<compile_context>
chip_gen: v7x
topology: tpu7x:2x2x1
jax: 0.10.0
libtpu: 0.0.40
codegen_flags: <defaults>
</compile_context>

<pallas_src>
import functools

import numpy as np
import jax
import jax.numpy as jnp
from jax.experimental import pallas as pl
from jax.experimental.pallas import tpu as pltpu

# ----------------------------- net params (small) -----------------------------
NUM_STEPS = 8
NUM_JOINTS = 8                        # n  (>= 3 so conv_out rows 0..2 exist)
FC_LAYERS = (32, 32, NUM_JOINTS)      # FC_layers[2] must equal n (channel concat)
C1 = 4                                # Conv_layers_RELU = [3, C1, (1, 1)]
C2 = 8                                # Conv_layers      = [C1, C2, (1, 1)]
OUTPUT_DIM = 3                        # m
BETA = 0.9
THRESHOLD = 1.0                       # snntorch Leaky default

F0, F1, F2 = FC_LAYERS
assert F2 == NUM_JOINTS, "FC_layers[2] must equal num_joints (channel concat)"
IN_DIM = 2 * NUM_JOINTS               # fc1 input width (2n = 16)
NC1 = NUM_JOINTS * C1                 # flat conv1-state width (n*C1 = 32)
TOTAL_W = 2 * IN_DIM                  # packed spike width: [spk_in | thdot | thdot2]

# ---------------------- packed parameter slab layout --------------------------
# One f32 slab holds every weight/bias so the kernel needs a single weight DMA.
# Every region starts on an 8-row (sublane) boundary; all widths <= 32 lanes.
def _align8(r):
    return (r + 7) // 8 * 8

SLAB_W = max(F0, F1, NC1)                       # 32
R_W1   = 0                                      # (IN_DIM, F0)   fc1
R_W2   = _align8(R_W1 + IN_DIM)                 # (F0, F1)       fc2
R_WTH  = _align8(R_W2 + F0)                     # (2n, NC1)      conv1 thdot|thdot2 (block-diag, stacked)
R_WSP3 = _align8(R_WTH + 2 * NUM_JOINTS)        # (n, NC1)       conv1 spk3 (block-diag)
R_W3   = _align8(R_WSP3 + F2)                   # (F1, F2)       fc3
R_WRD  = _align8(R_W3 + F1)                     # (NC1, n)       fused conv2 @ fc_A readout
R_BIAS = _align8(R_WRD + NC1)                   # 5 bias rows: b1, b2, bc1, b3, b_rd
SLAB_ROWS = _align8(R_BIAS + 5)                 # 144


# --------------------------------- kernel -------------------------------------
def snn_kernel(spk_ref, slab_ref, out_ref):
    """spk_ref: (T, Bt, 4n) packed [spk_in | thdot | thdot2]; slab_ref: weights."""
    T, Bt, _ = spk_ref.shape

    # ---- static parameter views from the packed slab (zero-cost slices) ----
    w1    = slab_ref[R_W1:R_W1 + IN_DIM, 0:F0]
    w2    = slab_ref[R_W2:R_W2 + F0, 0:F1]
    w3    = slab_ref[R_W3:R_W3 + F1, 0:F2]
    w_th  = slab_ref[R_WTH:R_WTH + 2 * NUM_JOINTS, 0:NC1]
    w_sp3 = slab_ref[R_WSP3:R_WSP3 + F2, 0:NC1]
    w_rd  = slab_ref[R_WRD:R_WRD + NC1, 0:NUM_JOINTS]
    # biases, hoisted & broadcast once (JAX does not CSE broadcast_in_dim).
    b1   = jnp.broadcast_to(slab_ref[R_BIAS + 0:R_BIAS + 1, 0:F0], (Bt, F0))
    b2   = jnp.broadcast_to(slab_ref[R_BIAS + 1:R_BIAS + 2, 0:F1], (Bt, F1))
    bc1  = jnp.broadcast_to(slab_ref[R_BIAS + 2:R_BIAS + 3, 0:NC1], (Bt, NC1))
    b3   = jnp.broadcast_to(slab_ref[R_BIAS + 3:R_BIAS + 4, 0:F2], (Bt, F2))
    b_rd = jnp.broadcast_to(slab_ref[R_BIAS + 4:R_BIAS + 5, 0:NUM_JOINTS],
                            (Bt, NUM_JOINTS))

    # ---- hoist the thdot/thdot2 half of conv1 OFF the recurrence chain ----
    # One big (T*Bt, 2n) x (2n, NC1) matmul instead of 2 tiny matmuls per step.
    th2d = spk_ref[:, :, IN_DIM:IN_DIM + 2 * NUM_JOINTS].reshape(
        T * Bt, 2 * NUM_JOINTS)
    th_contrib = jnp.dot(th2d, w_th, preferred_element_type=jnp.float32)  # (T*Bt, NC1)

    def lif(cur, mem_old):
        # snntorch Leaky, reset_mechanism="subtract": the reset uses the
        # PREVIOUS step's threshold crossing (mem_reset(mem) before update),
        # which matches the pure-JAX reference below.
        mem_new = (BETA * mem_old + cur
                   - jnp.where(mem_old > THRESHOLD, THRESHOLD, 0.0))
        spk = jnp.where(mem_new > THRESHOLD, 1.0, 0.0)
        return spk, mem_new

    mem1 = jnp.zeros((Bt, F0), jnp.float32)
    mem2 = jnp.zeros((Bt, F1), jnp.float32)
    mem3 = jnp.zeros((Bt, F2), jnp.float32)
    mem4 = jnp.zeros((Bt, NC1), jnp.float32)
    spk4 = mem4

    # Fully unrolled straight-line recurrence (T = 8): membrane state lives in
    # registers, every ref / th_contrib index is static.
    for t in range(T):
        x0 = spk_ref[t, :, 0:IN_DIM]                                     # (Bt, 2n)
        spk1, mem1 = lif(jnp.dot(x0, w1, preferred_element_type=jnp.float32) + b1, mem1)
        spk2, mem2 = lif(jnp.dot(spk1, w2, preferred_element_type=jnp.float32) + b2, mem2)
        spk3, mem3 = lif(jnp.dot(spk2, w3, preferred_element_type=jnp.float32) + b3, mem3)
        cur4 = (th_contrib[t * Bt:(t + 1) * Bt, :] + bc1
                + jnp.dot(spk3, w_sp3, preferred_element_type=jnp.float32))
        spk4, mem4 = lif(cur4, mem4)

    # Fused conv2 + fc_A readout on the LAST step's spk4 (only the last step's
    # conv_out feeds the torch return value).
    out_ref[...] = (jnp.dot(spk4, w_rd, preferred_element_type=jnp.float32) + b_rd)


# ------------------------ one-time parameter plumbing --------------------------
def prepare_params(p):
    """Pack all weights/biases into one (SLAB_ROWS, SLAB_W) f32 slab.

    The 1x1 convs (MaxPool(1) = identity) are recast as block-diagonal 2D
    matmuls over the flat (joint, channel) axis, and conv2 + fc_A are composed
    into a single readout matrix.  Runs once per parameter set.
    """
    N = NUM_JOINTS
    eye = jnp.eye(N, dtype=jnp.float32)
    w_th  = jnp.kron(eye, p["wc1"][0:1, :])                 # (N, NC1)
    w_th2 = jnp.kron(eye, p["wc1"][2:3, :])                 # (N, NC1)
    w_th_stack = jnp.concatenate([w_th, w_th2], axis=0)     # (2N, NC1)
    w_sp3 = jnp.kron(eye, p["wc1"][1:2, :])                 # (N, NC1)
    bc1_t = jnp.tile(p["bc1"], (1, N))                      # (1, NC1)
    w_c2  = jnp.kron(eye, p["wc2"])                         # (NC1, N*C2)
    bc2_t = jnp.tile(p["bc2"], (1, N))                      # (1, N*C2)
    w_a   = jnp.kron(eye, p["wa"].T)                        # (N*C2, N)
    w_rd  = w_c2 @ w_a                                      # (NC1, N) fused conv2+fc_A
    b_rd  = bc2_t @ w_a                                     # (1, N)

    slab = jnp.zeros((SLAB_ROWS, SLAB_W), jnp.float32)

    def put(s, row, arr):
        arr = jnp.asarray(arr, jnp.float32)
        return s.at[row:row + arr.shape[0], 0:arr.shape[1]].set(arr)

    slab = put(slab, R_W1, p["w1"])
    slab = put(slab, R_W2, p["w2"])
    slab = put(slab, R_WTH, w_th_stack)
    slab = put(slab, R_WSP3, w_sp3)
    slab = put(slab, R_W3, p["w3"])
    slab = put(slab, R_WRD, w_rd)
    slab = put(slab, R_BIAS + 0, p["b1"])
    slab = put(slab, R_BIAS + 1, p["b2"])
    slab = put(slab, R_BIAS + 2, bc1_t)
    slab = put(slab, R_BIAS + 3, p["b3"])
    slab = put(slab, R_BIAS + 4, b_rd)
    return slab


# --------------------------------- wrapper -------------------------------------
@functools.partial(jax.jit, static_argnames=("batch_tile",))
def snn_forward_pallas(spk_in, spk_thdot, spk_thdot2, slab, batch_tile=128):
    """spk_*: (T, B, features) rate-encoded spikes; slab: prepare_params output."""
    # Collapse the three spike-train DMAs into one (T, B, 4n) input.
    spk_all = jnp.concatenate([spk_in, spk_thdot, spk_thdot2], axis=-1)
    T, B, W = spk_all.shape

    # Batch-tile grid: 128 stacked rows per matmul saturates the v5e MXU and
    # gives v7x's two TensorCores a "parallel" axis to split.  Falls back to a
    # single tile when B does not divide evenly (grid of 1 == no tiling).
    bt = batch_tile if (B % batch_tile == 0) else B
    grid = (B // bt,)

    out = pl.pallas_call(
        snn_kernel,
        out_shape=jax.ShapeDtypeStruct((B, NUM_JOINTS), jnp.float32),
        grid_spec=pltpu.PrefetchScalarGridSpec(
            num_scalar_prefetch=0,
            grid=grid,
            in_specs=[
                pl.BlockSpec((T, bt, W), lambda b: (0, b, 0)),
                pl.BlockSpec((SLAB_ROWS, SLAB_W), lambda b: (0, 0)),
            ],
            out_specs=pl.BlockSpec((bt, NUM_JOINTS), lambda b: (b, 0)),
        ),
        compiler_params=pltpu.CompilerParams(
            dimension_semantics=("parallel",)),
    )(spk_all, slab)
    return out[:, :OUTPUT_DIM]


# ------------------------------ glue (plain JAX) -------------------------------
def rate_encode(key, data, num_steps, max_rate=100.0, min_rate=0.0, dt=0.001):
    """RateEncoder.encode semantics (stochasticity via jax.random)."""
    dmin = jnp.min(data, axis=1, keepdims=True)
    dmax = jnp.max(data, axis=1, keepdims=True)
    rng = dmax - dmin
    rng = jnp.where(rng == 0, jnp.ones_like(rng), rng)
    dnorm = (data - dmin) / rng
    rates = min_rate + (max_rate - min_rate) * dnorm
    prob = jnp.clip(rates * dt, 0.0, 1.0)
    u = jax.random.uniform(key, (num_steps,) + data.shape)
    return (u < prob[None]).astype(jnp.float32)


def init_params(key):
    def lin(k, fan_in, fan_out, bias=True):
        k1, k2 = jax.random.split(k)
        bound = 1.0 / np.sqrt(fan_in)
        w = jax.random.uniform(k1, (fan_in, fan_out), jnp.float32, -bound, bound)
        b = (jax.random.uniform(k2, (1, fan_out), jnp.float32, -bound, bound)
             if bias else None)
        return w, b

    ks = jax.random.split(key, 6)
    w1, b1 = lin(ks[0], 2 * NUM_JOINTS, F0)
    w2, b2 = lin(ks[1], F0, F1)
    w3, b3 = lin(ks[2], F1, F2)
    wc1, bc1 = lin(ks[3], 3, C1)        # torch conv1 weight (C1,3,1,1) -> (3,C1)
    wc2, bc2 = lin(ks[4], C1, C2)       # torch conv2 weight (C2,C1,1,1) -> (C1,C2)
    wa, _ = lin(ks[5], C2, 1, bias=False)
    wa = wa.T                            # (1, C2) : fc_A weight row
    return dict(w1=w1, b1=b1, w2=w2, b2=b2, w3=w3, b3=b3,
                wc1=wc1, bc1=bc1, wc2=wc2, bc2=bc2, wa=wa)


def snn_forward_ref(spk_in, thdot, thdot2, p):
    """Pure-JAX reference of the torch forward (Train=True path)."""
    B = spk_in.shape[1]
    mem1 = jnp.zeros((B, F0)); mem2 = jnp.zeros((B, F1))
    mem3 = jnp.zeros((B, F2)); mem4 = jnp.zeros((B, NUM_JOINTS, C1))

    def lif(cur, mem):
        reset = (mem > THRESHOLD).astype(jnp.float32)
        mem_new = BETA * mem + cur - reset * THRESHOLD
        return (mem_new > THRESHOLD).astype(jnp.float32), mem_new

    conv_out = None
    for t in range(NUM_STEPS):
        spk1, mem1 = lif(spk_in[t] @ p["w1"] + p["b1"], mem1)
        spk2, mem2 = lif(spk1 @ p["w2"] + p["b2"], mem2)
        spk3, mem3 = lif(spk2 @ p["w3"] + p["b3"], mem3)
        cur4 = (thdot[t][:, :, None] * p["wc1"][0]
                + spk3[:, :, None] * p["wc1"][1]
                + thdot2[t][:, :, None] * p["wc1"][2]
                + p["bc1"])
        spk4, mem4 = lif(cur4, mem4)
        conv_out = jnp.einsum("bnc,cd->bnd", spk4, p["wc2"]) + p["bc2"]
    # TODO(synk): dec_out (RateDecoder over spk_rec) is computed in the torch
    # module but unused in the returned value, so it is skipped here and in the kernel.
    return jnp.einsum("bmc,c->bm", conv_out[:, :OUTPUT_DIM, :], p["wa"][0])


if __name__ == "__main__":
    key = jax.random.PRNGKey(0)
    kx, kp, ke1, ke2, ke3 = jax.random.split(key, 5)

    n = NUM_JOINTS
    # 256 stacked sequences (still only a few hundred KiB): gives every matmul
    # >=128 MXU rows and exercises the 2-tile "parallel" batch grid.
    batch = 256
    x = jax.random.normal(kx, (batch, 3 * n), jnp.float32)
    params = init_params(kp)
    slab = prepare_params(params)        # one-time weight plumbing, outside the jitted call

    spk_in = rate_encode(ke1, x[:, :2 * n], NUM_STEPS)        # (T, B, 2n)
    spk_thdot = rate_encode(ke2, x[:, n:2 * n], NUM_STEPS)    # (T, B, n)
    spk_thdot2 = rate_encode(ke3, x[:, 2 * n:], NUM_STEPS)    # (T, B, n)

    out = snn_forward_pallas(spk_in, spk_thdot, spk_thdot2, slab)
    out = jax.block_until_ready(out)

    ref = snn_forward_ref(spk_in, spk_thdot, spk_thdot2, params)
    np.testing.assert_allclose(np.asarray(out), np.asarray(ref), rtol=1e-5, atol=1e-5)
    assert out.shape == (batch, OUTPUT_DIM)
    print("KERNEL_OK")
</pallas_src>

<mosaic_0001>
module attributes {stable_mosaic.version = 11 : i64} {
  func.func @snn_kernel(%arg0: i32, %arg1: memref<8x128x32xf32, #tpu.memory_space<vmem>>, %arg2: memref<144x32xf32, #tpu.memory_space<vmem>>, %arg3: memref<128x8xf32, #tpu.memory_space<vmem>>) attributes {dimension_semantics = [#tpu.dimension_semantics<parallel>], iteration_bounds = array<i64: 2>, scalar_prefetch = 0 : i64, scratch_operands = 0 : i64, tpu.core_type = #tpu.core_type<tc>, window_params = [{transform_indices = @transform_0, window_bounds = array<i64: 8, 128, 32>}, {pipeline_mode = #tpu.pipeline_mode<synchronous>, transform_indices = @transform_1, window_bounds = array<i64: 144, 32>}, {transform_indices = @transform_2, window_bounds = array<i64: 128, 8>}]} {
    %c0 = arith.constant 0 : index
    %c0_0 = arith.constant 0 : index
    %0 = vector.load %arg2[%c0, %c0_0] : memref<144x32xf32, #tpu.memory_space<vmem>>, vector<16x32xf32>
    %c16 = arith.constant 16 : index
    %c0_1 = arith.constant 0 : index
    %1 = vector.load %arg2[%c16, %c0_1] : memref<144x32xf32, #tpu.memory_space<vmem>>, vector<32x32xf32>
    %c72 = arith.constant 72 : index
    %c0_2 = arith.constant 0 : index
    %2 = vector.load %arg2[%c72, %c0_2] : memref<144x32xf32, #tpu.memory_space<vmem>>, vector<32x8xf32>
    %c48 = arith.constant 48 : index
    %c0_3 = arith.constant 0 : index
    %3 = vector.load %arg2[%c48, %c0_3] : memref<144x32xf32, #tpu.memory_space<vmem>>, vector<16x32xf32>
    %c64 = arith.constant 64 : index
    %c0_4 = arith.constant 0 : index
    %4 = vector.load %arg2[%c64, %c0_4] : memref<144x32xf32, #tpu.memory_space<vmem>>, vector<8x32xf32>
    %c104 = arith.constant 104 : index
    %c0_5 = arith.constant 0 : index
    %5 = vector.load %arg2[%c104, %c0_5] : memref<144x32xf32, #tpu.memory_space<vmem>>, vector<32x8xf32>
    %c136 = arith.constant 136 : index
    %c0_6 = arith.constant 0 : index
    %6 = vector.load %arg2[%c136, %c0_6] : memref<144x32xf32, #tpu.memory_space<vmem>>, vector<1x32xf32>
    %7 = vector.shape_cast %6 : vector<1x32xf32> to vector<1x32xf32>
    %8 = vector.broadcast %7 : vector<1x32xf32> to vector<128x32xf32>
    %c137 = arith.constant 137 : index
    %c0_7 = arith.constant 0 : index
    %9 = vector.load %arg2[%c137, %c0_7] : memref<144x32xf32, #tpu.memory_space<vmem>>, vector<1x32xf32>
    %10 = vector.shape_cast %9 : vector<1x32xf32> to vector<1x32xf32>
    %11 = vector.broadcast %10 : vector<1x32xf32> to vector<128x32xf32>
    %c138 = arith.constant 138 : index
    %c0_8 = arith.constant 0 : index
    %12 = vector.load %arg2[%c138, %c0_8] : memref<144x32xf32, #tpu.memory_space<vmem>>, vector<1x32xf32>
    %13 = vector.shape_cast %12 : vector<1x32xf32> to vector<1x32xf32>
    %14 = vector.broadcast %13 : vector<1x32xf32> to vector<128x32xf32>
    %c139 = arith.constant 139 : index
    %c0_9 = arith.constant 0 : index
    %15 = vector.load %arg2[%c139, %c0_9] : memref<144x32xf32, #tpu.memory_space<vmem>>, vector<1x8xf32>
    %16 = vector.shape_cast %15 : vector<1x8xf32> to vector<1x8xf32>
    %17 = vector.broadcast %16 : vector<1x8xf32> to vector<128x8xf32>
    %c140 = arith.constant 140 : index
    %c0_10 = arith.constant 0 : index
    %18 = vector.load %arg2[%c140, %c0_10] : memref<144x32xf32, #tpu.memory_space<vmem>>, vector<1x8xf32>
    %19 = vector.shape_cast %18 : vector<1x8xf32> to vector<1x8xf32>
    %20 = vector.broadcast %19 : vector<1x8xf32> to vector<128x8xf32>
    %c0_11 = arith.constant 0 : index
    %c0_12 = arith.constant 0 : index
    %c16_13 = arith.constant 16 : index
    %21 = vector.load %arg1[%c0_11, %c0_12, %c16_13] : memref<8x128x32xf32, #tpu.memory_space<vmem>>, vector<8x128x16xf32>
    %22 = vector.shape_cast %21 : vector<8x128x16xf32> to vector<1024x16xf32>
    %cst = arith.constant dense<0.000000e+00> : vector<1024x32xf32>
    %23 = tpu.matmul %22, %3, %cst {dimension_numbers = #tpu.dot_dimension_numbers<[1], [0], [0], [1], [0, 0, 1, 1], [], []>} : vector<1024x16xf32>, vector<16x32xf32>, vector<1024x32xf32> -> vector<1024x32xf32>
    %cst_14 = arith.constant 0.000000e+00 : f32
    %24 = vector.broadcast %cst_14 : f32 to vector<128x32xf32>
    %cst_15 = arith.constant 0.000000e+00 : f32
    %25 = vector.broadcast %cst_15 : f32 to vector<128x32xf32>
    %cst_16 = arith.constant 0.000000e+00 : f32
    %26 = vector.broadcast %cst_16 : f32 to vector<128x8xf32>
    %cst_17 = arith.constant 0.000000e+00 : f32
    %27 = vector.broadcast %cst_17 : f32 to vector<128x32xf32>
    %c0_18 = arith.constant 0 : index
    %c0_19 = arith.constant 0 : index
    %c0_20 = arith.constant 0 : index
    %28 = vector.load %arg1[%c0_18, %c0_19, %c0_20] : memref<8x128x32xf32, #tpu.memory_space<vmem>>, vector<1x128x16xf32>
    %29 = vector.shape_cast %28 : vector<1x128x16xf32> to vector<128x16xf32>
    %cst_21 = arith.constant dense<0.000000e+00> : vector<128x32xf32>
    %30 = tpu.matmul %29, %0, %cst_21 {dimension_numbers = #tpu.dot_dimension_numbers<[1], [0], [0], [1], [0, 0, 1, 1], [], []>} : vector<128x16xf32>, vector<16x32xf32>, vector<128x32xf32> -> vector<128x32xf32>
    %31 = arith.addf %30, %8 : vector<128x32xf32>
    %cst_22 = arith.constant 0.899999976 : f32
    %32 = vector.broadcast %cst_22 : f32 to vector<128x32xf32>
    %33 = arith.mulf %32, %24 : vector<128x32xf32>
    %34 = arith.addf %33, %31 : vector<128x32xf32>
    %cst_23 = arith.constant 1.000000e+00 : f32
    %35 = vector.broadcast %cst_23 : f32 to vector<128x32xf32>
    %36 = arith.cmpf ogt, %24, %35 : vector<128x32xf32>
    %cst_24 = arith.constant 1.000000e+00 : f32
    %cst_25 = arith.constant 0.000000e+00 : f32
    %37 = vector.broadcast %cst_24 : f32 to vector<128x32xf32>
    %38 = vector.broadcast %cst_25 : f32 to vector<128x32xf32>
    %39 = arith.select %36, %37, %38 : vector<128x32xi1>, vector<128x32xf32>
    %40 = arith.subf %34, %39 : vector<128x32xf32>
    %cst_26 = arith.constant 1.000000e+00 : f32
    %41 = vector.broadcast %cst_26 : f32 to vector<128x32xf32>
    %42 = arith.cmpf ogt, %40, %41 : vector<128x32xf32>
    %cst_27 = arith.constant 1.000000e+00 : f32
    %cst_28 = arith.constant 0.000000e+00 : f32
    %43 = vector.broadcast %cst_27 : f32 to vector<128x32xf32>
    %44 = vector.broadcast %cst_28 : f32 to vector<128x32xf32>
    %45 = arith.select %42, %43, %44 : vector<128x32xi1>, vector<128x32xf32>
    %cst_29 = arith.constant dense<0.000000e+00> : vector<128x32xf32>
    %46 = tpu.matmul %45, %1, %cst_29 {dimension_numbers = #tpu.dot_dimension_numbers<[1], [0], [0], [1], [0, 0, 1, 1], [], []>} : vector<128x32xf32>, vector<32x32xf32>, vector<128x32xf32> -> vector<128x32xf32>
    %47 = arith.addf %46, %11 : vector<128x32xf32>
    %cst_30 = arith.constant 0.899999976 : f32
    %48 = vector.broadcast %cst_30 : f32 to vector<128x32xf32>
    %49 = arith.mulf %48, %25 : vector<128x32xf32>
    %50 = arith.addf %49, %47 : vector<128x32xf32>
    %cst_31 = arith.constant 1.000000e+00 : f32
    %51 = vector.broadcast %cst_31 : f32 to vector<128x32xf32>
    %52 = arith.cmpf ogt, %25, %51 : vector<128x32xf32>
    %cst_32 = arith.constant 1.000000e+00 : f32
    %cst_33 = arith.constant 0.000000e+00 : f32
    %53 = vector.broadcast %cst_32 : f32 to vector<128x32xf32>
    %54 = vector.broadcast %cst_33 : f32 to vector<128x32xf32>
    %55 = arith.select %52, %53, %54 : vector<128x32xi1>, vector<128x32xf32>
    %56 = arith.subf %50, %55 : vector<128x32xf32>
    %cst_34 = arith.constant 1.000000e+00 : f32
    %57 = vector.broadcast %cst_34 : f32 to vector<128x32xf32>
    %58 = arith.cmpf ogt, %56, %57 : vector<128x32xf32>
    %cst_35 = arith.constant 1.000000e+00 : f32
    %cst_36 = arith.constant 0.000000e+00 : f32
    %59 = vector.broadcast %cst_35 : f32 to vector<128x32xf32>
    %60 = vector.broadcast %cst_36 : f32 to vector<128x32xf32>
    %61 = arith.select %58, %59, %60 : vector<128x32xi1>, vector<128x32xf32>
    %cst_37 = arith.constant dense<0.000000e+00> : vector<128x8xf32>
    %62 = tpu.matmul %61, %2, %cst_37 {dimension_numbers = #tpu.dot_dimension_numbers<[1], [0], [0], [1], [0, 0, 1, 1], [], []>} : vector<128x32xf32>, vector<32x8xf32>, vector<128x8xf32> -> vector<128x8xf32>
    %63 = arith.addf %62, %17 : vector<128x8xf32>
    %cst_38 = arith.constant 0.899999976 : f32
    %64 = vector.broadcast %cst_38 : f32 to vector<128x8xf32>
    %65 = arith.mulf %64, %26 : vector<128x8xf32>
    %66 = arith.addf %65, %63 : vector<128x8xf32>
    %cst_39 = arith.constant 1.000000e+00 : f32
    %67 = vector.broadcast %cst_39 : f32 to vector<128x8xf32>
    %68 = arith.cmpf ogt, %26, %67 : vector<128x8xf32>
    %cst_40 = arith.constant 1.000000e+00 : f32
    %cst_41 = arith.constant 0.000000e+00 : f32
    %69 = vector.broadcast %cst_40 : f32 to vector<128x8xf32>
    %70 = vector.broadcast %cst_41 : f32 to vector<128x8xf32>
    %71 = arith.select %68, %69, %70 : vector<128x8xi1>, vector<128x8xf32>
    %72 = arith.subf %66, %71 : vector<128x8xf32>
    %cst_42 = arith.constant 1.000000e+00 : f32
    %73 = vector.broadcast %cst_42 : f32 to vector<128x8xf32>
    %74 = arith.cmpf ogt, %72, %73 : vector<128x8xf32>
    %cst_43 = arith.constant 1.000000e+00 : f32
    %cst_44 = arith.constant 0.000000e+00 : f32
    %75 = vector.broadcast %cst_43 : f32 to vector<128x8xf32>
    %76 = vector.broadcast %cst_44 : f32 to vector<128x8xf32>
    %77 = arith.select %74, %75, %76 : vector<128x8xi1>, vector<128x8xf32>
    %78 = vector.extract_strided_slice %23 {offsets = [0, 0], sizes = [128, 32], strides = [1, 1]} : vector<1024x32xf32> to vector<128x32xf32>
    %79 = arith.addf %78, %14 : vector<128x32xf32>
    %cst_45 = arith.constant dense<0.000000e+00> : vector<128x32xf32>
    %80 = tpu.matmul %77, %4, %cst_45 {dimension_numbers = #tpu.dot_dimension_numbers<[1], [0], [0], [1], [0, 0, 1, 1], [], []>} : vector<128x8xf32>, vector<8x32xf32>, vector<128x32xf32> -> vector<128x32xf32>
    %81 = arith.addf %79, %80 : vector<128x32xf32>
    %cst_46 = arith.constant 0.899999976 : f32
    %82 = vector.broadcast %cst_46 : f32 to vector<128x32xf32>
    %83 = arith.mulf %82, %27 : vector<128x32xf32>
    %84 = arith.addf %83, %81 : vector<128x32xf32>
    %cst_47 = arith.constant 1.000000e+00 : f32
    %85 = vector.broadcast %cst_47 : f32 to vector<128x32xf32>
    %86 = arith.cmpf ogt, %27, %85 : vector<128x32xf32>
    %cst_48 = arith.constant 1.000000e+00 : f32
    %cst_49 = arith.constant 0.000000e+00 : f32
    %87 = vector.broadcast %cst_48 : f32 to vector<128x32xf32>
    %88 = vector.broadcast %cst_49 : f32 to vector<128x32xf32>
    %89 = arith.select %86, %87, %88 : vector<128x32xi1>, vector<128x32xf32>
    %90 = arith.subf %84, %89 : vector<128x32xf32>
    %c1 = arith.constant 1 : index
    %c0_50 = arith.constant 0 : index
    %c0_51 = arith.constant 0 : index
    %91 = vector.load %arg1[%c1, %c0_50, %c0_51] : memref<8x128x32xf32, #tpu.memory_space<vmem>>, vector<1x128x16xf32>
    %92 = vector.shape_cast %91 : vector<1x128x16xf32> to vector<128x16xf32>
    %cst_52 = arith.constant dense<0.000000e+00> : vector<128x32xf32>
    %93 = tpu.matmul %92, %0, %cst_52 {dimension_numbers = #tpu.dot_dimension_numbers<[1], [0], [0], [1], [0, 0, 1, 1], [], []>} : vector<128x16xf32>, vector<16x32xf32>, vector<128x32xf32> -> vector<128x32xf32>
    %94 = arith.addf %93, %8 : vector<128x32xf32>
    %cst_53 = arith.constant 0.899999976 : f32
    %95 = vector.broadcast %cst_53 : f32 to vector<128x32xf32>
    %96 = arith.mulf %95, %40 : vector<128x32xf32>
    %97 = arith.addf %96, %94 : vector<128x32xf32>
    %cst_54 = arith.constant 1.000000e+00 : f32
    %98 = vector.broadcast %cst_54 : f32 to vector<128x32xf32>
    %99 = arith.cmpf ogt, %40, %98 : vector<128x32xf32>
    %cst_55 = arith.constant 1.000000e+00 : f32
    %cst_56 = arith.constant 0.000000e+00 : f32
    %100 = vector.broadcast %cst_55 : f32 to vector<128x32xf32>
    %101 = vector.broadcast %cst_56 : f32 to vector<128x32xf32>
    %102 = arith.select %99, %100, %101 : vector<128x32xi1>, vector<128x32xf32>
    %103 = arith.subf %97, %102 : vector<128x32xf32>
    %cst_57 = arith.constant 1.000000e+00 : f32
    %104 = vector.broadcast %cst_57 : f32 to vector<128x32xf32>
    %105 = arith.cmpf ogt, %103, %104 : vector<128x32xf32>
    %cst_58 = arith.constant 1.000000e+00 : f32
    %cst_59 = arith.constant 0.000000e+00 : f32
    %106 = vector.broadcast %cst_58 : f32 to vector<128x32xf32>
    %107 = vector.broadcast %cst_59 : f32 to vector<128x32xf32>
    %108 = arith.select %105, %106, %107 : vector<128x32xi1>, vector<128x32xf32>
    %cst_60 = arith.constant dense<0.000000e+00> : vector<128x32xf32>
    %109 = tpu.matmul %108, %1, %cst_60 {dimension_numbers = #tpu.dot_dimension_numbers<[1], [0], [0], [1], [0, 0, 1, 1], [], []>} : vector<128x32xf32>, vector<32x32xf32>, vector<128x32xf32> -> vector<128x32xf32>
    %110 = arith.addf %109, %11 : vector<128x32xf32>
    %cst_61 = arith.constant 0.899999976 : f32
    %111 = vector.broadcast %cst_61 : f32 to vector<128x32xf32>
    %112 = arith.mulf %111, %56 : vector<128x32xf32>
    %113 = arith.addf %112, %110 : vector<128x32xf32>
    %cst_62 = arith.constant 1.000000e+00 : f32
    %114 = vector.broadcast %cst_62 : f32 to vector<128x32xf32>
    %115 = arith.cmpf ogt, %56, %114 : vector<128x32xf32>
    %cst_63 = arith.constant 1.000000e+00 : f32
    %cst_64 = arith.constant 0.000000e+00 : f32
    %116 = vector.broadcast %cst_63 : f32 to vector<128x32xf32>
    %117 = vector.broadcast %cst_64 : f32 to vector<128x32xf32>
    %118 = arith.select %115, %116, %117 : vector<128x32xi1>, vector<128x32xf32>
    %119 = arith.subf %113, %118 : vector<128x32xf32>
    %cst_65 = arith.constant 1.000000e+00 : f32
    %120 = vector.broadcast %cst_65 : f32 to vector<128x32xf32>
    %121 = arith.cmpf ogt, %119, %120 : vector<128x32xf32>
    %cst_66 = arith.constant 1.000000e+00 : f32
    %cst_67 = arith.constant 0.000000e+00 : f32
    %122 = vector.broadcast %cst_66 : f32 to vector<128x32xf32>
    %123 = vector.broadcast %cst_67 : f32 to vector<128x32xf32>
    %124 = arith.select %121, %122, %123 : vector<128x32xi1>, vector<128x32xf32>
    %cst_68 = arith.constant dense<0.000000e+00> : vector<128x8xf32>
    %125 = tpu.matmul %124, %2, %cst_68 {dimension_numbers = #tpu.dot_dimension_numbers<[1], [0], [0], [1], [0, 0, 1, 1], [], []>} : vector<128x32xf32>, vector<32x8xf32>, vector<128x8xf32> -> vector<128x8xf32>
    %126 = arith.addf %125, %17 : vector<128x8xf32>
    %cst_69 = arith.constant 0.899999976 : f32
    %127 = vector.broadcast %cst_69 : f32 to vector<128x8xf32>
    %128 = arith.mulf %127, %72 : vector<128x8xf32>
    %129 = arith.addf %128, %126 : vector<128x8xf32>
    %cst_70 = arith.constant 1.000000e+00 : f32
    %130 = vector.broadcast %cst_70 : f32 to vector<128x8xf32>
    %131 = arith.cmpf ogt, %72, %130 : vector<128x8xf32>
    %cst_71 = arith.constant 1.000000e+00 : f32
    %cst_72 = arith.constant 0.000000e+00 : f32
    %132 = vector.broadcast %cst_71 : f32 to vector<128x8xf32>
    %133 = vector.broadcast %cst_72 : f32 to vector<128x8xf32>
    %134 = arith.select %131, %132, %133 : vector<128x8xi1>, vector<128x8xf32>
    %135 = arith.subf %129, %134 : vector<128x8xf32>
    %cst_73 = arith.constant 1.000000e+00 : f32
    %136 = vector.broadcast %cst_73 : f32 to vector<128x8xf32>
    %137 = arith.cmpf ogt, %135, %136 : vector<128x8xf32>
    %cst_74 = arith.constant 1.000000e+00 : f32
    %cst_75 = arith.constant 0.000000e+00 : f32
    %138 = vector.broadcast %cst_74 : f32 to vector<128x8xf32>
    %139 = vector.broadcast %cst_75 : f32 to vector<128x8xf32>
    %140 = arith.select %137, %138, %139 : vector<128x8xi1>, vector<128x8xf32>
    %141 = vector.extract_strided_slice %23 {offsets = [128, 0], sizes = [128, 32], strides = [1, 1]} : vector<1024x32xf32> to vector<128x32xf32>
    %142 = arith.addf %141, %14 : vector<128x32xf32>
    %cst_76 = arith.constant dense<0.000000e+00> : vector<128x32xf32>
    %143 = tpu.matmul %140, %4, %cst_76 {dimension_numbers = #tpu.dot_dimension_numbers<[1], [0], [0], [1], [0, 0, 1, 1], [], []>} : vector<128x8xf32>, vector<8x32xf32>, vector<128x32xf32> -> vector<128x32xf32>
    %144 = arith.addf %142, %143 : vector<128x32xf32>
    %cst_77 = arith.constant 0.899999976 : f32
    %145 = vector.broadcast %cst_77 : f32 to vector<128x32xf32>
    %146 = arith.mulf %145, %90 : vector<128x32xf32>
    %147 = arith.addf %146, %144 : vector<128x32xf32>
    %cst_78 = arith.constant 1.000000e+00 : f32
    %148 = vector.broadcast %cst_78 : f32 to vector<128x32xf32>
    %149 = arith.cmpf ogt, %90, %148 : vector<128x32xf32>
    %cst_79 = arith.constant 1.000000e+00 : f32
    %cst_80 = arith.constant 0.000000e+00 : f32
    %150 = vector.broadcast %cst_79 : f32 to vector<128x32xf32>
    %151 = vector.broadcast %cst_80 : f32 to vector<128x32xf32>
    %152 = arith.select %149, %150, %151 : vector<128x32xi1>, vector<128x32xf32>
    %153 = arith.subf %147, %152 : vector<128x32xf32>
    %c2 = arith.constant 2 : index
    %c0_81 = arith.constant 0 : index
    %c0_82 = arith.constant 0 : index
    %154 = vector.load %arg1[%c2, %c0_81, %c0_82] : memref<8x128x32xf32, #tpu.memory_space<vmem>>, vector<1x128x16xf32>
    %155 = vector.shape_cast %154 : vector<1x128x16xf32> to vector<128x16xf32>
    %cst_83 = arith.constant dense<0.000000e+00> : vector<128x32xf32>
    %156 = tpu.matmul %155, %0, %cst_83 {dimension_numbers = #tpu.dot_dimension_numbers<[1], [0], [0], [1], [0, 0, 1, 1], [], []>} : vector<128x16xf32>, vector<16x32xf32>, vector<128x32xf32> -> vector<128x32xf32>
    %157 = arith.addf %156, %8 : vector<128x32xf32>
    %cst_84 = arith.constant 0.899999976 : f32
    %158 = vector.broadcast %cst_84 : f32 to vector<128x32xf32>
    %159 = arith.mulf %158, %103 : vector<128x32xf32>
    %160 = arith.addf %159, %157 : vector<128x32xf32>
    %cst_85 = arith.constant 1.000000e+00 : f32
    %161 = vector.broadcast %cst_85 : f32 to vector<128x32xf32>
    %162 = arith.cmpf ogt, %103, %161 : vector<128x32xf32>
    %cst_86 = arith.constant 1.000000e+00 : f32
    %cst_87 = arith.constant 0.000000e+00 : f32
    %163 = vector.broadcast %cst_86 : f32 to vector<128x32xf32>
    %164 = vector.broadcast %cst_87 : f32 to vector<128x32xf32>
    %165 = arith.select %162, %163, %164 : vector<128x32xi1>, vector<128x32xf32>
    %166 = arith.subf %160, %165 : vector<128x32xf32>
    %cst_88 = arith.constant 1.000000e+00 : f32
    %167 = vector.broadcast %cst_88 : f32 to vector<128x32xf32>
    %168 = arith.cmpf ogt, %166, %167 : vector<128x32xf32>
    %cst_89 = arith.constant 1.000000e+00 : f32
    %cst_90 = arith.constant 0.000000e+00 : f32
    %169 = vector.broadcast %cst_89 : f32 to vector<128x32xf32>
    %170 = vector.broadcast %cst_90 : f32 to vector<128x32xf32>
    %171 = arith.select %168, %169, %170 : vector<128x32xi1>, vector<128x32xf32>
    %cst_91 = arith.constant dense<0.000000e+00> : vector<128x32xf32>
    %172 = tpu.matmul %171, %1, %cst_91 {dimension_numbers = #tpu.dot_dimension_numbers<[1], [0], [0], [1], [0, 0, 1, 1], [], []>} : vector<128x32xf32>, vector<32x32xf32>, vector<128x32xf32> -> vector<128x32xf32>
    %173 = arith.addf %172, %11 : vector<128x32xf32>
    %cst_92 = arith.constant 0.899999976 : f32
    %174 = vector.broadcast %cst_92 : f32 to vector<128x32xf32>
    %175 = arith.mulf %174, %119 : vector<128x32xf32>
    %176 = arith.addf %175, %173 : vector<128x32xf32>
    %cst_93 = arith.constant 1.000000e+00 : f32
    %177 = vector.broadcast %cst_93 : f32 to vector<128x32xf32>
    %178 = arith.cmpf ogt, %119, %177 : vector<128x32xf32>
    %cst_94 = arith.constant 1.000000e+00 : f32
    %cst_95 = arith.constant 0.000000e+00 : f32
    %179 = vector.broadcast %cst_94 : f32 to vector<128x32xf32>
    %180 = vector.broadcast %cst_95 : f32 to vector<128x32xf32>
    %181 = arith.select %178, %179, %180 : vector<128x32xi1>, vector<128x32xf32>
    %182 = arith.subf %176, %181 : vector<128x32xf32>
    %cst_96 = arith.constant 1.000000e+00 : f32
    %183 = vector.broadcast %cst_96 : f32 to vector<128x32xf32>
    %184 = arith.cmpf ogt, %182, %183 : vector<128x32xf32>
    %cst_97 = arith.constant 1.000000e+00 : f32
    %cst_98 = arith.constant 0.000000e+00 : f32
    %185 = vector.broadcast %cst_97 : f32 to vector<128x32xf32>
    %186 = vector.broadcast %cst_98 : f32 to vector<128x32xf32>
    %187 = arith.select %184, %185, %186 : vector<128x32xi1>, vector<128x32xf32>
    %cst_99 = arith.constant dense<0.000000e+00> : vector<128x8xf32>
    %188 = tpu.matmul %187, %2, %cst_99 {dimension_numbers = #tpu.dot_dimension_numbers<[1], [0], [0], [1], [0, 0, 1, 1], [], []>} : vector<128x32xf32>, vector<32x8xf32>, vector<128x8xf32> -> vector<128x8xf32>
    %189 = arith.addf %188, %17 : vector<128x8xf32>
    %cst_100 = arith.constant 0.899999976 : f32
    %190 = vector.broadcast %cst_100 : f32 to vector<128x8xf32>
    %191 = arith.mulf %190, %135 : vector<128x8xf32>
    %192 = arith.addf %191, %189 : vector<128x8xf32>
    %cst_101 = arith.constant 1.000000e+00 : f32
    %193 = vector.broadcast %cst_101 : f32 to vector<128x8xf32>
    %194 = arith.cmpf ogt, %135, %193 : vector<128x8xf32>
    %cst_102 = arith.constant 1.000000e+00 : f32
    %cst_103 = arith.constant 0.000000e+00 : f32
    %195 = vector.broadcast %cst_102 : f32 to vector<128x8xf32>
    %196 = vector.broadcast %cst_103 : f32 to vector<128x8xf32>
    %197 = arith.select %194, %195, %196 : vector<128x8xi1>, vector<128x8xf32>
    %198 = arith.subf %192, %197 : vector<128x8xf32>
    %cst_104 = arith.constant 1.000000e+00 : f32
    %199 = vector.broadcast %cst_104 : f32 to vector<128x8xf32>
    %200 = arith.cmpf ogt, %198, %199 : vector<128x8xf32>
    %cst_105 = arith.constant 1.000000e+00 : f32
    %cst_106 = arith.constant 0.000000e+00 : f32
    %201 = vector.broadcast %cst_105 : f32 to vector<128x8xf32>
    %202 = vector.broadcast %cst_106 : f32 to vector<128x8xf32>
    %203 = arith.select %200, %201, %202 : vector<128x8xi1>, vector<128x8xf32>
    %204 = vector.extract_strided_slice %23 {offsets = [256, 0], sizes = [128, 32], strides = [1, 1]} : vector<1024x32xf32> to vector<128x32xf32>
    %205 = arith.addf %204, %14 : vector<128x32xf32>
    %cst_107 = arith.constant dense<0.000000e+00> : vector<128x32xf32>
    %206 = tpu.matmul %203, %4, %cst_107 {dimension_numbers = #tpu.dot_dimension_numbers<[1], [0], [0], [1], [0, 0, 1, 1], [], []>} : vector<128x8xf32>, vector<8x32xf32>, vector<128x32xf32> -> vector<128x32xf32>
    %207 = arith.addf %205, %206 : vector<128x32xf32>
    %cst_108 = arith.constant 0.899999976 : f32
    %208 = vector.broadcast %cst_108 : f32 to vector<128x32xf32>
    %209 = arith.mulf %208, %153 : vector<128x32xf32>
    %210 = arith.addf %209, %207 : vector<128x32xf32>
    %cst_109 = arith.constant 1.000000e+00 : f32
    %211 = vector.broadcast %cst_109 : f32 to vector<128x32xf32>
    %212 = arith.cmpf ogt, %153, %211 : vector<128x32xf32>
    %cst_110 = arith.constant 1.000000e+00 : f32
    %cst_111 = arith.constant 0.000000e+00 : f32
    %213 = vector.broadcast %cst_110 : f32 to vector<128x32xf32>
    %214 = vector.broadcast %cst_111 : f32 to vector<128x32xf32>
    %215 = arith.select %212, %213, %214 : vector<128x32xi1>, vector<128x32xf32>
    %216 = arith.subf %210, %215 : vector<128x32xf32>
    %c3 = arith.constant 3 : index
    %c0_112 = arith.constant 0 : index
    %c0_113 = arith.constant 0 : index
    %217 = vector.load %arg1[%c3, %c0_112, %c0_113] : memref<8x128x32xf32, #tpu.memory_space<vmem>>, vector<1x128x16xf32>
    %218 = vector.shape_cast %217 : vector<1x128x16xf32> to vector<128x16xf32>
    %cst_114 = arith.constant dense<0.000000e+00> : vector<128x32xf32>
    %219 = tpu.matmul %218, %0, %cst_114 {dimension_numbers = #tpu.dot_dimension_numbers<[1], [0], [0], [1], [0, 0, 1, 1], [], []>} : vector<128x16xf32>, vector<16x32xf32>, vector<128x32xf32> -> vector<128x32xf32>
    %220 = arith.addf %219, %8 : vector<128x32xf32>
    %cst_115 = arith.constant 0.899999976 : f32
    %221 = vector.broadcast %cst_115 : f32 to vector<128x32xf32>
    %222 = arith.mulf %221, %166 : vector<128x32xf32>
    %223 = arith.addf %222, %220 : vector<128x32xf32>
    %cst_116 = arith.constant 1.000000e+00 : f32
    %224 = vector.broadcast %cst_116 : f32 to vector<128x32xf32>
    %225 = arith.cmpf ogt, %166, %224 : vector<128x32xf32>
    %cst_117 = arith.constant 1.000000e+00 : f32
    %cst_118 = arith.constant 0.000000e+00 : f32
    %226 = vector.broadcast %cst_117 : f32 to vector<128x32xf32>
    %227 = vector.broadcast %cst_118 : f32 to vector<128x32xf32>
    %228 = arith.select %225, %226, %227 : vector<128x32xi1>, vector<128x32xf32>
    %229 = arith.subf %223, %228 : vector<128x32xf32>
    %cst_119 = arith.constant 1.000000e+00 : f32
    %230 = vector.broadcast %cst_119 : f32 to vector<128x32xf32>
    %231 = arith.cmpf ogt, %229, %230 : vector<128x32xf32>
    %cst_120 = arith.constant 1.000000e+00 : f32
    %cst_121 = arith.constant 0.000000e+00 : f32
    %232 = vector.broadcast %cst_120 : f32 to vector<128x32xf32>
    %233 = vector.broadcast %cst_121 : f32 to vector<128x32xf32>
    %234 = arith.select %231, %232, %233 : vector<128x32xi1>, vector<128x32xf32>
    %cst_122 = arith.constant dense<0.000000e+00> : vector<128x32xf32>
    %235 = tpu.matmul %234, %1, %cst_122 {dimension_numbers = #tpu.dot_dimension_numbers<[1], [0], [0], [1], [0, 0, 1, 1], [], []>} : vector<128x32xf32>, vector<32x32xf32>, vector<128x32xf32> -> vector<128x32xf32>
    %236 = arith.addf %235, %11 : vector<128x32xf32>
    %cst_123 = arith.constant 0.899999976 : f32
    %237 = vector.broadcast %cst_123 : f32 to vector<128x32xf32>
    %238 = arith.mulf %237, %182 : vector<128x32xf32>
    %239 = arith.addf %238, %236 : vector<128x32xf32>
    %cst_124 = arith.constant 1.000000e+00 : f32
    %240 = vector.broadcast %cst_124 : f32 to vector<128x32xf32>
    %241 = arith.cmpf ogt, %182, %240 : vector<128x32xf32>
    %cst_125 = arith.constant 1.000000e+00 : f32
    %cst_126 = arith.constant 0.000000e+00 : f32
    %242 = vector.broadcast %cst_125 : f32 to vector<128x32xf32>
    %243 = vector.broadcast %cst_126 : f32 to vector<128x32xf32>
    %244 = arith.select %241, %242, %243 : vector<128x32xi1>, vector<128x32xf32>
    %245 = arith.subf %239, %244 : vector<128x32xf32>
    %cst_127 = arith.constant 1.000000e+00 : f32
    %246 = vector.broadcast %cst_127 : f32 to vector<128x32xf32>
    %247 = arith.cmpf ogt, %245, %246 : vector<128x32xf32>
    %cst_128 = arith.constant 1.000000e+00 : f32
    %cst_129 = arith.constant 0.000000e+00 : f32
    %248 = vector.broadcast %cst_128 : f32 to vector<128x32xf32>
    %249 = vector.broadcast %cst_129 : f32 to vector<128x32xf32>
    %250 = arith.select %247, %248, %249 : vector<128x32xi1>, vector<128x32xf32>
    %cst_130 = arith.constant dense<0.000000e+00> : vector<128x8xf32>
    %251 = tpu.matmul %250, %2, %cst_130 {dimension_numbers = #tpu.dot_dimension_numbers<[1], [0], [0], [1], [0, 0, 1, 1], [], []>} : vector<128x32xf32>, vector<32x8xf32>, vector<128x8xf32> -> vector<128x8xf32>
    %252 = arith.addf %251, %17 : vector<128x8xf32>
    %cst_131 = arith.constant 0.899999976 : f32
    %253 = vector.broadcast %cst_131 : f32 to vector<128x8xf32>
    %254 = arith.mulf %253, %198 : vector<128x8xf32>
    %255 = arith.addf %254, %252 : vector<128x8xf32>
    %cst_132 = arith.constant 1.000000e+00 : f32
    %256 = vector.broadcast %cst_132 : f32 to vector<128x8xf32>
    %257 = arith.cmpf ogt, %198, %256 : vector<128x8xf32>
    %cst_133 = arith.constant 1.000000e+00 : f32
    %cst_134 = arith.constant 0.000000e+00 : f32
    %258 = vector.broadcast %cst_133 : f32 to vector<128x8xf32>
    %259 = vector.broadcast %cst_134 : f32 to vector<128x8xf32>
    %260 = arith.select %257, %258, %259 : vector<128x8xi1>, vector<128x8xf32>
    %261 = arith.subf %255, %260 : vector<128x8xf32>
    %cst_135 = arith.constant 1.000000e+00 : f32
    %262 = vector.broadcast %cst_135 : f32 to vector<128x8xf32>
    %263 = arith.cmpf ogt, %261, %262 : vector<128x8xf32>
    %cst_136 = arith.constant 1.000000e+00 : f32
    %cst_137 = arith.constant 0.000000e+00 : f32
    %264 = vector.broadcast %cst_136 : f32 to vector<128x8xf32>
    %265 = vector.broadcast %cst_137 : f32 to vector<128x8xf32>
    %266 = arith.select %263, %264, %265 : vector<128x8xi1>, vector<128x8xf32>
    %267 = vector.extract_strided_slice %23 {offsets = [384, 0], sizes = [128, 32], strides = [1, 1]} : vector<1024x32xf32> to vector<128x32xf32>
    %268 = arith.addf %267, %14 : vector<128x32xf32>
    %cst_138 = arith.constant dense<0.000000e+00> : vector<128x32xf32>
    %269 = tpu.matmul %266, %4, %cst_138 {dimension_numbers = #tpu.dot_dimension_numbers<[1], [0], [0], [1], [0, 0, 1, 1], [], []>} : vector<128x8xf32>, vector<8x32xf32>, vector<128x32xf32> -> vector<128x32xf32>
    %270 = arith.addf %268, %269 : vector<128x32xf32>
    %cst_139 = arith.constant 0.899999976 : f32
    %271 = vector.broadcast %cst_139 : f32 to vector<128x32xf32>
    %272 = arith.mulf %271, %216 : vector<128x32xf32>
    %273 = arith.addf %272, %270 : vector<128x32xf32>
    %cst_140 = arith.constant 1.000000e+00 : f32
    %274 = vector.broadcast %cst_140 : f32 to vector<128x32xf32>
    %275 = arith.cmpf ogt, %216, %274 : vector<128x32xf32>
    %cst_141 = arith.constant 1.000000e+00 : f32
    %cst_142 = arith.constant 0.000000e+00 : f32
    %276 = vector.broadcast %cst_141 : f32 to vector<128x32xf32>
    %277 = vector.broadcast %cst_142 : f32 to vector<128x32xf32>
    %278 = arith.select %275, %276, %277 : vector<128x32xi1>, vector<128x32xf32>
    %279 = arith.subf %273, %278 : vector<128x32xf32>
    %c4 = arith.constant 4 : index
    %c0_143 = arith.constant 0 : index
    %c0_144 = arith.constant 0 : index
    %280 = vector.load %arg1[%c4, %c0_143, %c0_144] : memref<8x128x32xf32, #tpu.memory_space<vmem>>, vector<1x128x16xf32>
    %281 = vector.shape_cast %280 : vector<1x128x16xf32> to vector<128x16xf32>
    %cst_145 = arith.constant dense<0.000000e+00> : vector<128x32xf32>
    %282 = tpu.matmul %281, %0, %cst_145 {dimension_numbers = #tpu.dot_dimension_numbers<[1], [0], [0], [1], [0, 0, 1, 1], [], []>} : vector<128x16xf32>, vector<16x32xf32>, vector<128x32xf32> -> vector<128x32xf32>
    %283 = arith.addf %282, %8 : vector<128x32xf32>
    %cst_146 = arith.constant 0.899999976 : f32
    %284 = vector.broadcast %cst_146 : f32 to vector<128x32xf32>
    %285 = arith.mulf %284, %229 : vector<128x32xf32>
    %286 = arith.addf %285, %283 : vector<128x32xf32>
    %cst_147 = arith.constant 1.000000e+00 : f32
    %287 = vector.broadcast %cst_147 : f32 to vector<128x32xf32>
    %288 = arith.cmpf ogt, %229, %287 : vector<128x32xf32>
    %cst_148 = arith.constant 1.000000e+00 : f32
    %cst_149 = arith.constant 0.000000e+00 : f32
    %289 = vector.broadcast %cst_148 : f32 to vector<128x32xf32>
    %290 = vector.broadcast %cst_149 : f32 to vector<128x32xf32>
    %291 = arith.select %288, %289, %290 : vector<128x32xi1>, vector<128x32xf32>
    %292 = arith.subf %286, %291 : vector<128x32xf32>
    %cst_150 = arith.constant 1.000000e+00 : f32
    %293 = vector.broadcast %cst_150 : f32 to vector<128x32xf32>
    %294 = arith.cmpf ogt, %292, %293 : vector<128x32xf32>
    %cst_151 = arith.constant 1.000000e+00 : f32
    %cst_152 = arith.constant 0.000000e+00 : f32
    %295 = vector.broadcast %cst_151 : f32 to vector<128x32xf32>
    %296 = vector.broadcast %cst_152 : f32 to vector<128x32xf32>
    %297 = arith.select %294, %295, %296 : vector<128x32xi1>, vector<128x32xf32>
    %cst_153 = arith.constant dense<0.000000e+00> : vector<128x32xf32>
    %298 = tpu.matmul %297, %1, %cst_153 {dimension_numbers = #tpu.dot_dimension_numbers<[1], [0], [0], [1], [0, 0, 1, 1], [], []>} : vector<128x32xf32>, vector<32x32xf32>, vector<128x32xf32> -> vector<128x32xf32>
    %299 = arith.addf %298, %11 : vector<128x32xf32>
    %cst_154 = arith.constant 0.899999976 : f32
    %300 = vector.broadcast %cst_154 : f32 to vector<128x32xf32>
    %301 = arith.mulf %300, %245 : vector<128x32xf32>
    %302 = arith.addf %301, %299 : vector<128x32xf32>
    %cst_155 = arith.constant 1.000000e+00 : f32
    %303 = vector.broadcast %cst_155 : f32 to vector<128x32xf32>
    %304 = arith.cmpf ogt, %245, %303 : vector<128x32xf32>
    %cst_156 = arith.constant 1.000000e+00 : f32
    %cst_157 = arith.constant 0.000000e+00 : f32
    %305 = vector.broadcast %cst_156 : f32 to vector<128x32xf32>
    %306 = vector.broadcast %cst_157 : f32 to vector<128x32xf32>
    %307 = arith.select %304, %305, %306 : vector<128x32xi1>, vector<128x32xf32>
    %308 = arith.subf %302, %307 : vector<128x32xf32>
    %cst_158 = arith.constant 1.000000e+00 : f32
    %309 = vector.broadcast %cst_158 : f32 to vector<128x32xf32>
    %310 = arith.cmpf ogt, %308, %309 : vector<128x32xf32>
    %cst_159 = arith.constant 1.000000e+00 : f32
    %cst_160 = arith.constant 0.000000e+00 : f32
    %311 = vector.broadcast %cst_159 : f32 to vector<128x32xf32>
    %312 = vector.broadcast %cst_160 : f32 to vector<128x32xf32>
    %313 = arith.select %310, %311, %312 : vector<128x32xi1>, vector<128x32xf32>
    %cst_161 = arith.constant dense<0.000000e+00> : vector<128x8xf32>
    %314 = tpu.matmul %313, %2, %cst_161 {dimension_numbers = #tpu.dot_dimension_numbers<[1], [0], [0], [1], [0, 0, 1, 1], [], []>} : vector<128x32xf32>, vector<32x8xf32>, vector<128x8xf32> -> vector<128x8xf32>
    %315 = arith.addf %314, %17 : vector<128x8xf32>
    %cst_162 = arith.constant 0.899999976 : f32
    %316 = vector.broadcast %cst_162 : f32 to vector<128x8xf32>
    %317 = arith.mulf %316, %261 : vector<128x8xf32>
    %318 = arith.addf %317, %315 : vector<128x8xf32>
    %cst_163 = arith.constant 1.000000e+00 : f32
    %319 = vector.broadcast %cst_163 : f32 to vector<128x8xf32>
    %320 = arith.cmpf ogt, %261, %319 : vector<128x8xf32>
    %cst_164 = arith.constant 1.000000e+00 : f32
    %cst_165 = arith.constant 0.000000e+00 : f32
    %321 = vector.broadcast %cst_164 : f32 to vector<128x8xf32>
    %322 = vector.broadcast %cst_165 : f32 to vector<128x8xf32>
    %323 = arith.select %320, %321, %322 : vector<128x8xi1>, vector<128x8xf32>
    %324 = arith.subf %318, %323 : vector<128x8xf32>
    %cst_166 = arith.constant 1.000000e+00 : f32
    %325 = vector.broadcast %cst_166 : f32 to vector<128x8xf32>
    %326 = arith.cmpf ogt, %324, %325 : vector<128x8xf32>
    %cst_167 = arith.constant 1.000000e+00 : f32
    %cst_168 = arith.constant 0.000000e+00 : f32
    %327 = vector.broadcast %cst_167 : f32 to vector<128x8xf32>
    %328 = vector.broadcast %cst_168 : f32 to vector<128x8xf32>
    %329 = arith.select %326, %327, %328 : vector<128x8xi1>, vector<128x8xf32>
    %330 = vector.extract_strided_slice %23 {offsets = [512, 0], sizes = [128, 32], strides = [1, 1]} : vector<1024x32xf32> to vector<128x32xf32>
    %331 = arith.addf %330, %14 : vector<128x32xf32>
    %cst_169 = arith.constant dense<0.000000e+00> : vector<128x32xf32>
    %332 = tpu.matmul %329, %4, %cst_169 {dimension_numbers = #tpu.dot_dimension_numbers<[1], [0], [0], [1], [0, 0, 1, 1], [], []>} : vector<128x8xf32>, vector<8x32xf32>, vector<128x32xf32> -> vector<128x32xf32>
    %333 = arith.addf %331, %332 : vector<128x32xf32>
    %cst_170 = arith.constant 0.899999976 : f32
    %334 = vector.broadcast %cst_170 : f32 to vector<128x32xf32>
    %335 = arith.mulf %334, %279 : vector<128x32xf32>
    %336 = arith.addf %335, %333 : vector<128x32xf32>
    %cst_171 = arith.constant 1.000000e+00 : f32
    %337 = vector.broadcast %cst_171 : f32 to vector<128x32xf32>
    %338 = arith.cmpf ogt, %279, %337 : vector<128x32xf32>
    %cst_172 = arith.constant 1.000000e+00 : f32
    %cst_173 = arith.constant 0.000000e+00 : f32
    %339 = vector.broadcast %cst_172 : f32 to vector<128x32xf32>
    %340 = vector.broadcast %cst_173 : f32 to vector<128x32xf32>
    %341 = arith.select %338, %339, %340 : vector<128x32xi1>, vector<128x32xf32>
    %342 = arith.subf %336, %341 : vector<128x32xf32>
    %c5 = arith.constant 5 : index
    %c0_174 = arith.constant 0 : index
    %c0_175 = arith.constant 0 : index
    %343 = vector.load %arg1[%c5, %c0_174, %c0_175] : memref<8x128x32xf32, #tpu.memory_space<vmem>>, vector<1x128x16xf32>
    %344 = vector.shape_cast %343 : vector<1x128x16xf32> to vector<128x16xf32>
    %cst_176 = arith.constant dense<0.000000e+00> : vector<128x32xf32>
    %345 = tpu.matmul %344, %0, %cst_176 {dimension_numbers = #tpu.dot_dimension_numbers<[1], [0], [0], [1], [0, 0, 1, 1], [], []>} : vector<128x16xf32>, vector<16x32xf32>, vector<128x32xf32> -> vector<128x32xf32>
    %346 = arith.addf %345, %8 : vector<128x32xf32>
    %cst_177 = arith.constant 0.899999976 : f32
    %347 = vector.broadcast %cst_177 : f32 to vector<128x32xf32>
    %348 = arith.mulf %347, %292 : vector<128x32xf32>
    %349 = arith.addf %348, %346 : vector<128x32xf32>
    %cst_178 = arith.constant 1.000000e+00 : f32
    %350 = vector.broadcast %cst_178 : f32 to vector<128x32xf32>
    %351 = arith.cmpf ogt, %292, %350 : vector<128x32xf32>
    %cst_179 = arith.constant 1.000000e+00 : f32
    %cst_180 = arith.constant 0.000000e+00 : f32
    %352 = vector.broadcast %cst_179 : f32 to vector<128x32xf32>
    %353 = vector.broadcast %cst_180 : f32 to vector<128x32xf32>
    %354 = arith.select %351, %352, %353 : vector<128x32xi1>, vector<128x32xf32>
    %355 = arith.subf %349, %354 : vector<128x32xf32>
    %cst_181 = arith.constant 1.000000e+00 : f32
    %356 = vector.broadcast %cst_181 : f32 to vector<128x32xf32>
    %357 = arith.cmpf ogt, %355, %356 : vector<128x32xf32>
    %cst_182 = arith.constant 1.000000e+00 : f32
    %cst_183 = arith.constant 0.000000e+00 : f32
    %358 = vector.broadcast %cst_182 : f32 to vector<128x32xf32>
    %359 = vector.broadcast %cst_183 : f32 to vector<128x32xf32>
    %360 = arith.select %357, %358, %359 : vector<128x32xi1>, vector<128x32xf32>
    %cst_184 = arith.constant dense<0.000000e+00> : vector<128x32xf32>
    %361 = tpu.matmul %360, %1, %cst_184 {dimension_numbers = #tpu.dot_dimension_numbers<[1], [0], [0], [1], [0, 0, 1, 1], [], []>} : vector<128x32xf32>, vector<32x32xf32>, vector<128x32xf32> -> vector<128x32xf32>
    %362 = arith.addf %361, %11 : vector<128x32xf32>
    %cst_185 = arith.constant 0.899999976 : f32
    %363 = vector.broadcast %cst_185 : f32 to vector<128x32xf32>
    %364 = arith.mulf %363, %308 : vector<128x32xf32>
    %365 = arith.addf %364, %362 : vector<128x32xf32>
    %cst_186 = arith.constant 1.000000e+00 : f32
    %366 = vector.broadcast %cst_186 : f32 to vector<128x32xf32>
    %367 = arith.cmpf ogt, %308, %366 : vector<128x32xf32>
    %cst_187 = arith.constant 1.000000e+00 : f32
    %cst_188 = arith.constant 0.000000e+00 : f32
    %368 = vector.broadcast %cst_187 : f32 to vector<128x32xf32>
    %369 = vector.broadcast %cst_188 : f32 to vector<128x32xf32>
    %370 = arith.select %367, %368, %369 : vector<128x32xi1>, vector<128x32xf32>
    %371 = arith.subf %365, %370 : vector<128x32xf32>
    %cst_189 = arith.constant 1.000000e+00 : f32
    %372 = vector.broadcast %cst_189 : f32 to vector<128x32xf32>
    %373 = arith.cmpf ogt, %371, %372 : vector<128x32xf32>
    %cst_190 = arith.constant 1.000000e+00 : f32
    %cst_191 = arith.constant 0.000000e+00 : f32
    %374 = vector.broadcast %cst_190 : f32 to vector<128x32xf32>
    %375 = vector.broadcast %cst_191 : f32 to vector<128x32xf32>
    %376 = arith.select %373, %374, %375 : vector<128x32xi1>, vector<128x32xf32>
    %cst_192 = arith.constant dense<0.000000e+00> : vector<128x8xf32>
    %377 = tpu.matmul %376, %2, %cst_192 {dimension_numbers = #tpu.dot_dimension_numbers<[1], [0], [0], [1], [0, 0, 1, 1], [], []>} : vector<128x32xf32>, vector<32x8xf32>, vector<128x8xf32> -> vector<128x8xf32>
    %378 = arith.addf %377, %17 : vector<128x8xf32>
    %cst_193 = arith.constant 0.899999976 : f32
    %379 = vector.broadcast %cst_193 : f32 to vector<128x8xf32>
    %380 = arith.mulf %379, %324 : vector<128x8xf32>
    %381 = arith.addf %380, %378 : vector<128x8xf32>
    %cst_194 = arith.constant 1.000000e+00 : f32
    %382 = vector.broadcast %cst_194 : f32 to vector<128x8xf32>
    %383 = arith.cmpf ogt, %324, %382 : vector<128x8xf32>
    %cst_195 = arith.constant 1.000000e+00 : f32
    %cst_196 = arith.constant 0.000000e+00 : f32
    %384 = vector.broadcast %cst_195 : f32 to vector<128x8xf32>
    %385 = vector.broadcast %cst_196 : f32 to vector<128x8xf32>
    %386 = arith.select %383, %384, %385 : vector<128x8xi1>, vector<128x8xf32>
    %387 = arith.subf %381, %386 : vector<128x8xf32>
    %cst_197 = arith.constant 1.000000e+00 : f32
    %388 = vector.broadcast %cst_197 : f32 to vector<128x8xf32>
    %389 = arith.cmpf ogt, %387, %388 : vector<128x8xf32>
    %cst_198 = arith.constant 1.000000e+00 : f32
    %cst_199 = arith.constant 0.000000e+00 : f32
    %390 = vector.broadcast %cst_198 : f32 to vector<128x8xf32>
    %391 = vector.broadcast %cst_199 : f32 to vector<128x8xf32>
    %392 = arith.select %389, %390, %391 : vector<128x8xi1>, vector<128x8xf32>
    %393 = vector.extract_strided_slice %23 {offsets = [640, 0], sizes = [128, 32], strides = [1, 1]} : vector<1024x32xf32> to vector<128x32xf32>
    %394 = arith.addf %393, %14 : vector<128x32xf32>
    %cst_200 = arith.constant dense<0.000000e+00> : vector<128x32xf32>
    %395 = tpu.matmul %392, %4, %cst_200 {dimension_numbers = #tpu.dot_dimension_numbers<[1], [0], [0], [1], [0, 0, 1, 1], [], []>} : vector<128x8xf32>, vector<8x32xf32>, vector<128x32xf32> -> vector<128x32xf32>
    %396 = arith.addf %394, %395 : vector<128x32xf32>
    %cst_201 = arith.constant 0.899999976 : f32
    %397 = vector.broadcast %cst_201 : f32 to vector<128x32xf32>
    %398 = arith.mulf %397, %342 : vector<128x32xf32>
    %399 = arith.addf %398, %396 : vector<128x32xf32>
    %cst_202 = arith.constant 1.000000e+00 : f32
    %400 = vector.broadcast %cst_202 : f32 to vector<128x32xf32>
    %401 = arith.cmpf ogt, %342, %400 : vector<128x32xf32>
    %cst_203 = arith.constant 1.000000e+00 : f32
    %cst_204 = arith.constant 0.000000e+00 : f32
    %402 = vector.broadcast %cst_203 : f32 to vector<128x32xf32>
    %403 = vector.broadcast %cst_204 : f32 to vector<128x32xf32>
    %404 = arith.select %401, %402, %403 : vector<128x32xi1>, vector<128x32xf32>
    %405 = arith.subf %399, %404 : vector<128x32xf32>
    %c6 = arith.constant 6 : index
    %c0_205 = arith.constant 0 : index
    %c0_206 = arith.constant 0 : index
    %406 = vector.load %arg1[%c6, %c0_205, %c0_206] : memref<8x128x32xf32, #tpu.memory_space<vmem>>, vector<1x128x16xf32>
    %407 = vector.shape_cast %406 : vector<1x128x16xf32> to vector<128x16xf32>
    %cst_207 = arith.constant dense<0.000000e+00> : vector<128x32xf32>
    %408 = tpu.matmul %407, %0, %cst_207 {dimension_numbers = #tpu.dot_dimension_numbers<[1], [0], [0], [1], [0, 0, 1, 1], [], []>} : vector<128x16xf32>, vector<16x32xf32>, vector<128x32xf32> -> vector<128x32xf32>
    %409 = arith.addf %408, %8 : vector<128x32xf32>
    %cst_208 = arith.constant 0.899999976 : f32
    %410 = vector.broadcast %cst_208 : f32 to vector<128x32xf32>
    %411 = arith.mulf %410, %355 : vector<128x32xf32>
    %412 = arith.addf %411, %409 : vector<128x32xf32>
    %cst_209 = arith.constant 1.000000e+00 : f32
    %413 = vector.broadcast %cst_209 : f32 to vector<128x32xf32>
    %414 = arith.cmpf ogt, %355, %413 : vector<128x32xf32>
    %cst_210 = arith.constant 1.000000e+00 : f32
    %cst_211 = arith.constant 0.000000e+00 : f32
    %415 = vector.broadcast %cst_210 : f32 to vector<128x32xf32>
    %416 = vector.broadcast %cst_211 : f32 to vector<128x32xf32>
    %417 = arith.select %414, %415, %416 : vector<128x32xi1>, vector<128x32xf32>
    %418 = arith.subf %412, %417 : vector<128x32xf32>
    %cst_212 = arith.constant 1.000000e+00 : f32
    %419 = vector.broadcast %cst_212 : f32 to vector<128x32xf32>
    %420 = arith.cmpf ogt, %418, %419 : vector<128x32xf32>
    %cst_213 = arith.constant 1.000000e+00 : f32
    %cst_214 = arith.constant 0.000000e+00 : f32
    %421 = vector.broadcast %cst_213 : f32 to vector<128x32xf32>
    %422 = vector.broadcast %cst_214 : f32 to vector<128x32xf32>
    %423 = arith.select %420, %421, %422 : vector<128x32xi1>, vector<128x32xf32>
    %cst_215 = arith.constant dense<0.000000e+00> : vector<128x32xf32>
    %424 = tpu.matmul %423, %1, %cst_215 {dimension_numbers = #tpu.dot_dimension_numbers<[1], [0], [0], [1], [0, 0, 1, 1], [], []>} : vector<128x32xf32>, vector<32x32xf32>, vector<128x32xf32> -> vector<128x32xf32>
    %425 = arith.addf %424, %11 : vector<128x32xf32>
    %cst_216 = arith.constant 0.899999976 : f32
    %426 = vector.broadcast %cst_216 : f32 to vector<128x32xf32>
    %427 = arith.mulf %426, %371 : vector<128x32xf32>
    %428 = arith.addf %427, %425 : vector<128x32xf32>
    %cst_217 = arith.constant 1.000000e+00 : f32
    %429 = vector.broadcast %cst_217 : f32 to vector<128x32xf32>
    %430 = arith.cmpf ogt, %371, %429 : vector<128x32xf32>
    %cst_218 = arith.constant 1.000000e+00 : f32
    %cst_219 = arith.constant 0.000000e+00 : f32
    %431 = vector.broadcast %cst_218 : f32 to vector<128x32xf32>
    %432 = vector.broadcast %cst_219 : f32 to vector<128x32xf32>
    %433 = arith.select %430, %431, %432 : vector<128x32xi1>, vector<128x32xf32>
    %434 = arith.subf %428, %433 : vector<128x32xf32>
    %cst_220 = arith.constant 1.000000e+00 : f32
    %435 = vector.broadcast %cst_220 : f32 to vector<128x32xf32>
    %436 = arith.cmpf ogt, %434, %435 : vector<128x32xf32>
    %cst_221 = arith.constant 1.000000e+00 : f32
    %cst_222 = arith.constant 0.000000e+00 : f32
    %437 = vector.broadcast %cst_221 : f32 to vector<128x32xf32>
    %438 = vector.broadcast %cst_222 : f32 to vector<128x32xf32>
    %439 = arith.select %436, %437, %438 : vector<128x32xi1>, vector<128x32xf32>
    %cst_223 = arith.constant dense<0.000000e+00> : vector<128x8xf32>
    %440 = tpu.matmul %439, %2, %cst_223 {dimension_numbers = #tpu.dot_dimension_numbers<[1], [0], [0], [1], [0, 0, 1, 1], [], []>} : vector<128x32xf32>, vector<32x8xf32>, vector<128x8xf32> -> vector<128x8xf32>
    %441 = arith.addf %440, %17 : vector<128x8xf32>
    %cst_224 = arith.constant 0.899999976 : f32
    %442 = vector.broadcast %cst_224 : f32 to vector<128x8xf32>
    %443 = arith.mulf %442, %387 : vector<128x8xf32>
    %444 = arith.addf %443, %441 : vector<128x8xf32>
    %cst_225 = arith.constant 1.000000e+00 : f32
    %445 = vector.broadcast %cst_225 : f32 to vector<128x8xf32>
    %446 = arith.cmpf ogt, %387, %445 : vector<128x8xf32>
    %cst_226 = arith.constant 1.000000e+00 : f32
    %cst_227 = arith.constant 0.000000e+00 : f32
    %447 = vector.broadcast %cst_226 : f32 to vector<128x8xf32>
    %448 = vector.broadcast %cst_227 : f32 to vector<128x8xf32>
    %449 = arith.select %446, %447, %448 : vector<128x8xi1>, vector<128x8xf32>
    %450 = arith.subf %444, %449 : vector<128x8xf32>
    %cst_228 = arith.constant 1.000000e+00 : f32
    %451 = vector.broadcast %cst_228 : f32 to vector<128x8xf32>
    %452 = arith.cmpf ogt, %450, %451 : vector<128x8xf32>
    %cst_229 = arith.constant 1.000000e+00 : f32
    %cst_230 = arith.constant 0.000000e+00 : f32
    %453 = vector.broadcast %cst_229 : f32 to vector<128x8xf32>
    %454 = vector.broadcast %cst_230 : f32 to vector<128x8xf32>
    %455 = arith.select %452, %453, %454 : vector<128x8xi1>, vector<128x8xf32>
    %456 = vector.extract_strided_slice %23 {offsets = [768, 0], sizes = [128, 32], strides = [1, 1]} : vector<1024x32xf32> to vector<128x32xf32>
    %457 = arith.addf %456, %14 : vector<128x32xf32>
    %cst_231 = arith.constant dense<0.000000e+00> : vector<128x32xf32>
    %458 = tpu.matmul %455, %4, %cst_231 {dimension_numbers = #tpu.dot_dimension_numbers<[1], [0], [0], [1], [0, 0, 1, 1], [], []>} : vector<128x8xf32>, vector<8x32xf32>, vector<128x32xf32> -> vector<128x32xf32>
    %459 = arith.addf %457, %458 : vector<128x32xf32>
    %cst_232 = arith.constant 0.899999976 : f32
    %460 = vector.broadcast %cst_232 : f32 to vector<128x32xf32>
    %461 = arith.mulf %460, %405 : vector<128x32xf32>
    %462 = arith.addf %461, %459 : vector<128x32xf32>
    %cst_233 = arith.constant 1.000000e+00 : f32
    %463 = vector.broadcast %cst_233 : f32 to vector<128x32xf32>
    %464 = arith.cmpf ogt, %405, %463 : vector<128x32xf32>
    %cst_234 = arith.constant 1.000000e+00 : f32
    %cst_235 = arith.constant 0.000000e+00 : f32
    %465 = vector.broadcast %cst_234 : f32 to vector<128x32xf32>
    %466 = vector.broadcast %cst_235 : f32 to vector<128x32xf32>
    %467 = arith.select %464, %465, %466 : vector<128x32xi1>, vector<128x32xf32>
    %468 = arith.subf %462, %467 : vector<128x32xf32>
    %c7 = arith.constant 7 : index
    %c0_236 = arith.constant 0 : index
    %c0_237 = arith.constant 0 : index
    %469 = vector.load %arg1[%c7, %c0_236, %c0_237] : memref<8x128x32xf32, #tpu.memory_space<vmem>>, vector<1x128x16xf32>
    %470 = vector.shape_cast %469 : vector<1x128x16xf32> to vector<128x16xf32>
    %cst_238 = arith.constant dense<0.000000e+00> : vector<128x32xf32>
    %471 = tpu.matmul %470, %0, %cst_238 {dimension_numbers = #tpu.dot_dimension_numbers<[1], [0], [0], [1], [0, 0, 1, 1], [], []>} : vector<128x16xf32>, vector<16x32xf32>, vector<128x32xf32> -> vector<128x32xf32>
    %472 = arith.addf %471, %8 : vector<128x32xf32>
    %cst_239 = arith.constant 0.899999976 : f32
    %473 = vector.broadcast %cst_239 : f32 to vector<128x32xf32>
    %474 = arith.mulf %473, %418 : vector<128x32xf32>
    %475 = arith.addf %474, %472 : vector<128x32xf32>
    %cst_240 = arith.constant 1.000000e+00 : f32
    %476 = vector.broadcast %cst_240 : f32 to vector<128x32xf32>
    %477 = arith.cmpf ogt, %418, %476 : vector<128x32xf32>
    %cst_241 = arith.constant 1.000000e+00 : f32
    %cst_242 = arith.constant 0.000000e+00 : f32
    %478 = vector.broadcast %cst_241 : f32 to vector<128x32xf32>
    %479 = vector.broadcast %cst_242 : f32 to vector<128x32xf32>
    %480 = arith.select %477, %478, %479 : vector<128x32xi1>, vector<128x32xf32>
    %481 = arith.subf %475, %480 : vector<128x32xf32>
    %cst_243 = arith.constant 1.000000e+00 : f32
    %482 = vector.broadcast %cst_243 : f32 to vector<128x32xf32>
    %483 = arith.cmpf ogt, %481, %482 : vector<128x32xf32>
    %cst_244 = arith.constant 1.000000e+00 : f32
    %cst_245 = arith.constant 0.000000e+00 : f32
    %484 = vector.broadcast %cst_244 : f32 to vector<128x32xf32>
    %485 = vector.broadcast %cst_245 : f32 to vector<128x32xf32>
    %486 = arith.select %483, %484, %485 : vector<128x32xi1>, vector<128x32xf32>
    %cst_246 = arith.constant dense<0.000000e+00> : vector<128x32xf32>
    %487 = tpu.matmul %486, %1, %cst_246 {dimension_numbers = #tpu.dot_dimension_numbers<[1], [0], [0], [1], [0, 0, 1, 1], [], []>} : vector<128x32xf32>, vector<32x32xf32>, vector<128x32xf32> -> vector<128x32xf32>
    %488 = arith.addf %487, %11 : vector<128x32xf32>
    %cst_247 = arith.constant 0.899999976 : f32
    %489 = vector.broadcast %cst_247 : f32 to vector<128x32xf32>
    %490 = arith.mulf %489, %434 : vector<128x32xf32>
    %491 = arith.addf %490, %488 : vector<128x32xf32>
    %cst_248 = arith.constant 1.000000e+00 : f32
    %492 = vector.broadcast %cst_248 : f32 to vector<128x32xf32>
    %493 = arith.cmpf ogt, %434, %492 : vector<128x32xf32>
    %cst_249 = arith.constant 1.000000e+00 : f32
    %cst_250 = arith.constant 0.000000e+00 : f32
    %494 = vector.broadcast %cst_249 : f32 to vector<128x32xf32>
    %495 = vector.broadcast %cst_250 : f32 to vector<128x32xf32>
    %496 = arith.select %493, %494, %495 : vector<128x32xi1>, vector<128x32xf32>
    %497 = arith.subf %491, %496 : vector<128x32xf32>
    %cst_251 = arith.constant 1.000000e+00 : f32
    %498 = vector.broadcast %cst_251 : f32 to vector<128x32xf32>
    %499 = arith.cmpf ogt, %497, %498 : vector<128x32xf32>
    %cst_252 = arith.constant 1.000000e+00 : f32
    %cst_253 = arith.constant 0.000000e+00 : f32
    %500 = vector.broadcast %cst_252 : f32 to vector<128x32xf32>
    %501 = vector.broadcast %cst_253 : f32 to vector<128x32xf32>
    %502 = arith.select %499, %500, %501 : vector<128x32xi1>, vector<128x32xf32>
    %cst_254 = arith.constant dense<0.000000e+00> : vector<128x8xf32>
    %503 = tpu.matmul %502, %2, %cst_254 {dimension_numbers = #tpu.dot_dimension_numbers<[1], [0], [0], [1], [0, 0, 1, 1], [], []>} : vector<128x32xf32>, vector<32x8xf32>, vector<128x8xf32> -> vector<128x8xf32>
    %504 = arith.addf %503, %17 : vector<128x8xf32>
    %cst_255 = arith.constant 0.899999976 : f32
    %505 = vector.broadcast %cst_255 : f32 to vector<128x8xf32>
    %506 = arith.mulf %505, %450 : vector<128x8xf32>
    %507 = arith.addf %506, %504 : vector<128x8xf32>
    %cst_256 = arith.constant 1.000000e+00 : f32
    %508 = vector.broadcast %cst_256 : f32 to vector<128x8xf32>
    %509 = arith.cmpf ogt, %450, %508 : vector<128x8xf32>
    %cst_257 = arith.constant 1.000000e+00 : f32
    %cst_258 = arith.constant 0.000000e+00 : f32
    %510 = vector.broadcast %cst_257 : f32 to vector<128x8xf32>
    %511 = vector.broadcast %cst_258 : f32 to vector<128x8xf32>
    %512 = arith.select %509, %510, %511 : vector<128x8xi1>, vector<128x8xf32>
    %513 = arith.subf %507, %512 : vector<128x8xf32>
    %cst_259 = arith.constant 1.000000e+00 : f32
    %514 = vector.broadcast %cst_259 : f32 to vector<128x8xf32>
    %515 = arith.cmpf ogt, %513, %514 : vector<128x8xf32>
    %cst_260 = arith.constant 1.000000e+00 : f32
    %cst_261 = arith.constant 0.000000e+00 : f32
    %516 = vector.broadcast %cst_260 : f32 to vector<128x8xf32>
    %517 = vector.broadcast %cst_261 : f32 to vector<128x8xf32>
    %518 = arith.select %515, %516, %517 : vector<128x8xi1>, vector<128x8xf32>
    %519 = vector.extract_strided_slice %23 {offsets = [896, 0], sizes = [128, 32], strides = [1, 1]} : vector<1024x32xf32> to vector<128x32xf32>
    %520 = arith.addf %519, %14 : vector<128x32xf32>
    %cst_262 = arith.constant dense<0.000000e+00> : vector<128x32xf32>
    %521 = tpu.matmul %518, %4, %cst_262 {dimension_numbers = #tpu.dot_dimension_numbers<[1], [0], [0], [1], [0, 0, 1, 1], [], []>} : vector<128x8xf32>, vector<8x32xf32>, vector<128x32xf32> -> vector<128x32xf32>
    %522 = arith.addf %520, %521 : vector<128x32xf32>
    %cst_263 = arith.constant 0.899999976 : f32
    %523 = vector.broadcast %cst_263 : f32 to vector<128x32xf32>
    %524 = arith.mulf %523, %468 : vector<128x32xf32>
    %525 = arith.addf %524, %522 : vector<128x32xf32>
    %cst_264 = arith.constant 1.000000e+00 : f32
    %526 = vector.broadcast %cst_264 : f32 to vector<128x32xf32>
    %527 = arith.cmpf ogt, %468, %526 : vector<128x32xf32>
    %cst_265 = arith.constant 1.000000e+00 : f32
    %cst_266 = arith.constant 0.000000e+00 : f32
    %528 = vector.broadcast %cst_265 : f32 to vector<128x32xf32>
    %529 = vector.broadcast %cst_266 : f32 to vector<128x32xf32>
    %530 = arith.select %527, %528, %529 : vector<128x32xi1>, vector<128x32xf32>
    %531 = arith.subf %525, %530 : vector<128x32xf32>
    %cst_267 = arith.constant 1.000000e+00 : f32
    %532 = vector.broadcast %cst_267 : f32 to vector<128x32xf32>
    %533 = arith.cmpf ogt, %531, %532 : vector<128x32xf32>
    %cst_268 = arith.constant 1.000000e+00 : f32
    %cst_269 = arith.constant 0.000000e+00 : f32
    %534 = vector.broadcast %cst_268 : f32 to vector<128x32xf32>
    %535 = vector.broadcast %cst_269 : f32 to vector<128x32xf32>
    %536 = arith.select %533, %534, %535 : vector<128x32xi1>, vector<128x32xf32>
    %cst_270 = arith.constant dense<0.000000e+00> : vector<128x8xf32>
    %537 = tpu.matmul %536, %5, %cst_270 {dimension_numbers = #tpu.dot_dimension_numbers<[1], [0], [0], [1], [0, 0, 1, 1], [], []>} : vector<128x32xf32>, vector<32x8xf32>, vector<128x8xf32> -> vector<128x8xf32>
    %538 = arith.addf %537, %20 : vector<128x8xf32>
    %c0_271 = arith.constant 0 : index
    %c0_272 = arith.constant 0 : index
    %539 = vector.load %arg3[%c0_271, %c0_272] : memref<128x8xf32, #tpu.memory_space<vmem>>, vector<128x8xf32>
    tpu.vector_store %arg3[%c0_271, %c0_272], %538 {strides = array<i32>} : memref<128x8xf32, #tpu.memory_space<vmem>>, vector<128x8xf32>,
    return
  }
  func.func @transform_0(%arg0: i32) -> (i32, i32, i32) {
    %c0_i32 = arith.constant 0 : i32
    %c0_i32_0 = arith.constant 0 : i32
    %c0_i32_1 = arith.constant 0 : i32
    return %c0_i32, %arg0, %c0_i32_0 : i32, i32, i32
  }
  func.func @transform_1(%arg0: i32) -> (i32, i32) {
    %c0_i32 = arith.constant 0 : i32
    %c0_i32_0 = arith.constant 0 : i32
    %c0_i32_1 = arith.constant 0 : i32
    return %c0_i32, %c0_i32_0 : i32, i32
  }
  func.func @transform_2(%arg0: i32) -> (i32, i32) {
    %c0_i32 = arith.constant 0 : i32
    %c0_i32_0 = arith.constant 0 : i32
    return %arg0, %c0_i32 : i32, i32
  }
}

</mosaic_0001>

<bundles_post_ra>
// kernel: snn_forward_pallas.1
= control target key start
LH: loop header
LB: loop body
LE: loop exit
PB: predicated region body
PF: predicated region fallthrough
CT: control target
= control target key end

     0   :  { %s14793_s9 = smov 0   ;;  %s14795_s10 = smov 0   ;;  %s20678_s0 = inlined_call_operand.vmem [shape: f32[8,256,32], index: 0, kind: input, shape index: {}]   ;;  %s20679_s1 = inlined_call_operand.vmem [shape: f32[144,32], index: 1, kind: input, shape index: {}]   ;;  %s20680_s2 = inlined_call_operand.vmem [shape: f32[256,8], index: 2, kind: output, shape index: {}]  }
   0x1   :  { %s14797_s11 = smov 0  }
   0x2 LB: > { %s11543_s12 = sadd.s32 4294967295, %s14774_s11   ;;  %s14810_s13 = sadd.s32 1, %s14774_s11   ;;  %s14774_s11 = sphi %s14797_s11, %s21996_s11   ;;  %s14770_s10 = sphi %s14795_s10, %s21995_s10   ;;  %s14766_s9 = sphi %s14793_s9, %s21994_s9  }
   0x3   : > { %s16_s14 = ssub.s32 %s14774_s11, %s14810_s13  ;;  %s19_s15 = sadd.s32 1, %s14770_s10 }
   0x4   : > { %p17_p0 = scmp.eq.s32.totalorder %s16_s14, 0  ;;  %p26_p1 = scmp.ne.s32.totalorder %s14770_s10, %s14766_s9 }
   0x5   : > { %p27_p2 = scmp.eq.s32.totalorder %s14774_s11, 0  ;;  %p11546_p4 = scmp.ge.s32.totalorder %s14774_s11, 2 }
   0x6   : > { %s14819_s16 = scalar_select %p17_p0, %s14770_s10, %s19_s15  }
   0x7   : > { %p28_p3 = por %p27_p2, %p26_p1  ;;  %102 = sbr.rel (%p11546_p4) target bundleno = 82 (0x52), region = 20 }
   0xe   : > { %105 = sbr.rel (!%p28_p3) target bundleno = 82 (0x52), region = 24  ;;  %s107_s17 = sand.u32 (%p28_p3), 1, %s14770_s10  }
   0xf   : > { %s12329_s18 = sshll.u32 (%p28_p3), %s14774_s11, 7  ;;  %s11547_s19 = sshll.u32 (%p28_p3), %s107_s17, 10 }
  0x10   : > { %s14827_s22 = scalar_lea.vmem (%p28_p3), %s20678_s0, %s12329_s18  ;;  %s14832_s23 = scalar_lea.vmem (%p28_p3), [#allocation2], %s11547_s19 }
  0x11   : > { %v394_v0 = vld [vmem:[%s14827_s22] sm:$0xff] (%p28_p3)  ;;  %v396_v1 = vld [vmem:[%s14827_s22 + $0x8] sm:$0xff] (%p28_p3)  ;;  %v398_v2 = vld [vmem:[%s14827_s22 + $0x10] sm:$0xff] (%p28_p3) }
  0x12   : > { %395 = vst [vmem:[%s14832_s23] sm:$0xff] (%p28_p3), %v394_v0  ;;  %397 = vst [vmem:[%s14832_s23 + $0x8] sm:$0xff] (%p28_p3), %v396_v1  ;;  %v400_v3 = vld [vmem:[%s14827_s22 + $0x18] sm:$0xff] (%p28_p3)  ;;  %v402_v4 = vld [vmem:[%s14827_s22 + $0x20] sm:$0xff] (%p28_p3) }
  0x13   : > { %399 = vst [vmem:[%s14832_s23 + $0x10] sm:$0xff] (%p28_p3), %v398_v2  ;;  %v404_v5 = vld [vmem:[%s14827_s22 + $0x28] sm:$0xff] (%p28_p3)  ;;  %401 = vst [vmem:[%s14832_s23 + $0x18] sm:$0xff] (%p28_p3), %v400_v3  ;;  %v406_v6 = vld [vmem:[%s14827_s22 + $0x30] sm:$0xff] (%p28_p3) }
  0x14   : > { %403 = vst [vmem:[%s14832_s23 + $0x20] sm:$0xff] (%p28_p3), %v402_v4  ;;  %405 = vst [vmem:[%s14832_s23 + $0x28] sm:$0xff] (%p28_p3), %v404_v5  ;;  %v408_v7 = vld [vmem:[%s14827_s22 + $0x38] sm:$0xff] (%p28_p3)  ;;  %v410_v8 = vld [vmem:[%s14827_s22 + $0x40] sm:$0xff] (%p28_p3) }
  0x15   : > { %407 = vst [vmem:[%s14832_s23 + $0x30] sm:$0xff] %v406_v6  ;;  %409 = vst [vmem:[%s14832_s23 + $0x38] sm:$0xff] %v408_v7  ;;  %v412_v9 = vld [vmem:[%s14827_s22 + $0x48] sm:$0xff]  ;;  %v414_v10 = vld [vmem:[%s14827_s22 + $0x50] sm:$0xff] }
  0x16   : > { %411 = vst [vmem:[%s14832_s23 + $0x40] sm:$0xff] %v410_v8  ;;  %v416_v11 = vld [vmem:[%s14827_s22 + $0x58] sm:$0xff]  ;;  %413 = vst [vmem:[%s14832_s23 + $0x48] sm:$0xff] %v412_v9  ;;  %v418_v12 = vld [vmem:[%s14827_s22 + $0x60] sm:$0xff] }
  0x17   : > { %415 = vst [vmem:[%s14832_s23 + $0x50] sm:$0xff] %v414_v10  ;;  %417 = vst [vmem:[%s14832_s23 + $0x58] sm:$0xff] %v416_v11  ;;  %v420_v13 = vld [vmem:[%s14827_s22 + $0x68] sm:$0xff]  ;;  %v422_v14 = vld [vmem:[%s14827_s22 + $0x70] sm:$0xff] }
  0x18   : > { %419 = vst [vmem:[%s14832_s23 + $0x60] sm:$0xff] %v418_v12  ;;  %421 = vst [vmem:[%s14832_s23 + $0x68] sm:$0xff] %v420_v13  ;;  %v424_v15 = vld [vmem:[%s14827_s22 + $0x78] sm:$0xff]  ;;  %v426_v16 = vld [vmem:[%s14827_s22 + $0x100] sm:$0xff] }
  0x19   : > { %423 = vst [vmem:[%s14832_s23 + $0x70] sm:$0xff] %v422_v14  ;;  %v428_v17 = vld [vmem:[%s14827_s22 + $0x108] sm:$0xff]  ;;  %425 = vst [vmem:[%s14832_s23 + $0x78] sm:$0xff] %v424_v15  ;;  %v430_v18 = vld [vmem:[%s14827_s22 + $0x110] sm:$0xff] }
  0x1a   : > { %427 = vst [vmem:[%s14832_s23 + $0x80] sm:$0xff] %v426_v16  ;;  %429 = vst [vmem:[%s14832_s23 + $0x88] sm:$0xff] %v428_v17  ;;  %v432_v19 = vld [vmem:[%s14827_s22 + $0x118] sm:$0xff]  ;;  %v434_v20 = vld [vmem:[%s14827_s22 + $0x120] sm:$0xff] }
  0x1b   : > { %431 = vst [vmem:[%s14832_s23 + $0x90] sm:$0xff] %v430_v18  ;;  %433 = vst [vmem:[%s14832_s23 + $0x98] sm:$0xff] %v432_v19  ;;  %v436_v21 = vld [vmem:[%s14827_s22 + $0x128] sm:$0xff]  ;;  %v438_v22 = vld [vmem:[%s14827_s22 + $0x130] sm:$0xff] }
  0x1c   : > { %435 = vst [vmem:[%s14832_s23 + $0xa0] sm:$0xff] %v434_v20  ;;  %v440_v23 = vld [vmem:[%s14827_s22 + $0x138] sm:$0xff]  ;;  %437 = vst [vmem:[%s14832_s23 + $0xa8] sm:$0xff] %v436_v21  ;;  %v442_v24 = vld [vmem:[%s14827_s22 + $0x140] sm:$0xff] }
  0x1d   : > { %439 = vst [vmem:[%s14832_s23 + $0xb0] sm:$0xff] %v438_v22  ;;  %441 = vst [vmem:[%s14832_s23 + $0xb8] sm:$0xff] %v440_v23  ;;  %v444_v25 = vld [vmem:[%s14827_s22 + $0x148] sm:$0xff]  ;;  %v446_v26 = vld [vmem:[%s14827_s22 + $0x150] sm:$0xff] }
  0x1e   : > { %443 = vst [vmem:[%s14832_s23 + $0xc0] sm:$0xff] %v442_v24  ;;  %445 = vst [vmem:[%s14832_s23 + $0xc8] sm:$0xff] %v444_v25  ;;  %v448_v27 = vld [vmem:[%s14827_s22 + $0x158] sm:$0xff]  ;;  %v450_v28 = vld [vmem:[%s14827_s22 + $0x160] sm:$0xff] }
  0x1f   : > { %447 = vst [vmem:[%s14832_s23 + $0xd0] sm:$0xff] %v446_v26  ;;  %v452_v29 = vld [vmem:[%s14827_s22 + $0x168] sm:$0xff]  ;;  %449 = vst [vmem:[%s14832_s23 + $0xd8] sm:$0xff] %v448_v27  ;;  %v454_v30 = vld [vmem:[%s14827_s22 + $0x170] sm:$0xff] }
  0x20   : > { %451 = vst [vmem:[%s14832_s23 + $0xe0] sm:$0xff] %v450_v28  ;;  %453 = vst [vmem:[%s14832_s23 + $0xe8] sm:$0xff] %v452_v29  ;;  %v456_v31 = vld [vmem:[%s14827_s22 + $0x178] sm:$0xff]  ;;  %v458_v32 = vld [vmem:[%s14827_s22 + $0x200] sm:$0xff] }
  0x21   : > { %455 = vst [vmem:[%s14832_s23 + $0xf0] sm:$0xff] %v454_v30  ;;  %457 = vst [vmem:[%s14832_s23 + $0xf8] sm:$0xff] %v456_v31  ;;  %v460_v33 = vld [vmem:[%s14827_s22 + $0x208] sm:$0xff]  ;;  %v462_v34 = vld [vmem:[%s14827_s22 + $0x210] sm:$0xff] }
  0x22   : > { %459 = vst [vmem:[%s14832_s23 + $0x100] sm:$0xff] %v458_v32  ;;  %v464_v35 = vld [vmem:[%s14827_s22 + $0x218] sm:$0xff]  ;;  %461 = vst [vmem:[%s14832_s23 + $0x108] sm:$0xff] %v460_v33  ;;  %v466_v36 = vld [vmem:[%s14827_s22 + $0x220] sm:$0xff] }
  0x23   : > { %463 = vst [vmem:[%s14832_s23 + $0x110] sm:$0xff] %v462_v34  ;;  %465 = vst [vmem:[%s14832_s23 + $0x118] sm:$0xff] %v464_v35  ;;  %v468_v37 = vld [vmem:[%s14827_s22 + $0x228] sm:$0xff]  ;;  %v470_v38 = vld [vmem:[%s14827_s22 + $0x230] sm:$0xff] }
  0x24   : > { %467 = vst [vmem:[%s14832_s23 + $0x120] sm:$0xff] %v466_v36  ;;  %469 = vst [vmem:[%s14832_s23 + $0x128] sm:$0xff] %v468_v37  ;;  %v472_v39 = vld [vmem:[%s14827_s22 + $0x238] sm:$0xff]  ;;  %v474_v40 = vld [vmem:[%s14827_s22 + $0x240] sm:$0xff] }
  0x25   : > { %471 = vst [vmem:[%s14832_s23 + $0x130] sm:$0xff] %v470_v38  ;;  %v476_v41 = vld [vmem:[%s14827_s22 + $0x248] sm:$0xff]  ;;  %473 = vst [vmem:[%s14832_s23 + $0x138] sm:$0xff] %v472_v39  ;;  %v478_v42 = vld [vmem:[%s14827_s22 + $0x250] sm:$0xff] }
  0x26   : > { %475 = vst [vmem:[%s14832_s23 + $0x140] sm:$0xff] %v474_v40  ;;  %477 = vst [vmem:[%s14832_s23 + $0x148] sm:$0xff] %v476_v41  ;;  %v480_v43 = vld [vmem:[%s14827_s22 + $0x258] sm:$0xff]  ;;  %v482_v44 = vld [vmem:[%s14827_s22 + $0x260] sm:$0xff] }
  0x27   : > { %479 = vst [vmem:[%s14832_s23 + $0x150] sm:$0xff] %v478_v42  ;;  %481 = vst [vmem:[%s14832_s23 + $0x158] sm:$0xff] %v480_v43  ;;  %v484_v45 = vld [vmem:[%s14827_s22 + $0x268] sm:$0xff]  ;;  %v486_v46 = vld [vmem:[%s14827_s22 + $0x270] sm:$0xff] }
  0x28   : > { %483 = vst [vmem:[%s14832_s23 + $0x160] sm:$0xff] %v482_v44  ;;  %v488_v47 = vld [vmem:[%s14827_s22 + $0x278] sm:$0xff]  ;;  %485 = vst [vmem:[%s14832_s23 + $0x168] sm:$0xff] %v484_v45  ;;  %v490_v48 = vld [vmem:[%s14827_s22 + $0x300] sm:$0xff] }
  0x29   : > { %487 = vst [vmem:[%s14832_s23 + $0x170] sm:$0xff] %v486_v46  ;;  %489 = vst [vmem:[%s14832_s23 + $0x178] sm:$0xff] %v488_v47  ;;  %v492_v49 = vld [vmem:[%s14827_s22 + $0x308] sm:$0xff]  ;;  %v494_v50 = vld [vmem:[%s14827_s22 + $0x310] sm:$0xff] }
  0x2a   : > { %491 = vst [vmem:[%s14832_s23 + $0x180] sm:$0xff] %v490_v48  ;;  %493 = vst [vmem:[%s14832_s23 + $0x188] sm:$0xff] %v492_v49  ;;  %v496_v51 = vld [vmem:[%s14827_s22 + $0x318] sm:$0xff]  ;;  %v498_v52 = vld [vmem:[%s14827_s22 + $0x320] sm:$0xff] }
  0x2b   : > { %495 = vst [vmem:[%s14832_s23 + $0x190] sm:$0xff] %v494_v50  ;;  %v500_v53 = vld [vmem:[%s14827_s22 + $0x328] sm:$0xff]  ;;  %497 = vst [vmem:[%s14832_s23 + $0x198] sm:$0xff] %v496_v51  ;;  %v502_v54 = vld [vmem:[%s14827_s22 + $0x330] sm:$0xff] }
  0x2c   : > { %499 = vst [vmem:[%s14832_s23 + $0x1a0] sm:$0xff] %v498_v52  ;;  %501 = vst [vmem:[%s14832_s23 + $0x1a8] sm:$0xff] %v500_v53  ;;  %v504_v55 = vld [vmem:[%s14827_s22 + $0x338] sm:$0xff]  ;;  %v506_v56 = vld [vmem:[%s14827_s22 + $0x340] sm:$0xff] }
  0x2d   : > { %503 = vst [vmem:[%s14832_s23 + $0x1b0] sm:$0xff] %v502_v54  ;;  %505 = vst [vmem:[%s14832_s23 + $0x1b8] sm:$0xff] %v504_v55  ;;  %v508_v57 = vld [vmem:[%s14827_s22 + $0x348] sm:$0xff]  ;;  %v510_v58 = vld [vmem:[%s14827_s22 + $0x350] sm:$0xff] }
  0x2e   : > { %507 = vst [vmem:[%s14832_s23 + $0x1c0] sm:$0xff] %v506_v56  ;;  %v512_v59 = vld [vmem:[%s14827_s22 + $0x358] sm:$0xff]  ;;  %509 = vst [vmem:[%s14832_s23 + $0x1c8] sm:$0xff] %v508_v57  ;;  %v514_v60 = vld [vmem:[%s14827_s22 + $0x360] sm:$0xff] }
  0x2f   : > { %511 = vst [vmem:[%s14832_s23 + $0x1d0] sm:$0xff] %v510_v58  ;;  %513 = vst [vmem:[%s14832_s23 + $0x1d8] sm:$0xff] %v512_v59  ;;  %v516_v61 = vld [vmem:[%s14827_s22 + $0x368] sm:$0xff]  ;;  %v518_v62 = vld [vmem:[%s14827_s22 + $0x370] sm:$0xff] }
  0x30   : > { %515 = vst [vmem:[%s14832_s23 + $0x1e0] sm:$0xff] %v514_v60  ;;  %517 = vst [vmem:[%s14832_s23 + $0x1e8] sm:$0xff] %v516_v61  ;;  %v520_v63 = vld [vmem:[%s14827_s22 + $0x378] sm:$0xff]  ;;  %v522_v0 = vld [vmem:[%s14827_s22 + $0x400] sm:$0xff] }
  0x31   : > { %519 = vst [vmem:[%s14832_s23 + $0x1f0] sm:$0xff] %v518_v62  ;;  %v524_v1 = vld [vmem:[%s14827_s22 + $0x408] sm:$0xff]  ;;  %521 = vst [vmem:[%s14832_s23 + $0x1f8] sm:$0xff] %v520_v63  ;;  %v526_v2 = vld [vmem:[%s14827_s22 + $0x410] sm:$0xff] }
  0x32   : > { %523 = vst [vmem:[%s14832_s23 + $0x200] sm:$0xff] %v522_v0  ;;  %525 = vst [vmem:[%s14832_s23 + $0x208] sm:$0xff] %v524_v1  ;;  %v528_v3 = vld [vmem:[%s14827_s22 + $0x418] sm:$0xff]  ;;  %v530_v4 = vld [vmem:[%s14827_s22 + $0x420] sm:$0xff] }
  0x33   : > { %527 = vst [vmem:[%s14832_s23 + $0x210] sm:$0xff] %v526_v2  ;;  %529 = vst [vmem:[%s14832_s23 + $0x218] sm:$0xff] %v528_v3  ;;  %v532_v5 = vld [vmem:[%s14827_s22 + $0x428] sm:$0xff]  ;;  %v534_v6 = vld [vmem:[%s14827_s22 + $0x430] sm:$0xff] }
  0x34   : > { %531 = vst [vmem:[%s14832_s23 + $0x220] sm:$0xff] %v530_v4  ;;  %v536_v7 = vld [vmem:[%s14827_s22 + $0x438] sm:$0xff]  ;;  %533 = vst [vmem:[%s14832_s23 + $0x228] sm:$0xff] %v532_v5  ;;  %v538_v8 = vld [vmem:[%s14827_s22 + $0x440] sm:$0xff] }
  0x35   : > { %535 = vst [vmem:[%s14832_s23 + $0x230] sm:$0xff] %v534_v6  ;;  %537 = vst [vmem:[%s14832_s23 + $0x238] sm:$0xff] %v536_v7  ;;  %v540_v9 = vld [vmem:[%s14827_s22 + $0x448] sm:$0xff]  ;;  %v542_v10 = vld [vmem:[%s14827_s22 + $0x450] sm:$0xff] }
  0x36   : > { %539 = vst [vmem:[%s14832_s23 + $0x240] sm:$0xff] %v538_v8  ;;  %541 = vst [vmem:[%s14832_s23 + $0x248] sm:$0xff] %v540_v9  ;;  %v544_v11 = vld [vmem:[%s14827_s22 + $0x458] sm:$0xff]  ;;  %v546_v12 = vld [vmem:[%s14827_s22 + $0x460] sm:$0xff] }
  0x37   : > { %543 = vst [vmem:[%s14832_s23 + $0x250] sm:$0xff] %v542_v10  ;;  %v548_v13 = vld [vmem:[%s14827_s22 + $0x468] sm:$0xff]  ;;  %545 = vst [vmem:[%s14832_s23 + $0x258] sm:$0xff] %v544_v11  ;;  %v550_v14 = vld [vmem:[%s14827_s22 + $0x470] sm:$0xff] }
  0x38   : > { %547 = vst [vmem:[%s14832_s23 + $0x260] sm:$0xff] %v546_v12  ;;  %549 = vst [vmem:[%s14832_s23 + $0x268] sm:$0xff] %v548_v13  ;;  %v552_v15 = vld [vmem:[%s14827_s22 + $0x478] sm:$0xff]  ;;  %v554_v16 = vld [vmem:[%s14827_s22 + $0x500] sm:$0xff] }
  0x39   : > { %551 = vst [vmem:[%s14832_s23 + $0x270] sm:$0xff] %v550_v14  ;;  %553 = vst [vmem:[%s14832_s23 + $0x278] sm:$0xff] %v552_v15  ;;  %v556_v17 = vld [vmem:[%s14827_s22 + $0x508] sm:$0xff]  ;;  %v558_v18 = vld [vmem:[%s14827_s22 + $0x510] sm:$0xff] }
  0x3a   : > { %555 = vst [vmem:[%s14832_s23 + $0x280] sm:$0xff] %v554_v16  ;;  %v560_v19 = vld [vmem:[%s14827_s22 + $0x518] sm:$0xff]  ;;  %557 = vst [vmem:[%s14832_s23 + $0x288] sm:$0xff] %v556_v17  ;;  %v562_v20 = vld [vmem:[%s14827_s22 + $0x520] sm:$0xff] }
  0x3b   : > { %559 = vst [vmem:[%s14832_s23 + $0x290] sm:$0xff] %v558_v18  ;;  %561 = vst [vmem:[%s14832_s23 + $0x298] sm:$0xff] %v560_v19  ;;  %v564_v21 = vld [vmem:[%s14827_s22 + $0x528] sm:$0xff]  ;;  %v566_v22 = vld [vmem:[%s14827_s22 + $0x530] sm:$0xff] }
  0x3c   : > { %563 = vst [vmem:[%s14832_s23 + $0x2a0] sm:$0xff] %v562_v20  ;;  %565 = vst [vmem:[%s14832_s23 + $0x2a8] sm:$0xff] %v564_v21  ;;  %v568_v23 = vld [vmem:[%s14827_s22 + $0x538] sm:$0xff]  ;;  %v570_v24 = vld [vmem:[%s14827_s22 + $0x540] sm:$0xff] }
  0x3d   : > { %567 = vst [vmem:[%s14832_s23 + $0x2b0] sm:$0xff] %v566_v22  ;;  %v572_v25 = vld [vmem:[%s14827_s22 + $0x548] sm:$0xff]  ;;  %569 = vst [vmem:[%s14832_s23 + $0x2b8] sm:$0xff] %v568_v23  ;;  %v574_v26 = vld [vmem:[%s14827_s22 + $0x550] sm:$0xff] }
  0x3e   : > { %571 = vst [vmem:[%s14832_s23 + $0x2c0] sm:$0xff] %v570_v24  ;;  %573 = vst [vmem:[%s14832_s23 + $0x2c8] sm:$0xff] %v572_v25  ;;  %v576_v27 = vld [vmem:[%s14827_s22 + $0x558] sm:$0xff]  ;;  %v578_v28 = vld [vmem:[%s14827_s22 + $0x560] sm:$0xff] }
  0x3f   : > { %575 = vst [vmem:[%s14832_s23 + $0x2d0] sm:$0xff] %v574_v26  ;;  %577 = vst [vmem:[%s14832_s23 + $0x2d8] sm:$0xff] %v576_v27  ;;  %v580_v29 = vld [vmem:[%s14827_s22 + $0x568] sm:$0xff]  ;;  %v582_v30 = vld [vmem:[%s14827_s22 + $0x570] sm:$0xff] }
  0x40   : > { %579 = vst [vmem:[%s14832_s23 + $0x2e0] sm:$0xff] %v578_v28  ;;  %v584_v31 = vld [vmem:[%s14827_s22 + $0x578] sm:$0xff]  ;;  %581 = vst [vmem:[%s14832_s23 + $0x2e8] sm:$0xff] %v580_v29  ;;  %v586_v32 = vld [vmem:[%s14827_s22 + $0x600] sm:$0xff] }
  0x41   : > { %583 = vst [vmem:[%s14832_s23 + $0x2f0] sm:$0xff] %v582_v30  ;;  %585 = vst [vmem:[%s14832_s23 + $0x2f8] sm:$0xff] %v584_v31  ;;  %v588_v33 = vld [vmem:[%s14827_s22 + $0x608] sm:$0xff]  ;;  %v590_v34 = vld [vmem:[%s14827_s22 + $0x610] sm:$0xff] }
  0x42   : > { %587 = vst [vmem:[%s14832_s23 + $0x300] sm:$0xff] %v586_v32  ;;  %589 = vst [vmem:[%s14832_s23 + $0x308] sm:$0xff] %v588_v33  ;;  %v592_v35 = vld [vmem:[%s14827_s22 + $0x618] sm:$0xff]  ;;  %v594_v36 = vld [vmem:[%s14827_s22 + $0x620] sm:$0xff] }
  0x43   : > { %591 = vst [vmem:[%s14832_s23 + $0x310] sm:$0xff] %v590_v34  ;;  %v596_v37 = vld [vmem:[%s14827_s22 + $0x628] sm:$0xff]  ;;  %593 = vst [vmem:[%s14832_s23 + $0x318] sm:$0xff] %v592_v35  ;;  %v598_v38 = vld [vmem:[%s14827_s22 + $0x630] sm:$0xff] }
  0x44   : > { %595 = vst [vmem:[%s14832_s23 + $0x320] sm:$0xff] %v594_v36  ;;  %597 = vst [vmem:[%s14832_s23 + $0x328] sm:$0xff] %v596_v37  ;;  %v600_v39 = vld [vmem:[%s14827_s22 + $0x638] sm:$0xff]  ;;  %v602_v40 = vld [vmem:[%s14827_s22 + $0x640] sm:$0xff] }
  0x45   : > { %599 = vst [vmem:[%s14832_s23 + $0x330] sm:$0xff] %v598_v38  ;;  %601 = vst [vmem:[%s14832_s23 + $0x338] sm:$0xff] %v600_v39  ;;  %v604_v41 = vld [vmem:[%s14827_s22 + $0x648] sm:$0xff]  ;;  %v606_v42 = vld [vmem:[%s14827_s22 + $0x650] sm:$0xff] }
  0x46   : > { %603 = vst [vmem:[%s14832_s23 + $0x340] sm:$0xff] %v602_v40  ;;  %v608_v43 = vld [vmem:[%s14827_s22 + $0x658] sm:$0xff]  ;;  %605 = vst [vmem:[%s14832_s23 + $0x348] sm:$0xff] %v604_v41  ;;  %v610_v44 = vld [vmem:[%s14827_s22 + $0x660] sm:$0xff] }
  0x47   : > { %607 = vst [vmem:[%s14832_s23 + $0x350] sm:$0xff] %v606_v42  ;;  %609 = vst [vmem:[%s14832_s23 + $0x358] sm:$0xff] %v608_v43  ;;  %v612_v45 = vld [vmem:[%s14827_s22 + $0x668] sm:$0xff]  ;;  %v614_v46 = vld [vmem:[%s14827_s22 + $0x670] sm:$0xff] }
  0x48   : > { %611 = vst [vmem:[%s14832_s23 + $0x360] sm:$0xff] %v610_v44  ;;  %613 = vst [vmem:[%s14832_s23 + $0x368] sm:$0xff] %v612_v45  ;;  %v616_v47 = vld [vmem:[%s14827_s22 + $0x678] sm:$0xff]  ;;  %v618_v48 = vld [vmem:[%s14827_s22 + $0x700] sm:$0xff] }
  0x49   : > { %615 = vst [vmem:[%s14832_s23 + $0x370] sm:$0xff] %v614_v46  ;;  %v620_v49 = vld [vmem:[%s14827_s22 + $0x708] sm:$0xff]  ;;  %617 = vst [vmem:[%s14832_s23 + $0x378] sm:$0xff] %v616_v47  ;;  %v622_v50 = vld [vmem:[%s14827_s22 + $0x710] sm:$0xff] }
  0x4a   : > { %619 = vst [vmem:[%s14832_s23 + $0x380] sm:$0xff] %v618_v48  ;;  %621 = vst [vmem:[%s14832_s23 + $0x388] sm:$0xff] %v620_v49  ;;  %v624_v51 = vld [vmem:[%s14827_s22 + $0x718] sm:$0xff]  ;;  %v626_v52 = vld [vmem:[%s14827_s22 + $0x720] sm:$0xff] }
  0x4b   : > { %623 = vst [vmem:[%s14832_s23 + $0x390] sm:$0xff] %v622_v50  ;;  %625 = vst [vmem:[%s14832_s23 + $0x398] sm:$0xff] %v624_v51  ;;  %v628_v53 = vld [vmem:[%s14827_s22 + $0x728] sm:$0xff]  ;;  %v630_v54 = vld [vmem:[%s14827_s22 + $0x730] sm:$0xff] }
  0x4c   : > { %627 = vst [vmem:[%s14832_s23 + $0x3a0] sm:$0xff] %v626_v52  ;;  %v632_v55 = vld [vmem:[%s14827_s22 + $0x738] sm:$0xff]  ;;  %629 = vst [vmem:[%s14832_s23 + $0x3a8] sm:$0xff] %v628_v53  ;;  %v634_v56 = vld [vmem:[%s14827_s22 + $0x740] sm:$0xff] }
  0x4d   : > { %631 = vst [vmem:[%s14832_s23 + $0x3b0] sm:$0xff] %v630_v54  ;;  %633 = vst [vmem:[%s14832_s23 + $0x3b8] sm:$0xff] %v632_v55  ;;  %v636_v57 = vld [vmem:[%s14827_s22 + $0x748] sm:$0xff]  ;;  %v638_v58 = vld [vmem:[%s14827_s22 + $0x750] sm:$0xff] }
  0x4e   : > { %635 = vst [vmem:[%s14832_s23 + $0x3c0] sm:$0xff] %v634_v56  ;;  %637 = vst [vmem:[%s14832_s23 + $0x3c8] sm:$0xff] %v636_v57  ;;  %v640_v59 = vld [vmem:[%s14827_s22 + $0x758] sm:$0xff]  ;;  %v642_v60 = vld [vmem:[%s14827_s22 + $0x760] sm:$0xff] }
  0x4f   : > { %639 = vst [vmem:[%s14832_s23 + $0x3d0] sm:$0xff] %v638_v58  ;;  %v644_v61 = vld [vmem:[%s14827_s22 + $0x768] sm:$0xff]  ;;  %641 = vst [vmem:[%s14832_s23 + $0x3d8] sm:$0xff] %v640_v59  ;;  %v646_v62 = vld [vmem:[%s14827_s22 + $0x770] sm:$0xff] }
  0x50   : > { %643 = vst [vmem:[%s14832_s23 + $0x3e0] sm:$0xff] %v642_v60  ;;  %645 = vst [vmem:[%s14832_s23 + $0x3e8] sm:$0xff] %v644_v61  ;;  %v648_v63 = vld [vmem:[%s14827_s22 + $0x778] sm:$0xff] }
  0x51   : > { %647 = vst [vmem:[%s14832_s23 + $0x3f0] sm:$0xff] %v646_v62  ;;  %649 = vst [vmem:[%s14832_s23 + $0x3f8] sm:$0xff] %v648_v63 }
  0x52 PF: > { %p11550_p5 = scmp.ge.s32.totalorder %s14774_s11, 1  ;;  %p654_p6 = scmp.lt.s32.totalorder %s14774_s11, 3 }
  0x54   : > { %p655_p7 = pnand %p11550_p5, %p654_p6 }
  0x56   : > { %658 = sbr.rel (%p655_p7) target bundleno = 3800 (0xed8), region = 62 }
  0x5d   : > { %s661_s24 = sand.u32 1, %s14766_s9   ;;  %v699_v0 = vld [vmem:[%s20679_s1 + $0x30] sm:$0xff]  ;;  %v700_v1 = vld [vmem:[%s20679_s1 + $0x38] sm:$0xff]  ;;  %v689_v2 = vld [vmem:[%s20679_s1] sm:$0xff]  ;;  %s14776_s7 = smov 112   ;;  %vm1243_vm0 = vcmask 130048  }
  0x5e   : > { %s11551_s3 = sshll.u32 %s661_s24, 10  ;;  %v14252_v3 = vpack.c.bf16 %v700_v1, %v699_v0  ;;  %v690_v4 = vld [vmem:[%s20679_s1 + $0x8] sm:$0xff]  ;;  %v691_v32 = vld [vmem:[%s20679_s1 + $0x10] sm:$0xff]  ;;  %v692_v33 = vld [vmem:[%s20679_s1 + $0x18] sm:$0xff]  ;;  %vm2480_vm2 = vcmask 261120   ;;  %s11552_s8 = sshll.u32 %s11543_s12, 4 }
  0x5f   : > { %v15102_v5 = vpack.c.bf16 %v690_v4, %v689_v2  ;;  %s15104_s6 = scalar_lea.vmem [#allocation2], %s11551_s3  ;;  %v15162_v34 = vpack.c.bf16 %v692_v33, %v691_v32  ;;  %v693_v41 = vld [vmem:[%s20679_s1 + $0x20] sm:$0xff]  ;;  %v694_v42 = vld [vmem:[%s20679_s1 + $0x28] sm:$0xff]  ;;  %v696_v63 = vld [vmem:[%s20679_s1 + $0x50] sm:$0xff]  ;;  %p684_p8 = scmp.lt.s32.totalorder %s11552_s8, 31 }
  0x60   : > { %v851_v6 = vld [vmem:[%s15104_s6 + $0x3c0] sm:$0xff]  ;;  %v853_v7 = vld [vmem:[%s15104_s6 + $0x3d0] sm:$0xff]  ;;  %14424 = vmatprep.subr.bf16.mxu1 %v14252_v3  ;;  %14253 = vmatprep.subr.bf16.mxu0 %v14252_v3  ;;  %v852_v8 = vld [vmem:[%s15104_s6 + $0x3c8] sm:$0xff]  ;;  %v15196_v43 = vpack.c.bf16 %v694_v42, %v693_v41 }
  0x61   : > { %21109 = vst [vmem:[#allocation3_spill] sm:$0xff] %v15102_v5  ;;  %1227 = vrot.lane.b32.xlu0 %v851_v6, %s14776_s7  ;;  %1231 = vrot.lane.b32.xlu1 %v853_v7, %s14776_s7  ;;  %v854_v9 = vld [vmem:[%s15104_s6 + $0x3d8] sm:$0xff]  ;;  %v855_v10 = vld [vmem:[%s15104_s6 + $0x3e0] sm:$0xff]  ;;  %21110 = vst [vmem:[#allocation4_spill] sm:$0xff] %v15162_v34  ;;  %s21998_s8 = smov (!%p684_p8, %s11552_s8), 31 }
  0x62   : > { %14425 = vmatpush3.bf16.msra.mxu1 %v14252_v3  ;;  %14255 = vmatpush3.bf16.msra.mxu0 %v14252_v3  ;;  %v856_v11 = vld [vmem:[%s15104_s6 + $0x3e8] sm:$0xff]  ;;  %v857_v12 = vld [vmem:[%s15104_s6 + $0x3f0] sm:$0xff]  ;;  %v858_v13 = vld [vmem:[%s15104_s6 + $0x3f8] sm:$0xff]  ;;  %21111 = vst [vmem:[#allocation5_spill] sm:$0xff] %v15196_v43  ;;  %s11553_s9 = sshll.u32 %s21998_s8, 3 }
  0x63   : > { %14257 = vmatprep.subr.bf16.mxu1 %v15102_v5  ;;  %v2205_v14 = vld [vmem:[%s15104_s6] sm:$0xff]  ;;  %v2206_v15 = vld [vmem:[%s15104_s6 + $0x8] sm:$0xff]  ;;  %v2207_v16 = vld [vmem:[%s15104_s6 + $0x10] sm:$0xff]  ;;  %s20634_s19 = scalar_lea.vmem %s20680_s2, %s11553_s9 }
  0x64   : > { %v2208_v17 = vld [vmem:[%s15104_s6 + $0x18] sm:$0xff]  ;;  %v2209_v18 = vld [vmem:[%s15104_s6 + $0x20] sm:$0xff]  ;;  %v2210_v19 = vld [vmem:[%s15104_s6 + $0x28] sm:$0xff] }
  0x65   : > { %1229 = vrot.lane.b32.xlu0 %v852_v8, %s14776_s7  ;;  %1233 = vrot.lane.b32.xlu1 %v854_v9, %s14776_s7  ;;  %v2211_v20 = vld [vmem:[%s15104_s6 + $0x30] sm:$0xff]  ;;  %v2212_v21 = vld [vmem:[%s15104_s6 + $0x38] sm:$0xff] }
  0x66   : > { %v2213_v22 = vld [vmem:[%s15104_s6 + $0x40] sm:$0xff]  ;;  %v2214_v23 = vld [vmem:[%s15104_s6 + $0x48] sm:$0xff]  ;;  %v2215_v24 = vld [vmem:[%s15104_s6 + $0x50] sm:$0xff] }
  0x67   : > { %v2216_v25 = vld [vmem:[%s15104_s6 + $0x58] sm:$0xff]  ;;  %v2217_v26 = vld [vmem:[%s15104_s6 + $0x60] sm:$0xff]  ;;  %v2218_v27 = vld [vmem:[%s15104_s6 + $0x68] sm:$0xff] }
  0x68   : > { %v2219_v28 = vld [vmem:[%s15104_s6 + $0x70] sm:$0xff]  ;;  %v2220_v29 = vld [vmem:[%s15104_s6 + $0x78] sm:$0xff]  ;;  %v747_v44 = vld [vmem:[%s15104_s6 + $0x80] sm:$0xff] }
  0x69   : > { %1235 = vrot.lane.b32.xlu0 %v855_v10, %s14776_s7  ;;  %1237 = vrot.lane.b32.xlu1 %v856_v11, %s14776_s7  ;;  %v748_v45 = vld [vmem:[%s15104_s6 + $0x88] sm:$0xff]  ;;  %v749_v48 = vld [vmem:[%s15104_s6 + $0x90] sm:$0xff] }
  0x6a   : > { %v750_v49 = vld [vmem:[%s15104_s6 + $0x98] sm:$0xff]  ;;  %v751_v52 = vld [vmem:[%s15104_s6 + $0xa0] sm:$0xff]  ;;  %v752_v53 = vld [vmem:[%s15104_s6 + $0xa8] sm:$0xff] }
  0x6b   : > { %v753_v56 = vld [vmem:[%s15104_s6 + $0xb0] sm:$0xff]  ;;  %v754_v57 = vld [vmem:[%s15104_s6 + $0xb8] sm:$0xff]  ;;  %v695_v60 = vld [vmem:[%s20679_s1 + $0x48] sm:$0xff] }
  0x6c   : > { %v755_v61 = vld [vmem:[%s15104_s6 + $0xc0] sm:$0xff]  ;;  %v756_v62 = vld [vmem:[%s15104_s6 + $0xc8] sm:$0xff]  ;;  %v15231_v0 = vpack.c.bf16 %v696_v63, %v695_v60  ;;  %v757_v2 = vld [vmem:[%s15104_s6 + $0xd0] sm:$0xff]  ;;  %v20693_v63 = vmov 0.0  }
  0x6d   : > { %1239 = vrot.lane.b32.xlu0 %v857_v12, %s14776_s7  ;;  %1241 = vrot.lane.b32.xlu1 %v858_v13, %s14776_s7  ;;  %v758_v3 = vld [vmem:[%s15104_s6 + $0xd8] sm:$0xff]  ;;  %v759_v4 = vld [vmem:[%s15104_s6 + $0xe0] sm:$0xff] }
  0x6e   : > { %v760_v6 = vld [vmem:[%s15104_s6 + $0xe8] sm:$0xff]  ;;  %v761_v7 = vld [vmem:[%s15104_s6 + $0xf0] sm:$0xff]  ;;  %v762_v8 = vld [vmem:[%s15104_s6 + $0xf8] sm:$0xff] }
  0x6f   : > { %v763_v9 = vld [vmem:[%s15104_s6 + $0x100] sm:$0xff]  ;;  %v764_v10 = vld [vmem:[%s15104_s6 + $0x108] sm:$0xff]  ;;  %v765_v11 = vld [vmem:[%s15104_s6 + $0x110] sm:$0xff] }
  0x70   : > { %v766_v12 = vld [vmem:[%s15104_s6 + $0x118] sm:$0xff]  ;;  %v767_v13 = vld [vmem:[%s15104_s6 + $0x120] sm:$0xff] }
  0x71   : > { %987 = vrot.lane.b32.xlu0 %v2205_v14, %s14776_s7  ;;  %989 = vrot.lane.b32.xlu1 %v2206_v15, %s14776_s7  ;;  %v786_v32 = vld [vmem:[%s15104_s6 + $0x1b8] sm:$0xff] }
  0x72   : > { %v790_v41 = vld [vmem:[%s15104_s6 + $0x1d8] sm:$0xff] }
  0x75   : > { %991 = vrot.lane.b32.xlu0 %v2207_v16, %s14776_s7  ;;  %993 = vrot.lane.b32.xlu1 %v2208_v17, %s14776_s7 }
  0x79   : > { %995 = vrot.lane.b32.xlu0 %v2209_v18, %s14776_s7  ;;  %997 = vrot.lane.b32.xlu1 %v2210_v19, %s14776_s7 }
  0x7d   : > { %999 = vrot.lane.b32.xlu0 %v2211_v20, %s14776_s7  ;;  %1001 = vrot.lane.b32.xlu1 %v2212_v21, %s14776_s7 }
  0x81   : > { %1003 = vrot.lane.b32.xlu0 %v2213_v22, %s14776_s7  ;;  %1005 = vrot.lane.b32.xlu1 %v2214_v23, %s14776_s7 }
  0x85   : > { %1007 = vrot.lane.b32.xlu0 %v2215_v24, %s14776_s7  ;;  %1009 = vrot.lane.b32.xlu1 %v2216_v25, %s14776_s7 }
  0x89   : > { %1011 = vrot.lane.b32.xlu0 %v2217_v26, %s14776_s7  ;;  %1013 = vrot.lane.b32.xlu1 %v2218_v27, %s14776_s7 }
  0x8d   : > { %1015 = vrot.lane.b32.xlu0 %v2219_v28, %s14776_s7  ;;  %1017 = vrot.lane.b32.xlu1 %v2220_v29, %s14776_s7 }
  0x91   : > { %1019 = vrot.lane.b32.xlu0 %v747_v44, %s14776_s7  ;;  %1021 = vrot.lane.b32.xlu1 %v748_v45, %s14776_s7  ;;  %v791_v45 = vld [vmem:[%s15104_s6 + $0x1e0] sm:$0xff] }
  0x95   : > { %1023 = vrot.lane.b32.xlu0 %v749_v48, %s14776_s7  ;;  %1025 = vrot.lane.b32.xlu1 %v750_v49, %s14776_s7  ;;  %v793_v49 = vld [vmem:[%s15104_s6 + $0x1f0] sm:$0xff] }
  0x99   : > { %1027 = vrot.lane.b32.xlu0 %v751_v52, %s14776_s7  ;;  %1029 = vrot.lane.b32.xlu1 %v752_v53, %s14776_s7 }
  0x9d   : > { %1031 = vrot.lane.b32.xlu0 %v753_v56, %s14776_s7  ;;  %1033 = vrot.lane.b32.xlu1 %v754_v57, %s14776_s7  ;;  %v796_v56 = vld [vmem:[%s15104_s6 + $0x208] sm:$0xff] }
  0xa1   : > { %1035 = vrot.lane.b32.xlu0 %v755_v61, %s14776_s7  ;;  %1037 = vrot.lane.b32.xlu1 %v756_v62, %s14776_s7 }
  0xa5   : > { %1039 = vrot.lane.b32.xlu0 %v757_v2, %s14776_s7  ;;  %1041 = vrot.lane.b32.xlu1 %v758_v3, %s14776_s7 }
  0xa9   : > { %1043 = vrot.lane.b32.xlu0 %v759_v4, %s14776_s7  ;;  %1045 = vrot.lane.b32.xlu1 %v760_v6, %s14776_s7 }
  0xad   : > { %1047 = vrot.lane.b32.xlu0 %v761_v7, %s14776_s7  ;;  %1049 = vrot.lane.b32.xlu1 %v762_v8, %s14776_s7 }
  0xb1   : > { %1051 = vrot.lane.b32.xlu0 %v763_v9, %s14776_s7  ;;  %1053 = vrot.lane.b32.xlu1 %v764_v10, %s14776_s7 }
  0xb5   : > { %1055 = vrot.lane.b32.xlu0 %v765_v11, %s14776_s7  ;;  %1057 = vrot.lane.b32.xlu1 %v766_v12, %s14776_s7 }
  0xb9   : > { %1059 = vrot.lane.b32.xlu0 %v767_v13, %s14776_s7 }
  0xd3   : > { %v1228_v30 = vpop.permute.xlu0 %1227  ;;  %v1232_v31 = vpop.permute.xlu1 %1231 }
  0xd4   : > { %13264 = vmatprep.mubr.msk.f32.mxu1 %vm1243_vm0, %v1228_v30  ;;  %v784_v30 = vld [vmem:[%s15104_s6 + $0x1a8] sm:$0xff] }
  0xd7   : > { %v1230_v35 = vpop.permute.xlu0 %1229  ;;  %v1234_v36 = vpop.permute.xlu1 %1233 }
  0xd8   : > { %13265 = vmatmul.mubr.msk.f32.vlgmr.msra.gmra.mrb[0].mxu1 %vm1243_vm0, %v1230_v35 }
  0xd9   : > { %14259 = vmatpush3.bf16.msra.mxu1 %v15102_v5  ;;  %13267 = vmatprep.mubr.msk.f32.mxu1 %vm1243_vm0, %v1232_v31  ;;  %v785_v31 = vld [vmem:[%s15104_s6 + $0x1b0] sm:$0xff] }
  0xda   : > { %14261 = vmatprep.subr.bf16.mxu1 %v15162_v34 }
  0xdb   : > { %v1236_v37 = vpop.permute.xlu0 %1235  ;;  %v1238_v38 = vpop.permute.xlu1 %1237 }
  0xdc   : > { %13268 = vmatmul.mubr.msk.f32.gmra.mrb[2].mxu1 %vm1243_vm0, %v1234_v36  ;;  %v787_v36 = vld [vmem:[%s15104_s6 + $0x1c0] sm:$0xff] }
  0xdd   : > { %13270 = vmatprep.mubr.msk.f32.mxu1 %vm1243_vm0, %v1236_v37  ;;  %v788_v37 = vld [vmem:[%s15104_s6 + $0x1c8] sm:$0xff] }
  0xdf   : > { %v1240_v39 = vpop.permute.xlu0 %1239  ;;  %v1242_v40 = vpop.permute.xlu1 %1241 }
  0xe0   : > { %13271 = vmatmul.mubr.msk.f32.gmra.mrb[4].mxu1 %vm1243_vm0, %v1238_v38 }
  0xe1   : > { %13273 = vmatprep.mubr.msk.f32.mxu1 %vm1243_vm0, %v1240_v39 }
  0xe3   : > { %v988_v46 = vpop.permute.xlu0 %987  ;;  %v990_v47 = vpop.permute.xlu1 %989 }
  0xe4   : > { %13274 = vmatmul.mubr.msk.f32.gmra.mrb[6].mxu1 %vm1243_vm0, %v1242_v40  ;;  %13084 = vmatprep.mubr.msk.f32.mxu0 %vm1243_vm0, %v988_v46  ;;  %v789_v40 = vld [vmem:[%s15104_s6 + $0x1d0] sm:$0xff]  ;;  %v792_v46 = vld [vmem:[%s15104_s6 + $0x1e8] sm:$0xff] }
  0xe5   : > { %13280 = vmatprep.mubr.msk.f32.mxu1 %vm1243_vm0, %v2205_v14  ;;  %13085 = vmatmul.mubr.msk.f32.vlgmr.msra.gmra.mrb[0].mxu0 %vm1243_vm0, %v990_v47  ;;  %v768_v14 = vld [vmem:[%s15104_s6 + $0x128] sm:$0xff] }
  0xe6   : > { %1061 = vrot.lane.b32.xlu1 %v768_v14, %s14776_s7 }
  0xe7   : > { %v992_v50 = vpop.permute.xlu0 %991  ;;  %v994_v51 = vpop.permute.xlu1 %993 }
  0xe8   : > { %13281 = vmatmul.mubr.msk.f32.vlgmr.msra.gmra.mrb[8].mxu1 %vm1243_vm0, %v2206_v15  ;;  %13087 = vmatprep.mubr.msk.f32.mxu0 %vm1243_vm0, %v992_v50  ;;  %v769_v15 = vld [vmem:[%s15104_s6 + $0x130] sm:$0xff]  ;;  %v794_v50 = vld [vmem:[%s15104_s6 + $0x1f8] sm:$0xff] }
  0xe9   : > { %13283 = vmatprep.mubr.msk.f32.mxu1 %vm1243_vm0, %v2207_v16  ;;  %14263 = vmatpush3.bf16.msra.mxu1 %v15162_v34  ;;  %v770_v16 = vld [vmem:[%s15104_s6 + $0x138] sm:$0xff] }
  0xea   : > { %14265 = vmatprep.subr.bf16.mxu1 %v15196_v43  ;;  %13088 = vmatmul.mubr.msk.f32.gmra.mrb[2].mxu0 %vm1243_vm0, %v994_v51  ;;  %v15331_v51 = vld [vmem:[%s20679_s1 + $0x88] ss:$0 sm:$0xff] }
  0xeb   : > { %v996_v54 = vpop.permute.xlu0 %995  ;;  %v998_v55 = vpop.permute.xlu1 %997  ;;  %1063 = vrot.lane.b32.xlu0 %v769_v15, %s14776_s7  ;;  %1065 = vrot.lane.b32.xlu1 %v770_v16, %s14776_s7 }
  0xec   : > { %13284 = vmatmul.mubr.msk.f32.gmra.mrb[10].mxu1 %vm1243_vm0, %v2208_v17  ;;  %13090 = vmatprep.mubr.msk.f32.mxu0 %vm1243_vm0, %v996_v54  ;;  %v771_v17 = vld [vmem:[%s15104_s6 + $0x140] sm:$0xff] }
  0xed   : > { %13286 = vmatprep.mubr.msk.f32.mxu1 %vm1243_vm0, %v2209_v18  ;;  %14267 = vmatpush3.bf16.msra.mxu1 %v15196_v43  ;;  %v772_v18 = vld [vmem:[%s15104_s6 + $0x148] sm:$0xff] }
  0xee   : > { %13091 = vmatmul.mubr.msk.f32.gmra.mrb[4].mxu0 %vm1243_vm0, %v998_v55  ;;  %14269 = vmatprep.subr.bf16.mxu1 %v15231_v0  ;;  %v795_v55 = vld [vmem:[%s15104_s6 + $0x200] sm:$0xff] }
  0xef   : > { %v1000_v58 = vpop.permute.xlu0 %999  ;;  %v1002_v59 = vpop.permute.xlu1 %1001  ;;  %1067 = vrot.lane.b32.xlu0 %v771_v17, %s14776_s7  ;;  %1069 = vrot.lane.b32.xlu1 %v772_v18, %s14776_s7 }
  0xf0   : > { %13287 = vmatmul.mubr.msk.f32.gmra.mrb[12].mxu1 %vm1243_vm0, %v2210_v19  ;;  %13093 = vmatprep.mubr.msk.f32.mxu0 %vm1243_vm0, %v1000_v58  ;;  %v773_v19 = vld [vmem:[%s15104_s6 + $0x150] sm:$0xff]  ;;  %v697_v58 = vld [vmem:[%s20679_s1 + $0x58] sm:$0xff] }
  0xf1   : > { %13289 = vmatprep.mubr.msk.f32.mxu1 %vm1243_vm0, %v2211_v20  ;;  %v774_v20 = vld [vmem:[%s15104_s6 + $0x158] sm:$0xff] }
  0xf2   : > { %13094 = vmatmul.mubr.msk.f32.gmra.mrb[6].mxu0 %vm1243_vm0, %v1002_v59  ;;  %v698_v59 = vld [vmem:[%s20679_s1 + $0x60] sm:$0xff] }
  0xf3   : > { %v1004_v1 = vpop.permute.xlu0 %1003  ;;  %1071 = vrot.lane.b32.xlu0 %v773_v19, %s14776_s7  ;;  %1073 = vrot.lane.b32.xlu1 %v774_v20, %s14776_s7  ;;  %v15359_v2 = vpack.c.bf16 %v698_v59, %v697_v58  ;;  %v798_v58 = vld [vmem:[%s15104_s6 + $0x218] sm:$0xff] }
  0xf4   : > { %13290 = vmatmul.mubr.msk.f32.gmra.mrb[14].mxu1 %vm1243_vm0, %v2212_v21  ;;  %13096 = vmatprep.mubr.msk.f32.mxu0 %vm1243_vm0, %v1004_v1  ;;  %v775_v21 = vld [vmem:[%s15104_s6 + $0x160] sm:$0xff] }
  0xf5   : > { %13292 = vmatprep.mubr.msk.f32.mxu1 %vm1243_vm0, %v2213_v22  ;;  %v776_v22 = vld [vmem:[%s15104_s6 + $0x168] sm:$0xff]  ;;  %21120 = vst [vmem:[#allocation14_spill] sm:$0xff] %v15359_v2 }
  0xf7   : > { %1075 = vrot.lane.b32.xlu0 %v775_v21, %s14776_s7  ;;  %1077 = vrot.lane.b32.xlu1 %v776_v22, %s14776_s7  ;;  %v1008_v59 = vpop.permute.xlu0 %1007 }
  0xf8   : > { %13293 = vmatmul.mubr.msk.f32.gmra.mrb[16].mxu1 %vm1243_vm0, %v2214_v23  ;;  %v777_v23 = vld [vmem:[%s15104_s6 + $0x170] sm:$0xff] }
  0xf9   : > { %13295 = vmatprep.mubr.msk.f32.mxu1 %vm1243_vm0, %v2215_v24  ;;  %v778_v24 = vld [vmem:[%s15104_s6 + $0x178] sm:$0xff] }
  0xfb   : > { %1079 = vrot.lane.b32.xlu0 %v777_v23, %s14776_s7  ;;  %1081 = vrot.lane.b32.xlu1 %v778_v24, %s14776_s7 }
  0xfc   : > { %13296 = vmatmul.mubr.msk.f32.gmra.mrb[18].mxu1 %vm1243_vm0, %v2216_v25  ;;  %v779_v25 = vld [vmem:[%s15104_s6 + $0x180] sm:$0xff] }
  0xfd   : > { %13298 = vmatprep.mubr.msk.f32.mxu1 %vm1243_vm0, %v2217_v26  ;;  %v780_v26 = vld [vmem:[%s15104_s6 + $0x188] sm:$0xff] }
  0xff   : > { %1083 = vrot.lane.b32.xlu0 %v779_v25, %s14776_s7  ;;  %1085 = vrot.lane.b32.xlu1 %v780_v26, %s14776_s7 }
 0x100   : > { %13299 = vmatmul.mubr.msk.f32.gmra.mrb[20].mxu1 %vm1243_vm0, %v2218_v27  ;;  %v781_v27 = vld [vmem:[%s15104_s6 + $0x190] sm:$0xff] }
 0x101   : > { %13301 = vmatprep.mubr.msk.f32.mxu1 %vm1243_vm0, %v2219_v28  ;;  %v782_v28 = vld [vmem:[%s15104_s6 + $0x198] sm:$0xff] }
 0x103   : > { %1087 = vrot.lane.b32.xlu0 %v781_v27, %s14776_s7  ;;  %1089 = vrot.lane.b32.xlu1 %v782_v28, %s14776_s7 }
 0x104   : > { %13302 = vmatmul.mubr.msk.f32.gmra.mrb[22].mxu1 %vm1243_vm0, %v2220_v29  ;;  %v783_v29 = vld [vmem:[%s15104_s6 + $0x1a0] sm:$0xff] }
 0x107   : > { %1091 = vrot.lane.b32.xlu0 %v783_v29, %s14776_s7  ;;  %1093 = vrot.lane.b32.xlu1 %v784_v30, %s14776_s7 }
 0x10b   : > { %1095 = vrot.lane.b32.xlu0 %v785_v31, %s14776_s7  ;;  %1097 = vrot.lane.b32.xlu1 %v786_v32, %s14776_s7 }
 0x10f   : > { %1099 = vrot.lane.b32.xlu0 %v787_v36, %s14776_s7  ;;  %1101 = vrot.lane.b32.xlu1 %v788_v37, %s14776_s7 }
 0x113   : > { %1103 = vrot.lane.b32.xlu0 %v789_v40, %s14776_s7  ;;  %1105 = vrot.lane.b32.xlu1 %v790_v41, %s14776_s7 }
 0x117   : > { %1107 = vrot.lane.b32.xlu0 %v791_v45, %s14776_s7  ;;  %1109 = vrot.lane.b32.xlu1 %v792_v46, %s14776_s7 }
 0x11b   : > { %1111 = vrot.lane.b32.xlu0 %v793_v49, %s14776_s7  ;;  %1113 = vrot.lane.b32.xlu1 %v794_v50, %s14776_s7 }
 0x11f   : > { %1115 = vrot.lane.b32.xlu0 %v795_v55, %s14776_s7  ;;  %1117 = vrot.lane.b32.xlu1 %v796_v56, %s14776_s7  ;;  %v1006_v55 = vpop.permute.xlu1 %1005  ;;  %v797_v56 = vld [vmem:[%s15104_s6 + $0x210] sm:$0xff] }
 0x120   : > { %13097 = vmatmul.mubr.msk.f32.gmra.mrb[8].mxu0 %vm1243_vm0, %v1006_v55  ;;  %v806_v55 = vld [vmem:[%s15104_s6 + $0x258] sm:$0xff] }
 0x121   : > { %13099 = vmatprep.mubr.msk.f32.mxu0 %vm1243_vm0, %v1008_v59  ;;  %v807_v59 = vld [vmem:[%s15104_s6 + $0x260] sm:$0xff] }
 0x123   : > { %1119 = vrot.lane.b32.xlu0 %v797_v56, %s14776_s7  ;;  %1121 = vrot.lane.b32.xlu1 %v798_v58, %s14776_s7 }
 0x1ab   : > { %v15296_v33 = vpop.f32.mrb[0].mxu1 }
 0x1ac   : > { %21112 = vst [vmem:[#allocation6_spill] sm:$0xff] %v15296_v33  ;;  %v15300_v35 = vpop.f32.mrb[1].mxu1 }
 0x1ad   : > { %21113 = vst [vmem:[#allocation7_spill] sm:$0xff] %v15300_v35 }
 0x1af   : > { %v15304_v38 = vpop.f32.mrb[2].mxu1 }
 0x1b0   : > { %21114 = vst [vmem:[#allocation8_spill] sm:$0xff] %v15304_v38  ;;  %v15308_v39 = vpop.f32.mrb[3].mxu1 }
 0x1b1   : > { %21115 = vst [vmem:[#allocation9_spill] sm:$0xff] %v15308_v39 }
 0x1b3   : > { %v15312_v42 = vpop.f32.mrb[4].mxu1 }
 0x1b4   : > { %21116 = vst [vmem:[#allocation10_spill] sm:$0xff] %v15312_v42  ;;  %v15316_v44 = vpop.f32.mrb[5].mxu1 }
 0x1b5   : > { %21117 = vst [vmem:[#allocation11_spill] sm:$0xff] %v15316_v44 }
 0x1b7   : > { %v15320_v47 = vpop.f32.mrb[6].mxu1 }
 0x1b8   : > { %21118 = vst [vmem:[#allocation12_spill] sm:$0xff] %v15320_v47  ;;  %v15324_v48 = vpop.f32.mrb[7].mxu1 }
 0x1b9   : > { %21119 = vst [vmem:[#allocation13_spill] sm:$0xff] %v15324_v48 }
 0x1bb   : > { %v13282_v52 = vpop.f32.mrb[8].mxu1 }
 0x1bc   : > { %v15336_v53 = vadd.f32 %v13282_v52, %v15331_v51  ;;  %v2335_v54 = vpop.f32.mrb[9].mxu1 }
 0x1bd   : > { %v15341_v57 = vadd.f32 %v15331_v51, %v2335_v54 }
 0x1be   : > { %vm2449_vm1 = vcmp.gt.f32.partialorder %v15336_v53, 1.0 }
 0x1bf   : > { %v13285_v60 = vpop.f32.mrb[10].mxu1  ;;  %vm2448_vm3 = vcmp.gt.f32.partialorder %v15341_v57, 1.0  ;;  %v15362_v3 = vsel %vm2449_vm1, 1.0, %v20693_v63 }
 0x1c0   : > { %v15354_v61 = vadd.f32 %v13285_v60, %v15331_v51  ;;  %v2345_v62 = vpop.f32.mrb[11].mxu1  ;;  %v15357_v1 = vsel %vm2448_vm3, 1.0, %v20693_v63  ;;  %v1010_v60 = vpop.permute.xlu1 %1009 }
 0x1c1   : > { %v15365_v4 = vadd.f32 %v15331_v51, %v2345_v62  ;;  %13312 = vmatprep.mubr.msk.f32.mxu1 %vm2480_vm2, %v15357_v1  ;;  %v799_v62 = vld [vmem:[%s15104_s6 + $0x220] sm:$0xff]  ;;  %13100 = vmatmul.mubr.msk.f32.gmra.mrb[10].mxu0 %vm1243_vm0, %v1010_v60  ;;  %v808_v60 = vld [vmem:[%s15104_s6 + $0x268] sm:$0xff] }
 0x1c2   : > { %13313 = vmatmul.mubr.msk.f32.vlgmr.msra.gmra.mrb[24].mxu1 %vm2480_vm2, %v15362_v3  ;;  %vm2451_vm4 = vcmp.gt.f32.partialorder %v15354_v61, 1.0  ;;  %1123 = vrot.lane.b32.xlu0 %v799_v62, %s14776_s7 }
 0x1c3   : > { %v13288_v6 = vpop.f32.mrb[12].mxu1  ;;  %vm2450_vm5 = vcmp.gt.f32.partialorder %v15365_v4, 1.0  ;;  %14271 = vmatpush3.bf16.msra.mxu1 %v15231_v0  ;;  %v15387_v11 = vsel %vm2451_vm4, 1.0, %v20693_v63 }
 0x1c4   : > { %v15375_v7 = vadd.f32 %v13288_v6, %v15331_v51  ;;  %v2355_v8 = vpop.f32.mrb[13].mxu1  ;;  %v15378_v9 = vsel %vm2450_vm5, 1.0, %v20693_v63  ;;  %14273 = vmatprep.subr.bf16.mxu1 %v15359_v2  ;;  %v800_v6 = vld [vmem:[%s15104_s6 + $0x228] sm:$0xff] }
 0x1c5   : > { %v15382_v10 = vadd.f32 %v15331_v51, %v2355_v8  ;;  %13315 = vmatprep.mubr.msk.f32.mxu1 %vm2480_vm2, %v15378_v9  ;;  %1125 = vrot.lane.b32.xlu1 %v800_v6, %s14776_s7  ;;  %v1012_v8 = vpop.permute.xlu0 %1011 }
 0x1c6   : > { %13316 = vmatmul.mubr.msk.f32.gmra.mrb[26].mxu1 %vm2480_vm2, %v15387_v11  ;;  %vm2453_vm6 = vcmp.gt.f32.partialorder %v15375_v7, 1.0  ;;  %13102 = vmatprep.mubr.msk.f32.mxu0 %vm1243_vm0, %v1012_v8  ;;  %v809_v8 = vld [vmem:[%s15104_s6 + $0x270] sm:$0xff] }
 0x1c7   : > { %v13291_v12 = vpop.f32.mrb[14].mxu1  ;;  %vm2452_vm7 = vcmp.gt.f32.partialorder %v15382_v10, 1.0  ;;  %14275 = vmatpush3.bf16.msra.mxu1 %v15359_v2  ;;  %v15407_v17 = vsel %vm2453_vm6, 1.0, %v20693_v63 }
 0x1c8   : > { %v15395_v13 = vadd.f32 %v13291_v12, %v15331_v51  ;;  %v2365_v14 = vpop.f32.mrb[15].mxu1  ;;  %v15398_v15 = vsel %vm2452_vm7, 1.0, %v20693_v63  ;;  %14277 = vmatprep.subr.bf16.mxu1 %v15102_v5  ;;  %v1014_v12 = vpop.permute.xlu1 %1013 }
 0x1c9   : > { %v15402_v16 = vadd.f32 %v15331_v51, %v2365_v14  ;;  %13318 = vmatprep.mubr.msk.f32.mxu1 %vm2480_vm2, %v15398_v15  ;;  %v801_v14 = vld [vmem:[%s15104_s6 + $0x230] sm:$0xff]  ;;  %13103 = vmatmul.mubr.msk.f32.gmra.mrb[12].mxu0 %vm1243_vm0, %v1014_v12  ;;  %v810_v12 = vld [vmem:[%s15104_s6 + $0x278] sm:$0xff] }
 0x1ca   : > { %13319 = vmatmul.mubr.msk.f32.gmra.mrb[28].mxu1 %vm2480_vm2, %v15407_v17  ;;  %vm2455_vm8 = vcmp.gt.f32.partialorder %v15395_v13, 1.0  ;;  %1127 = vrot.lane.b32.xlu0 %v801_v14, %s14776_s7 }
 0x1cb   : > { %v13294_v18 = vpop.f32.mrb[16].mxu1  ;;  %vm2454_vm9 = vcmp.gt.f32.partialorder %v15402_v16, 1.0  ;;  %v15425_v23 = vsel %vm2455_vm8, 1.0, %v20693_v63 }
 0x1cc   : > { %v15414_v19 = vadd.f32 %v13294_v18, %v15331_v51  ;;  %v2375_v20 = vpop.f32.mrb[17].mxu1  ;;  %v15417_v21 = vsel %vm2454_vm9, 1.0, %v20693_v63  ;;  %v802_v18 = vld [vmem:[%s15104_s6 + $0x238] sm:$0xff] }
 0x1cd   : > { %v15420_v22 = vadd.f32 %v15331_v51, %v2375_v20  ;;  %13321 = vmatprep.mubr.msk.f32.mxu1 %vm2480_vm2, %v15417_v21  ;;  %1129 = vrot.lane.b32.xlu1 %v802_v18, %s14776_s7  ;;  %v1016_v20 = vpop.permute.xlu0 %1015 }
 0x1ce   : > { %13322 = vmatmul.mubr.msk.f32.gmra.mrb[30].mxu1 %vm2480_vm2, %v15425_v23  ;;  %vm2457_vm10 = vcmp.gt.f32.partialorder %v15414_v19, 1.0  ;;  %13105 = vmatprep.mubr.msk.f32.mxu0 %vm1243_vm0, %v1016_v20  ;;  %v811_v20 = vld [vmem:[%s15104_s6 + $0x280] sm:$0xff] }
 0x1cf   : > { %v13297_v24 = vpop.f32.mrb[18].mxu1  ;;  %vm2456_vm11 = vcmp.gt.f32.partialorder %v15420_v22, 1.0  ;;  %v15443_v29 = vsel %vm2457_vm10, 1.0, %v20693_v63 }
 0x1d0   : > { %v15432_v25 = vadd.f32 %v13297_v24, %v15331_v51  ;;  %v2385_v26 = vpop.f32.mrb[19].mxu1  ;;  %v15435_v27 = vsel %vm2456_vm11, 1.0, %v20693_v63  ;;  %v1018_v24 = vpop.permute.xlu1 %1017 }
 0x1d1   : > { %v15438_v28 = vadd.f32 %v15331_v51, %v2385_v26  ;;  %13324 = vmatprep.mubr.msk.f32.mxu1 %vm2480_vm2, %v15435_v27  ;;  %v803_v26 = vld [vmem:[%s15104_s6 + $0x240] sm:$0xff]  ;;  %13106 = vmatmul.mubr.msk.f32.gmra.mrb[14].mxu0 %vm1243_vm0, %v1018_v24  ;;  %v812_v24 = vld [vmem:[%s15104_s6 + $0x288] sm:$0xff] }
 0x1d2   : > { %13325 = vmatmul.mubr.msk.f32.gmra.mrb[32].mxu1 %vm2480_vm2, %v15443_v29  ;;  %vm2459_vm12 = vcmp.gt.f32.partialorder %v15432_v25, 1.0  ;;  %1131 = vrot.lane.b32.xlu0 %v803_v26, %s14776_s7 }
 0x1d3   : > { %v13300_v30 = vpop.f32.mrb[20].mxu1  ;;  %vm2458_vm13 = vcmp.gt.f32.partialorder %v15438_v28, 1.0  ;;  %v15461_v40 = vsel %vm2459_vm12, 1.0, %v20693_v63 }
 0x1d4   : > { %v15450_v31 = vadd.f32 %v13300_v30, %v15331_v51  ;;  %v2395_v32 = vpop.f32.mrb[21].mxu1  ;;  %v15453_v36 = vsel %vm2458_vm13, 1.0, %v20693_v63  ;;  %v804_v30 = vld [vmem:[%s15104_s6 + $0x248] sm:$0xff] }
 0x1d5   : > { %v15456_v37 = vadd.f32 %v15331_v51, %v2395_v32  ;;  %13327 = vmatprep.mubr.msk.f32.mxu1 %vm2480_vm2, %v15453_v36  ;;  %1133 = vrot.lane.b32.xlu1 %v804_v30, %s14776_s7  ;;  %v1020_v32 = vpop.permute.xlu0 %1019  ;;  %v813_v30 = vld [vmem:[%s15104_s6 + $0x290] sm:$0xff] }
 0x1d6   : > { %13328 = vmatmul.mubr.msk.f32.gmra.mrb[34].mxu1 %vm2480_vm2, %v15461_v40  ;;  %vm2461_vm14 = vcmp.gt.f32.partialorder %v15450_v31, 1.0  ;;  %13108 = vmatprep.mubr.msk.f32.mxu0 %vm1243_vm0, %v1020_v32 }
 0x1d7   : > { %v13303_v41 = vpop.f32.mrb[22].mxu1  ;;  %vm2460_vm15 = vcmp.gt.f32.partialorder %v15456_v37, 1.0  ;;  %v15479_v52 = vsel %vm2461_vm14, 1.0, %v20693_v63 }
 0x1d8   : > { %v15468_v45 = vadd.f32 %v13303_v41, %v15331_v51  ;;  %v2405_v46 = vpop.f32.mrb[23].mxu1  ;;  %v15471_v49 = vsel %vm2460_vm15, 1.0, %v20693_v63  ;;  %v1022_v41 = vpop.permute.xlu1 %1021 }
 0x1d9   : > { %v15474_v50 = vadd.f32 %v15331_v51, %v2405_v46  ;;  %13330 = vmatprep.mubr.msk.f32.mxu1 %vm2480_vm2, %v15471_v49  ;;  %v805_v46 = vld [vmem:[%s15104_s6 + $0x250] sm:$0xff]  ;;  %13109 = vmatmul.mubr.msk.f32.gmra.mrb[16].mxu0 %vm1243_vm0, %v1022_v41  ;;  %v1024_v56 = vpop.permute.xlu0 %1023  ;;  %v814_v41 = vld [vmem:[%s15104_s6 + $0x298] sm:$0xff] }
 0x1da   : > { %13331 = vmatmul.mubr.msk.f32.gmra.mrb[36].mxu1 %vm2480_vm2, %v15479_v52  ;;  %vm2463_vm1 = vcmp.gt.f32.partialorder %v15468_v45, 1.0  ;;  %1135 = vrot.lane.b32.xlu0 %v805_v46, %s14776_s7 }
 0x1db   : > { %vm2462_vm3 = vcmp.gt.f32.partialorder %v15474_v50, 1.0  ;;  %v15491_v51 = vsel %vm2463_vm1, 1.0, %v20693_v63  ;;  %1137 = vrot.lane.b32.xlu1 %v806_v55, %s14776_s7  ;;  %13111 = vmatprep.mubr.msk.f32.mxu0 %vm1243_vm0, %v1024_v56  ;;  %v815_v55 = vld [vmem:[%s15104_s6 + $0x2a0] sm:$0xff] }
 0x1dc   : > { %v15486_v54 = vsel %vm2462_vm3, 1.0, %v20693_v63  ;;  %v1026_v58 = vpop.permute.xlu1 %1025 }
 0x1dd   : > { %13333 = vmatprep.mubr.msk.f32.mxu1 %vm2480_vm2, %v15486_v54  ;;  %13112 = vmatmul.mubr.msk.f32.gmra.mrb[18].mxu0 %vm1243_vm0, %v1026_v58  ;;  %v1028_v62 = vpop.permute.xlu0 %1027  ;;  %v816_v58 = vld [vmem:[%s15104_s6 + $0x2a8] sm:$0xff] }
 0x1de   : > { %13334 = vmatmul.mubr.msk.f32.gmra.mrb[38].mxu1 %vm2480_vm2, %v15491_v51  ;;  %1139 = vrot.lane.b32.xlu0 %v807_v59, %s14776_s7 }
 0x1df   : > { %1141 = vrot.lane.b32.xlu1 %v808_v60, %s14776_s7  ;;  %13114 = vmatprep.mubr.msk.f32.mxu0 %vm1243_vm0, %v1028_v62  ;;  %v817_v60 = vld [vmem:[%s15104_s6 + $0x2b0] sm:$0xff] }
 0x1e0   : > { %v1030_v6 = vpop.permute.xlu1 %1029 }
 0x1e1   : > { %13115 = vmatmul.mubr.msk.f32.gmra.mrb[20].mxu0 %vm1243_vm0, %v1030_v6  ;;  %v1032_v14 = vpop.permute.xlu0 %1031  ;;  %v818_v6 = vld [vmem:[%s15104_s6 + $0x2b8] sm:$0xff] }
 0x1e2   : > { %1143 = vrot.lane.b32.xlu0 %v809_v8, %s14776_s7  ;;  %13117 = vmatprep.mubr.msk.f32.mxu0 %vm1243_vm0, %v1032_v14 }
 0x1e3   : > { %1145 = vrot.lane.b32.xlu1 %v810_v12, %s14776_s7  ;;  %v819_v12 = vld [vmem:[%s15104_s6 + $0x2c0] sm:$0xff] }
 0x1e4   : > { %v1034_v18 = vpop.permute.xlu1 %1033 }
 0x1e5   : > { %13118 = vmatmul.mubr.msk.f32.gmra.mrb[22].mxu0 %vm1243_vm0, %v1034_v18  ;;  %v1036_v26 = vpop.permute.xlu0 %1035  ;;  %v820_v18 = vld [vmem:[%s15104_s6 + $0x2c8] sm:$0xff] }
 0x1e6   : > { %1147 = vrot.lane.b32.xlu0 %v811_v20, %s14776_s7  ;;  %13120 = vmatprep.mubr.msk.f32.mxu0 %vm1243_vm0, %v1036_v26 }
 0x1e7   : > { %1149 = vrot.lane.b32.xlu1 %v812_v24, %s14776_s7  ;;  %v821_v24 = vld [vmem:[%s15104_s6 + $0x2d0] sm:$0xff] }
 0x1e8   : > { %v1038_v32 = vpop.permute.xlu1 %1037 }
 0x1e9   : > { %13121 = vmatmul.mubr.msk.f32.gmra.mrb[24].mxu0 %vm1243_vm0, %v1038_v32  ;;  %v1040_v46 = vpop.permute.xlu0 %1039 }
 0x1ea   : > { %1151 = vrot.lane.b32.xlu0 %v813_v30, %s14776_s7  ;;  %13123 = vmatprep.mubr.msk.f32.mxu0 %vm1243_vm0, %v1040_v46  ;;  %v822_v30 = vld [vmem:[%s15104_s6 + $0x2d8] sm:$0xff] }
 0x1eb   : > { %1153 = vrot.lane.b32.xlu1 %v814_v41, %s14776_s7  ;;  %v823_v41 = vld [vmem:[%s15104_s6 + $0x2e0] sm:$0xff] }
 0x1ec   : > { %v1042_v56 = vpop.permute.xlu1 %1041 }
 0x1ed   : > { %13124 = vmatmul.mubr.msk.f32.gmra.mrb[26].mxu0 %vm1243_vm0, %v1042_v56  ;;  %v1044_v59 = vpop.permute.xlu0 %1043 }
 0x1ee   : > { %1155 = vrot.lane.b32.xlu0 %v815_v55, %s14776_s7  ;;  %13126 = vmatprep.mubr.msk.f32.mxu0 %vm1243_vm0, %v1044_v59  ;;  %v824_v55 = vld [vmem:[%s15104_s6 + $0x2e8] sm:$0xff] }
 0x1ef   : > { %1157 = vrot.lane.b32.xlu1 %v816_v58, %s14776_s7  ;;  %v825_v58 = vld [vmem:[%s15104_s6 + $0x2f0] sm:$0xff] }
 0x1f0   : > { %v1046_v62 = vpop.permute.xlu1 %1045 }
 0x1f1   : > { %13127 = vmatmul.mubr.msk.f32.gmra.mrb[28].mxu0 %vm1243_vm0, %v1046_v62  ;;  %v1048_v8 = vpop.permute.xlu0 %1047 }
 0x1f2   : > { %1159 = vrot.lane.b32.xlu0 %v817_v60, %s14776_s7  ;;  %13129 = vmatprep.mubr.msk.f32.mxu0 %vm1243_vm0, %v1048_v8  ;;  %v826_v60 = vld [vmem:[%s15104_s6 + $0x2f8] sm:$0xff] }
 0x1f3   : > { %1161 = vrot.lane.b32.xlu1 %v818_v6, %s14776_s7  ;;  %v827_v6 = vld [vmem:[%s15104_s6 + $0x300] sm:$0xff] }
 0x1f4   : > { %v1050_v14 = vpop.permute.xlu1 %1049 }
 0x1f5   : > { %13130 = vmatmul.mubr.msk.f32.gmra.mrb[30].mxu0 %vm1243_vm0, %v1050_v14  ;;  %v1052_v20 = vpop.permute.xlu0 %1051 }
 0x1f6   : > { %1163 = vrot.lane.b32.xlu0 %v819_v12, %s14776_s7  ;;  %13132 = vmatprep.mubr.msk.f32.mxu0 %vm1243_vm0, %v1052_v20  ;;  %v828_v12 = vld [vmem:[%s15104_s6 + $0x308] sm:$0xff] }
 0x1f7   : > { %1165 = vrot.lane.b32.xlu1 %v820_v18, %s14776_s7  ;;  %v829_v18 = vld [vmem:[%s15104_s6 + $0x310] sm:$0xff] }
 0x1f8   : > { %v1054_v26 = vpop.permute.xlu1 %1053 }
 0x1f9   : > { %13133 = vmatmul.mubr.msk.f32.gmra.mrb[32].mxu0 %vm1243_vm0, %v1054_v26  ;;  %v1056_v32 = vpop.permute.xlu0 %1055 }
 0x1fa   : > { %1167 = vrot.lane.b32.xlu0 %v821_v24, %s14776_s7  ;;  %13135 = vmatprep.mubr.msk.f32.mxu0 %vm1243_vm0, %v1056_v32  ;;  %v830_v24 = vld [vmem:[%s15104_s6 + $0x318] sm:$0xff]  ;;  %v832_v32 = vld [vmem:[%s15104_s6 + $0x328] sm:$0xff] }
 0x1fb   : > { %1169 = vrot.lane.b32.xlu1 %v822_v30, %s14776_s7  ;;  %v831_v30 = vld [vmem:[%s15104_s6 + $0x320] sm:$0xff] }
 0x1fc   : > { %v1058_v46 = vpop.permute.xlu1 %1057 }
 0x1fd   : > { %13136 = vmatmul.mubr.msk.f32.gmra.mrb[34].mxu0 %vm1243_vm0, %v1058_v46  ;;  %v1060_v56 = vpop.permute.xlu0 %1059  ;;  %v833_v46 = vld [vmem:[%s15104_s6 + $0x330] sm:$0xff] }
 0x1fe   : > { %1171 = vrot.lane.b32.xlu0 %v823_v41, %s14776_s7  ;;  %13138 = vmatprep.mubr.msk.f32.mxu0 %vm1243_vm0, %v1060_v56  ;;  %v834_v56 = vld [vmem:[%s15104_s6 + $0x338] sm:$0xff] }
 0x1ff   : > { %1173 = vrot.lane.b32.xlu1 %v824_v55, %s14776_s7 }
 0x200   : > { %v1062_v59 = vpop.permute.xlu1 %1061 }
 0x201   : > { %13139 = vmatmul.mubr.msk.f32.gmra.mrb[36].mxu0 %vm1243_vm0, %v1062_v59  ;;  %v1064_v62 = vpop.permute.xlu0 %1063  ;;  %v835_v59 = vld [vmem:[%s15104_s6 + $0x340] sm:$0xff] }
 0x202   : > { %1175 = vrot.lane.b32.xlu0 %v825_v58, %s14776_s7  ;;  %13141 = vmatprep.mubr.msk.f32.mxu0 %vm1243_vm0, %v1064_v62  ;;  %v836_v62 = vld [vmem:[%s15104_s6 + $0x348] sm:$0xff] }
 0x203   : > { %1177 = vrot.lane.b32.xlu1 %v826_v60, %s14776_s7 }
 0x204   : > { %v1066_v8 = vpop.permute.xlu1 %1065 }
 0x205   : > { %13142 = vmatmul.mubr.msk.f32.gmra.mrb[38].mxu0 %vm1243_vm0, %v1066_v8  ;;  %v1068_v14 = vpop.permute.xlu0 %1067  ;;  %v837_v8 = vld [vmem:[%s15104_s6 + $0x350] sm:$0xff] }
 0x206   : > { %1179 = vrot.lane.b32.xlu0 %v827_v6, %s14776_s7  ;;  %13144 = vmatprep.mubr.msk.f32.mxu0 %vm1243_vm0, %v1068_v14  ;;  %v838_v14 = vld [vmem:[%s15104_s6 + $0x358] sm:$0xff] }
 0x207   : > { %1181 = vrot.lane.b32.xlu1 %v828_v12, %s14776_s7 }
 0x208   : > { %v1070_v20 = vpop.permute.xlu1 %1069 }
 0x209   : > { %13145 = vmatmul.mubr.msk.f32.gmra.mrb[40].mxu0 %vm1243_vm0, %v1070_v20  ;;  %v1072_v26 = vpop.permute.xlu0 %1071  ;;  %v839_v20 = vld [vmem:[%s15104_s6 + $0x360] sm:$0xff] }
 0x20a   : > { %1183 = vrot.lane.b32.xlu0 %v829_v18, %s14776_s7  ;;  %13147 = vmatprep.mubr.msk.f32.mxu0 %vm1243_vm0, %v1072_v26  ;;  %v840_v26 = vld [vmem:[%s15104_s6 + $0x368] sm:$0xff] }
 0x20b   : > { %1185 = vrot.lane.b32.xlu1 %v830_v24, %s14776_s7 }
 0x20c   : > { %v1074_v41 = vpop.permute.xlu1 %1073 }
 0x20d   : > { %13148 = vmatmul.mubr.msk.f32.gmra.mrb[42].mxu0 %vm1243_vm0, %v1074_v41  ;;  %v1076_v55 = vpop.permute.xlu0 %1075 }
 0x20e   : > { %1187 = vrot.lane.b32.xlu0 %v831_v30, %s14776_s7  ;;  %13150 = vmatprep.mubr.msk.f32.mxu0 %vm1243_vm0, %v1076_v55 }
 0x20f   : > { %1189 = vrot.lane.b32.xlu1 %v832_v32, %s14776_s7  ;;  %v841_v32 = vld [vmem:[%s15104_s6 + $0x370] sm:$0xff] }
 0x210   : > { %v1078_v58 = vpop.permute.xlu1 %1077 }
 0x211   : > { %13151 = vmatmul.mubr.msk.f32.gmra.mrb[44].mxu0 %vm1243_vm0, %v1078_v58  ;;  %v1080_v60 = vpop.permute.xlu0 %1079 }
 0x212   : > { %1191 = vrot.lane.b32.xlu0 %v833_v46, %s14776_s7  ;;  %13153 = vmatprep.mubr.msk.f32.mxu0 %vm1243_vm0, %v1080_v60  ;;  %v842_v46 = vld [vmem:[%s15104_s6 + $0x378] sm:$0xff] }
 0x213   : > { %1193 = vrot.lane.b32.xlu1 %v834_v56, %s14776_s7  ;;  %v843_v56 = vld [vmem:[%s15104_s6 + $0x380] sm:$0xff] }
 0x214   : > { %v1082_v6 = vpop.permute.xlu1 %1081 }
 0x215   : > { %13154 = vmatmul.mubr.msk.f32.gmra.mrb[46].mxu0 %vm1243_vm0, %v1082_v6  ;;  %v1084_v12 = vpop.permute.xlu0 %1083 }
 0x216   : > { %1195 = vrot.lane.b32.xlu0 %v835_v59, %s14776_s7  ;;  %13156 = vmatprep.mubr.msk.f32.mxu0 %vm1243_vm0, %v1084_v12  ;;  %v844_v59 = vld [vmem:[%s15104_s6 + $0x388] sm:$0xff] }
 0x217   : > { %1197 = vrot.lane.b32.xlu1 %v836_v62, %s14776_s7  ;;  %v845_v62 = vld [vmem:[%s15104_s6 + $0x390] sm:$0xff] }
 0x218   : > { %v1086_v18 = vpop.permute.xlu1 %1085 }
 0x219   : > { %13157 = vmatmul.mubr.msk.f32.gmra.mrb[48].mxu0 %vm1243_vm0, %v1086_v18  ;;  %v1088_v24 = vpop.permute.xlu0 %1087 }
 0x21a   : > { %1199 = vrot.lane.b32.xlu0 %v837_v8, %s14776_s7  ;;  %13159 = vmatprep.mubr.msk.f32.mxu0 %vm1243_vm0, %v1088_v24  ;;  %v846_v8 = vld [vmem:[%s15104_s6 + $0x398] sm:$0xff] }
 0x21b   : > { %1201 = vrot.lane.b32.xlu1 %v838_v14, %s14776_s7  ;;  %v847_v14 = vld [vmem:[%s15104_s6 + $0x3a0] sm:$0xff] }
 0x21c   : > { %v1090_v30 = vpop.permute.xlu1 %1089 }
 0x21d   : > { %13160 = vmatmul.mubr.msk.f32.gmra.mrb[50].mxu0 %vm1243_vm0, %v1090_v30  ;;  %v1092_v41 = vpop.permute.xlu0 %1091 }
 0x21e   : > { %1203 = vrot.lane.b32.xlu0 %v839_v20, %s14776_s7  ;;  %13162 = vmatprep.mubr.msk.f32.mxu0 %vm1243_vm0, %v1092_v41  ;;  %v848_v20 = vld [vmem:[%s15104_s6 + $0x3a8] sm:$0xff] }
 0x21f   : > { %1205 = vrot.lane.b32.xlu1 %v840_v26, %s14776_s7  ;;  %v849_v26 = vld [vmem:[%s15104_s6 + $0x3b0] sm:$0xff] }
 0x220   : > { %v1094_v55 = vpop.permute.xlu1 %1093 }
 0x221   : > { %13163 = vmatmul.mubr.msk.f32.gmra.mrb[52].mxu0 %vm1243_vm0, %v1094_v55  ;;  %v1096_v58 = vpop.permute.xlu0 %1095 }
 0x222   : > { %1207 = vrot.lane.b32.xlu0 %v841_v32, %s14776_s7  ;;  %13165 = vmatprep.mubr.msk.f32.mxu0 %vm1243_vm0, %v1096_v58  ;;  %v850_v32 = vld [vmem:[%s15104_s6 + $0x3b8] sm:$0xff] }
 0x223   : > { %1209 = vrot.lane.b32.xlu1 %v842_v46, %s14776_s7 }
 0x224   : > { %v1098_v60 = vpop.permute.xlu1 %1097 }
 0x225   : > { %13166 = vmatmul.mubr.msk.f32.gmra.mrb[54].mxu0 %vm1243_vm0, %v1098_v60  ;;  %v1100_v6 = vpop.permute.xlu0 %1099 }
 0x226   : > { %1211 = vrot.lane.b32.xlu0 %v843_v56, %s14776_s7  ;;  %13168 = vmatprep.mubr.msk.f32.mxu0 %vm1243_vm0, %v1100_v6 }
 0x227   : > { %1213 = vrot.lane.b32.xlu1 %v844_v59, %s14776_s7 }
 0x228   : > { %v1102_v12 = vpop.permute.xlu1 %1101 }
 0x229   : > { %13169 = vmatmul.mubr.msk.f32.gmra.mrb[56].mxu0 %vm1243_vm0, %v1102_v12  ;;  %v1104_v18 = vpop.permute.xlu0 %1103 }
 0x22a   : > { %1215 = vrot.lane.b32.xlu0 %v845_v62, %s14776_s7  ;;  %13171 = vmatprep.mubr.msk.f32.mxu0 %vm1243_vm0, %v1104_v18 }
 0x22b   : > { %1217 = vrot.lane.b32.xlu1 %v846_v8, %s14776_s7 }
 0x22c   : > { %v1106_v24 = vpop.permute.xlu1 %1105 }
 0x22d   : > { %13172 = vmatmul.mubr.msk.f32.gmra.mrb[58].mxu0 %vm1243_vm0, %v1106_v24  ;;  %v1108_v30 = vpop.permute.xlu0 %1107 }
 0x22e   : > { %1219 = vrot.lane.b32.xlu0 %v847_v14, %s14776_s7  ;;  %13174 = vmatprep.mubr.msk.f32.mxu0 %vm1243_vm0, %v1108_v30  ;;  %v15669_v14 = vld [vmem:[%s20679_s1 + $0x89] ss:$0 sm:$0xff] }
 0x22f   : > { %1221 = vrot.lane.b32.xlu1 %v848_v20, %s14776_s7 }
 0x230   : > { %v1110_v41 = vpop.permute.xlu1 %1109 }
 0x231   : > { %13175 = vmatmul.mubr.msk.f32.gmra.mrb[60].mxu0 %vm1243_vm0, %v1110_v41  ;;  %v1112_v46 = vpop.permute.xlu0 %1111 }
 0x232   : > { %1223 = vrot.lane.b32.xlu0 %v849_v26, %s14776_s7  ;;  %13177 = vmatprep.mubr.msk.f32.mxu0 %vm1243_vm0, %v1112_v46 }
 0x233   : > { %1225 = vrot.lane.b32.xlu1 %v850_v32, %s14776_s7 }
 0x234   : > { %v1114_v55 = vpop.permute.xlu1 %1113 }
 0x235   : > { %13178 = vmatmul.mubr.msk.f32.gmra.mrb[62].mxu0 %vm1243_vm0, %v1114_v55  ;;  %v1116_v56 = vpop.permute.xlu0 %1115 }
 0x236   : > { %13180 = vmatprep.mubr.msk.f32.mxu0 %vm1243_vm0, %v1116_v56 }
 0x238   : > { %v1118_v58 = vpop.permute.xlu1 %1117 }
 0x239   : > { %13181 = vmatmul.mubr.msk.f32.gmra.mrb[64].mxu0 %vm1243_vm0, %v1118_v58  ;;  %v1120_v59 = vpop.permute.xlu0 %1119 }
 0x23a   : > { %13183 = vmatprep.mubr.msk.f32.mxu0 %vm1243_vm0, %v1120_v59 }
 0x23c   : > { %v1122_v60 = vpop.permute.xlu1 %1121 }
 0x23d   : > { %13184 = vmatmul.mubr.msk.f32.gmra.mrb[66].mxu0 %vm1243_vm0, %v1122_v60  ;;  %v1124_v62 = vpop.permute.xlu0 %1123 }
 0x23e   : > { %13186 = vmatprep.mubr.msk.f32.mxu0 %vm1243_vm0, %v1124_v62 }
 0x240   : > { %v1126_v6 = vpop.permute.xlu1 %1125 }
 0x241   : > { %13187 = vmatmul.mubr.msk.f32.gmra.mrb[68].mxu0 %vm1243_vm0, %v1126_v6  ;;  %v1128_v8 = vpop.permute.xlu0 %1127 }
 0x242   : > { %13189 = vmatprep.mubr.msk.f32.mxu0 %vm1243_vm0, %v1128_v8 }
 0x244   : > { %v1130_v12 = vpop.permute.xlu1 %1129 }
 0x245   : > { %13190 = vmatmul.mubr.msk.f32.gmra.mrb[70].mxu0 %vm1243_vm0, %v1130_v12  ;;  %v1132_v18 = vpop.permute.xlu0 %1131 }
 0x246   : > { %13192 = vmatprep.mubr.msk.f32.mxu0 %vm1243_vm0, %v1132_v18 }
 0x248   : > { %v1134_v24 = vpop.permute.xlu1 %1133 }
 0x249   : > { %13193 = vmatmul.mubr.msk.f32.gmra.mrb[72].mxu0 %vm1243_vm0, %v1134_v24 }
 0x24c   : > { %v1136_v41 = vpop.permute.xlu0 %1135 }
 0x24d   : > { %v1138_v55 = vpop.permute.xlu1 %1137  ;;  %13195 = vmatprep.mubr.msk.f32.mxu0 %vm1243_vm0, %v1136_v41 }
 0x24e   : > { %13196 = vmatmul.mubr.msk.f32.gmra.mrb[74].mxu0 %vm1243_vm0, %v1138_v55 }
 0x250   : > { %v1140_v6 = vpop.permute.xlu0 %1139 }
 0x251   : > { %v1142_v12 = vpop.permute.xlu1 %1141  ;;  %13198 = vmatprep.mubr.msk.f32.mxu0 %vm1243_vm0, %v1140_v6 }
 0x252   : > { %13199 = vmatmul.mubr.msk.f32.gmra.mrb[76].mxu0 %vm1243_vm0, %v1142_v12 }
 0x295   : > { %v13314_v20 = vpop.f32.mrb[24].mxu1 }
 0x296   : > { %v15673_v26 = vadd.f32 %v13314_v20, %v15669_v14  ;;  %v2595_v30 = vpop.f32.mrb[25].mxu1 }
 0x297   : > { %v15677_v32 = vadd.f32 %v15669_v14, %v2595_v30 }
 0x298   : > { %vm2707_vm4 = vcmp.gt.f32.partialorder %v15673_v26, 1.0 }
 0x299   : > { %v13317_v46 = vpop.f32.mrb[26].mxu1  ;;  %vm2706_vm5 = vcmp.gt.f32.partialorder %v15677_v32, 1.0  ;;  %v15690_v60 = vsel %vm2707_vm4, 1.0, %v20693_v63 }
 0x29a   : > { %v15683_v56 = vadd.f32 %v13317_v46, %v15669_v14  ;;  %v2605_v58 = vpop.f32.mrb[27].mxu1  ;;  %v15686_v59 = vsel %vm2706_vm5, 1.0, %v20693_v63  ;;  %v1144_v46 = vpop.permute.xlu0 %1143 }
 0x29b   : > { %v15693_v62 = vadd.f32 %v15669_v14, %v2605_v58  ;;  %13344 = vmatprep.mubr.msk.f32.mxu1 %vm2480_vm2, %v15686_v59  ;;  %v1146_v58 = vpop.permute.xlu1 %1145  ;;  %13201 = vmatprep.mubr.msk.f32.mxu0 %vm1243_vm0, %v1144_v46 }
 0x29c   : > { %13345 = vmatmul.mubr.msk.f32.vlgmr.msra.gmra.mrb[40].mxu1 %vm2480_vm2, %v15690_v60  ;;  %vm2709_vm6 = vcmp.gt.f32.partialorder %v15683_v56, 1.0  ;;  %13202 = vmatmul.mubr.msk.f32.gmra.mrb[78].mxu0 %vm1243_vm0, %v1146_v58 }
 0x29d   : > { %14279 = vmatpush3.bf16.msra.mxu1 %v15102_v5  ;;  %v13320_v8 = vpop.f32.mrb[28].mxu1  ;;  %vm2708_vm7 = vcmp.gt.f32.partialorder %v15693_v62, 1.0  ;;  %v15717_v41 = vsel %vm2709_vm6, 1.0, %v20693_v63 }
 0x29e   : > { %v15704_v18 = vadd.f32 %v13320_v8, %v15669_v14  ;;  %v2615_v20 = vpop.f32.mrb[29].mxu1  ;;  %v15707_v24 = vsel %vm2708_vm7, 1.0, %v20693_v63  ;;  %14281 = vmatprep.subr.bf16.mxu1 %v15162_v34  ;;  %v1148_v46 = vpop.permute.xlu0 %1147  ;;  %vm3011_vm7 = vcmask 64512  }
 0x29f   : > { %v15712_v30 = vadd.f32 %v15669_v14, %v2615_v20  ;;  %13347 = vmatprep.mubr.msk.f32.mxu1 %vm2480_vm2, %v15707_v24  ;;  %v1150_v47 = vpop.permute.xlu1 %1149  ;;  %13204 = vmatprep.mubr.msk.f32.mxu0 %vm1243_vm0, %v1148_v46 }
 0x2a0   : > { %13348 = vmatmul.mubr.msk.f32.gmra.mrb[42].mxu1 %vm2480_vm2, %v15717_v41  ;;  %vm2711_vm8 = vcmp.gt.f32.partialorder %v15704_v18, 1.0  ;;  %13205 = vmatmul.mubr.msk.f32.gmra.mrb[80].mxu0 %vm1243_vm0, %v1150_v47 }
 0x2a1   : > { %v13323_v55 = vpop.f32.mrb[30].mxu1  ;;  %vm2710_vm9 = vcmp.gt.f32.partialorder %v15712_v30, 1.0  ;;  %v15737_v48 = vsel %vm2711_vm8, 1.0, %v20693_v63 }
 0x2a2   : > { %v15725_v6 = vadd.f32 %v13323_v55, %v15669_v14  ;;  %v2625_v8 = vpop.f32.mrb[31].mxu1  ;;  %v15728_v12 = vsel %vm2710_vm9, 1.0, %v20693_v63  ;;  %v1152_v46 = vpop.permute.xlu0 %1151 }
 0x2a3   : > { %21121 = vst [vmem:[#allocation15_spill] sm:$0xff] %v15728_v12  ;;  %v15732_v20 = vadd.f32 %v15669_v14, %v2625_v8  ;;  %13350 = vmatprep.mubr.msk.f32.mxu1 %vm2480_vm2, %v15728_v12  ;;  %v1154_v38 = vpop.permute.xlu1 %1153  ;;  %13207 = vmatprep.mubr.msk.f32.mxu0 %vm1243_vm0, %v1152_v46  ;;  %v3465_v12 = vmul.f32 0.9, %v15365_v4 }
 0x2a4   : > { %13351 = vmatmul.mubr.msk.f32.gmra.mrb[44].mxu1 %vm2480_vm2, %v15737_v48  ;;  %vm2713_vm10 = vcmp.gt.f32.partialorder %v15725_v6, 1.0  ;;  %13208 = vmatmul.mubr.msk.f32.gmra.mrb[82].mxu0 %vm1243_vm0, %v1154_v38 }
 0x2a5   : > { %21122 = vst [vmem:[#allocation16_spill] sm:$0xff] %v15732_v20  ;;  %v13326_v55 = vpop.f32.mrb[32].mxu1  ;;  %vm2712_vm11 = vcmp.gt.f32.partialorder %v15732_v20, 1.0  ;;  %v15757_v39 = vsel %vm2713_vm10, 1.0, %v20693_v63 }
 0x2a6   : > { %v15745_v58 = vadd.f32 %v13326_v55, %v15669_v14  ;;  %v2635_v8 = vpop.f32.mrb[33].mxu1  ;;  %v15748_v44 = vsel %vm2712_vm11, 1.0, %v20693_v63  ;;  %21126 = vst [vmem:[#allocation20_spill] sm:$0xff] %v15757_v39  ;;  %v1156_v46 = vpop.permute.xlu0 %1155 }
 0x2a7   : > { %21124 = vst [vmem:[#allocation18_spill] sm:$0xff] %v15748_v44  ;;  %v15752_v42 = vadd.f32 %v15669_v14, %v2635_v8  ;;  %13353 = vmatprep.mubr.msk.f32.mxu1 %vm2480_vm2, %v15748_v44  ;;  %13210 = vmatprep.mubr.msk.f32.mxu0 %vm1243_vm0, %v1156_v46 }
 0x2a8   : > { %21123 = vst [vmem:[#allocation17_spill] sm:$0xff] %v15745_v58  ;;  %13354 = vmatmul.mubr.msk.f32.gmra.mrb[46].mxu1 %vm2480_vm2, %v15757_v39  ;;  %vm2715_vm12 = vcmp.gt.f32.partialorder %v15745_v58, 1.0 }
 0x2a9   : > { %21125 = vst [vmem:[#allocation19_spill] sm:$0xff] %v15752_v42  ;;  %v13329_v55 = vpop.f32.mrb[34].mxu1  ;;  %vm2714_vm13 = vcmp.gt.f32.partialorder %v15752_v42, 1.0  ;;  %v15777_v44 = vsel %vm2715_vm12, 1.0, %v20693_v63  ;;  %v1158_v42 = vpop.permute.xlu1 %1157 }
 0x2aa   : > { %v15765_v47 = vadd.f32 %v13329_v55, %v15669_v14  ;;  %v2645_v8 = vpop.f32.mrb[35].mxu1  ;;  %v15768_v35 = vsel %vm2714_vm13, 1.0, %v20693_v63  ;;  %21130 = vst [vmem:[#allocation24_spill] sm:$0xff] %v15777_v44  ;;  %13211 = vmatmul.mubr.msk.f32.gmra.mrb[84].mxu0 %vm1243_vm0, %v1158_v42  ;;  %v1160_v46 = vpop.permute.xlu0 %1159 }
 0x2ab   : > { %21128 = vst [vmem:[#allocation22_spill] sm:$0xff] %v15768_v35  ;;  %v15772_v33 = vadd.f32 %v15669_v14, %v2645_v8  ;;  %13356 = vmatprep.mubr.msk.f32.mxu1 %vm2480_vm2, %v15768_v35  ;;  %13213 = vmatprep.mubr.msk.f32.mxu0 %vm1243_vm0, %v1160_v46 }
 0x2ac   : > { %21127 = vst [vmem:[#allocation21_spill] sm:$0xff] %v15765_v47  ;;  %13357 = vmatmul.mubr.msk.f32.gmra.mrb[48].mxu1 %vm2480_vm2, %v15777_v44  ;;  %vm2717_vm14 = vcmp.gt.f32.partialorder %v15765_v47, 1.0 }
 0x2ad   : > { %21129 = vst [vmem:[#allocation23_spill] sm:$0xff] %v15772_v33  ;;  %v13332_v55 = vpop.f32.mrb[36].mxu1  ;;  %vm2716_vm15 = vcmp.gt.f32.partialorder %v15772_v33, 1.0  ;;  %v15797_v33 = vsel %vm2717_vm14, 1.0, %v20693_v63  ;;  %v1162_v47 = vpop.permute.xlu1 %1161 }
 0x2ae   : > { %v15785_v38 = vadd.f32 %v13332_v55, %v15669_v14  ;;  %v2655_v8 = vpop.f32.mrb[37].mxu1  ;;  %v15788_v35 = vsel %vm2716_vm15, 1.0, %v20693_v63  ;;  %21134 = vst [vmem:[#allocation28_spill] sm:$0xff] %v15797_v33  ;;  %13214 = vmatmul.mubr.msk.f32.gmra.mrb[86].mxu0 %vm1243_vm0, %v1162_v47  ;;  %v1164_v46 = vpop.permute.xlu0 %1163 }
 0x2af   : > { %21132 = vst [vmem:[#allocation26_spill] sm:$0xff] %v15788_v35  ;;  %v15792_v44 = vadd.f32 %v15669_v14, %v2655_v8  ;;  %13359 = vmatprep.mubr.msk.f32.mxu1 %vm2480_vm2, %v15788_v35  ;;  %13216 = vmatprep.mubr.msk.f32.mxu0 %vm1243_vm0, %v1164_v46 }
 0x2b0   : > { %21131 = vst [vmem:[#allocation25_spill] sm:$0xff] %v15785_v38  ;;  %13360 = vmatmul.mubr.msk.f32.gmra.mrb[50].mxu1 %vm2480_vm2, %v15797_v33  ;;  %vm2719_vm1 = vcmp.gt.f32.partialorder %v15785_v38, 1.0 }
 0x2b1   : > { %21133 = vst [vmem:[#allocation27_spill] sm:$0xff] %v15792_v44  ;;  %v13335_v55 = vpop.f32.mrb[38].mxu1  ;;  %vm2718_vm3 = vcmp.gt.f32.partialorder %v15792_v44, 1.0  ;;  %v15817_v44 = vsel %vm2719_vm1, 1.0, %v20693_v63  ;;  %v1166_v47 = vpop.permute.xlu1 %1165 }
 0x2b2   : > { %v15805_v42 = vadd.f32 %v13335_v55, %v15669_v14  ;;  %v2665_v8 = vpop.f32.mrb[39].mxu1  ;;  %v15808_v35 = vsel %vm2718_vm3, 1.0, %v20693_v63  ;;  %21138 = vst [vmem:[#allocation32_spill] sm:$0xff] %v15817_v44  ;;  %13217 = vmatmul.mubr.msk.f32.gmra.mrb[88].mxu0 %vm1243_vm0, %v1166_v47  ;;  %v14709_v47 = vld [vmem:[%s15104_s6 + $0x88] sm:$0xff] }
 0x2b3   : > { %21136 = vst [vmem:[#allocation30_spill] sm:$0xff] %v15808_v35  ;;  %v15812_v33 = vadd.f32 %v15669_v14, %v2665_v8  ;;  %13362 = vmatprep.mubr.msk.f32.mxu1 %vm2480_vm2, %v15808_v35  ;;  %v1168_v35 = vpop.permute.xlu0 %1167 }
 0x2b4   : > { %21135 = vst [vmem:[#allocation29_spill] sm:$0xff] %v15805_v42  ;;  %13363 = vmatmul.mubr.msk.f32.gmra.mrb[52].mxu1 %vm2480_vm2, %v15817_v44  ;;  %vm2721_vm4 = vcmp.gt.f32.partialorder %v15805_v42, 1.0  ;;  %13219 = vmatprep.mubr.msk.f32.mxu0 %vm1243_vm0, %v1168_v35  ;;  %v21146_v44 = vmov 0.0  }
 0x2b5   : > { %21137 = vst [vmem:[#allocation31_spill] sm:$0xff] %v15812_v33  ;;  %vm2720_vm5 = vcmp.gt.f32.partialorder %v15812_v33, 1.0  ;;  %v15831_v8 = vsel %vm2721_vm4, 1.0, %v20693_v63  ;;  %v14708_v33 = vld [vmem:[%s15104_s6 + $0x80] sm:$0xff]  ;;  %v1170_v46 = vpop.permute.xlu1 %1169 }
 0x2b6   : > { %v15825_v55 = vsel %vm2720_vm5, 1.0, %v20693_v63  ;;  %21140 = vst [vmem:[#allocation34_spill] sm:$0xff] %v15831_v8  ;;  %13220 = vmatmul.mubr.msk.f32.gmra.mrb[90].mxu0 %vm1243_vm0, %v1170_v46  ;;  %v14710_v63 = vld [vmem:[%s15104_s6 + $0x90] sm:$0xff]  ;;  %v14712_v46 = vld [vmem:[%s15104_s6 + $0xa0] sm:$0xff] }
 0x2b7   : > { %21139 = vst [vmem:[#allocation33_spill] sm:$0xff] %v15825_v55  ;;  %13365 = vmatprep.mubr.msk.f32.mxu1 %vm2480_vm2, %v15825_v55  ;;  %v1172_v55 = vpop.permute.xlu0 %1171 }
 0x2b8   : > { %13366 = vmatmul.mubr.msk.f32.gmra.mrb[54].mxu1 %vm2480_vm2, %v15831_v8  ;;  %13222 = vmatprep.mubr.msk.f32.mxu0 %vm1243_vm0, %v1172_v55  ;;  %v14713_v55 = vld [vmem:[%s15104_s6 + $0xa8] sm:$0xff] }
 0x2b9   : > { %13398 = vmatprep.mubr.msk.f32.mxu1 %vm1243_vm0, %v14708_v33  ;;  %v1174_v8 = vpop.permute.xlu1 %1173  ;;  %v14711_v33 = vld [vmem:[%s15104_s6 + $0x98] sm:$0xff] }
 0x2ba   : > { %13223 = vmatmul.mubr.msk.f32.gmra.mrb[92].mxu0 %vm1243_vm0, %v1174_v8 }
 0x2bb   : > { %v1176_v35 = vpop.permute.xlu0 %1175 }
 0x2bc   : > { %13399 = vmatmul.mubr.msk.f32.vlgmr.msra.gmra.mrb[56].mxu1 %vm1243_vm0, %v14709_v47  ;;  %13225 = vmatprep.mubr.msk.f32.mxu0 %vm1243_vm0, %v1176_v35  ;;  %v14714_v47 = vld [vmem:[%s15104_s6 + $0xb0] sm:$0xff]  ;;  %v14715_v35 = vld [vmem:[%s15104_s6 + $0xb8] sm:$0xff] }
 0x2bd   : > { %13401 = vmatprep.mubr.msk.f32.mxu1 %vm1243_vm0, %v14710_v63  ;;  %14283 = vmatpush3.bf16.msra.mxu1 %v15162_v34  ;;  %v1178_v63 = vpop.permute.xlu1 %1177 }
 0x2be   : > { %14285 = vmatprep.subr.bf16.mxu1 %v15196_v43  ;;  %13226 = vmatmul.mubr.msk.f32.gmra.mrb[94].mxu0 %vm1243_vm0, %v1178_v63  ;;  %v14716_v63 = vld [vmem:[%s15104_s6 + $0xc0] sm:$0xff] }
 0x2bf   : > { %v1180_v8 = vpop.permute.xlu0 %1179 }
 0x2c0   : > { %13402 = vmatmul.mubr.msk.f32.gmra.mrb[58].mxu1 %vm1243_vm0, %v14711_v33  ;;  %13228 = vmatprep.mubr.msk.f32.mxu0 %vm1243_vm0, %v1180_v8 }
 0x2c1   : > { %13404 = vmatprep.mubr.msk.f32.mxu1 %vm1243_vm0, %v14712_v46  ;;  %14287 = vmatpush3.bf16.msra.mxu1 %v15196_v43  ;;  %v1182_v33 = vpop.permute.xlu1 %1181 }
 0x2c2   : > { %14289 = vmatprep.subr.bf16.mxu1 %v15231_v0  ;;  %13229 = vmatmul.mubr.msk.f32.gmra.mrb[96].mxu0 %vm1243_vm0, %v1182_v33  ;;  %v14718_v33 = vld [vmem:[%s15104_s6 + $0xd0] sm:$0xff] }
 0x2c3   : > { %v1184_v46 = vpop.permute.xlu0 %1183 }
 0x2c4   : > { %13405 = vmatmul.mubr.msk.f32.gmra.mrb[60].mxu1 %vm1243_vm0, %v14713_v55  ;;  %13231 = vmatprep.mubr.msk.f32.mxu0 %vm1243_vm0, %v1184_v46 }
 0x2c5   : > { %13407 = vmatprep.mubr.msk.f32.mxu1 %vm1243_vm0, %v14714_v47  ;;  %v1186_v55 = vpop.permute.xlu1 %1185  ;;  %v14717_v47 = vld [vmem:[%s15104_s6 + $0xc8] sm:$0xff] }
 0x2c6   : > { %13232 = vmatmul.mubr.msk.f32.gmra.mrb[98].mxu0 %vm1243_vm0, %v1186_v55  ;;  %v14720_v55 = vld [vmem:[%s15104_s6 + $0xe0] sm:$0xff] }
 0x2c7   : > { %v1188_v8 = vpop.permute.xlu0 %1187 }
 0x2c8   : > { %13408 = vmatmul.mubr.msk.f32.gmra.mrb[62].mxu1 %vm1243_vm0, %v14715_v35  ;;  %13234 = vmatprep.mubr.msk.f32.mxu0 %vm1243_vm0, %v1188_v8  ;;  %v14722_v8 = vld [vmem:[%s15104_s6 + $0xf0] sm:$0xff] }
 0x2c9   : > { %13410 = vmatprep.mubr.msk.f32.mxu1 %vm1243_vm0, %v14716_v63  ;;  %v1190_v35 = vpop.permute.xlu1 %1189  ;;  %v14719_v63 = vld [vmem:[%s15104_s6 + $0xd8] sm:$0xff] }
 0x2ca   : > { %13235 = vmatmul.mubr.msk.f32.gmra.mrb[100].mxu0 %vm1243_vm0, %v1190_v35 }
 0x2cb   : > { %v1192_v46 = vpop.permute.xlu0 %1191 }
 0x2cc   : > { %13411 = vmatmul.mubr.msk.f32.gmra.mrb[64].mxu1 %vm1243_vm0, %v14717_v47  ;;  %13237 = vmatprep.mubr.msk.f32.mxu0 %vm1243_vm0, %v1192_v46  ;;  %v14721_v47 = vld [vmem:[%s15104_s6 + $0xe8] sm:$0xff] }
 0x2cd   : > { %13413 = vmatprep.mubr.msk.f32.mxu1 %vm1243_vm0, %v14718_v33  ;;  %v1194_v43 = vpop.permute.xlu1 %1193 }
 0x2ce   : > { %13238 = vmatmul.mubr.msk.f32.gmra.mrb[102].mxu0 %vm1243_vm0, %v1194_v43 }
 0x2cf   : > { %v1196_v33 = vpop.permute.xlu0 %1195 }
 0x2d0   : > { %13414 = vmatmul.mubr.msk.f32.gmra.mrb[66].mxu1 %vm1243_vm0, %v14719_v63  ;;  %13240 = vmatprep.mubr.msk.f32.mxu0 %vm1243_vm0, %v1196_v33  ;;  %v14723_v63 = vld [vmem:[%s15104_s6 + $0xf8] sm:$0xff] }
 0x2d1   : > { %13416 = vmatprep.mubr.msk.f32.mxu1 %vm1243_vm0, %v14720_v55  ;;  %v1198_v35 = vpop.permute.xlu1 %1197 }
 0x2d2   : > { %13241 = vmatmul.mubr.msk.f32.gmra.mrb[104].mxu0 %vm1243_vm0, %v1198_v35 }
 0x2d3   : > { %v1200_v55 = vpop.permute.xlu0 %1199 }
 0x2d4   : > { %13417 = vmatmul.mubr.msk.f32.gmra.mrb[68].mxu1 %vm1243_vm0, %v14721_v47  ;;  %13243 = vmatprep.mubr.msk.f32.mxu0 %vm1243_vm0, %v1200_v55 }
 0x2d5   : > { %13419 = vmatprep.mubr.msk.f32.mxu1 %vm1243_vm0, %v14722_v8  ;;  %v1202_v42 = vpop.permute.xlu1 %1201 }
 0x2d6   : > { %13244 = vmatmul.mubr.msk.f32.gmra.mrb[106].mxu0 %vm1243_vm0, %v1202_v42 }
 0x2d7   : > { %v1204_v43 = vpop.permute.xlu0 %1203 }
 0x2d8   : > { %13420 = vmatmul.mubr.msk.f32.gmra.mrb[70].mxu1 %vm1243_vm0, %v14723_v63  ;;  %13246 = vmatprep.mubr.msk.f32.mxu0 %vm1243_vm0, %v1204_v43 }
 0x2d9   : > { %v1206_v46 = vpop.permute.xlu1 %1205 }
 0x2da   : > { %13247 = vmatmul.mubr.msk.f32.gmra.mrb[108].mxu0 %vm1243_vm0, %v1206_v46 }
 0x2db   : > { %v1208_v47 = vpop.permute.xlu0 %1207 }
 0x2dc   : > { %13249 = vmatprep.mubr.msk.f32.mxu0 %vm1243_vm0, %v1208_v47 }
 0x2dd   : > { %v1210_v8 = vpop.permute.xlu1 %1209 }
 0x2de   : > { %13250 = vmatmul.mubr.msk.f32.gmra.mrb[110].mxu0 %vm1243_vm0, %v1210_v8  ;;  %v15904_v8 = vld [vmem:[%s20679_s1 + $0x40] sm:$0xff] }
 0x2df   : > { %v1212_v33 = vpop.permute.xlu0 %1211  ;;  %21141 = vst [vmem:[#allocation35_spill] sm:$0xff] %v15904_v8  ;;  %13368 = vmatprep.subr.mxu0 %v15904_v8 }
 0x2e0   : > { %13252 = vmatprep.mubr.msk.f32.mxu0 %vm1243_vm0, %v1212_v33  ;;  %13369 = vmatpush3.msra.mxu0 %v15904_v8  ;;  %v15912_v33 = vld [vmem:[%s20679_s1 + $0x8b] ss:$0 sm:$0xff] }
 0x2e1   : > { %v1214_v35 = vpop.permute.xlu1 %1213  ;;  %13486 = vmatprep.subr.mxu0 %v15904_v8  ;;  %21142 = vst [vmem:[#allocation36_spill] sm:$0xff] %v15912_v33 }
 0x2e2   : > { %13253 = vmatmul.mubr.msk.f32.gmra.mrb[112].mxu0 %vm1243_vm0, %v1214_v35 }
 0x2e3   : > { %v1216_v63 = vpop.permute.xlu0 %1215 }
 0x2e4   : > { %13255 = vmatprep.mubr.msk.f32.mxu0 %vm1243_vm0, %v1216_v63 }
 0x2e5   : > { %v1218_v42 = vpop.permute.xlu1 %1217 }
 0x2e6   : > { %13256 = vmatmul.mubr.msk.f32.gmra.mrb[114].mxu0 %vm1243_vm0, %v1218_v42 }
 0x2e7   : > { %v1220_v55 = vpop.permute.xlu0 %1219 }
 0x2e8   : > { %13258 = vmatprep.mubr.msk.f32.mxu0 %vm1243_vm0, %v1220_v55 }
 0x2e9   : > { %v1222_v43 = vpop.permute.xlu1 %1221 }
 0x2ea   : > { %13259 = vmatmul.mubr.msk.f32.gmra.mrb[116].mxu0 %vm1243_vm0, %v1222_v43 }
 0x2eb   : > { %v1224_v46 = vpop.permute.xlu0 %1223 }
 0x2ec   : > { %13261 = vmatprep.mubr.msk.f32.mxu0 %vm1243_vm0, %v1224_v46 }
 0x2ed   : > { %v1226_v47 = vpop.permute.xlu1 %1225 }
 0x2ee   : > { %13262 = vmatmul.mubr.msk.f32.gmra.mrb[118].mxu0 %vm1243_vm0, %v1226_v47 }
 0x36f   : > { %v13346_v35 = vpop.f32.mrb[40].mxu1 }
 0x370   : > { %v15915_v63 = vadd.f32 %v13346_v35, %v15912_v33  ;;  %v2852_v42 = vpop.f32.mrb[41].mxu1 }
 0x371   : > { %v15918_v55 = vadd.f32 %v15912_v33, %v2852_v42 }
 0x372   : > { %21143 = vst [vmem:[#allocation37_spill] sm:$0xff] %v15915_v63  ;;  %vm2964_vm6 = vcmp.gt.f32.partialorder %v15915_v63, 1.0 }
 0x373   : > { %21144 = vst [vmem:[#allocation38_spill] sm:$0xff] %v15918_v55  ;;  %v13349_v43 = vpop.f32.mrb[42].mxu1  ;;  %vm2963_vm8 = vcmp.gt.f32.partialorder %v15918_v55, 1.0  ;;  %v15929_v35 = vsel %vm2964_vm6, 1.0, %v21146_v44 }
 0x374   : > { %v15923_v46 = vadd.f32 %v13349_v43, %v15912_v33  ;;  %v2862_v47 = vpop.f32.mrb[43].mxu1  ;;  %v15926_v38 = vsel %vm2963_vm8, 1.0, %v21146_v44  ;;  %21148 = vst [vmem:[#allocation41_spill] sm:$0xff] %v15929_v35 }
 0x375   : > { %21147 = vst [vmem:[#allocation40_spill] sm:$0xff] %v15926_v38  ;;  %v15932_v39 = vadd.f32 %v15912_v33, %v2862_v47  ;;  %13370 = vmatprep.mubr.msk.f32.mxu0 %vm3011_vm7, %v15926_v38 }
 0x376   : > { %21145 = vst [vmem:[#allocation39_spill] sm:$0xff] %v15923_v46  ;;  %13371 = vmatmul.mubr.msk.f32.vlgmr.msra.gmra.mrb[0].mxu0 %vm3011_vm7, %v15929_v35  ;;  %vm2966_vm9 = vcmp.gt.f32.partialorder %v15923_v46, 1.0 }
 0x377   : > { %21149 = vst [vmem:[#allocation42_spill] sm:$0xff] %v15932_v39  ;;  %v13352_v42 = vpop.f32.mrb[44].mxu1  ;;  %vm2965_vm10 = vcmp.gt.f32.partialorder %v15932_v39, 1.0  ;;  %13487 = vmatpush3.msra.mxu0 %v15904_v8  ;;  %v15954_v46 = vsel %vm2966_vm9, 1.0, %v21146_v44 }
 0x378   : > { %v15942_v43 = vadd.f32 %v13352_v42, %v15912_v33  ;;  %v2872_v55 = vpop.f32.mrb[45].mxu1  ;;  %v15945_v47 = vsel %vm2965_vm10, 1.0, %v21146_v44  ;;  %13604 = vmatprep.subr.mxu0 %v15904_v8  ;;  %21153 = vst [vmem:[#allocation46_spill] sm:$0xff] %v15954_v46 }
 0x379   : > { %21151 = vst [vmem:[#allocation44_spill] sm:$0xff] %v15945_v47  ;;  %v15949_v38 = vadd.f32 %v15912_v33, %v2872_v55  ;;  %13373 = vmatprep.mubr.msk.f32.mxu0 %vm3011_vm7, %v15945_v47 }
 0x37a   : > { %21150 = vst [vmem:[#allocation43_spill] sm:$0xff] %v15942_v43  ;;  %13374 = vmatmul.mubr.msk.f32.gmra.mrb[2].mxu0 %vm3011_vm7, %v15954_v46  ;;  %vm2968_vm11 = vcmp.gt.f32.partialorder %v15942_v43, 1.0 }
 0x37b   : > { %21152 = vst [vmem:[#allocation45_spill] sm:$0xff] %v15949_v38  ;;  %v13355_v42 = vpop.f32.mrb[46].mxu1  ;;  %vm2967_vm12 = vcmp.gt.f32.partialorder %v15949_v38, 1.0  ;;  %v15972_v46 = vsel %vm2968_vm11, 1.0, %v21146_v44 }
 0x37c   : > { %v15961_v39 = vadd.f32 %v13355_v42, %v15912_v33  ;;  %v2882_v8 = vpop.f32.mrb[47].mxu1  ;;  %v15964_v55 = vsel %vm2967_vm12, 1.0, %v21146_v44  ;;  %21157 = vst [vmem:[#allocation50_spill] sm:$0xff] %v15972_v46 }
 0x37d   : > { %21155 = vst [vmem:[#allocation48_spill] sm:$0xff] %v15964_v55  ;;  %v15967_v47 = vadd.f32 %v15912_v33, %v2882_v8  ;;  %13376 = vmatprep.mubr.msk.f32.mxu0 %vm3011_vm7, %v15964_v55 }
 0x37e   : > { %21154 = vst [vmem:[#allocation47_spill] sm:$0xff] %v15961_v39  ;;  %13377 = vmatmul.mubr.msk.f32.gmra.mrb[4].mxu0 %vm3011_vm7, %v15972_v46  ;;  %vm2970_vm13 = vcmp.gt.f32.partialorder %v15961_v39, 1.0 }
 0x37f   : > { %21156 = vst [vmem:[#allocation49_spill] sm:$0xff] %v15967_v47  ;;  %v13358_v42 = vpop.f32.mrb[48].mxu1  ;;  %vm2969_vm14 = vcmp.gt.f32.partialorder %v15967_v47, 1.0  ;;  %v15990_v46 = vsel %vm2970_vm13, 1.0, %v21146_v44 }
 0x380   : > { %v15979_v38 = vadd.f32 %v13358_v42, %v15912_v33  ;;  %v2892_v43 = vpop.f32.mrb[49].mxu1  ;;  %v15982_v8 = vsel %vm2969_vm14, 1.0, %v21146_v44  ;;  %21161 = vst [vmem:[#allocation54_spill] sm:$0xff] %v15990_v46 }
 0x381   : > { %21159 = vst [vmem:[#allocation52_spill] sm:$0xff] %v15982_v8  ;;  %v15985_v55 = vadd.f32 %v15912_v33, %v2892_v43  ;;  %13379 = vmatprep.mubr.msk.f32.mxu0 %vm3011_vm7, %v15982_v8 }
 0x382   : > { %21158 = vst [vmem:[#allocation51_spill] sm:$0xff] %v15979_v38  ;;  %13380 = vmatmul.mubr.msk.f32.gmra.mrb[6].mxu0 %vm3011_vm7, %v15990_v46  ;;  %vm2972_vm15 = vcmp.gt.f32.partialorder %v15979_v38, 1.0 }
 0x383   : > { %21160 = vst [vmem:[#allocation53_spill] sm:$0xff] %v15985_v55  ;;  %v13361_v42 = vpop.f32.mrb[50].mxu1  ;;  %vm2971_vm1 = vcmp.gt.f32.partialorder %v15985_v55, 1.0  ;;  %v16008_v46 = vsel %vm2972_vm15, 1.0, %v21146_v44 }
 0x384   : > { %v15997_v47 = vadd.f32 %v13361_v42, %v15912_v33  ;;  %v2902_v39 = vpop.f32.mrb[51].mxu1  ;;  %v16000_v43 = vsel %vm2971_vm1, 1.0, %v21146_v44  ;;  %21165 = vst [vmem:[#allocation58_spill] sm:$0xff] %v16008_v46 }
 0x385   : > { %21163 = vst [vmem:[#allocation56_spill] sm:$0xff] %v16000_v43  ;;  %v16003_v8 = vadd.f32 %v15912_v33, %v2902_v39  ;;  %13382 = vmatprep.mubr.msk.f32.mxu0 %vm3011_vm7, %v16000_v43 }
 0x386   : > { %21162 = vst [vmem:[#allocation55_spill] sm:$0xff] %v15997_v47  ;;  %13383 = vmatmul.mubr.msk.f32.gmra.mrb[8].mxu0 %vm3011_vm7, %v16008_v46  ;;  %vm2974_vm3 = vcmp.gt.f32.partialorder %v15997_v47, 1.0 }
 0x387   : > { %21164 = vst [vmem:[#allocation57_spill] sm:$0xff] %v16003_v8  ;;  %v13364_v42 = vpop.f32.mrb[52].mxu1  ;;  %vm2973_vm4 = vcmp.gt.f32.partialorder %v16003_v8, 1.0  ;;  %v16026_v46 = vsel %vm2974_vm3, 1.0, %v21146_v44 }
 0x388   : > { %v16015_v55 = vadd.f32 %v13364_v42, %v15912_v33  ;;  %v2912_v38 = vpop.f32.mrb[53].mxu1  ;;  %v16018_v39 = vsel %vm2973_vm4, 1.0, %v21146_v44  ;;  %21169 = vst [vmem:[#allocation62_spill] sm:$0xff] %v16026_v46 }
 0x389   : > { %21167 = vst [vmem:[#allocation60_spill] sm:$0xff] %v16018_v39  ;;  %v16021_v43 = vadd.f32 %v15912_v33, %v2912_v38  ;;  %13385 = vmatprep.mubr.msk.f32.mxu0 %vm3011_vm7, %v16018_v39 }
 0x38a   : > { %21166 = vst [vmem:[#allocation59_spill] sm:$0xff] %v16015_v55  ;;  %13386 = vmatmul.mubr.msk.f32.gmra.mrb[10].mxu0 %vm3011_vm7, %v16026_v46  ;;  %vm2976_vm5 = vcmp.gt.f32.partialorder %v16015_v55, 1.0 }
 0x38b   : > { %21168 = vst [vmem:[#allocation61_spill] sm:$0xff] %v16021_v43  ;;  %v13367_v42 = vpop.f32.mrb[54].mxu1  ;;  %vm2975_vm6 = vcmp.gt.f32.partialorder %v16021_v43, 1.0  ;;  %v16044_v46 = vsel %vm2976_vm5, 1.0, %v21146_v44  ;;  %v3464_v43 = vmul.f32 0.9, %v15336_v53 }
 0x38c   : > { %v16033_v8 = vadd.f32 %v13367_v42, %v15912_v33  ;;  %v2922_v47 = vpop.f32.mrb[55].mxu1  ;;  %v16036_v38 = vsel %vm2975_vm6, 1.0, %v21146_v44  ;;  %21173 = vst [vmem:[#allocation66_spill] sm:$0xff] %v16044_v46 }
 0x38d   : > { %21171 = vst [vmem:[#allocation64_spill] sm:$0xff] %v16036_v38  ;;  %v16039_v39 = vadd.f32 %v15912_v33, %v2922_v47  ;;  %13388 = vmatprep.mubr.msk.f32.mxu0 %vm3011_vm7, %v16036_v38  ;;  %v16054_v47 = vld [vmem:[%s20679_s1 + $0x88] ss:$0 sm:$0xff]  ;;  %v3466_v33 = vmul.f32 0.9, %v15354_v61 }
 0x38e   : > { %21170 = vst [vmem:[#allocation63_spill] sm:$0xff] %v16033_v8  ;;  %13389 = vmatmul.mubr.msk.f32.gmra.mrb[12].mxu0 %vm3011_vm7, %v16044_v46  ;;  %vm2978_vm8 = vcmp.gt.f32.partialorder %v16033_v8, 1.0  ;;  %v3463_v46 = vmul.f32 0.9, %v15341_v57  ;;  %v3468_v61 = vmul.f32 0.9, %v15375_v7 }
 0x38f   : > { %21172 = vst [vmem:[#allocation65_spill] sm:$0xff] %v16039_v39  ;;  %v13400_v42 = vpop.f32.mrb[56].mxu1  ;;  %vm2977_vm9 = vcmp.gt.f32.partialorder %v16039_v39, 1.0  ;;  %v16065_v53 = vsel %vm2978_vm8, 1.0, %v21146_v44 }
 0x390   : > { %v3390_v38 = vadd.f32 %v16054_v47, %v13400_v42  ;;  %v3384_v55 = vpop.f32.mrb[57].mxu1  ;;  %v16058_v35 = vsel %vm2977_vm9, 1.0, %v21146_v44 }
 0x391   : > { %21174 = vst [vmem:[#allocation67_spill] sm:$0xff] %v16058_v35  ;;  %v3385_v8 = vadd.f32 %v16054_v47, %v3384_v55  ;;  %13391 = vmatprep.mubr.msk.f32.mxu0 %vm3011_vm7, %v16058_v35 }
 0x392   : > { %v3480_v39 = vadd.f32 %v3464_v43, %v3390_v38  ;;  %13392 = vmatmul.mubr.msk.f32.gmra.mrb[14].mxu0 %vm3011_vm7, %v16065_v53 }
 0x393   : > { %v3479_v63 = vadd.f32 %v3463_v46, %v3385_v8  ;;  %v13403_v42 = vpop.f32.mrb[58].mxu1 }
 0x394   : > { %v16071_v58 = vsub.f32 %v3480_v39, %v15362_v3  ;;  %v3400_v57 = vadd.f32 %v16054_v47, %v13403_v42  ;;  %v3394_v55 = vpop.f32.mrb[59].mxu1 }
 0x395   : > { %v3395_v35 = vadd.f32 %v16054_v47, %v3394_v55  ;;  %v16077_v20 = vsub.f32 %v3479_v63, %v15357_v1  ;;  %v3467_v1 = vmul.f32 0.9, %v15382_v10  ;;  %v3470_v10 = vmul.f32 0.9, %v15395_v13 }
 0x396   : > { %v3482_v43 = vadd.f32 %v3466_v33, %v3400_v57  ;;  %vm3512_vm10 = vcmp.gt.f32.partialorder %v16071_v58, 1.0 }
 0x397   : > { %v3481_v46 = vadd.f32 %v3465_v12, %v3395_v35  ;;  %v13406_v8 = vpop.f32.mrb[60].mxu1  ;;  %vm3511_vm11 = vcmp.gt.f32.partialorder %v16077_v20, 1.0  ;;  %v16094_v12 = vsel %vm3512_vm10, 1.0, %v21146_v44 }
 0x398   : > { %v3410_v3 = vadd.f32 %v16054_v47, %v13406_v8  ;;  %v3404_v39 = vpop.f32.mrb[61].mxu1  ;;  %v16084_v38 = vsel %vm3511_vm11, 1.0, %v21146_v44  ;;  %v16087_v4 = vsub.f32 %v3482_v43, %v15387_v11  ;;  %v3469_v43 = vmul.f32 0.9, %v15402_v16 }
 0x399   : > { %v3405_v33 = vadd.f32 %v16054_v47, %v3404_v39  ;;  %13430 = vmatprep.mubr.msk.f32.mxu1 %vm2480_vm2, %v16084_v38  ;;  %v16097_v7 = vsub.f32 %v3481_v46, %v15378_v9  ;;  %v3472_v16 = vmul.f32 0.9, %v15414_v19 }
 0x39a   : > { %v3484_v63 = vadd.f32 %v3468_v61, %v3410_v3  ;;  %13431 = vmatmul.mubr.msk.f32.vlgmr.msra.gmra.mrb[72].mxu1 %vm2480_vm2, %v16094_v12  ;;  %vm3514_vm12 = vcmp.gt.f32.partialorder %v16087_v4, 1.0 }
 0x39b   : > { %v3483_v11 = vadd.f32 %v3467_v1, %v3405_v33  ;;  %v13409_v35 = vpop.f32.mrb[62].mxu1  ;;  %vm3513_vm13 = vcmp.gt.f32.partialorder %v16097_v7, 1.0  ;;  %14291 = vmatpush3.bf16.msra.mxu1 %v15231_v0  ;;  %v16118_v13 = vsel %vm3514_vm12, 1.0, %v21146_v44 }
 0x39c   : > { %v3420_v42 = vadd.f32 %v16054_v47, %v13409_v35  ;;  %v3414_v57 = vpop.f32.mrb[63].mxu1  ;;  %v16107_v9 = vsel %vm3513_vm13, 1.0, %v21146_v44  ;;  %v16110_v55 = vsub.f32 %v3484_v63, %v15407_v17  ;;  %14293 = vmatprep.subr.bf16.mxu1 %v15359_v2  ;;  %v3471_v63 = vmul.f32 0.9, %v15420_v22 }
 0x39d   : > { %v3415_v46 = vadd.f32 %v16054_v47, %v3414_v57  ;;  %13433 = vmatprep.mubr.msk.f32.mxu1 %vm2480_vm2, %v16107_v9  ;;  %v16121_v8 = vsub.f32 %v3483_v11, %v15398_v15  ;;  %v3474_v22 = vmul.f32 0.9, %v15432_v25 }
 0x39e   : > { %v3486_v61 = vadd.f32 %v3470_v10, %v3420_v42  ;;  %13434 = vmatmul.mubr.msk.f32.gmra.mrb[74].mxu1 %vm2480_vm2, %v16118_v13  ;;  %vm3516_vm14 = vcmp.gt.f32.partialorder %v16110_v55, 1.0 }
 0x39f   : > { %v3485_v17 = vadd.f32 %v3469_v43, %v3415_v46  ;;  %v13412_v3 = vpop.f32.mrb[64].mxu1  ;;  %vm3515_vm15 = vcmp.gt.f32.partialorder %v16121_v8, 1.0  ;;  %14295 = vmatpush3.bf16.msra.mxu1 %v15359_v2  ;;  %v16142_v19 = vsel %vm3516_vm14, 1.0, %v21146_v44 }
 0x3a0   : > { %v3430_v39 = vadd.f32 %v16054_v47, %v13412_v3  ;;  %v3424_v1 = vpop.f32.mrb[65].mxu1  ;;  %v16131_v15 = vsel %vm3515_vm15, 1.0, %v21146_v44  ;;  %v16134_v33 = vsub.f32 %v3486_v61, %v15425_v23  ;;  %14297 = vmatprep.subr.bf16.mxu1 %v15102_v5  ;;  %v3473_v61 = vmul.f32 0.9, %v15438_v28 }
 0x3a1   : > { %v3425_v11 = vadd.f32 %v16054_v47, %v3424_v1  ;;  %13436 = vmatprep.mubr.msk.f32.mxu1 %vm2480_vm2, %v16131_v15  ;;  %v16145_v35 = vsub.f32 %v3485_v17, %v15417_v21  ;;  %v3476_v28 = vmul.f32 0.9, %v15450_v31 }
 0x3a2   : > { %v3488_v10 = vadd.f32 %v3472_v16, %v3430_v39  ;;  %13437 = vmatmul.mubr.msk.f32.gmra.mrb[76].mxu1 %vm2480_vm2, %v16142_v19  ;;  %vm3518_vm1 = vcmp.gt.f32.partialorder %v16134_v33, 1.0 }
 0x3a3   : > { %v3487_v23 = vadd.f32 %v3471_v63, %v3425_v11  ;;  %v13415_v42 = vpop.f32.mrb[66].mxu1  ;;  %vm3517_vm3 = vcmp.gt.f32.partialorder %v16145_v35, 1.0  ;;  %v16164_v3 = vsel %vm3518_vm1, 1.0, %v21146_v44 }
 0x3a4   : > { %v3440_v57 = vadd.f32 %v16054_v47, %v13415_v42  ;;  %v3434_v43 = vpop.f32.mrb[67].mxu1  ;;  %v16154_v46 = vsel %vm3517_vm3, 1.0, %v21146_v44  ;;  %v16157_v21 = vsub.f32 %v3488_v10, %v15443_v29  ;;  %v3475_v10 = vmul.f32 0.9, %v15456_v37 }
 0x3a5   : > { %v3435_v17 = vadd.f32 %v16054_v47, %v3434_v43  ;;  %13439 = vmatprep.mubr.msk.f32.mxu1 %vm2480_vm2, %v16154_v46  ;;  %v16167_v25 = vsub.f32 %v3487_v23, %v15435_v27  ;;  %v3478_v37 = vmul.f32 0.9, %v15468_v45 }
 0x3a6   : > { %v3490_v16 = vadd.f32 %v3474_v22, %v3440_v57  ;;  %13440 = vmatmul.mubr.msk.f32.gmra.mrb[78].mxu1 %vm2480_vm2, %v16164_v3  ;;  %vm3520_vm4 = vcmp.gt.f32.partialorder %v16157_v21, 1.0 }
 0x3a7   : > { %v3489_v29 = vadd.f32 %v3473_v61, %v3435_v17  ;;  %v13418_v39 = vpop.f32.mrb[68].mxu1  ;;  %vm3519_vm5 = vcmp.gt.f32.partialorder %v16167_v25, 1.0  ;;  %v16186_v42 = vsel %vm3520_vm4, 1.0, %v21146_v44 }
 0x3a8   : > { %v3450_v1 = vadd.f32 %v16054_v47, %v13418_v39  ;;  %v3444_v63 = vpop.f32.mrb[69].mxu1  ;;  %v16176_v11 = vsel %vm3519_vm5, 1.0, %v21146_v44  ;;  %v16179_v27 = vsub.f32 %v3490_v16, %v15461_v40  ;;  %v3477_v16 = vmul.f32 0.9, %v15474_v50 }
 0x3a9   : > { %v3445_v23 = vadd.f32 %v16054_v47, %v3444_v63  ;;  %13442 = vmatprep.mubr.msk.f32.mxu1 %vm2480_vm2, %v16176_v11  ;;  %v16189_v31 = vsub.f32 %v3489_v29, %v15453_v36 }
 0x3aa   : > { %v3492_v22 = vadd.f32 %v3476_v28, %v3450_v1  ;;  %13443 = vmatmul.mubr.msk.f32.gmra.mrb[80].mxu1 %vm2480_vm2, %v16186_v42  ;;  %vm3522_vm6 = vcmp.gt.f32.partialorder %v16179_v27, 1.0 }
 0x3ab   : > { %v3491_v40 = vadd.f32 %v3475_v10, %v3445_v23  ;;  %v13421_v57 = vpop.f32.mrb[70].mxu1  ;;  %vm3521_vm8 = vcmp.gt.f32.partialorder %v16189_v31, 1.0  ;;  %v16208_v39 = vsel %vm3522_vm6, 1.0, %v21146_v44 }
 0x3ac   : > { %v3460_v43 = vadd.f32 %v16054_v47, %v13421_v57  ;;  %v3454_v61 = vpop.f32.mrb[71].mxu1  ;;  %v16198_v17 = vsel %vm3521_vm8, 1.0, %v21146_v44  ;;  %v16201_v36 = vsub.f32 %v3492_v22, %v15479_v52 }
 0x3ad   : > { %v3455_v29 = vadd.f32 %v16054_v47, %v3454_v61  ;;  %13445 = vmatprep.mubr.msk.f32.mxu1 %vm2480_vm2, %v16198_v17  ;;  %v16211_v45 = vsub.f32 %v3491_v40, %v15471_v49 }
 0x3ae   : > { %v3494_v28 = vadd.f32 %v3478_v37, %v3460_v43  ;;  %13446 = vmatmul.mubr.msk.f32.gmra.mrb[82].mxu1 %vm2480_vm2, %v16208_v39  ;;  %vm3524_vm9 = vcmp.gt.f32.partialorder %v16201_v36, 1.0 }
 0x3af   : > { %v3493_v52 = vadd.f32 %v3477_v16, %v3455_v29  ;;  %vm3523_vm10 = vcmp.gt.f32.partialorder %v16211_v45, 1.0  ;;  %v16226_v49 = vsel %vm3524_vm9, 1.0, %v21146_v44 }
 0x3b0   : > { %v16218_v50 = vsel %vm3523_vm10, 1.0, %v21146_v44  ;;  %v16221_v1 = vsub.f32 %v3494_v28, %v15491_v51 }
 0x3b1   : > { %13448 = vmatprep.mubr.msk.f32.mxu1 %vm2480_vm2, %v16218_v50  ;;  %v16229_v63 = vsub.f32 %v3493_v52, %v15486_v54 }
 0x3b2   : > { %13449 = vmatmul.mubr.msk.f32.gmra.mrb[84].mxu1 %vm2480_vm2, %v16226_v49  ;;  %vm3526_vm11 = vcmp.gt.f32.partialorder %v16221_v1, 1.0 }
 0x3b3   : > { %vm3525_vm12 = vcmp.gt.f32.partialorder %v16229_v63, 1.0  ;;  %v16241_v51 = vsel %vm3526_vm11, 1.0, %v21146_v44 }
 0x3b4   : > { %v16236_v10 = vsel %vm3525_vm12, 1.0, %v21146_v44  ;;  %21176 = vst [vmem:[#allocation69_spill] sm:$0xff] %v16241_v51 }
 0x3b5   : > { %21175 = vst [vmem:[#allocation68_spill] sm:$0xff] %v16236_v10  ;;  %13451 = vmatprep.mubr.msk.f32.mxu1 %vm2480_vm2, %v16236_v10 }
 0x3b6   : > { %13452 = vmatmul.mubr.msk.f32.gmra.mrb[86].mxu1 %vm2480_vm2, %v16241_v51 }
 0x449   : > { %v16245_v54 = vpop.f32.mrb[0].mxu0 }
 0x44a   : > { %21177 = vst [vmem:[#allocation70_spill] sm:$0xff] %v16245_v54  ;;  %v16247_v23 = vpop.f32.mrb[1].mxu0 }
 0x44b   : > { %21178 = vst [vmem:[#allocation71_spill] sm:$0xff] %v16247_v23 }
 0x44d   : > { %v16249_v22 = vpop.f32.mrb[2].mxu0 }
 0x44e   : > { %21179 = vst [vmem:[#allocation72_spill] sm:$0xff] %v16249_v22  ;;  %v16251_v40 = vpop.f32.mrb[3].mxu0 }
 0x44f   : > { %21180 = vst [vmem:[#allocation73_spill] sm:$0xff] %v16251_v40 }
 0x451   : > { %v16253_v57 = vpop.f32.mrb[4].mxu0 }
 0x452   : > { %21181 = vst [vmem:[#allocation74_spill] sm:$0xff] %v16253_v57  ;;  %v16255_v37 = vpop.f32.mrb[5].mxu0 }
 0x453   : > { %21182 = vst [vmem:[#allocation75_spill] sm:$0xff] %v16255_v37 }
 0x455   : > { %v16257_v43 = vpop.f32.mrb[6].mxu0 }
 0x456   : > { %21183 = vst [vmem:[#allocation76_spill] sm:$0xff] %v16257_v43  ;;  %v16259_v61 = vpop.f32.mrb[7].mxu0  ;;  %v3737_v43 = vmul.f32 0.9, %v15673_v26  ;;  %v3738_v26 = vmul.f32 0.9, %v15693_v62 }
 0x457   : > { %21184 = vst [vmem:[#allocation77_spill] sm:$0xff] %v16259_v61 }
 0x459   : > { %v16261_v16 = vpop.f32.mrb[8].mxu0 }
 0x45a   : > { %21185 = vst [vmem:[#allocation78_spill] sm:$0xff] %v16261_v16  ;;  %v16263_v29 = vpop.f32.mrb[9].mxu0 }
 0x45b   : > { %21186 = vst [vmem:[#allocation79_spill] sm:$0xff] %v16263_v29  ;;  %v3736_v29 = vmul.f32 0.9, %v15677_v32 }
 0x45d   : > { %v16265_v28 = vpop.f32.mrb[10].mxu0 }
 0x45e   : > { %21187 = vst [vmem:[#allocation80_spill] sm:$0xff] %v16265_v28  ;;  %v16267_v52 = vpop.f32.mrb[11].mxu0 }
 0x45f   : > { %21188 = vst [vmem:[#allocation81_spill] sm:$0xff] %v16267_v52 }
 0x461   : > { %v16269_v23 = vpop.f32.mrb[12].mxu0 }
 0x462   : > { %21189 = vst [vmem:[#allocation82_spill] sm:$0xff] %v16269_v23  ;;  %v16271_v22 = vpop.f32.mrb[13].mxu0  ;;  %v3739_v23 = vmul.f32 0.9, %v15683_v56  ;;  %v3741_v56 = vmul.f32 0.9, %v15704_v18 }
 0x463   : > { %21190 = vst [vmem:[#allocation83_spill] sm:$0xff] %v16271_v22 }
 0x465   : > { %v16273_v40 = vpop.f32.mrb[14].mxu0 }
 0x466   : > { %21191 = vst [vmem:[#allocation84_spill] sm:$0xff] %v16273_v40  ;;  %v16275_v57 = vpop.f32.mrb[15].mxu0 }
 0x467   : > { %21192 = vst [vmem:[#allocation85_spill] sm:$0xff] %v16275_v57 }
 0x46d   : > { %v13432_v37 = vpop.f32.mrb[72].mxu1 }
 0x46e   : > { %v3663_v61 = vadd.f32 %v13432_v37, %v15669_v14  ;;  %v3657_v16 = vpop.f32.mrb[73].mxu1 }
 0x46f   : > { %v3658_v28 = vadd.f32 %v15669_v14, %v3657_v16  ;;  %v3743_v16 = vmul.f32 0.9, %v15725_v6 }
 0x470   : > { %v3753_v54 = vadd.f32 %v3737_v43, %v3663_v61 }
 0x471   : > { %v3752_v52 = vadd.f32 %v3736_v29, %v3658_v28  ;;  %v13435_v10 = vpop.f32.mrb[74].mxu1 }
 0x472   : > { %v16283_v22 = vsub.f32 %v3753_v54, %v15690_v60  ;;  %v3673_v57 = vadd.f32 %v13435_v10, %v15669_v14  ;;  %v3667_v40 = vpop.f32.mrb[75].mxu1 }
 0x473   : > { %v3668_v37 = vadd.f32 %v15669_v14, %v3667_v40  ;;  %v16289_v51 = vsub.f32 %v3752_v52, %v15686_v59  ;;  %v3740_v59 = vmul.f32 0.9, %v15712_v30 }
 0x474   : > { %v3755_v32 = vadd.f32 %v3739_v23, %v3673_v57  ;;  %vm3785_vm13 = vcmp.gt.f32.partialorder %v16283_v22, 1.0 }
 0x475   : > { %v3754_v43 = vadd.f32 %v3738_v26, %v3668_v37  ;;  %v13438_v61 = vpop.f32.mrb[76].mxu1  ;;  %vm3784_vm14 = vcmp.gt.f32.partialorder %v16289_v51, 1.0  ;;  %v16306_v40 = vsel %vm3785_vm13, 1.0, %v21146_v44  ;;  %v21195_v26 = vld [vmem:[#allocation16_spill] sm:$0xff] }
 0x476   : > { %v3683_v60 = vadd.f32 %v13438_v61, %v15669_v14  ;;  %v3677_v10 = vpop.f32.mrb[77].mxu1  ;;  %v16296_v54 = vsel %vm3784_vm14, 1.0, %v21146_v44  ;;  %v16299_v62 = vsub.f32 %v3755_v32, %v15717_v41  ;;  %v3742_v37 = vmul.f32 0.9, %v21195_v26 }
 0x477   : > { %v3678_v23 = vadd.f32 %v15669_v14, %v3677_v10  ;;  %13462 = vmatprep.mubr.msk.f32.mxu1 %vm2480_vm2, %v16296_v54  ;;  %v16309_v18 = vsub.f32 %v3754_v43, %v15707_v24  ;;  %v21196_v43 = vld [vmem:[#allocation15_spill] sm:$0xff] }
 0x478   : > { %v3757_v57 = vadd.f32 %v3741_v56, %v3683_v60  ;;  %13463 = vmatmul.mubr.msk.f32.vlgmr.msra.gmra.mrb[88].mxu1 %vm2480_vm2, %v16306_v40  ;;  %vm3787_vm15 = vcmp.gt.f32.partialorder %v16299_v62, 1.0 }
 0x479   : > { %v3756_v41 = vadd.f32 %v3740_v59, %v3678_v23  ;;  %14299 = vmatpush3.bf16.msra.mxu1 %v15102_v5  ;;  %v13441_v30 = vpop.f32.mrb[78].mxu1  ;;  %vm3786_vm1 = vcmp.gt.f32.partialorder %v16309_v18, 1.0  ;;  %v16330_v6 = vsel %vm3787_vm15, 1.0, %v21146_v44  ;;  %v21198_v59 = vld [vmem:[#allocation17_spill] sm:$0xff] }
 0x47a   : > { %v3693_v29 = vadd.f32 %v13441_v30, %v15669_v14  ;;  %v3687_v28 = vpop.f32.mrb[79].mxu1  ;;  %v16319_v24 = vsel %vm3786_vm1, 1.0, %v21146_v44  ;;  %v16322_v52 = vsub.f32 %v3757_v57, %v15737_v48  ;;  %14301 = vmatprep.subr.bf16.mxu1 %v15162_v34  ;;  %v3745_v23 = vmul.f32 0.9, %v21198_v59 }
 0x47b   : > { %21193 = vst [vmem:[#allocation86_spill] sm:$0xff] %v16319_v24  ;;  %v3688_v32 = vadd.f32 %v15669_v14, %v3687_v28  ;;  %13465 = vmatprep.mubr.msk.f32.mxu1 %vm2480_vm2, %v16319_v24  ;;  %v16333_v61 = vsub.f32 %v3756_v41, %v21196_v43  ;;  %v21200_v41 = vld [vmem:[#allocation20_spill] sm:$0xff] }
 0x47c   : > { %21194 = vst [vmem:[#allocation87_spill] sm:$0xff] %v16322_v52  ;;  %v3759_v56 = vadd.f32 %v3743_v16, %v3693_v29  ;;  %13466 = vmatmul.mubr.msk.f32.gmra.mrb[90].mxu1 %vm2480_vm2, %v16330_v6  ;;  %vm3789_vm3 = vcmp.gt.f32.partialorder %v16322_v52, 1.0  ;;  %v21202_v29 = vld [vmem:[#allocation19_spill] sm:$0xff]  ;;  %v21245_v52 = vld [vmem:[#allocation42_spill] sm:$0xff] }
 0x47d   : > { %21197 = vst [vmem:[#allocation16_spill] sm:$0xff] %v16333_v61  ;;  %v3758_v48 = vadd.f32 %v3742_v37, %v3688_v32  ;;  %v13444_v60 = vpop.f32.mrb[80].mxu1  ;;  %vm3788_vm4 = vcmp.gt.f32.partialorder %v16333_v61, 1.0  ;;  %v3744_v26 = vmul.f32 0.9, %v21202_v29  ;;  %v16352_v37 = vsel %vm3789_vm3, 1.0, %v21146_v44 }
 0x47e   : > { %v3703_v10 = vadd.f32 %v13444_v60, %v15669_v14  ;;  %v3697_v57 = vpop.f32.mrb[81].mxu1  ;;  %v16342_v30 = vsel %vm3788_vm4, 1.0, %v21146_v44  ;;  %v16345_v28 = vsub.f32 %v3759_v56, %v21200_v41  ;;  %21203 = vst [vmem:[#allocation20_spill] sm:$0xff] %v16352_v37  ;;  %v21204_v32 = vld [vmem:[#allocation18_spill] sm:$0xff] }
 0x47f   : > { %21199 = vst [vmem:[#allocation15_spill] sm:$0xff] %v16342_v30  ;;  %v3698_v16 = vadd.f32 %v15669_v14, %v3697_v57  ;;  %13468 = vmatprep.mubr.msk.f32.mxu1 %vm2480_vm2, %v16342_v30  ;;  %v16355_v43 = vsub.f32 %v3758_v48, %v21204_v32  ;;  %v21206_v57 = vld [vmem:[#allocation24_spill] sm:$0xff]  ;;  %v21208_v30 = vld [vmem:[#allocation21_spill] sm:$0xff]  ;;  %v21212_v32 = vld [vmem:[#allocation23_spill] sm:$0xff] }
 0x480   : > { %21201 = vst [vmem:[#allocation17_spill] sm:$0xff] %v16345_v28  ;;  %v3761_v60 = vadd.f32 %v3745_v23, %v3703_v10  ;;  %13469 = vmatmul.mubr.msk.f32.gmra.mrb[92].mxu1 %vm2480_vm2, %v16352_v37  ;;  %vm3791_vm5 = vcmp.gt.f32.partialorder %v16345_v28, 1.0  ;;  %v3747_v61 = vmul.f32 0.9, %v21208_v30  ;;  %v21210_v10 = vld [vmem:[#allocation22_spill] sm:$0xff]  ;;  %v21244_v37 = vld [vmem:[#allocation40_spill] sm:$0xff] }
 0x481   : > { %21205 = vst [vmem:[#allocation19_spill] sm:$0xff] %v16355_v43  ;;  %v3760_v56 = vadd.f32 %v3744_v26, %v3698_v16  ;;  %v13447_v59 = vpop.f32.mrb[82].mxu1  ;;  %vm3790_vm6 = vcmp.gt.f32.partialorder %v16355_v43, 1.0  ;;  %v16375_v16 = vld [vmem:[%s20679_s1 + $0x89] ss:$0 sm:$0xff] }
 0x482   : > { %v16362_v41 = vsub.f32 %v3761_v60, %v21206_v57  ;;  %v3713_v29 = vadd.f32 %v13447_v59, %v15669_v14  ;;  %v3707_v24 = vpop.f32.mrb[83].mxu1  ;;  %v16367_v48 = vsel %vm3790_vm6, 1.0, %v21146_v44  ;;  %v3746_v60 = vmul.f32 0.9, %v21212_v32  ;;  %v21214_v57 = vld [vmem:[#allocation28_spill] sm:$0xff]  ;;  %v21216_v32 = vld [vmem:[#allocation25_spill] sm:$0xff] }
 0x483   : > { %21209 = vst [vmem:[#allocation24_spill] sm:$0xff] %v16367_v48  ;;  %v16370_v23 = vsub.f32 %v3760_v56, %v21210_v10  ;;  %v3708_v26 = vadd.f32 %v16375_v16, %v3707_v24  ;;  %13471 = vmatprep.mubr.msk.f32.mxu1 %vm2480_vm2, %v16367_v48  ;;  %v16382_v14 = vsel %vm3791_vm5, 1.0, %v21146_v44  ;;  %v3749_v48 = vmul.f32 0.9, %v21216_v32 }
 0x484   : > { %21207 = vst [vmem:[#allocation18_spill] sm:$0xff] %v16362_v41  ;;  %21213 = vst [vmem:[#allocation22_spill] sm:$0xff] %v16382_v14  ;;  %v3763_v30 = vadd.f32 %v3747_v61, %v3713_v29  ;;  %13472 = vmatmul.mubr.msk.f32.gmra.mrb[94].mxu1 %vm2480_vm2, %v16382_v14  ;;  %vm3793_vm8 = vcmp.gt.f32.partialorder %v16362_v41, 1.0  ;;  %v21218_v61 = vld [vmem:[#allocation26_spill] sm:$0xff] }
 0x485   : > { %21211 = vst [vmem:[#allocation21_spill] sm:$0xff] %v16370_v23  ;;  %v3762_v56 = vadd.f32 %v3746_v60, %v3708_v26  ;;  %v13450_v59 = vpop.f32.mrb[84].mxu1  ;;  %vm3792_vm9 = vcmp.gt.f32.partialorder %v16370_v23, 1.0  ;;  %v21220_v26 = vld [vmem:[#allocation27_spill] sm:$0xff] }
 0x486   : > { %v16389_v24 = vsub.f32 %v3763_v30, %v21214_v57  ;;  %v3723_v10 = vadd.f32 %v16375_v16, %v13450_v59  ;;  %v3717_v43 = vpop.f32.mrb[85].mxu1  ;;  %v16394_v28 = vsel %vm3792_vm9, 1.0, %v21146_v44  ;;  %v3748_v60 = vmul.f32 0.9, %v21220_v26  ;;  %v21224_v26 = vld [vmem:[#allocation29_spill] sm:$0xff] }
 0x487   : > { %21217 = vst [vmem:[#allocation28_spill] sm:$0xff] %v16394_v28  ;;  %v16397_v29 = vsub.f32 %v3762_v56, %v21218_v61  ;;  %v3718_v41 = vadd.f32 %v16375_v16, %v3717_v43  ;;  %13474 = vmatprep.mubr.msk.f32.mxu1 %vm2480_vm2, %v16394_v28  ;;  %v16404_v30 = vsel %vm3793_vm8, 1.0, %v21146_v44  ;;  %v21222_v56 = vld [vmem:[#allocation32_spill] sm:$0xff]  ;;  %v3751_v28 = vmul.f32 0.9, %v21224_v26 }
 0x488   : > { %21215 = vst [vmem:[#allocation23_spill] sm:$0xff] %v16389_v24  ;;  %21221 = vst [vmem:[#allocation26_spill] sm:$0xff] %v16404_v30  ;;  %v3765_v59 = vadd.f32 %v3749_v48, %v3723_v10  ;;  %13475 = vmatmul.mubr.msk.f32.gmra.mrb[96].mxu1 %vm2480_vm2, %v16404_v30  ;;  %vm3795_vm10 = vcmp.gt.f32.partialorder %v16389_v24, 1.0  ;;  %v21226_v48 = vld [vmem:[#allocation30_spill] sm:$0xff]  ;;  %v21243_v30 = vld [vmem:[#allocation39_spill] sm:$0xff] }
 0x489   : > { %21219 = vst [vmem:[#allocation25_spill] sm:$0xff] %v16397_v29  ;;  %v3764_v57 = vadd.f32 %v3748_v60, %v3718_v41  ;;  %v13453_v32 = vpop.f32.mrb[86].mxu1  ;;  %vm3794_vm11 = vcmp.gt.f32.partialorder %v16397_v29, 1.0  ;;  %v21228_v41 = vld [vmem:[#allocation31_spill] sm:$0xff]  ;;  %v21242_v29 = vld [vmem:[#allocation41_spill] sm:$0xff] }
 0x48a   : > { %v16411_v43 = vsub.f32 %v3765_v59, %v21222_v56  ;;  %v3733_v61 = vadd.f32 %v16375_v16, %v13453_v32  ;;  %v3727_v23 = vpop.f32.mrb[87].mxu1  ;;  %v16416_v14 = vsel %vm3794_vm11, 1.0, %v21146_v44  ;;  %v3750_v60 = vmul.f32 0.9, %v21228_v41 }
 0x48b   : > { %21225 = vst [vmem:[#allocation32_spill] sm:$0xff] %v16416_v14  ;;  %v16419_v10 = vsub.f32 %v3764_v57, %v21226_v48  ;;  %v3728_v24 = vadd.f32 %v16375_v16, %v3727_v23  ;;  %13477 = vmatprep.mubr.msk.f32.mxu1 %vm2480_vm2, %v16416_v14  ;;  %v16426_v59 = vsel %vm3795_vm10, 1.0, %v21146_v44  ;;  %v21230_v23 = vld [vmem:[#allocation34_spill] sm:$0xff]  ;;  %v21233_v48 = vld [vmem:[#allocation33_spill] sm:$0xff] }
 0x48c   : > { %21223 = vst [vmem:[#allocation27_spill] sm:$0xff] %v16411_v43  ;;  %21229 = vst [vmem:[#allocation30_spill] sm:$0xff] %v16426_v59  ;;  %v3767_v32 = vadd.f32 %v3751_v28, %v3733_v61  ;;  %13478 = vmatmul.mubr.msk.f32.gmra.mrb[98].mxu1 %vm2480_vm2, %v16426_v59  ;;  %vm3797_vm12 = vcmp.gt.f32.partialorder %v16411_v43, 1.0  ;;  %v11831_v61 = vld [vmem:[%s15104_s6 + $0x100] sm:$0xff] }
 0x48d   : > { %21227 = vst [vmem:[#allocation29_spill] sm:$0xff] %v16419_v10  ;;  %v3766_v56 = vadd.f32 %v3750_v60, %v3728_v24  ;;  %vm3796_vm13 = vcmp.gt.f32.partialorder %v16419_v10, 1.0  ;;  %v16444_v28 = vsel %vm3797_vm12, 1.0, %v21146_v44 }
 0x48e   : > { %v16433_v57 = vsub.f32 %v3767_v32, %v21230_v23  ;;  %v16436_v26 = vsel %vm3796_vm13, 1.0, %v21146_v44  ;;  %21235 = vst [vmem:[#allocation88_spill] sm:$0xff] %v16444_v28  ;;  %v11832_v32 = vld [vmem:[%s15104_s6 + $0x108] sm:$0xff]  ;;  %v11834_v23 = vld [vmem:[%s15104_s6 + $0x118] sm:$0xff] }
 0x48f   : > { %21232 = vst [vmem:[#allocation34_spill] sm:$0xff] %v16436_v26  ;;  %v16439_v41 = vsub.f32 %v3766_v56, %v21233_v48  ;;  %13480 = vmatprep.mubr.msk.f32.mxu1 %vm2480_vm2, %v16436_v26  ;;  %v11833_v56 = vld [vmem:[%s15104_s6 + $0x110] sm:$0xff]  ;;  %v11835_v48 = vld [vmem:[%s15104_s6 + $0x120] sm:$0xff]  ;;  %v21239_v26 = vld [vmem:[#allocation36_spill] sm:$0xff] }
 0x490   : > { %21231 = vst [vmem:[#allocation31_spill] sm:$0xff] %v16433_v57  ;;  %13481 = vmatmul.mubr.msk.f32.gmra.mrb[100].mxu1 %vm2480_vm2, %v16444_v28  ;;  %vm3799_vm14 = vcmp.gt.f32.partialorder %v16433_v57, 1.0  ;;  %v21240_v57 = vld [vmem:[#allocation37_spill] sm:$0xff] }
 0x491   : > { %21234 = vst [vmem:[#allocation33_spill] sm:$0xff] %v16439_v41  ;;  %vm3798_vm15 = vcmp.gt.f32.partialorder %v16439_v41, 1.0  ;;  %v16457_v60 = vsel %vm3799_vm14, 1.0, %v21146_v44  ;;  %v11843_v41 = vld [vmem:[%s15104_s6 + $0x160] sm:$0xff] }
 0x492   : > { %v16451_v24 = vsel %vm3798_vm15, 1.0, %v21146_v44  ;;  %21237 = vst [vmem:[#allocation90_spill] sm:$0xff] %v16457_v60 }
 0x493   : > { %21236 = vst [vmem:[#allocation89_spill] sm:$0xff] %v16451_v24  ;;  %13483 = vmatprep.mubr.msk.f32.mxu1 %vm2480_vm2, %v16451_v24  ;;  %v21238_v24 = vld [vmem:[#allocation5_spill] sm:$0xff] }
 0x494   : > { %13484 = vmatmul.mubr.msk.f32.gmra.mrb[102].mxu1 %vm2480_vm2, %v16457_v60  ;;  %v11839_v60 = vld [vmem:[%s15104_s6 + $0x140] sm:$0xff] }
 0x495   : > { %13516 = vmatprep.mubr.msk.f32.mxu1 %vm1243_vm0, %v11831_v61  ;;  %v11836_v61 = vld [vmem:[%s15104_s6 + $0x128] sm:$0xff] }
 0x498   : > { %13517 = vmatmul.mubr.msk.f32.vlgmr.msra.gmra.mrb[104].mxu1 %vm1243_vm0, %v11832_v32  ;;  %v11837_v32 = vld [vmem:[%s15104_s6 + $0x130] sm:$0xff] }
 0x499   : > { %13519 = vmatprep.mubr.msk.f32.mxu1 %vm1243_vm0, %v11833_v56  ;;  %14303 = vmatpush3.bf16.msra.mxu1 %v15162_v34  ;;  %v11838_v56 = vld [vmem:[%s15104_s6 + $0x138] sm:$0xff] }
 0x49a   : > { %14305 = vmatprep.subr.bf16.mxu1 %v21238_v24 }
 0x49c   : > { %13520 = vmatmul.mubr.msk.f32.gmra.mrb[106].mxu1 %vm1243_vm0, %v11834_v23  ;;  %v11840_v23 = vld [vmem:[%s15104_s6 + $0x148] sm:$0xff] }
 0x49d   : > { %13522 = vmatprep.mubr.msk.f32.mxu1 %vm1243_vm0, %v11835_v48  ;;  %14307 = vmatpush3.bf16.msra.mxu1 %v21238_v24  ;;  %v11841_v48 = vld [vmem:[%s15104_s6 + $0x150] sm:$0xff]  ;;  %v11842_v24 = vld [vmem:[%s15104_s6 + $0x158] sm:$0xff] }
 0x49e   : > { %14309 = vmatprep.subr.bf16.mxu1 %v15231_v0 }
 0x4a0   : > { %13523 = vmatmul.mubr.msk.f32.gmra.mrb[108].mxu1 %vm1243_vm0, %v11836_v61  ;;  %v11844_v61 = vld [vmem:[%s15104_s6 + $0x168] sm:$0xff] }
 0x4a1   : > { %13525 = vmatprep.mubr.msk.f32.mxu1 %vm1243_vm0, %v11837_v32  ;;  %v11845_v32 = vld [vmem:[%s15104_s6 + $0x170] sm:$0xff] }
 0x4a4   : > { %13526 = vmatmul.mubr.msk.f32.gmra.mrb[110].mxu1 %vm1243_vm0, %v11838_v56  ;;  %v11846_v56 = vld [vmem:[%s15104_s6 + $0x178] sm:$0xff] }
 0x4a5   : > { %13528 = vmatprep.mubr.msk.f32.mxu1 %vm1243_vm0, %v11839_v60 }
 0x4a8   : > { %13529 = vmatmul.mubr.msk.f32.gmra.mrb[112].mxu1 %vm1243_vm0, %v11840_v23 }
 0x4a9   : > { %13531 = vmatprep.mubr.msk.f32.mxu1 %vm1243_vm0, %v11841_v48  ;;  %v4010_v48 = vmul.f32 0.9, %v21240_v57 }
 0x4ac   : > { %13532 = vmatmul.mubr.msk.f32.gmra.mrb[114].mxu1 %vm1243_vm0, %v11842_v24  ;;  %v21241_v24 = vld [vmem:[#allocation38_spill] sm:$0xff] }
 0x4ad   : > { %13534 = vmatprep.mubr.msk.f32.mxu1 %vm1243_vm0, %v11843_v41  ;;  %v4009_v14 = vmul.f32 0.9, %v21241_v24 }
 0x4b0   : > { %13535 = vmatmul.mubr.msk.f32.gmra.mrb[116].mxu1 %vm1243_vm0, %v11844_v61 }
 0x4b1   : > { %13537 = vmatprep.mubr.msk.f32.mxu1 %vm1243_vm0, %v11845_v32 }
 0x4b4   : > { %13538 = vmatmul.mubr.msk.f32.gmra.mrb[118].mxu1 %vm1243_vm0, %v11846_v56  ;;  %v4012_v56 = vmul.f32 0.9, %v21243_v30 }
 0x54b   : > { %v13464_v60 = vpop.f32.mrb[88].mxu1 }
 0x54c   : > { %v3936_v23 = vadd.f32 %v13464_v60, %v21239_v26  ;;  %v3930_v28 = vpop.f32.mrb[89].mxu1 }
 0x54d   : > { %v3931_v10 = vadd.f32 %v21239_v26, %v3930_v28  ;;  %v4011_v28 = vmul.f32 0.9, %v21245_v52  ;;  %v21251_v52 = vld [vmem:[#allocation44_spill] sm:$0xff] }
 0x54e   : > { %v4026_v41 = vadd.f32 %v4010_v48, %v3936_v23 }
 0x54f   : > { %v4025_v43 = vadd.f32 %v4009_v14, %v3931_v10  ;;  %v13467_v59 = vpop.f32.mrb[90].mxu1 }
 0x550   : > { %v16501_v61 = vsub.f32 %v4026_v41, %v21242_v29  ;;  %v3946_v32 = vadd.f32 %v13467_v59, %v21239_v26  ;;  %v3940_v34 = vpop.f32.mrb[91].mxu1  ;;  %v21246_v29 = vld [vmem:[#allocation46_spill] sm:$0xff]  ;;  %v21248_v59 = vld [vmem:[#allocation43_spill] sm:$0xff] }
 0x551   : > { %v16506_v60 = vsub.f32 %v4025_v43, %v21244_v37  ;;  %v3941_v57 = vadd.f32 %v21239_v26, %v3940_v34  ;;  %v4014_v24 = vmul.f32 0.9, %v21248_v59 }
 0x552   : > { %vm4058_vm1 = vcmp.gt.f32.partialorder %v16501_v61, 1.0  ;;  %v4028_v23 = vadd.f32 %v4012_v56, %v3946_v32  ;;  %v21253_v56 = vld [vmem:[#allocation45_spill] sm:$0xff] }
 0x553   : > { %v4027_v14 = vadd.f32 %v4011_v28, %v3941_v57  ;;  %v13470_v10 = vpop.f32.mrb[92].mxu1  ;;  %vm4057_vm3 = vcmp.gt.f32.partialorder %v16506_v60, 1.0  ;;  %v16521_v34 = vsel %vm4058_vm1, 1.0, %v21146_v44  ;;  %v4013_v57 = vmul.f32 0.9, %v21253_v56 }
 0x554   : > { %v16513_v48 = vsub.f32 %v4028_v23, %v21246_v29  ;;  %v3956_v30 = vadd.f32 %v13470_v10, %v21239_v26  ;;  %v3950_v37 = vpop.f32.mrb[93].mxu1  ;;  %v16518_v43 = vsel %vm4057_vm3, 1.0, %v21146_v44  ;;  %21250 = vst [vmem:[#allocation38_spill] sm:$0xff] %v16521_v34  ;;  %v21254_v29 = vld [vmem:[#allocation35_spill] sm:$0xff] }
 0x555   : > { %21249 = vst [vmem:[#allocation37_spill] sm:$0xff] %v16518_v43  ;;  %v16524_v41 = vsub.f32 %v4027_v14, %v21251_v52  ;;  %v3951_v32 = vadd.f32 %v21239_v26, %v3950_v37  ;;  %13488 = vmatprep.mubr.msk.f32.mxu0 %vm3011_vm7, %v16518_v43  ;;  %v21255_v14 = vld [vmem:[#allocation50_spill] sm:$0xff]  ;;  %v21257_v52 = vld [vmem:[#allocation47_spill] sm:$0xff] }
 0x556   : > { %21247 = vst [vmem:[#allocation36_spill] sm:$0xff] %v16513_v48  ;;  %v4030_v28 = vadd.f32 %v4014_v24, %v3956_v30  ;;  %13489 = vmatmul.mubr.msk.f32.vlgmr.msra.gmra.mrb[16].mxu0 %vm3011_vm7, %v16521_v34  ;;  %vm4060_vm4 = vcmp.gt.f32.partialorder %v16513_v48, 1.0  ;;  %v4016_v56 = vmul.f32 0.9, %v21257_v52  ;;  %v21259_v24 = vld [vmem:[#allocation48_spill] sm:$0xff] }
 0x557   : > { %21252 = vst [vmem:[#allocation41_spill] sm:$0xff] %v16524_v41  ;;  %v4029_v23 = vadd.f32 %v4013_v57, %v3951_v32  ;;  %v13473_v10 = vpop.f32.mrb[94].mxu1  ;;  %vm4059_vm5 = vcmp.gt.f32.partialorder %v16524_v41, 1.0  ;;  %13605 = vmatpush3.msra.mxu0 %v21254_v29  ;;  %v21261_v41 = vld [vmem:[#allocation49_spill] sm:$0xff] }
 0x558   : > { %v16536_v59 = vsub.f32 %v4030_v28, %v21255_v14  ;;  %v3966_v37 = vadd.f32 %v13473_v10, %v21239_v26  ;;  %v3960_v43 = vpop.f32.mrb[95].mxu1  ;;  %v16541_v30 = vsel %vm4059_vm5, 1.0, %v21146_v44  ;;  %14329 = vmatprep.subr.bf16.mxu0 %v15231_v0  ;;  %v4015_v29 = vmul.f32 0.9, %v21261_v41 }
 0x559   : > { %21258 = vst [vmem:[#allocation40_spill] sm:$0xff] %v16541_v30  ;;  %v16545_v32 = vsub.f32 %v4029_v23, %v21259_v24  ;;  %v3961_v57 = vadd.f32 %v21239_v26, %v3960_v43  ;;  %13491 = vmatprep.mubr.msk.f32.mxu0 %vm3011_vm7, %v16541_v30  ;;  %v16552_v28 = vsel %vm4060_vm4, 1.0, %v21146_v44  ;;  %v21263_v23 = vld [vmem:[#allocation54_spill] sm:$0xff]  ;;  %v21265_v24 = vld [vmem:[#allocation51_spill] sm:$0xff] }
 0x55a   : > { %21256 = vst [vmem:[#allocation39_spill] sm:$0xff] %v16536_v59  ;;  %21262 = vst [vmem:[#allocation46_spill] sm:$0xff] %v16552_v28  ;;  %v4032_v10 = vadd.f32 %v4016_v56, %v3966_v37  ;;  %13492 = vmatmul.mubr.msk.f32.gmra.mrb[18].mxu0 %vm3011_vm7, %v16552_v28  ;;  %vm4062_vm6 = vcmp.gt.f32.partialorder %v16536_v59, 1.0  ;;  %v4018_v30 = vmul.f32 0.9, %v21265_v24  ;;  %v21267_v37 = vld [vmem:[#allocation52_spill] sm:$0xff] }
 0x55b   : > { %21260 = vst [vmem:[#allocation42_spill] sm:$0xff] %v16545_v32  ;;  %v4031_v14 = vadd.f32 %v4015_v29, %v3961_v57  ;;  %v13476_v52 = vpop.f32.mrb[96].mxu1  ;;  %vm4061_vm8 = vcmp.gt.f32.partialorder %v16545_v32, 1.0  ;;  %v21269_v57 = vld [vmem:[#allocation53_spill] sm:$0xff] }
 0x55c   : > { %v16559_v43 = vsub.f32 %v4032_v10, %v21263_v23  ;;  %v3976_v41 = vadd.f32 %v13476_v52, %v21239_v26  ;;  %v3970_v48 = vpop.f32.mrb[97].mxu1  ;;  %v16564_v34 = vsel %vm4061_vm8, 1.0, %v21146_v44  ;;  %v4017_v29 = vmul.f32 0.9, %v21269_v57  ;;  %v21273_v57 = vld [vmem:[#allocation55_spill] sm:$0xff] }
 0x55d   : > { %21266 = vst [vmem:[#allocation44_spill] sm:$0xff] %v16564_v34  ;;  %v16567_v56 = vsub.f32 %v4031_v14, %v21267_v37  ;;  %v3971_v59 = vadd.f32 %v21239_v26, %v3970_v48  ;;  %13494 = vmatprep.mubr.msk.f32.mxu0 %vm3011_vm7, %v16564_v34  ;;  %v16574_v10 = vsel %vm4062_vm6, 1.0, %v21146_v44  ;;  %v21271_v14 = vld [vmem:[#allocation58_spill] sm:$0xff]  ;;  %v4020_v34 = vmul.f32 0.9, %v21273_v57 }
 0x55e   : > { %21264 = vst [vmem:[#allocation43_spill] sm:$0xff] %v16559_v43  ;;  %21270 = vst [vmem:[#allocation35_spill] sm:$0xff] %v16574_v10  ;;  %v4034_v52 = vadd.f32 %v4018_v30, %v3976_v41  ;;  %13495 = vmatmul.mubr.msk.f32.gmra.mrb[20].mxu0 %vm3011_vm7, %v16574_v10  ;;  %vm4064_vm9 = vcmp.gt.f32.partialorder %v16559_v43, 1.0  ;;  %v21275_v30 = vld [vmem:[#allocation56_spill] sm:$0xff] }
 0x55f   : > { %21268 = vst [vmem:[#allocation45_spill] sm:$0xff] %v16567_v56  ;;  %v4033_v23 = vadd.f32 %v4017_v29, %v3971_v59  ;;  %v13479_v24 = vpop.f32.mrb[98].mxu1  ;;  %vm4063_vm10 = vcmp.gt.f32.partialorder %v16567_v56, 1.0  ;;  %v21277_v59 = vld [vmem:[#allocation57_spill] sm:$0xff] }
 0x560   : > { %v16581_v48 = vsub.f32 %v4034_v52, %v21271_v14  ;;  %v3986_v37 = vadd.f32 %v13479_v24, %v21239_v26  ;;  %v3980_v32 = vpop.f32.mrb[99].mxu1  ;;  %v16586_v28 = vsel %vm4063_vm10, 1.0, %v21146_v44  ;;  %v4019_v29 = vmul.f32 0.9, %v21277_v59  ;;  %v21281_v59 = vld [vmem:[#allocation59_spill] sm:$0xff] }
 0x561   : > { %21274 = vst [vmem:[#allocation47_spill] sm:$0xff] %v16586_v28  ;;  %v16589_v41 = vsub.f32 %v4033_v23, %v21275_v30  ;;  %v3981_v43 = vadd.f32 %v21239_v26, %v3980_v32  ;;  %13497 = vmatprep.mubr.msk.f32.mxu0 %vm3011_vm7, %v16586_v28  ;;  %v16596_v52 = vsel %vm4064_vm9, 1.0, %v21146_v44  ;;  %v21279_v23 = vld [vmem:[#allocation62_spill] sm:$0xff]  ;;  %v4022_v28 = vmul.f32 0.9, %v21281_v59 }
 0x562   : > { %21272 = vst [vmem:[#allocation50_spill] sm:$0xff] %v16581_v48  ;;  %21278 = vst [vmem:[#allocation49_spill] sm:$0xff] %v16596_v52  ;;  %v4036_v24 = vadd.f32 %v4020_v34, %v3986_v37  ;;  %13498 = vmatmul.mubr.msk.f32.gmra.mrb[22].mxu0 %vm3011_vm7, %v16596_v52  ;;  %vm4066_vm11 = vcmp.gt.f32.partialorder %v16581_v48, 1.0  ;;  %v21283_v34 = vld [vmem:[#allocation60_spill] sm:$0xff] }
 0x563   : > { %21276 = vst [vmem:[#allocation48_spill] sm:$0xff] %v16589_v41  ;;  %v4035_v14 = vadd.f32 %v4019_v29, %v3981_v43  ;;  %v13482_v57 = vpop.f32.mrb[100].mxu1  ;;  %vm4065_vm12 = vcmp.gt.f32.partialorder %v16589_v41, 1.0  ;;  %v21284_v43 = vld [vmem:[#allocation61_spill] sm:$0xff] }
 0x564   : > { %v16603_v32 = vsub.f32 %v4036_v24, %v21279_v23  ;;  %v3996_v30 = vadd.f32 %v13482_v57, %v21239_v26  ;;  %v3990_v56 = vpop.f32.mrb[101].mxu1  ;;  %v16608_v10 = vsel %vm4065_vm12, 1.0, %v21146_v44  ;;  %v4021_v29 = vmul.f32 0.9, %v21284_v43  ;;  %v21286_v43 = vld [vmem:[#allocation63_spill] sm:$0xff] }
 0x565   : > { %21282 = vst [vmem:[#allocation51_spill] sm:$0xff] %v16608_v10  ;;  %v16611_v37 = vsub.f32 %v4035_v14, %v21283_v34  ;;  %v3991_v48 = vadd.f32 %v21239_v26, %v3990_v56  ;;  %13500 = vmatprep.mubr.msk.f32.mxu0 %vm3011_vm7, %v16608_v10  ;;  %v16618_v24 = vsel %vm4066_vm11, 1.0, %v21146_v44  ;;  %v21285_v14 = vld [vmem:[#allocation66_spill] sm:$0xff]  ;;  %v4024_v10 = vmul.f32 0.9, %v21286_v43 }
 0x566   : > { %21280 = vst [vmem:[#allocation54_spill] sm:$0xff] %v16603_v32  ;;  %v4038_v57 = vadd.f32 %v4022_v28, %v3996_v30  ;;  %13501 = vmatmul.mubr.msk.f32.gmra.mrb[24].mxu0 %vm3011_vm7, %v16618_v24  ;;  %vm4068_vm13 = vcmp.gt.f32.partialorder %v16603_v32, 1.0  ;;  %v21288_v28 = vld [vmem:[#allocation64_spill] sm:$0xff] }
 0x567   : > { %v4037_v23 = vadd.f32 %v4021_v29, %v3991_v48  ;;  %v13485_v59 = vpop.f32.mrb[102].mxu1  ;;  %vm4067_vm14 = vcmp.gt.f32.partialorder %v16611_v37, 1.0  ;;  %v21289_v48 = vld [vmem:[#allocation65_spill] sm:$0xff] }
 0x568   : > { %v16625_v56 = vsub.f32 %v4038_v57, %v21285_v14  ;;  %v4006_v34 = vadd.f32 %v13485_v59, %v21239_v26  ;;  %v4000_v41 = vpop.f32.mrb[103].mxu1  ;;  %v16630_v52 = vsel %vm4067_vm14, 1.0, %v21146_v44  ;;  %v4023_v29 = vmul.f32 0.9, %v21289_v48 }
 0x569   : > { %21287 = vst [vmem:[#allocation52_spill] sm:$0xff] %v16630_v52  ;;  %v16633_v30 = vsub.f32 %v4037_v23, %v21288_v28  ;;  %v4001_v32 = vadd.f32 %v21239_v26, %v4000_v41  ;;  %13503 = vmatprep.mubr.msk.f32.mxu0 %vm3011_vm7, %v16630_v52  ;;  %v16640_v57 = vsel %vm4068_vm13, 1.0, %v21146_v44  ;;  %v4605_v23 = vmul.f32 0.9, %v16071_v58 }
 0x56a   : > { %v4040_v59 = vadd.f32 %v4024_v10, %v4006_v34  ;;  %13504 = vmatmul.mubr.msk.f32.gmra.mrb[26].mxu0 %vm3011_vm7, %v16640_v57  ;;  %vm4070_vm15 = vcmp.gt.f32.partialorder %v16625_v56, 1.0  ;;  %v21290_v10 = vld [vmem:[#allocation67_spill] sm:$0xff] }
 0x56b   : > { %v4039_v14 = vadd.f32 %v4023_v29, %v4001_v32  ;;  %v13518_v43 = vpop.f32.mrb[104].mxu1  ;;  %vm4069_vm1 = vcmp.gt.f32.partialorder %v16633_v30, 1.0  ;;  %v4604_v32 = vmul.f32 0.9, %v16077_v20 }
 0x56c   : > { %v16647_v26 = vsub.f32 %v4040_v59, %v16065_v53  ;;  %v4531_v41 = vadd.f32 %v16054_v47, %v13518_v43  ;;  %v4525_v28 = vpop.f32.mrb[105].mxu1  ;;  %v16652_v48 = vsel %vm4069_vm1, 1.0, %v21146_v44  ;;  %v16662_v53 = vsel %vm4070_vm15, 1.0, %v21146_v44 }
 0x56d   : > { %v16655_v34 = vsub.f32 %v4039_v14, %v21290_v10  ;;  %v4526_v52 = vadd.f32 %v16054_v47, %v4525_v28  ;;  %13506 = vmatprep.mubr.msk.f32.mxu0 %vm3011_vm7, %v16652_v48  ;;  %v4607_v43 = vmul.f32 0.9, %v16087_v4 }
 0x56e   : > { %v4621_v29 = vadd.f32 %v4605_v23, %v4531_v41  ;;  %13507 = vmatmul.mubr.msk.f32.gmra.mrb[28].mxu0 %vm3011_vm7, %v16662_v53  ;;  %vm4072_vm3 = vcmp.gt.f32.partialorder %v16647_v26, 1.0 }
 0x56f   : > { %v4620_v58 = vadd.f32 %v4604_v32, %v4526_v52  ;;  %v13521_v59 = vpop.f32.mrb[106].mxu1  ;;  %vm4071_vm4 = vcmp.gt.f32.partialorder %v16655_v34, 1.0  ;;  %v4606_v52 = vmul.f32 0.9, %v16097_v7 }
 0x570   : > { %v16669_v14 = vsub.f32 %v4621_v29, %v16094_v12  ;;  %v4541_v20 = vadd.f32 %v16054_v47, %v13521_v59  ;;  %v4535_v28 = vpop.f32.mrb[107].mxu1  ;;  %v16674_v10 = vsel %vm4071_vm4, 1.0, %v21146_v44  ;;  %v16684_v12 = vsel %vm4072_vm3, 1.0, %v21146_v44 }
 0x571   : > { %v16677_v41 = vsub.f32 %v4620_v58, %v16084_v38  ;;  %v4536_v23 = vadd.f32 %v16054_v47, %v4535_v28  ;;  %13509 = vmatprep.mubr.msk.f32.mxu0 %vm3011_vm7, %v16674_v10  ;;  %v4609_v58 = vmul.f32 0.9, %v16110_v55 }
 0x572   : > { %vm4653_vm5 = vcmp.gt.f32.partialorder %v16669_v14, 1.0  ;;  %v4623_v4 = vadd.f32 %v4607_v43, %v4541_v20  ;;  %13510 = vmatmul.mubr.msk.f32.gmra.mrb[30].mxu0 %vm3011_vm7, %v16684_v12 }
 0x573   : > { %v4622_v32 = vadd.f32 %v4606_v52, %v4536_v23  ;;  %v13524_v29 = vpop.f32.mrb[108].mxu1  ;;  %vm4652_vm6 = vcmp.gt.f32.partialorder %v16677_v41, 1.0  ;;  %v16699_v20 = vsel %vm4653_vm5, 1.0, %v21146_v44  ;;  %v4608_v52 = vmul.f32 0.9, %v16121_v8 }
 0x574   : > { %v16691_v38 = vsub.f32 %v4623_v4, %v16118_v13  ;;  %v4551_v7 = vadd.f32 %v16054_v47, %v13524_v29  ;;  %v4545_v59 = vpop.f32.mrb[109].mxu1  ;;  %v16696_v28 = vsel %vm4652_vm6, 1.0, %v21146_v44 }
 0x575   : > { %v16702_v43 = vsub.f32 %v4622_v32, %v16107_v9  ;;  %v4546_v23 = vadd.f32 %v16054_v47, %v4545_v59  ;;  %13548 = vmatprep.mubr.msk.f32.mxu1 %vm2480_vm2, %v16696_v28  ;;  %v4611_v32 = vmul.f32 0.9, %v16134_v33 }
 0x576   : > { %v4625_v13 = vadd.f32 %v4609_v58, %v4551_v7  ;;  %13549 = vmatmul.mubr.msk.f32.vlgmr.msra.gmra.mrb[120].mxu1 %vm2480_vm2, %v16699_v20  ;;  %vm4655_vm8 = vcmp.gt.f32.partialorder %v16691_v38, 1.0 }
 0x577   : > { %v4624_v55 = vadd.f32 %v4608_v52, %v4546_v23  ;;  %v13527_v4 = vpop.f32.mrb[110].mxu1  ;;  %vm4654_vm9 = vcmp.gt.f32.partialorder %v16702_v43, 1.0  ;;  %14311 = vmatpush3.bf16.msra.mxu1 %v15231_v0  ;;  %v4610_v23 = vmul.f32 0.9, %v16145_v35 }
 0x578   : > { %v16714_v9 = vsub.f32 %v4625_v13, %v16142_v19  ;;  %v4561_v8 = vadd.f32 %v16054_v47, %v13527_v4  ;;  %v4555_v29 = vpop.f32.mrb[111].mxu1  ;;  %v16719_v7 = vsel %vm4654_vm9, 1.0, %v21146_v44  ;;  %14313 = vmatprep.subr.bf16.mxu1 %v15359_v2  ;;  %v16730_v19 = vsel %vm4655_vm8, 1.0, %v21146_v44 }
 0x579   : > { %v16723_v58 = vsub.f32 %v4624_v55, %v16131_v15  ;;  %v4556_v59 = vadd.f32 %v16054_v47, %v4555_v29  ;;  %13551 = vmatprep.mubr.msk.f32.mxu1 %vm2480_vm2, %v16719_v7  ;;  %v4613_v55 = vmul.f32 0.9, %v16157_v21 }
 0x57a   : > { %v4627_v33 = vadd.f32 %v4611_v32, %v4561_v8  ;;  %13552 = vmatmul.mubr.msk.f32.gmra.mrb[122].mxu1 %vm2480_vm2, %v16730_v19  ;;  %vm4657_vm10 = vcmp.gt.f32.partialorder %v16714_v9, 1.0 }
 0x57b   : > { %v4626_v52 = vadd.f32 %v4610_v23, %v4556_v59  ;;  %v13530_v13 = vpop.f32.mrb[112].mxu1  ;;  %vm4656_vm11 = vcmp.gt.f32.partialorder %v16723_v58, 1.0  ;;  %14315 = vmatpush3.bf16.msra.mxu1 %v15359_v2  ;;  %v4612_v59 = vmul.f32 0.9, %v16167_v25 }
 0x57c   : > { %v16738_v15 = vsub.f32 %v4627_v33, %v16164_v3  ;;  %v4571_v35 = vadd.f32 %v16054_v47, %v13530_v13  ;;  %v4565_v4 = vpop.f32.mrb[113].mxu1  ;;  %v16743_v8 = vsel %vm4656_vm11, 1.0, %v21146_v44  ;;  %14317 = vmatprep.subr.bf16.mxu1 %v15102_v5  ;;  %v16754_v3 = vsel %vm4657_vm10, 1.0, %v21146_v44 }
 0x57d   : > { %v16747_v32 = vsub.f32 %v4626_v52, %v16154_v46  ;;  %v4566_v29 = vadd.f32 %v16054_v47, %v4565_v4  ;;  %13554 = vmatprep.mubr.msk.f32.mxu1 %vm2480_vm2, %v16743_v8  ;;  %v16766_v46 = vld [vmem:[%s20679_s1 + $0x88] ss:$0 sm:$0xff]  ;;  %v4615_v52 = vmul.f32 0.9, %v16179_v27 }
 0x57e   : > { %v4629_v21 = vadd.f32 %v4613_v55, %v4571_v35  ;;  %13555 = vmatmul.mubr.msk.f32.gmra.mrb[124].mxu1 %vm2480_vm2, %v16754_v3  ;;  %vm4659_vm12 = vcmp.gt.f32.partialorder %v16738_v15, 1.0 }
 0x57f   : > { %v4628_v23 = vadd.f32 %v4612_v59, %v4566_v29  ;;  %v13533_v33 = vpop.f32.mrb[114].mxu1  ;;  %vm4658_vm13 = vcmp.gt.f32.partialorder %v16747_v32, 1.0  ;;  %v16781_v29 = vsel %vm4659_vm12, 1.0, %v21146_v44 }
 0x580   : > { %v16761_v47 = vsub.f32 %v4629_v21, %v16186_v42  ;;  %v4581_v25 = vadd.f32 %v16766_v46, %v13533_v33  ;;  %v4575_v13 = vpop.f32.mrb[115].mxu1  ;;  %v16771_v35 = vsel %vm4658_vm13, 1.0, %v21146_v44  ;;  %v4614_v42 = vmul.f32 0.9, %v16189_v31 }
 0x581   : > { %21292 = vst [vmem:[#allocation58_spill] sm:$0xff] %v16771_v35  ;;  %v16774_v55 = vsub.f32 %v4628_v23, %v16176_v11  ;;  %v4576_v4 = vadd.f32 %v16766_v46, %v4575_v13  ;;  %13557 = vmatprep.mubr.msk.f32.mxu1 %vm2480_vm2, %v16771_v35  ;;  %v4617_v23 = vmul.f32 0.9, %v16201_v36  ;;  %v21318_v35 = vld [vmem:[#allocation76_spill] sm:$0xff] }
 0x582   : > { %21291 = vst [vmem:[#allocation53_spill] sm:$0xff] %v16761_v47  ;;  %v4631_v59 = vadd.f32 %v4615_v52, %v4581_v25  ;;  %13558 = vmatmul.mubr.msk.f32.gmra.mrb[126].mxu1 %vm2480_vm2, %v16781_v29  ;;  %vm4661_vm14 = vcmp.gt.f32.partialorder %v16761_v47, 1.0 }
 0x583   : > { %21293 = vst [vmem:[#allocation55_spill] sm:$0xff] %v16774_v55  ;;  %v4630_v27 = vadd.f32 %v4614_v42, %v4576_v4  ;;  %v13536_v21 = vpop.f32.mrb[116].mxu1  ;;  %vm4660_vm15 = vcmp.gt.f32.partialorder %v16774_v55, 1.0  ;;  %v4616_v4 = vmul.f32 0.9, %v16211_v45 }
 0x584   : > { %v16788_v11 = vsub.f32 %v4631_v59, %v16208_v39  ;;  %v4591_v31 = vadd.f32 %v16766_v46, %v13536_v21  ;;  %v4585_v33 = vpop.f32.mrb[117].mxu1  ;;  %v16793_v13 = vsel %vm4660_vm15, 1.0, %v21146_v44  ;;  %v16803_v39 = vsel %vm4661_vm14, 1.0, %v21146_v44 }
 0x585   : > { %21295 = vst [vmem:[#allocation57_spill] sm:$0xff] %v16793_v13  ;;  %v16796_v25 = vsub.f32 %v4630_v27, %v16198_v17  ;;  %v4586_v52 = vadd.f32 %v16766_v46, %v4585_v33  ;;  %13560 = vmatprep.mubr.msk.f32.mxu1 %vm2480_vm2, %v16793_v13  ;;  %21297 = vst [vmem:[#allocation59_spill] sm:$0xff] %v16803_v39  ;;  %v4619_v27 = vmul.f32 0.9, %v16221_v1 }
 0x586   : > { %21294 = vst [vmem:[#allocation56_spill] sm:$0xff] %v16788_v11  ;;  %v4633_v42 = vadd.f32 %v4617_v23, %v4591_v31  ;;  %13561 = vmatmul.mubr.msk.f32.gmra.mrb[128].mxu1 %vm2480_vm2, %v16803_v39  ;;  %vm4663_vm1 = vcmp.gt.f32.partialorder %v16788_v11, 1.0 }
 0x587   : > { %21296 = vst [vmem:[#allocation62_spill] sm:$0xff] %v16796_v25  ;;  %v4632_v36 = vadd.f32 %v4616_v4, %v4586_v52  ;;  %v13539_v59 = vpop.f32.mrb[118].mxu1  ;;  %vm4662_vm3 = vcmp.gt.f32.partialorder %v16796_v25, 1.0  ;;  %v4618_v52 = vmul.f32 0.9, %v16229_v63 }
 0x588   : > { %v16810_v17 = vsub.f32 %v4633_v42, %v16226_v49  ;;  %v4601_v45 = vadd.f32 %v16766_v46, %v13539_v59  ;;  %v4595_v21 = vpop.f32.mrb[119].mxu1  ;;  %v16815_v33 = vsel %vm4662_vm3, 1.0, %v21146_v44  ;;  %v16825_v49 = vsel %vm4663_vm1, 1.0, %v21146_v44 }
 0x589   : > { %21299 = vst [vmem:[#allocation61_spill] sm:$0xff] %v16815_v33  ;;  %v16818_v31 = vsub.f32 %v4632_v36, %v16218_v50  ;;  %v4596_v23 = vadd.f32 %v16766_v46, %v4595_v21  ;;  %13563 = vmatprep.mubr.msk.f32.mxu1 %vm2480_vm2, %v16815_v33  ;;  %21301 = vst [vmem:[#allocation63_spill] sm:$0xff] %v16825_v49  ;;  %v21302_v50 = vld [vmem:[#allocation69_spill] sm:$0xff]  ;;  %v21305_v36 = vld [vmem:[#allocation68_spill] sm:$0xff] }
 0x58a   : > { %21298 = vst [vmem:[#allocation60_spill] sm:$0xff] %v16810_v17  ;;  %v4635_v4 = vadd.f32 %v4619_v27, %v4601_v45  ;;  %13564 = vmatmul.mubr.msk.f32.gmra.mrb[130].mxu1 %vm2480_vm2, %v16825_v49  ;;  %vm4665_vm4 = vcmp.gt.f32.partialorder %v16810_v17, 1.0 }
 0x58b   : > { %21300 = vst [vmem:[#allocation66_spill] sm:$0xff] %v16818_v31  ;;  %v4634_v1 = vadd.f32 %v4618_v52, %v4596_v23  ;;  %vm4664_vm5 = vcmp.gt.f32.partialorder %v16818_v31, 1.0  ;;  %v16843_v45 = vsel %vm4665_vm4, 1.0, %v21146_v44  ;;  %v16862_v23 = vld [vmem:[%s20679_s1 + $0x8a] ss:$0 sm:$0xff]  ;;  %v21310_v52 = vld [vmem:[#allocation70_spill] sm:$0xff] }
 0x58c   : > { %v16832_v42 = vsub.f32 %v4635_v4, %v21302_v50  ;;  %v16835_v63 = vsel %vm4664_vm5, 1.0, %v21146_v44  ;;  %21307 = vst [vmem:[#allocation69_spill] sm:$0xff] %v16843_v45  ;;  %v14426_v4 = vadd.f32 %v21310_v52, %v16862_v23 }
 0x58d   : > { %21304 = vst [vmem:[#allocation65_spill] sm:$0xff] %v16835_v63  ;;  %v16838_v59 = vsub.f32 %v4634_v1, %v21305_v36  ;;  %13566 = vmatprep.mubr.msk.f32.mxu1 %vm2480_vm2, %v16835_v63  ;;  %v21311_v1 = vld [vmem:[#allocation71_spill] sm:$0xff]  ;;  %v21312_v36 = vld [vmem:[#allocation72_spill] sm:$0xff] }
 0x58e   : > { %21303 = vst [vmem:[#allocation64_spill] sm:$0xff] %v16832_v42  ;;  %13567 = vmatmul.mubr.msk.f32.gmra.mrb[132].mxu1 %vm2480_vm2, %v16843_v45  ;;  %vm4667_vm6 = vcmp.gt.f32.partialorder %v16832_v42, 1.0  ;;  %v14427_v50 = vadd.f32 %v16862_v23, %v21311_v1  ;;  %vm4347_vm9 = vcmp.gt.f32.partialorder %v14426_v4, 1.0  ;;  %v4315_v63 = vmul.f32 0.9, %v14426_v4  ;;  %v21313_v42 = vld [vmem:[#allocation73_spill] sm:$0xff] }
 0x58f   : > { %21306 = vst [vmem:[#allocation67_spill] sm:$0xff] %v16838_v59  ;;  %vm4666_vm8 = vcmp.gt.f32.partialorder %v16838_v59, 1.0  ;;  %v16855_v21 = vsel %vm4667_vm6, 1.0, %v21146_v44  ;;  %v4363_v52 = vsel %vm4347_vm9, 1.0, %v21146_v44 }
 0x590   : > { %v16850_v27 = vsel %vm4666_vm8, 1.0, %v21146_v44  ;;  %21309 = vst [vmem:[#allocation91_spill] sm:$0xff] %v16855_v21  ;;  %vm4346_vm10 = vcmp.gt.f32.partialorder %v14427_v50, 1.0  ;;  %v4314_v33 = vmul.f32 0.9, %v14427_v50 }
 0x591   : > { %21308 = vst [vmem:[#allocation68_spill] sm:$0xff] %v16850_v27  ;;  %13569 = vmatprep.mubr.msk.f32.mxu1 %vm2480_vm2, %v16850_v27  ;;  %v14428_v27 = vadd.f32 %v21312_v36, %v16862_v23  ;;  %v4362_v1 = vsel %vm4346_vm10, 1.0, %v21146_v44  ;;  %v21314_v36 = vld [vmem:[#allocation74_spill] sm:$0xff] }
 0x592   : > { %13570 = vmatmul.mubr.msk.f32.gmra.mrb[134].mxu1 %vm2480_vm2, %v16855_v21  ;;  %v14429_v21 = vadd.f32 %v16862_v23, %v21313_v42  ;;  %v14430_v13 = vadd.f32 %v21314_v36, %v16862_v23  ;;  %v14432_v36 = vadd.f32 %v21318_v35, %v16862_v23 }
 0x593   : > { %v4317_v25 = vmul.f32 0.9, %v14428_v27  ;;  %vm4349_vm11 = vcmp.gt.f32.partialorder %v14428_v27, 1.0 }
 0x594   : > { %v4316_v39 = vmul.f32 0.9, %v14429_v21  ;;  %vm4348_vm12 = vcmp.gt.f32.partialorder %v14429_v21, 1.0  ;;  %vm4351_vm13 = vcmp.gt.f32.partialorder %v14430_v13, 1.0  ;;  %vm4353_vm15 = vcmp.gt.f32.partialorder %v14432_v36, 1.0 }
 0x595   : > { %v4364_v21 = vsel %vm4348_vm12, 1.0, %v21146_v44 }
 0x629   : > { %v13490_v59 = vpop.f32.mrb[16].mxu0 }
 0x62a   : > { %v14442_v45 = vadd.f32 %v13490_v59, %v16862_v23  ;;  %v4219_v31 = vpop.f32.mrb[17].mxu0 }
 0x62b   : > { %v14443_v17 = vadd.f32 %v16862_v23, %v4219_v31  ;;  %v21316_v31 = vld [vmem:[#allocation75_spill] sm:$0xff] }
 0x62c   : > { %v4331_v49 = vadd.f32 %v14442_v45, %v4315_v63  ;;  %v14431_v55 = vadd.f32 %v16862_v23, %v21316_v31 }
 0x62d   : > { %v4330_v4 = vadd.f32 %v14443_v17, %v4314_v33  ;;  %v13493_v11 = vpop.f32.mrb[18].mxu0  ;;  %v4365_v33 = vsel %vm4349_vm11, 1.0, %v21146_v44 }
 0x62e   : > { %v16878_v42 = vsub.f32 %v4331_v49, %v4363_v52  ;;  %v14444_v59 = vadd.f32 %v13493_v11, %v16862_v23  ;;  %v4229_v50 = vpop.f32.mrb[19].mxu0  ;;  %v21319_v49 = vld [vmem:[#allocation77_spill] sm:$0xff]  ;;  %vm4350_vm14 = vcmp.gt.f32.partialorder %v14431_v55, 1.0 }
 0x62f   : > { %v16883_v63 = vsub.f32 %v4330_v4, %v4362_v1  ;;  %v14445_v45 = vadd.f32 %v16862_v23, %v4229_v50  ;;  %v14433_v27 = vadd.f32 %v16862_v23, %v21319_v49  ;;  %v4318_v50 = vmul.f32 0.9, %v14431_v55 }
 0x630   : > { %21315 = vst [vmem:[#allocation70_spill] sm:$0xff] %v16878_v42  ;;  %v4333_v17 = vadd.f32 %v14444_v59, %v4317_v25  ;;  %v4319_v42 = vmul.f32 0.9, %v14430_v13  ;;  %v4367_v59 = vsel %vm4351_vm13, 1.0, %v21146_v44  ;;  %v21323_v13 = vld [vmem:[#allocation79_spill] sm:$0xff] }
 0x631   : > { %21317 = vst [vmem:[#allocation71_spill] sm:$0xff] %v16883_v63  ;;  %v4332_v11 = vadd.f32 %v14445_v45, %v4316_v39  ;;  %v13496_v52 = vpop.f32.mrb[20].mxu0  ;;  %vm4352_vm1 = vcmp.gt.f32.partialorder %v14433_v27, 1.0  ;;  %v21322_v39 = vld [vmem:[#allocation78_spill] sm:$0xff]  ;;  %v4321_v55 = vmul.f32 0.9, %v14432_v36 }
 0x632   : > { %v16892_v31 = vsub.f32 %v4333_v17, %v4365_v33  ;;  %v14446_v1 = vadd.f32 %v13496_v52, %v16862_v23  ;;  %v4239_v4 = vpop.f32.mrb[21].mxu0  ;;  %v14434_v45 = vadd.f32 %v21322_v39, %v16862_v23  ;;  %v14435_v17 = vadd.f32 %v16862_v23, %v21323_v13 }
 0x633   : > { %v16895_v35 = vsub.f32 %v4332_v11, %v4364_v21  ;;  %v14447_v25 = vadd.f32 %v16862_v23, %v4239_v4  ;;  %v4368_v39 = vsel %vm4352_vm1, 1.0, %v21146_v44 }
 0x634   : > { %21320 = vst [vmem:[#allocation72_spill] sm:$0xff] %v16892_v31  ;;  %v4335_v49 = vadd.f32 %v14446_v1, %v4319_v42  ;;  %v4366_v31 = vsel %vm4350_vm14, 1.0, %v21146_v44  ;;  %v4369_v1 = vsel %vm4353_vm15, 1.0, %v21146_v44  ;;  %vm4355_vm3 = vcmp.gt.f32.partialorder %v14434_v45, 1.0 }
 0x635   : > { %21321 = vst [vmem:[#allocation73_spill] sm:$0xff] %v16895_v35  ;;  %v4334_v33 = vadd.f32 %v14447_v25, %v4318_v50  ;;  %v13499_v52 = vpop.f32.mrb[22].mxu0  ;;  %v4320_v35 = vmul.f32 0.9, %v14433_v27  ;;  %vm4354_vm4 = vcmp.gt.f32.partialorder %v14435_v17, 1.0  ;;  %v21326_v50 = vld [vmem:[#allocation80_spill] sm:$0xff] }
 0x636   : > { %v16904_v11 = vsub.f32 %v4335_v49, %v4367_v59  ;;  %v14448_v21 = vadd.f32 %v13499_v52, %v16862_v23  ;;  %v4249_v4 = vpop.f32.mrb[23].mxu0  ;;  %v14436_v36 = vadd.f32 %v21326_v50, %v16862_v23  ;;  %v4323_v49 = vmul.f32 0.9, %v14434_v45  ;;  %v21327_v52 = vld [vmem:[#allocation81_spill] sm:$0xff]  ;;  %v21330_v45 = vld [vmem:[#allocation82_spill] sm:$0xff] }
 0x637   : > { %v16907_v63 = vsub.f32 %v4334_v33, %v4366_v31  ;;  %v14449_v42 = vadd.f32 %v16862_v23, %v4249_v4  ;;  %v14437_v27 = vadd.f32 %v16862_v23, %v21327_v52  ;;  %v4370_v50 = vsel %vm4354_vm4, 1.0, %v21146_v44 }
 0x638   : > { %21324 = vst [vmem:[#allocation74_spill] sm:$0xff] %v16904_v11  ;;  %v4337_v13 = vadd.f32 %v14448_v21, %v4321_v55  ;;  %v4371_v21 = vsel %vm4355_vm3, 1.0, %v21146_v44  ;;  %vm4357_vm5 = vcmp.gt.f32.partialorder %v14436_v36, 1.0  ;;  %v14438_v52 = vadd.f32 %v21330_v45, %v16862_v23 }
 0x639   : > { %21325 = vst [vmem:[#allocation75_spill] sm:$0xff] %v16907_v63  ;;  %v4336_v25 = vadd.f32 %v14449_v42, %v4320_v35  ;;  %v13502_v59 = vpop.f32.mrb[24].mxu0  ;;  %v4322_v63 = vmul.f32 0.9, %v14435_v17  ;;  %v4325_v42 = vmul.f32 0.9, %v14436_v36 }
 0x63a   : > { %v16916_v31 = vsub.f32 %v4337_v13, %v4369_v1  ;;  %v14450_v33 = vadd.f32 %v13502_v59, %v16862_v23  ;;  %v4259_v4 = vpop.f32.mrb[25].mxu0  ;;  %vm4356_vm6 = vcmp.gt.f32.partialorder %v14437_v27, 1.0  ;;  %v21331_v59 = vld [vmem:[#allocation83_spill] sm:$0xff]  ;;  %v4373_v36 = vsel %vm4357_vm5, 1.0, %v21146_v44 }
 0x63b   : > { %v16919_v11 = vsub.f32 %v4336_v25, %v4368_v39  ;;  %v14451_v55 = vadd.f32 %v16862_v23, %v4259_v4  ;;  %v14439_v17 = vadd.f32 %v16862_v23, %v21331_v59  ;;  %vm4359_vm8 = vcmp.gt.f32.partialorder %v14438_v52, 1.0  ;;  %v21335_v59 = vld [vmem:[#allocation85_spill] sm:$0xff] }
 0x63c   : > { %21328 = vst [vmem:[#allocation76_spill] sm:$0xff] %v16916_v31  ;;  %v4339_v35 = vadd.f32 %v14450_v33, %v4323_v49 }
 0x63d   : > { %21329 = vst [vmem:[#allocation77_spill] sm:$0xff] %v16919_v11  ;;  %v4338_v1 = vadd.f32 %v14451_v55, %v4322_v63  ;;  %v13505_v13 = vpop.f32.mrb[26].mxu0  ;;  %v4324_v11 = vmul.f32 0.9, %v14437_v27  ;;  %v4372_v63 = vsel %vm4356_vm6, 1.0, %v21146_v44  ;;  %vm4358_vm9 = vcmp.gt.f32.partialorder %v14439_v17, 1.0 }
 0x63e   : > { %v16928_v39 = vsub.f32 %v4339_v35, %v4371_v21  ;;  %v14452_v25 = vadd.f32 %v13505_v13, %v16862_v23  ;;  %v4269_v4 = vpop.f32.mrb[27].mxu0  ;;  %v4327_v55 = vmul.f32 0.9, %v14438_v52  ;;  %v21333_v21 = vld [vmem:[#allocation84_spill] sm:$0xff] }
 0x63f   : > { %v16931_v31 = vsub.f32 %v4338_v1, %v4370_v50  ;;  %v14453_v49 = vadd.f32 %v16862_v23, %v4269_v4  ;;  %v14440_v35 = vadd.f32 %v21333_v21, %v16862_v23  ;;  %v4326_v1 = vmul.f32 0.9, %v14439_v17 }
 0x640   : > { %v4341_v33 = vadd.f32 %v14452_v25, %v4325_v42  ;;  %v14441_v4 = vadd.f32 %v16862_v23, %v21335_v59 }
 0x641   : > { %21332 = vst [vmem:[#allocation78_spill] sm:$0xff] %v16931_v31  ;;  %v4340_v45 = vadd.f32 %v14453_v49, %v4324_v11  ;;  %v13508_v47 = vpop.f32.mrb[28].mxu0  ;;  %v4375_v11 = vsel %vm4359_vm8, 1.0, %v21146_v44  ;;  %v4374_v49 = vsel %vm4358_vm9, 1.0, %v21146_v44  ;;  %vm4361_vm10 = vcmp.gt.f32.partialorder %v14440_v35, 1.0 }
 0x642   : > { %v16938_v13 = vsub.f32 %v4341_v33, %v4373_v36  ;;  %v14454_v27 = vadd.f32 %v13508_v47, %v16862_v23  ;;  %v4279_v50 = vpop.f32.mrb[29].mxu0  ;;  %v4329_v36 = vmul.f32 0.9, %v14440_v35  ;;  %vm4360_vm11 = vcmp.gt.f32.partialorder %v14441_v4, 1.0 }
 0x643   : > { %v16943_v42 = vsub.f32 %v4340_v45, %v4372_v63  ;;  %v14455_v25 = vadd.f32 %v16862_v23, %v4279_v50 }
 0x644   : > { %21334 = vst [vmem:[#allocation79_spill] sm:$0xff] %v16938_v13  ;;  %v4343_v52 = vadd.f32 %v14454_v27, %v4327_v55  ;;  %v4328_v13 = vmul.f32 0.9, %v14441_v4  ;;  %v4377_v27 = vsel %vm4361_vm10, 1.0, %v21146_v44 }
 0x645   : > { %v4342_v31 = vadd.f32 %v14455_v25, %v4326_v1  ;;  %v13511_v21 = vpop.f32.mrb[30].mxu0  ;;  %v4376_v1 = vsel %vm4360_vm11, 1.0, %v21146_v44 }
 0x646   : > { %v16948_v33 = vsub.f32 %v4343_v52, %v4375_v11  ;;  %v14456_v47 = vadd.f32 %v13511_v21, %v16862_v23  ;;  %v4289_v17 = vpop.f32.mrb[31].mxu0  ;;  %v4878_v52 = vmul.f32 0.9, %v16283_v22 }
 0x647   : > { %v16951_v63 = vsub.f32 %v4342_v31, %v4374_v49  ;;  %v14457_v45 = vadd.f32 %v16862_v23, %v4289_v17  ;;  %v4877_v23 = vmul.f32 0.9, %v16289_v51  ;;  %v4880_v17 = vmul.f32 0.9, %v16299_v62 }
 0x648   : > { %v4345_v55 = vadd.f32 %v14456_v47, %v4329_v36 }
 0x649   : > { %v4344_v50 = vadd.f32 %v14457_v45, %v4328_v13  ;;  %v13550_v59 = vpop.f32.mrb[120].mxu1 }
 0x64a   : > { %v16956_v25 = vsub.f32 %v4345_v55, %v4377_v27  ;;  %v4804_v35 = vadd.f32 %v16375_v16, %v13550_v59  ;;  %v4798_v11 = vpop.f32.mrb[121].mxu1  ;;  %v4879_v27 = vmul.f32 0.9, %v16309_v18 }
 0x64b   : > { %v16960_v21 = vsub.f32 %v4344_v50, %v4376_v1  ;;  %v4799_v31 = vadd.f32 %v16375_v16, %v4798_v11  ;;  %v21336_v1 = vld [vmem:[#allocation87_spill] sm:$0xff]  ;;  %v21337_v11 = vld [vmem:[#allocation86_spill] sm:$0xff] }
 0x64c   : > { %v4894_v4 = vadd.f32 %v4878_v52, %v4804_v35  ;;  %v4882_v35 = vmul.f32 0.9, %v21336_v1  ;;  %v21345_v1 = vld [vmem:[#allocation15_spill] sm:$0xff] }
 0x64d   : > { %v4893_v49 = vadd.f32 %v4877_v23, %v4799_v31  ;;  %v13553_v36 = vpop.f32.mrb[122].mxu1 }
 0x64e   : > { %v16965_v13 = vsub.f32 %v4894_v4, %v16306_v40  ;;  %v4814_v47 = vadd.f32 %v16375_v16, %v13553_v36  ;;  %v4808_v45 = vpop.f32.mrb[123].mxu1  ;;  %v21339_v4 = vld [vmem:[#allocation16_spill] sm:$0xff] }
 0x64f   : > { %v16970_v22 = vsub.f32 %v4893_v49, %v16296_v54  ;;  %v4809_v55 = vadd.f32 %v16375_v16, %v4808_v45  ;;  %v4881_v49 = vmul.f32 0.9, %v21339_v4 }
 0x650   : > { %vm4926_vm12 = vcmp.gt.f32.partialorder %v16965_v13, 1.0  ;;  %v4896_v51 = vadd.f32 %v4880_v17, %v4814_v47  ;;  %v21340_v17 = vld [vmem:[#allocation20_spill] sm:$0xff] }
 0x651   : > { %v4895_v50 = vadd.f32 %v4879_v27, %v4809_v55  ;;  %v13556_v59 = vpop.f32.mrb[124].mxu1  ;;  %vm4925_vm13 = vcmp.gt.f32.partialorder %v16970_v22, 1.0  ;;  %v16985_v18 = vsel %vm4926_vm12, 1.0, %v21146_v44  ;;  %v21342_v27 = vld [vmem:[#allocation17_spill] sm:$0xff] }
 0x652   : > { %v16977_v40 = vsub.f32 %v4896_v51, %v16330_v6  ;;  %v4824_v62 = vadd.f32 %v16375_v16, %v13556_v59  ;;  %v4818_v54 = vpop.f32.mrb[125].mxu1  ;;  %v16982_v52 = vsel %vm4925_vm13, 1.0, %v21146_v44  ;;  %v4884_v51 = vmul.f32 0.9, %v21342_v27 }
 0x653   : > { %v16988_v31 = vsub.f32 %v4895_v50, %v21337_v11  ;;  %v4819_v23 = vadd.f32 %v16375_v16, %v4818_v54  ;;  %13580 = vmatprep.mubr.msk.f32.mxu1 %vm2480_vm2, %v16982_v52  ;;  %v17005_v16 = vld [vmem:[%s20679_s1 + $0x89] ss:$0 sm:$0xff]  ;;  %v21347_v11 = vld [vmem:[#allocation19_spill] sm:$0xff] }
 0x654   : > { %v4898_v6 = vadd.f32 %v4882_v35, %v4824_v62  ;;  %13581 = vmatmul.mubr.msk.f32.vlgmr.msra.gmra.mrb[136].mxu1 %vm2480_vm2, %v16985_v18  ;;  %vm4928_vm14 = vcmp.gt.f32.partialorder %v16977_v40, 1.0  ;;  %v21344_v62 = vld [vmem:[#allocation4_spill] sm:$0xff] }
 0x655   : > { %21338 = vst [vmem:[#allocation80_spill] sm:$0xff] %v16988_v31  ;;  %v4897_v36 = vadd.f32 %v4881_v49, %v4819_v23  ;;  %14319 = vmatpush3.bf16.msra.mxu1 %v15102_v5  ;;  %v13559_v47 = vpop.f32.mrb[126].mxu1  ;;  %vm4927_vm15 = vcmp.gt.f32.partialorder %v16988_v31, 1.0  ;;  %v4883_v23 = vmul.f32 0.9, %v21347_v11  ;;  %v17023_v4 = vsel %vm4928_vm14, 1.0, %v21146_v44 }
 0x656   : > { %v17000_v45 = vsub.f32 %v4898_v6, %v21340_v17  ;;  %v4834_v55 = vadd.f32 %v17005_v16, %v13559_v47  ;;  %v4828_v50 = vpop.f32.mrb[127].mxu1  ;;  %v17010_v59 = vsel %vm4927_vm15, 1.0, %v21146_v44  ;;  %14321 = vmatprep.subr.bf16.mxu1 %v21344_v62  ;;  %21348 = vst [vmem:[#allocation84_spill] sm:$0xff] %v17023_v4  ;;  %v21349_v47 = vld [vmem:[#allocation22_spill] sm:$0xff]  ;;  %v21395_v31 = vld [vmem:[#allocation41_spill] sm:$0xff] }
 0x657   : > { %21343 = vst [vmem:[#allocation82_spill] sm:$0xff] %v17010_v59  ;;  %v17014_v35 = vsub.f32 %v4897_v36, %v21345_v1  ;;  %v4829_v54 = vadd.f32 %v17005_v16, %v4828_v50  ;;  %13583 = vmatprep.mubr.msk.f32.mxu1 %vm2480_vm2, %v17010_v59  ;;  %v21351_v50 = vld [vmem:[#allocation18_spill] sm:$0xff] }
 0x658   : > { %21341 = vst [vmem:[#allocation81_spill] sm:$0xff] %v17000_v45  ;;  %v4900_v49 = vadd.f32 %v4884_v51, %v4834_v55  ;;  %13584 = vmatmul.mubr.msk.f32.gmra.mrb[138].mxu1 %vm2480_vm2, %v17023_v4  ;;  %vm4930_vm1 = vcmp.gt.f32.partialorder %v17000_v45, 1.0  ;;  %v4886_v1 = vmul.f32 0.9, %v21351_v50  ;;  %v21353_v55 = vld [vmem:[#allocation24_spill] sm:$0xff] }
 0x659   : > { %21346 = vst [vmem:[#allocation83_spill] sm:$0xff] %v17014_v35  ;;  %v4899_v6 = vadd.f32 %v4883_v23, %v4829_v54  ;;  %v13562_v36 = vpop.f32.mrb[128].mxu1  ;;  %vm4929_vm3 = vcmp.gt.f32.partialorder %v17014_v35, 1.0  ;;  %v21355_v54 = vld [vmem:[#allocation21_spill] sm:$0xff] }
 0x65a   : > { %v17030_v17 = vsub.f32 %v4900_v49, %v21349_v47  ;;  %v4844_v27 = vadd.f32 %v17005_v16, %v13562_v36  ;;  %v4838_v11 = vpop.f32.mrb[129].mxu1  ;;  %v17035_v59 = vsel %vm4929_vm3, 1.0, %v21146_v44  ;;  %v4885_v23 = vmul.f32 0.9, %v21355_v54  ;;  %v21359_v54 = vld [vmem:[#allocation23_spill] sm:$0xff] }
 0x65b   : > { %21352 = vst [vmem:[#allocation87_spill] sm:$0xff] %v17035_v59  ;;  %v17038_v51 = vsub.f32 %v4899_v6, %v21353_v55  ;;  %v4839_v45 = vadd.f32 %v17005_v16, %v4838_v11  ;;  %13586 = vmatprep.mubr.msk.f32.mxu1 %vm2480_vm2, %v17035_v59  ;;  %v17045_v49 = vsel %vm4930_vm1, 1.0, %v21146_v44  ;;  %v21357_v6 = vld [vmem:[#allocation26_spill] sm:$0xff]  ;;  %v4888_v59 = vmul.f32 0.9, %v21359_v54 }
 0x65c   : > { %21350 = vst [vmem:[#allocation85_spill] sm:$0xff] %v17030_v17  ;;  %21356 = vst [vmem:[#allocation16_spill] sm:$0xff] %v17045_v49  ;;  %v4902_v36 = vadd.f32 %v4886_v1, %v4844_v27  ;;  %13587 = vmatmul.mubr.msk.f32.gmra.mrb[140].mxu1 %vm2480_vm2, %v17045_v49  ;;  %vm4932_vm4 = vcmp.gt.f32.partialorder %v17030_v17, 1.0  ;;  %v21361_v27 = vld [vmem:[#allocation28_spill] sm:$0xff] }
 0x65d   : > { %21354 = vst [vmem:[#allocation86_spill] sm:$0xff] %v17038_v51  ;;  %v4901_v47 = vadd.f32 %v4885_v23, %v4839_v45  ;;  %v13565_v50 = vpop.f32.mrb[130].mxu1  ;;  %vm4931_vm5 = vcmp.gt.f32.partialorder %v17038_v51, 1.0  ;;  %v21363_v45 = vld [vmem:[#allocation25_spill] sm:$0xff] }
 0x65e   : > { %v17052_v11 = vsub.f32 %v4902_v36, %v21357_v6  ;;  %v4854_v55 = vadd.f32 %v17005_v16, %v13565_v50  ;;  %v4848_v35 = vpop.f32.mrb[131].mxu1  ;;  %v17057_v4 = vsel %vm4931_vm5, 1.0, %v21146_v44  ;;  %v4887_v23 = vmul.f32 0.9, %v21363_v45  ;;  %v21367_v45 = vld [vmem:[#allocation27_spill] sm:$0xff] }
 0x65f   : > { %21360 = vst [vmem:[#allocation17_spill] sm:$0xff] %v17057_v4  ;;  %v17060_v1 = vsub.f32 %v4901_v47, %v21361_v27  ;;  %v4849_v17 = vadd.f32 %v17005_v16, %v4848_v35  ;;  %13589 = vmatprep.mubr.msk.f32.mxu1 %vm2480_vm2, %v17057_v4  ;;  %v17067_v36 = vsel %vm4932_vm4, 1.0, %v21146_v44  ;;  %v21365_v47 = vld [vmem:[#allocation30_spill] sm:$0xff]  ;;  %v4890_v4 = vmul.f32 0.9, %v21367_v45 }
 0x660   : > { %21358 = vst [vmem:[#allocation20_spill] sm:$0xff] %v17052_v11  ;;  %21364 = vst [vmem:[#allocation19_spill] sm:$0xff] %v17067_v36  ;;  %v4904_v50 = vadd.f32 %v4888_v59, %v4854_v55  ;;  %13590 = vmatmul.mubr.msk.f32.gmra.mrb[142].mxu1 %vm2480_vm2, %v17067_v36  ;;  %vm4934_vm6 = vcmp.gt.f32.partialorder %v17052_v11, 1.0  ;;  %v21369_v59 = vld [vmem:[#allocation32_spill] sm:$0xff] }
 0x661   : > { %21362 = vst [vmem:[#allocation15_spill] sm:$0xff] %v17060_v1  ;;  %v4903_v6 = vadd.f32 %v4887_v23, %v4849_v17  ;;  %v13568_v54 = vpop.f32.mrb[132].mxu1  ;;  %vm4933_vm8 = vcmp.gt.f32.partialorder %v17060_v1, 1.0  ;;  %v21371_v17 = vld [vmem:[#allocation29_spill] sm:$0xff] }
 0x662   : > { %v17074_v35 = vsub.f32 %v4904_v50, %v21365_v47  ;;  %v4864_v27 = vadd.f32 %v17005_v16, %v13568_v54  ;;  %v4858_v51 = vpop.f32.mrb[133].mxu1  ;;  %v17079_v49 = vsel %vm4933_vm8, 1.0, %v21146_v44  ;;  %v4889_v23 = vmul.f32 0.9, %v21371_v17  ;;  %v21375_v17 = vld [vmem:[#allocation31_spill] sm:$0xff] }
 0x663   : > { %21368 = vst [vmem:[#allocation18_spill] sm:$0xff] %v17079_v49  ;;  %v17082_v55 = vsub.f32 %v4903_v6, %v21369_v59  ;;  %v4859_v11 = vadd.f32 %v17005_v16, %v4858_v51  ;;  %13592 = vmatprep.mubr.msk.f32.mxu1 %vm2480_vm2, %v17079_v49  ;;  %v17089_v50 = vsel %vm4934_vm6, 1.0, %v21146_v44  ;;  %v21373_v6 = vld [vmem:[#allocation88_spill] sm:$0xff]  ;;  %v4892_v49 = vmul.f32 0.9, %v21375_v17  ;;  %v21384_v17 = vld [vmem:[#allocation89_spill] sm:$0xff] }
 0x664   : > { %21366 = vst [vmem:[#allocation22_spill] sm:$0xff] %v17074_v35  ;;  %21372 = vst [vmem:[#allocation21_spill] sm:$0xff] %v17089_v50  ;;  %v4906_v54 = vadd.f32 %v4890_v4, %v4864_v27  ;;  %13593 = vmatmul.mubr.msk.f32.gmra.mrb[144].mxu1 %vm2480_vm2, %v17089_v50  ;;  %vm4936_vm9 = vcmp.gt.f32.partialorder %v17074_v35, 1.0  ;;  %v21377_v4 = vld [vmem:[#allocation34_spill] sm:$0xff]  ;;  %v21393_v50 = vld [vmem:[#allocation37_spill] sm:$0xff] }
 0x665   : > { %21370 = vst [vmem:[#allocation24_spill] sm:$0xff] %v17082_v55  ;;  %v4905_v47 = vadd.f32 %v4889_v23, %v4859_v11  ;;  %v13571_v45 = vpop.f32.mrb[134].mxu1  ;;  %vm4935_vm10 = vcmp.gt.f32.partialorder %v17082_v55, 1.0  ;;  %v21379_v11 = vld [vmem:[#allocation33_spill] sm:$0xff] }
 0x666   : > { %v17096_v51 = vsub.f32 %v4906_v54, %v21373_v6  ;;  %v4874_v59 = vadd.f32 %v17005_v16, %v13571_v45  ;;  %v4868_v1 = vpop.f32.mrb[135].mxu1  ;;  %v17101_v36 = vsel %vm4935_vm10, 1.0, %v21146_v44  ;;  %v4891_v23 = vmul.f32 0.9, %v21379_v11 }
 0x667   : > { %21376 = vst [vmem:[#allocation23_spill] sm:$0xff] %v17101_v36  ;;  %v17104_v27 = vsub.f32 %v4905_v47, %v21377_v4  ;;  %v4869_v35 = vadd.f32 %v17005_v16, %v4868_v1  ;;  %13595 = vmatprep.mubr.msk.f32.mxu1 %vm2480_vm2, %v17101_v36  ;;  %v17111_v54 = vsel %vm4936_vm9, 1.0, %v21146_v44  ;;  %v21381_v16 = vld [vmem:[#allocation90_spill] sm:$0xff] }
 0x668   : > { %21374 = vst [vmem:[#allocation26_spill] sm:$0xff] %v17096_v51  ;;  %21380 = vst [vmem:[#allocation25_spill] sm:$0xff] %v17111_v54  ;;  %v4908_v45 = vadd.f32 %v4892_v49, %v4874_v59  ;;  %13596 = vmatmul.mubr.msk.f32.gmra.mrb[146].mxu1 %vm2480_vm2, %v17111_v54  ;;  %vm4938_vm11 = vcmp.gt.f32.partialorder %v17096_v51, 1.0  ;;  %v11911_v59 = vld [vmem:[%s15104_s6 + $0x180] sm:$0xff]  ;;  %v21392_v51 = vld [vmem:[#allocation36_spill] sm:$0xff] }
 0x669   : > { %21378 = vst [vmem:[#allocation28_spill] sm:$0xff] %v17104_v27  ;;  %v4907_v6 = vadd.f32 %v4891_v23, %v4869_v35  ;;  %vm4937_vm12 = vcmp.gt.f32.partialorder %v17104_v27, 1.0  ;;  %v17129_v49 = vsel %vm4938_vm11, 1.0, %v21146_v44  ;;  %v11912_v23 = vld [vmem:[%s15104_s6 + $0x188] sm:$0xff]  ;;  %v21390_v27 = vld [vmem:[#allocation38_spill] sm:$0xff] }
 0x66a   : > { %v17118_v1 = vsub.f32 %v4908_v45, %v21381_v16  ;;  %v17121_v47 = vsel %vm4937_vm12, 1.0, %v21146_v44  ;;  %21386 = vst [vmem:[#allocation29_spill] sm:$0xff] %v17129_v49  ;;  %v11913_v45 = vld [vmem:[%s15104_s6 + $0x190] sm:$0xff]  ;;  %v11915_v16 = vld [vmem:[%s15104_s6 + $0x1a0] sm:$0xff]  ;;  %v5153_v54 = vmul.f32 0.9, %v21392_v51 }
 0x66b   : > { %21383 = vst [vmem:[#allocation27_spill] sm:$0xff] %v17121_v47  ;;  %v17124_v4 = vsub.f32 %v4907_v6, %v21384_v17  ;;  %13598 = vmatprep.mubr.msk.f32.mxu1 %vm2480_vm2, %v17121_v47  ;;  %v11914_v6 = vld [vmem:[%s15104_s6 + $0x198] sm:$0xff]  ;;  %v21389_v17 = vld [vmem:[#allocation5_spill] sm:$0xff] }
 0x66c   : > { %21382 = vst [vmem:[#allocation30_spill] sm:$0xff] %v17118_v1  ;;  %13599 = vmatmul.mubr.msk.f32.gmra.mrb[148].mxu1 %vm2480_vm2, %v17129_v49  ;;  %vm4940_vm13 = vcmp.gt.f32.partialorder %v17118_v1, 1.0 }
 0x66d   : > { %21385 = vst [vmem:[#allocation32_spill] sm:$0xff] %v17124_v4  ;;  %vm4939_vm14 = vcmp.gt.f32.partialorder %v17124_v4, 1.0  ;;  %v17142_v11 = vsel %vm4940_vm13, 1.0, %v21146_v44  ;;  %v11923_v4 = vld [vmem:[%s15104_s6 + $0x1e0] sm:$0xff] }
 0x66e   : > { %v17136_v35 = vsel %vm4939_vm14, 1.0, %v21146_v44  ;;  %21388 = vst [vmem:[#allocation31_spill] sm:$0xff] %v17142_v11 }
 0x66f   : > { %21387 = vst [vmem:[#allocation88_spill] sm:$0xff] %v17136_v35  ;;  %13601 = vmatprep.mubr.msk.f32.mxu1 %vm2480_vm2, %v17136_v35  ;;  %v11919_v35 = vld [vmem:[%s15104_s6 + $0x1c0] sm:$0xff] }
 0x670   : > { %13602 = vmatmul.mubr.msk.f32.gmra.mrb[150].mxu1 %vm2480_vm2, %v17142_v11  ;;  %v11922_v11 = vld [vmem:[%s15104_s6 + $0x1d8] sm:$0xff] }
 0x671   : > { %13634 = vmatprep.mubr.msk.f32.mxu1 %vm1243_vm0, %v11911_v59  ;;  %v11916_v59 = vld [vmem:[%s15104_s6 + $0x1a8] sm:$0xff] }
 0x674   : > { %13635 = vmatmul.mubr.msk.f32.vlgmr.msra.gmra.mrb[152].mxu1 %vm1243_vm0, %v11912_v23  ;;  %v11917_v23 = vld [vmem:[%s15104_s6 + $0x1b0] sm:$0xff] }
 0x675   : > { %13637 = vmatprep.mubr.msk.f32.mxu1 %vm1243_vm0, %v11913_v45  ;;  %14323 = vmatpush3.bf16.msra.mxu1 %v21344_v62  ;;  %v11918_v45 = vld [vmem:[%s15104_s6 + $0x1b8] sm:$0xff] }
 0x676   : > { %14325 = vmatprep.subr.bf16.mxu1 %v21389_v17 }
 0x678   : > { %13638 = vmatmul.mubr.msk.f32.gmra.mrb[154].mxu1 %vm1243_vm0, %v11914_v6  ;;  %v11920_v6 = vld [vmem:[%s15104_s6 + $0x1c8] sm:$0xff] }
 0x679   : > { %13640 = vmatprep.mubr.msk.f32.mxu1 %vm1243_vm0, %v11915_v16  ;;  %14327 = vmatpush3.bf16.msra.mxu1 %v21389_v17  ;;  %v11921_v16 = vld [vmem:[%s15104_s6 + $0x1d0] sm:$0xff] }
 0x67a   : > { %14337 = vmatprep.subr.bf16.mxu1 %v15102_v5 }
 0x67c   : > { %13641 = vmatmul.mubr.msk.f32.gmra.mrb[156].mxu1 %vm1243_vm0, %v11916_v59  ;;  %v11924_v59 = vld [vmem:[%s15104_s6 + $0x1e8] sm:$0xff] }
 0x67d   : > { %13643 = vmatprep.mubr.msk.f32.mxu1 %vm1243_vm0, %v11917_v23  ;;  %v11925_v23 = vld [vmem:[%s15104_s6 + $0x1f0] sm:$0xff] }
 0x680   : > { %13644 = vmatmul.mubr.msk.f32.gmra.mrb[158].mxu1 %vm1243_vm0, %v11918_v45  ;;  %v11926_v45 = vld [vmem:[%s15104_s6 + $0x1f8] sm:$0xff] }
 0x681   : > { %13646 = vmatprep.mubr.msk.f32.mxu1 %vm1243_vm0, %v11919_v35 }
 0x684   : > { %13647 = vmatmul.mubr.msk.f32.gmra.mrb[160].mxu1 %vm1243_vm0, %v11920_v6  ;;  %v17184_v6 = vld [vmem:[%s20679_s1 + $0x8b] ss:$0 sm:$0xff] }
 0x685   : > { %13649 = vmatprep.mubr.msk.f32.mxu1 %vm1243_vm0, %v11921_v16 }
 0x688   : > { %13650 = vmatmul.mubr.msk.f32.gmra.mrb[162].mxu1 %vm1243_vm0, %v11922_v11  ;;  %v5151_v11 = vmul.f32 0.9, %v16501_v61 }
 0x689   : > { %13652 = vmatprep.mubr.msk.f32.mxu1 %vm1243_vm0, %v11923_v4 }
 0x68c   : > { %13653 = vmatmul.mubr.msk.f32.gmra.mrb[164].mxu1 %vm1243_vm0, %v11924_v59  ;;  %v5150_v59 = vmul.f32 0.9, %v16506_v60 }
 0x68d   : > { %13655 = vmatprep.mubr.msk.f32.mxu1 %vm1243_vm0, %v11925_v23 }
 0x690   : > { %13656 = vmatmul.mubr.msk.f32.gmra.mrb[166].mxu1 %vm1243_vm0, %v11926_v45 }
 0x727   : > { %v13582_v35 = vpop.f32.mrb[136].mxu1 }
 0x728   : > { %v5077_v16 = vadd.f32 %v17184_v6, %v13582_v35  ;;  %v5071_v4 = vpop.f32.mrb[137].mxu1 }
 0x729   : > { %v5072_v47 = vadd.f32 %v17184_v6, %v5071_v4  ;;  %v5152_v4 = vmul.f32 0.9, %v21395_v31 }
 0x72a   : > { %v5167_v1 = vadd.f32 %v5151_v11, %v5077_v16 }
 0x72b   : > { %v5166_v23 = vadd.f32 %v5150_v59, %v5072_v47  ;;  %v13585_v49 = vpop.f32.mrb[138].mxu1 }
 0x72c   : > { %v17191_v45 = vsub.f32 %v5167_v1, %v21390_v27  ;;  %v5087_v36 = vadd.f32 %v17184_v6, %v13585_v49  ;;  %v5081_v55 = vpop.f32.mrb[139].mxu1  ;;  %v21396_v27 = vld [vmem:[#allocation46_spill] sm:$0xff]  ;;  %v21398_v49 = vld [vmem:[#allocation39_spill] sm:$0xff] }
 0x72d   : > { %v17196_v35 = vsub.f32 %v5166_v23, %v21393_v50  ;;  %v5082_v61 = vadd.f32 %v17184_v6, %v5081_v55  ;;  %v5155_v11 = vmul.f32 0.9, %v21398_v49  ;;  %v21401_v55 = vld [vmem:[#allocation40_spill] sm:$0xff]  ;;  %v21403_v23 = vld [vmem:[#allocation42_spill] sm:$0xff] }
 0x72e   : > { %21391 = vst [vmem:[#allocation34_spill] sm:$0xff] %v17191_v45  ;;  %vm5199_vm15 = vcmp.gt.f32.partialorder %v17191_v45, 1.0  ;;  %v5169_v60 = vadd.f32 %v5153_v54, %v5087_v36 }
 0x72f   : > { %21394 = vst [vmem:[#allocation33_spill] sm:$0xff] %v17196_v35  ;;  %v5168_v47 = vadd.f32 %v5152_v4, %v5082_v61  ;;  %v13588_v16 = vpop.f32.mrb[140].mxu1  ;;  %vm5198_vm1 = vcmp.gt.f32.partialorder %v17196_v35, 1.0  ;;  %v17211_v31 = vsel %vm5199_vm15, 1.0, %v21146_v44  ;;  %v5154_v61 = vmul.f32 0.9, %v21403_v23 }
 0x730   : > { %v17203_v1 = vsub.f32 %v5169_v60, %v21396_v27  ;;  %v5097_v51 = vadd.f32 %v17184_v6, %v13588_v16  ;;  %v5091_v50 = vpop.f32.mrb[141].mxu1  ;;  %v17208_v59 = vsel %vm5198_vm1, 1.0, %v21146_v44  ;;  %21400 = vst [vmem:[#allocation38_spill] sm:$0xff] %v17211_v31 }
 0x731   : > { %21399 = vst [vmem:[#allocation89_spill] sm:$0xff] %v17208_v59  ;;  %v17214_v36 = vsub.f32 %v5168_v47, %v21401_v55  ;;  %v5092_v54 = vadd.f32 %v17184_v6, %v5091_v50  ;;  %13606 = vmatprep.mubr.msk.f32.mxu0 %vm3011_vm7, %v17208_v59  ;;  %v21404_v47 = vld [vmem:[#allocation35_spill] sm:$0xff] }
 0x732   : > { %21397 = vst [vmem:[#allocation90_spill] sm:$0xff] %v17203_v1  ;;  %v5171_v4 = vadd.f32 %v5155_v11, %v5097_v51  ;;  %13607 = vmatmul.mubr.msk.f32.vlgmr.msra.gmra.mrb[32].mxu0 %vm3011_vm7, %v17211_v31  ;;  %vm5201_vm3 = vcmp.gt.f32.partialorder %v17203_v1, 1.0  ;;  %v21406_v50 = vld [vmem:[#allocation43_spill] sm:$0xff]  ;;  %v21408_v11 = vld [vmem:[#allocation44_spill] sm:$0xff] }
 0x733   : > { %21402 = vst [vmem:[#allocation36_spill] sm:$0xff] %v17214_v36  ;;  %v5170_v60 = vadd.f32 %v5154_v61, %v5092_v54  ;;  %v13591_v16 = vpop.f32.mrb[142].mxu1  ;;  %vm5200_vm4 = vcmp.gt.f32.partialorder %v17214_v36, 1.0  ;;  %14331 = vmatpush3.bf16.msra.mxu0 %v15231_v0  ;;  %v5157_v55 = vmul.f32 0.9, %v21406_v50  ;;  %v21410_v36 = vld [vmem:[#allocation45_spill] sm:$0xff] }
 0x734   : > { %v17226_v27 = vsub.f32 %v5171_v4, %v21404_v47  ;;  %v5107_v49 = vadd.f32 %v17184_v6, %v13591_v16  ;;  %v5101_v23 = vpop.f32.mrb[143].mxu1  ;;  %v17231_v51 = vsel %vm5200_vm4, 1.0, %v21146_v44  ;;  %14333 = vmatprep.subr.bf16.mxu0 %v15359_v2  ;;  %v5156_v59 = vmul.f32 0.9, %v21410_v36 }
 0x735   : > { %21407 = vst [vmem:[#allocation41_spill] sm:$0xff] %v17231_v51  ;;  %v17235_v54 = vsub.f32 %v5170_v60, %v21408_v11  ;;  %v5102_v61 = vadd.f32 %v17184_v6, %v5101_v23  ;;  %13609 = vmatprep.mubr.msk.f32.mxu0 %vm3011_vm7, %v17231_v51  ;;  %v17242_v4 = vsel %vm5201_vm3, 1.0, %v21146_v44  ;;  %v21412_v60 = vld [vmem:[#allocation49_spill] sm:$0xff]  ;;  %v21414_v11 = vld [vmem:[#allocation50_spill] sm:$0xff] }
 0x736   : > { %21405 = vst [vmem:[#allocation37_spill] sm:$0xff] %v17226_v27  ;;  %21411 = vst [vmem:[#allocation39_spill] sm:$0xff] %v17242_v4  ;;  %v5173_v16 = vadd.f32 %v5157_v55, %v5107_v49  ;;  %13610 = vmatmul.mubr.msk.f32.gmra.mrb[34].mxu0 %vm3011_vm7, %v17242_v4  ;;  %vm5203_vm5 = vcmp.gt.f32.partialorder %v17226_v27, 1.0  ;;  %v5159_v51 = vmul.f32 0.9, %v21414_v11  ;;  %v21416_v55 = vld [vmem:[#allocation47_spill] sm:$0xff] }
 0x737   : > { %21409 = vst [vmem:[#allocation46_spill] sm:$0xff] %v17235_v54  ;;  %v5172_v47 = vadd.f32 %v5156_v59, %v5102_v61  ;;  %v13594_v50 = vpop.f32.mrb[144].mxu1  ;;  %vm5202_vm6 = vcmp.gt.f32.partialorder %v17235_v54, 1.0  ;;  %14335 = vmatpush3.bf16.msra.mxu0 %v15359_v2  ;;  %v17260_v59 = vld [vmem:[%s20679_s1 + $0x40] sm:$0xff]  ;;  %v17273_v11 = vsel %vm5203_vm5, 1.0, %v21146_v44 }
 0x738   : > { %v17250_v36 = vsub.f32 %v5173_v16, %v21412_v60  ;;  %v5117_v23 = vadd.f32 %v17184_v6, %v13594_v50  ;;  %v5111_v1 = vpop.f32.mrb[145].mxu1  ;;  %v17255_v49 = vsel %vm5202_vm6, 1.0, %v21146_v44  ;;  %13722 = vmatprep.subr.mxu0 %v17260_v59  ;;  %v21418_v60 = vld [vmem:[#allocation48_spill] sm:$0xff]  ;;  %21419 = vst [vmem:[#allocation43_spill] sm:$0xff] %v17273_v11 }
 0x739   : > { %21415 = vst [vmem:[#allocation42_spill] sm:$0xff] %v17255_v49  ;;  %v17264_v61 = vsub.f32 %v5172_v47, %v21416_v55  ;;  %v5112_v16 = vadd.f32 %v17184_v6, %v5111_v1  ;;  %v5158_v50 = vmul.f32 0.9, %v21418_v60  ;;  %13612 = vmatprep.mubr.msk.f32.mxu0 %vm3011_vm7, %v17255_v49  ;;  %v21421_v49 = vld [vmem:[#allocation54_spill] sm:$0xff] }
 0x73a   : > { %21413 = vst [vmem:[#allocation40_spill] sm:$0xff] %v17250_v36  ;;  %v5175_v2 = vadd.f32 %v5159_v51, %v5117_v23  ;;  %13613 = vmatmul.mubr.msk.f32.gmra.mrb[36].mxu0 %vm3011_vm7, %v17273_v11  ;;  %vm5205_vm8 = vcmp.gt.f32.partialorder %v17250_v36, 1.0  ;;  %v5161_v54 = vmul.f32 0.9, %v21421_v49  ;;  %v21423_v51 = vld [vmem:[#allocation51_spill] sm:$0xff] }
 0x73b   : > { %21417 = vst [vmem:[#allocation35_spill] sm:$0xff] %v17264_v61  ;;  %v5174_v47 = vadd.f32 %v5158_v50, %v5112_v16  ;;  %v13597_v55 = vpop.f32.mrb[146].mxu1  ;;  %vm5204_vm9 = vcmp.gt.f32.partialorder %v17264_v61, 1.0  ;;  %v5160_v16 = vmul.f32 0.9, %v16611_v37  ;;  %v21463_v61 = vld [vmem:[#allocation71_spill] sm:$0xff] }
 0x73c   : > { %v17280_v1 = vsub.f32 %v5175_v2, %v16618_v24  ;;  %v5127_v60 = vadd.f32 %v17184_v6, %v13597_v55  ;;  %v5121_v27 = vpop.f32.mrb[147].mxu1  ;;  %v17285_v4 = vsel %vm5204_vm9, 1.0, %v21146_v44  ;;  %v17295_v2 = vsel %vm5205_vm8, 1.0, %v21146_v44 }
 0x73d   : > { %21422 = vst [vmem:[#allocation45_spill] sm:$0xff] %v17285_v4  ;;  %v17288_v23 = vsub.f32 %v5174_v47, %v21423_v51  ;;  %v5122_v36 = vadd.f32 %v17184_v6, %v5121_v27  ;;  %13615 = vmatprep.mubr.msk.f32.mxu0 %vm3011_vm7, %v17285_v4  ;;  %21425 = vst [vmem:[#allocation50_spill] sm:$0xff] %v17295_v2  ;;  %v5163_v47 = vmul.f32 0.9, %v16625_v56 }
 0x73e   : > { %21420 = vst [vmem:[#allocation44_spill] sm:$0xff] %v17280_v1  ;;  %v5177_v24 = vadd.f32 %v5161_v54, %v5127_v60  ;;  %13616 = vmatmul.mubr.msk.f32.gmra.mrb[38].mxu0 %vm3011_vm7, %v17295_v2  ;;  %vm5207_vm10 = vcmp.gt.f32.partialorder %v17280_v1, 1.0  ;;  %v21428_v54 = vld [vmem:[#allocation52_spill] sm:$0xff]  ;;  %v12003_v1 = vld [vmem:[%s15104_s6 + $0x260] sm:$0xff] }
 0x73f   : > { %21424 = vst [vmem:[#allocation49_spill] sm:$0xff] %v17288_v23  ;;  %v5176_v49 = vadd.f32 %v5160_v16, %v5122_v36  ;;  %v13600_v50 = vpop.f32.mrb[148].mxu1  ;;  %vm5206_vm11 = vcmp.gt.f32.partialorder %v17288_v23, 1.0  ;;  %v5162_v36 = vmul.f32 0.9, %v16633_v30  ;;  %v12002_v23 = vld [vmem:[%s15104_s6 + $0x258] sm:$0xff] }
 0x740   : > { %v17302_v27 = vsub.f32 %v5177_v24, %v16640_v57  ;;  %v5137_v37 = vadd.f32 %v17184_v6, %v13600_v50  ;;  %v5131_v55 = vpop.f32.mrb[149].mxu1  ;;  %v17307_v51 = vsel %vm5206_vm11, 1.0, %v21146_v44  ;;  %v17317_v57 = vsel %vm5207_vm10, 1.0, %v21146_v44 }
 0x741   : > { %21427 = vst [vmem:[#allocation48_spill] sm:$0xff] %v17307_v51  ;;  %v17310_v60 = vsub.f32 %v5176_v49, %v21428_v54  ;;  %v5132_v4 = vadd.f32 %v17184_v6, %v5131_v55  ;;  %13618 = vmatprep.mubr.msk.f32.mxu0 %vm3011_vm7, %v17307_v51  ;;  %21430 = vst [vmem:[#allocation51_spill] sm:$0xff] %v17317_v57  ;;  %v5165_v50 = vmul.f32 0.9, %v16647_v26 }
 0x742   : > { %21426 = vst [vmem:[#allocation47_spill] sm:$0xff] %v17302_v27  ;;  %v5179_v16 = vadd.f32 %v5163_v47, %v5137_v37  ;;  %13619 = vmatmul.mubr.msk.f32.gmra.mrb[40].mxu0 %vm3011_vm7, %v17317_v57  ;;  %vm5209_vm12 = vcmp.gt.f32.partialorder %v17302_v27, 1.0  ;;  %v11999_v57 = vld [vmem:[%s15104_s6 + $0x240] sm:$0xff] }
 0x743   : > { %21429 = vst [vmem:[#allocation54_spill] sm:$0xff] %v17310_v60  ;;  %v5178_v56 = vadd.f32 %v5162_v36, %v5132_v4  ;;  %v13603_v24 = vpop.f32.mrb[150].mxu1  ;;  %vm5208_vm13 = vcmp.gt.f32.partialorder %v17310_v60, 1.0  ;;  %v5164_v4 = vmul.f32 0.9, %v16655_v34 }
 0x744   : > { %v17324_v49 = vsub.f32 %v5179_v16, %v16662_v53  ;;  %v5147_v30 = vadd.f32 %v17184_v6, %v13603_v24  ;;  %v5141_v55 = vpop.f32.mrb[151].mxu1  ;;  %v17329_v54 = vsel %vm5208_vm13, 1.0, %v21146_v44  ;;  %v17339_v53 = vsel %vm5209_vm12, 1.0, %v21146_v44 }
 0x745   : > { %21432 = vst [vmem:[#allocation92_spill] sm:$0xff] %v17329_v54  ;;  %v17332_v37 = vsub.f32 %v5178_v56, %v16652_v48  ;;  %v5142_v47 = vadd.f32 %v17184_v6, %v5141_v55  ;;  %13621 = vmatprep.mubr.msk.f32.mxu0 %vm3011_vm7, %v17329_v54  ;;  %21434 = vst [vmem:[#allocation94_spill] sm:$0xff] %v17339_v53  ;;  %v5746_v6 = vmul.f32 0.9, %v16669_v14  ;;  %v5745_v55 = vmul.f32 0.9, %v16677_v41 }
 0x746   : > { %21431 = vst [vmem:[#allocation52_spill] sm:$0xff] %v17324_v49  ;;  %v5181_v36 = vadd.f32 %v5165_v50, %v5147_v30  ;;  %13622 = vmatmul.mubr.msk.f32.gmra.mrb[42].mxu0 %vm3011_vm7, %v17339_v53  ;;  %vm5211_vm14 = vcmp.gt.f32.partialorder %v17324_v49, 1.0 }
 0x747   : > { %21433 = vst [vmem:[#allocation93_spill] sm:$0xff] %v17332_v37  ;;  %v5180_v26 = vadd.f32 %v5164_v4, %v5142_v47  ;;  %v13636_v16 = vpop.f32.mrb[152].mxu1  ;;  %vm5210_vm15 = vcmp.gt.f32.partialorder %v17332_v37, 1.0 }
 0x748   : > { %v17346_v48 = vsub.f32 %v5181_v36, %v16684_v12  ;;  %v5672_v34 = vadd.f32 %v16766_v46, %v13636_v16  ;;  %v5666_v56 = vpop.f32.mrb[153].mxu1  ;;  %v17351_v24 = vsel %vm5210_vm15, 1.0, %v21146_v44  ;;  %v17361_v12 = vsel %vm5211_vm14, 1.0, %v21146_v44 }
 0x749   : > { %21436 = vst [vmem:[#allocation96_spill] sm:$0xff] %v17351_v24  ;;  %v17354_v30 = vsub.f32 %v5180_v26, %v16674_v10  ;;  %v5667_v50 = vadd.f32 %v16766_v46, %v5666_v56  ;;  %13624 = vmatprep.mubr.msk.f32.mxu0 %vm3011_vm7, %v17351_v24  ;;  %21438 = vst [vmem:[#allocation98_spill] sm:$0xff] %v17361_v12  ;;  %v5748_v36 = vmul.f32 0.9, %v16691_v38  ;;  %v5747_v56 = vmul.f32 0.9, %v16702_v43 }
 0x74a   : > { %21435 = vst [vmem:[#allocation95_spill] sm:$0xff] %v17346_v48  ;;  %v5762_v47 = vadd.f32 %v5746_v6, %v5672_v34  ;;  %13625 = vmatmul.mubr.msk.f32.gmra.mrb[44].mxu0 %vm3011_vm7, %v17361_v12  ;;  %vm5213_vm1 = vcmp.gt.f32.partialorder %v17346_v48, 1.0 }
 0x74b   : > { %21437 = vst [vmem:[#allocation97_spill] sm:$0xff] %v17354_v30  ;;  %v5761_v14 = vadd.f32 %v5745_v55, %v5667_v50  ;;  %v13639_v4 = vpop.f32.mrb[154].mxu1  ;;  %vm5212_vm3 = vcmp.gt.f32.partialorder %v17354_v30, 1.0 }
 0x74c   : > { %v17368_v10 = vsub.f32 %v5762_v47, %v16699_v20  ;;  %v5682_v41 = vadd.f32 %v16766_v46, %v13639_v4  ;;  %v5676_v26 = vpop.f32.mrb[155].mxu1  ;;  %v17373_v16 = vsel %vm5212_vm3, 1.0, %v21146_v44  ;;  %v17383_v20 = vsel %vm5213_vm1, 1.0, %v21146_v44 }
 0x74d   : > { %21439 = vst [vmem:[#allocation99_spill] sm:$0xff] %v17373_v16  ;;  %v17376_v34 = vsub.f32 %v5761_v14, %v16696_v28  ;;  %v5677_v6 = vadd.f32 %v16766_v46, %v5676_v26  ;;  %13627 = vmatprep.mubr.msk.f32.mxu0 %vm3011_vm7, %v17373_v16  ;;  %21440 = vst [vmem:[#allocation100_spill] sm:$0xff] %v17383_v20  ;;  %v5750_v47 = vmul.f32 0.9, %v16714_v9  ;;  %v17406_v26 = vld [vmem:[%s20679_s1 + $0x88] ss:$0 sm:$0xff] }
 0x74e   : > { %vm5794_vm4 = vcmp.gt.f32.partialorder %v17368_v10, 1.0  ;;  %v5764_v38 = vadd.f32 %v5748_v36, %v5682_v41  ;;  %13628 = vmatmul.mubr.msk.f32.gmra.mrb[46].mxu0 %vm3011_vm7, %v17383_v20 }
 0x74f   : > { %v5763_v50 = vadd.f32 %v5747_v56, %v5677_v6  ;;  %v13642_v55 = vpop.f32.mrb[156].mxu1  ;;  %vm5793_vm5 = vcmp.gt.f32.partialorder %v17376_v34, 1.0  ;;  %v17398_v41 = vsel %vm5794_vm4, 1.0, %v21146_v44 }
 0x750   : > { %v17390_v28 = vsub.f32 %v5764_v38, %v16730_v19  ;;  %v5692_v43 = vadd.f32 %v16766_v46, %v13642_v55  ;;  %v5686_v14 = vpop.f32.mrb[157].mxu1  ;;  %v17395_v4 = vsel %vm5793_vm5, 1.0, %v21146_v44  ;;  %v5749_v46 = vmul.f32 0.9, %v16723_v58 }
 0x751   : > { %v17401_v36 = vsub.f32 %v5763_v50, %v16719_v7  ;;  %v5687_v19 = vadd.f32 %v17406_v26, %v5686_v14  ;;  %13666 = vmatprep.mubr.msk.f32.mxu1 %vm2480_vm2, %v17395_v4  ;;  %v5752_v38 = vmul.f32 0.9, %v16738_v15  ;;  %v5751_v14 = vmul.f32 0.9, %v16747_v32 }
 0x752   : > { %v5766_v9 = vadd.f32 %v5750_v47, %v5692_v43  ;;  %13667 = vmatmul.mubr.msk.f32.vlgmr.msra.gmra.mrb[168].mxu1 %vm2480_vm2, %v17398_v41  ;;  %vm5796_vm6 = vcmp.gt.f32.partialorder %v17390_v28, 1.0 }
 0x753   : > { %v5765_v7 = vadd.f32 %v5749_v46, %v5687_v19  ;;  %14339 = vmatpush3.bf16.msra.mxu1 %v15102_v5  ;;  %v13645_v6 = vpop.f32.mrb[158].mxu1  ;;  %vm5795_vm8 = vcmp.gt.f32.partialorder %v17401_v36, 1.0 }
 0x754   : > { %v17418_v56 = vsub.f32 %v5766_v9, %v16754_v3  ;;  %v5702_v58 = vadd.f32 %v17406_v26, %v13645_v6  ;;  %v5696_v50 = vpop.f32.mrb[159].mxu1  ;;  %v17423_v55 = vsel %vm5795_vm8, 1.0, %v21146_v44  ;;  %14341 = vmatprep.subr.bf16.mxu1 %v21344_v62  ;;  %v17434_v3 = vsel %vm5796_vm6, 1.0, %v21146_v44  ;;  %v21441_v9 = vld [vmem:[#allocation53_spill] sm:$0xff] }
 0x755   : > { %v17427_v43 = vsub.f32 %v5765_v7, %v16743_v8  ;;  %v5697_v47 = vadd.f32 %v17406_v26, %v5696_v50  ;;  %13669 = vmatprep.mubr.msk.f32.mxu1 %vm2480_vm2, %v17423_v55  ;;  %v5754_v7 = vmul.f32 0.9, %v21441_v9 }
 0x756   : > { %v5768_v15 = vadd.f32 %v5752_v38, %v5702_v58  ;;  %13670 = vmatmul.mubr.msk.f32.gmra.mrb[170].mxu1 %vm2480_vm2, %v17434_v3  ;;  %vm5798_vm9 = vcmp.gt.f32.partialorder %v17418_v56, 1.0  ;;  %v21442_v58 = vld [vmem:[#allocation58_spill] sm:$0xff] }
 0x757   : > { %v5767_v19 = vadd.f32 %v5751_v14, %v5697_v47  ;;  %v13648_v46 = vpop.f32.mrb[160].mxu1  ;;  %vm5797_vm10 = vcmp.gt.f32.partialorder %v17427_v43, 1.0  ;;  %v21443_v47 = vld [vmem:[#allocation55_spill] sm:$0xff] }
 0x758   : > { %v17441_v8 = vsub.f32 %v5768_v15, %v16781_v29  ;;  %v5712_v32 = vadd.f32 %v17406_v26, %v13648_v46  ;;  %v5706_v6 = vpop.f32.mrb[161].mxu1  ;;  %v17446_v50 = vsel %vm5797_vm10, 1.0, %v21146_v44  ;;  %v5753_v14 = vmul.f32 0.9, %v21443_v47  ;;  %v21445_v47 = vld [vmem:[#allocation56_spill] sm:$0xff] }
 0x759   : > { %v17449_v38 = vsub.f32 %v5767_v19, %v21442_v58  ;;  %v5707_v16 = vadd.f32 %v17406_v26, %v5706_v6  ;;  %13672 = vmatprep.mubr.msk.f32.mxu1 %vm2480_vm2, %v17446_v50  ;;  %v17456_v29 = vsel %vm5798_vm9, 1.0, %v21146_v44  ;;  %v21444_v19 = vld [vmem:[#allocation59_spill] sm:$0xff]  ;;  %v5756_v20 = vmul.f32 0.9, %v21445_v47 }
 0x75a   : > { %v5770_v15 = vadd.f32 %v5754_v7, %v5712_v32  ;;  %13673 = vmatmul.mubr.msk.f32.gmra.mrb[172].mxu1 %vm2480_vm2, %v17456_v29  ;;  %vm5800_vm11 = vcmp.gt.f32.partialorder %v17441_v8, 1.0  ;;  %v21446_v32 = vld [vmem:[#allocation57_spill] sm:$0xff]  ;;  %vm5487_vm9 = vcmp.gt.f32.partialorder %v21463_v61, 1.0 }
 0x75b   : > { %v5769_v46 = vadd.f32 %v5753_v14, %v5707_v16  ;;  %v13651_v9 = vpop.f32.mrb[162].mxu1  ;;  %vm5799_vm12 = vcmp.gt.f32.partialorder %v17449_v38, 1.0  ;;  %v21447_v16 = vld [vmem:[#allocation62_spill] sm:$0xff]  ;;  %v5503_v35 = vsel %vm5487_vm9, 1.0, %v21146_v44  ;;  %vm5502_vm9 = vcmp.gt.f32.partialorder %v16956_v25, 1.0 }
 0x75c   : > { %v17463_v6 = vsub.f32 %v5770_v15, %v21444_v19  ;;  %v5722_v58 = vadd.f32 %v17406_v26, %v13651_v9  ;;  %v5716_v30 = vpop.f32.mrb[163].mxu1  ;;  %v17468_v24 = vsel %vm5799_vm12, 1.0, %v21146_v44  ;;  %v5755_v14 = vmul.f32 0.9, %v21447_v16  ;;  %v21449_v16 = vld [vmem:[#allocation60_spill] sm:$0xff] }
 0x75d   : > { %v17471_v7 = vsub.f32 %v5769_v46, %v21446_v32  ;;  %v5717_v48 = vadd.f32 %v17406_v26, %v5716_v30  ;;  %13675 = vmatprep.mubr.msk.f32.mxu1 %vm2480_vm2, %v17468_v24  ;;  %v17478_v15 = vsel %vm5800_vm11, 1.0, %v21146_v44  ;;  %v21448_v46 = vld [vmem:[#allocation63_spill] sm:$0xff]  ;;  %v5758_v12 = vmul.f32 0.9, %v21449_v16 }
 0x75e   : > { %v5772_v9 = vadd.f32 %v5756_v20, %v5722_v58  ;;  %13676 = vmatmul.mubr.msk.f32.gmra.mrb[174].mxu1 %vm2480_vm2, %v17478_v15  ;;  %vm5802_vm13 = vcmp.gt.f32.partialorder %v17463_v6, 1.0  ;;  %v21450_v20 = vld [vmem:[#allocation61_spill] sm:$0xff] }
 0x75f   : > { %v5771_v19 = vadd.f32 %v5755_v14, %v5717_v48  ;;  %v13654_v47 = vpop.f32.mrb[164].mxu1  ;;  %vm5801_vm14 = vcmp.gt.f32.partialorder %v17471_v7, 1.0  ;;  %v21451_v48 = vld [vmem:[#allocation66_spill] sm:$0xff] }
 0x760   : > { %v17485_v30 = vsub.f32 %v5772_v9, %v21448_v46  ;;  %v5732_v32 = vadd.f32 %v17406_v26, %v13654_v47  ;;  %v5726_v37 = vpop.f32.mrb[165].mxu1  ;;  %v17490_v54 = vsel %vm5801_vm14, 1.0, %v21146_v44  ;;  %v5757_v14 = vmul.f32 0.9, %v21451_v48  ;;  %v21453_v48 = vld [vmem:[#allocation64_spill] sm:$0xff] }
 0x761   : > { %v17493_v58 = vsub.f32 %v5771_v19, %v21450_v20  ;;  %v5727_v49 = vadd.f32 %v17406_v26, %v5726_v37  ;;  %13678 = vmatprep.mubr.msk.f32.mxu1 %vm2480_vm2, %v17490_v54  ;;  %v17500_v9 = vsel %vm5802_vm13, 1.0, %v21146_v44  ;;  %v21452_v19 = vld [vmem:[#allocation69_spill] sm:$0xff]  ;;  %v5760_v53 = vmul.f32 0.9, %v21453_v48 }
 0x762   : > { %v5774_v47 = vadd.f32 %v5758_v12, %v5732_v32  ;;  %13679 = vmatmul.mubr.msk.f32.gmra.mrb[176].mxu1 %vm2480_vm2, %v17500_v9  ;;  %vm5804_vm15 = vcmp.gt.f32.partialorder %v17485_v30, 1.0  ;;  %v21454_v12 = vld [vmem:[#allocation65_spill] sm:$0xff] }
 0x763   : > { %v5773_v46 = vadd.f32 %v5757_v14, %v5727_v49  ;;  %v13657_v16 = vpop.f32.mrb[166].mxu1  ;;  %vm5803_vm1 = vcmp.gt.f32.partialorder %v17493_v58, 1.0  ;;  %v21455_v49 = vld [vmem:[#allocation67_spill] sm:$0xff] }
 0x764   : > { %v17507_v37 = vsub.f32 %v5774_v47, %v21452_v19  ;;  %v5742_v20 = vadd.f32 %v17406_v26, %v13657_v16  ;;  %v5736_v60 = vpop.f32.mrb[167].mxu1  ;;  %v17512_v51 = vsel %vm5803_vm1, 1.0, %v21146_v44  ;;  %v5759_v14 = vmul.f32 0.9, %v21455_v49 }
 0x765   : > { %v17515_v32 = vsub.f32 %v5773_v46, %v21454_v12  ;;  %v5737_v27 = vadd.f32 %v17406_v26, %v5736_v60  ;;  %13681 = vmatprep.mubr.msk.f32.mxu1 %vm2480_vm2, %v17512_v51  ;;  %v17522_v47 = vsel %vm5804_vm15, 1.0, %v21146_v44  ;;  %v21456_v60 = vld [vmem:[#allocation91_spill] sm:$0xff]  ;;  %v21458_v12 = vld [vmem:[#allocation68_spill] sm:$0xff]  ;;  %vm5496_vm1 = vcmp.gt.f32.partialorder %v16928_v39, 1.0 }
 0x766   : > { %v5776_v16 = vadd.f32 %v5760_v53, %v5742_v20  ;;  %13682 = vmatmul.mubr.msk.f32.gmra.mrb[178].mxu1 %vm2480_vm2, %v17522_v47  ;;  %vm5806_vm3 = vcmp.gt.f32.partialorder %v17507_v37, 1.0  ;;  %v11991_v20 = vld [vmem:[%s15104_s6 + $0x200] sm:$0xff] }
 0x767   : > { %v5775_v19 = vadd.f32 %v5759_v14, %v5737_v27  ;;  %vm5805_vm4 = vcmp.gt.f32.partialorder %v17515_v32, 1.0  ;;  %v17540_v53 = vsel %vm5806_vm3, 1.0, %v21146_v44 }
 0x768   : > { %v17529_v46 = vsub.f32 %v5776_v16, %v21456_v60  ;;  %v17532_v48 = vsel %vm5805_vm4, 1.0, %v21146_v44  ;;  %v11992_v16 = vld [vmem:[%s15104_s6 + $0x208] sm:$0xff]  ;;  %v11994_v60 = vld [vmem:[%s15104_s6 + $0x218] sm:$0xff] }
 0x769   : > { %21457 = vst [vmem:[#allocation53_spill] sm:$0xff] %v17532_v48  ;;  %v17535_v49 = vsub.f32 %v5775_v19, %v21458_v12  ;;  %13684 = vmatprep.mubr.msk.f32.mxu1 %vm2480_vm2, %v17532_v48  ;;  %v11993_v19 = vld [vmem:[%s15104_s6 + $0x210] sm:$0xff]  ;;  %v11995_v12 = vld [vmem:[%s15104_s6 + $0x220] sm:$0xff] }
 0x76a   : > { %13685 = vmatmul.mubr.msk.f32.gmra.mrb[180].mxu1 %vm2480_vm2, %v17540_v53  ;;  %vm5808_vm5 = vcmp.gt.f32.partialorder %v17529_v46, 1.0 }
 0x76b   : > { %21459 = vst [vmem:[#allocation58_spill] sm:$0xff] %v17535_v49  ;;  %vm5807_vm6 = vcmp.gt.f32.partialorder %v17535_v49, 1.0  ;;  %v17553_v14 = vsel %vm5808_vm5, 1.0, %v21146_v44  ;;  %v21466_v49 = vld [vmem:[#allocation73_spill] sm:$0xff]  ;;  %vm5497_vm5 = vcmp.gt.f32.partialorder %v16943_v42, 1.0 }
 0x76c   : > { %v17547_v27 = vsel %vm5807_vm6, 1.0, %v21146_v44  ;;  %21461 = vst [vmem:[#allocation59_spill] sm:$0xff] %v17553_v14  ;;  %vm5489_vm11 = vcmp.gt.f32.partialorder %v21466_v49, 1.0  ;;  %vm5500_vm6 = vcmp.gt.f32.partialorder %v16948_v33, 1.0 }
 0x76d   : > { %21460 = vst [vmem:[#allocation55_spill] sm:$0xff] %v17547_v27  ;;  %13687 = vmatprep.mubr.msk.f32.mxu1 %vm2480_vm2, %v17547_v27 }
 0x76e   : > { %13688 = vmatmul.mubr.msk.f32.gmra.mrb[182].mxu1 %vm2480_vm2, %v17553_v14 }
 0x76f   : > { %13752 = vmatprep.mubr.msk.f32.mxu1 %vm1243_vm0, %v11991_v20  ;;  %v11996_v20 = vld [vmem:[%s15104_s6 + $0x228] sm:$0xff] }
 0x772   : > { %13753 = vmatmul.mubr.msk.f32.vlgmr.msra.gmra.mrb[184].mxu1 %vm1243_vm0, %v11992_v16  ;;  %v11997_v16 = vld [vmem:[%s15104_s6 + $0x230] sm:$0xff] }
 0x773   : > { %13755 = vmatprep.mubr.msk.f32.mxu1 %vm1243_vm0, %v11993_v19  ;;  %14343 = vmatpush3.bf16.msra.mxu1 %v21344_v62  ;;  %v11998_v19 = vld [vmem:[%s15104_s6 + $0x238] sm:$0xff] }
 0x774   : > { %14345 = vmatprep.subr.bf16.mxu1 %v21389_v17 }
 0x776   : > { %13756 = vmatmul.mubr.msk.f32.gmra.mrb[186].mxu1 %vm1243_vm0, %v11994_v60  ;;  %v12000_v60 = vld [vmem:[%s15104_s6 + $0x248] sm:$0xff] }
 0x777   : > { %13758 = vmatprep.mubr.msk.f32.mxu1 %vm1243_vm0, %v11995_v12  ;;  %14347 = vmatpush3.bf16.msra.mxu1 %v21389_v17  ;;  %v12001_v12 = vld [vmem:[%s15104_s6 + $0x250] sm:$0xff]  ;;  %v21464_v17 = vld [vmem:[#allocation72_spill] sm:$0xff] }
 0x778   : > { %14357 = vmatprep.subr.bf16.mxu1 %v15102_v5  ;;  %vm5490_vm10 = vcmp.gt.f32.partialorder %v21464_v17, 1.0 }
 0x77a   : > { %13759 = vmatmul.mubr.msk.f32.gmra.mrb[188].mxu1 %vm1243_vm0, %v11996_v20  ;;  %v12004_v20 = vld [vmem:[%s15104_s6 + $0x268] sm:$0xff] }
 0x77b   : > { %13761 = vmatprep.mubr.msk.f32.mxu1 %vm1243_vm0, %v11997_v16  ;;  %v12005_v16 = vld [vmem:[%s15104_s6 + $0x270] sm:$0xff] }
 0x77e   : > { %13762 = vmatmul.mubr.msk.f32.gmra.mrb[190].mxu1 %vm1243_vm0, %v11998_v19  ;;  %v12006_v19 = vld [vmem:[%s15104_s6 + $0x278] sm:$0xff] }
 0x77f   : > { %13764 = vmatprep.mubr.msk.f32.mxu1 %vm1243_vm0, %v11999_v57 }
 0x782   : > { %13765 = vmatmul.mubr.msk.f32.gmra.mrb[192].mxu1 %vm1243_vm0, %v12000_v60  ;;  %v17595_v60 = vld [vmem:[%s20679_s1 + $0x8a] ss:$0 sm:$0xff] }
 0x783   : > { %13767 = vmatprep.mubr.msk.f32.mxu1 %vm1243_vm0, %v12001_v12 }
 0x786   : > { %13768 = vmatmul.mubr.msk.f32.gmra.mrb[194].mxu1 %vm1243_vm0, %v12002_v23  ;;  %v21462_v23 = vld [vmem:[#allocation70_spill] sm:$0xff] }
 0x787   : > { %13770 = vmatprep.mubr.msk.f32.mxu1 %vm1243_vm0, %v12003_v1  ;;  %v5456_v2 = vmul.f32 0.9, %v21462_v23  ;;  %vm5488_vm8 = vcmp.gt.f32.partialorder %v21462_v23, 1.0 }
 0x788   : > { %v5504_v11 = vsel %vm5488_vm8, 1.0, %v21146_v44  ;;  %vm5499_vm8 = vcmp.gt.f32.partialorder %v16951_v63, 1.0 }
 0x78a   : > { %13771 = vmatmul.mubr.msk.f32.gmra.mrb[196].mxu1 %vm1243_vm0, %v12004_v20 }
 0x78b   : > { %13773 = vmatprep.mubr.msk.f32.mxu1 %vm1243_vm0, %v12005_v16  ;;  %v5455_v16 = vmul.f32 0.9, %v21463_v61 }
 0x78e   : > { %13774 = vmatmul.mubr.msk.f32.gmra.mrb[198].mxu1 %vm1243_vm0, %v12006_v19 }
 0x805   : > { %v13608_v57 = vpop.f32.mrb[32].mxu0 }
 0x806   : > { %v14458_v12 = vadd.f32 %v17595_v60, %v13608_v57  ;;  %v5360_v1 = vpop.f32.mrb[33].mxu0  ;;  %v5458_v57 = vmul.f32 0.9, %v21464_v17 }
 0x807   : > { %v14459_v20 = vadd.f32 %v17595_v60, %v5360_v1 }
 0x808   : > { %v5472_v19 = vadd.f32 %v14458_v12, %v5456_v2  ;;  %v5457_v2 = vmul.f32 0.9, %v21466_v49 }
 0x809   : > { %v5471_v31 = vadd.f32 %v14459_v20, %v5455_v16  ;;  %v13611_v45 = vpop.f32.mrb[34].mxu0  ;;  %v5506_v20 = vsel %vm5490_vm10, 1.0, %v21146_v44  ;;  %vm5501_vm10 = vcmp.gt.f32.partialorder %v16960_v21, 1.0 }
 0x80a   : > { %v17606_v27 = vsub.f32 %v5472_v19, %v5504_v11  ;;  %v14460_v23 = vadd.f32 %v17595_v60, %v13611_v45  ;;  %v5370_v14 = vpop.f32.mrb[35].mxu0  ;;  %v5505_v11 = vsel %vm5489_vm11, 1.0, %v21146_v44 }
 0x80b   : > { %v17611_v1 = vsub.f32 %v5471_v31, %v5503_v35  ;;  %v14461_v61 = vadd.f32 %v17595_v60, %v5370_v14  ;;  %v21470_v31 = vld [vmem:[#allocation75_spill] sm:$0xff] }
 0x80c   : > { %21465 = vst [vmem:[#allocation56_spill] sm:$0xff] %v17606_v27  ;;  %v5474_v12 = vadd.f32 %v14460_v23, %v5458_v57  ;;  %v21468_v27 = vld [vmem:[#allocation74_spill] sm:$0xff]  ;;  %vm5491_vm13 = vcmp.gt.f32.partialorder %v21470_v31, 1.0  ;;  %v5459_v57 = vmul.f32 0.9, %v21470_v31 }
 0x80d   : > { %21467 = vst [vmem:[#allocation57_spill] sm:$0xff] %v17611_v1  ;;  %v5473_v16 = vadd.f32 %v14461_v61, %v5457_v2  ;;  %v13614_v19 = vpop.f32.mrb[36].mxu0  ;;  %v5460_v45 = vmul.f32 0.9, %v21468_v27  ;;  %vm5492_vm12 = vcmp.gt.f32.partialorder %v21468_v27, 1.0 }
 0x80e   : > { %v17618_v48 = vsub.f32 %v5474_v12, %v5506_v20  ;;  %v14462_v17 = vadd.f32 %v17595_v60, %v13614_v19  ;;  %v5380_v35 = vpop.f32.mrb[37].mxu0  ;;  %v5508_v61 = vsel %vm5492_vm12, 1.0, %v21146_v44  ;;  %v5507_v12 = vsel %vm5491_vm13, 1.0, %v21146_v44 }
 0x80f   : > { %v17623_v14 = vsub.f32 %v5473_v16, %v5505_v11  ;;  %v14463_v49 = vadd.f32 %v17595_v60, %v5380_v35  ;;  %v21474_v11 = vld [vmem:[#allocation77_spill] sm:$0xff] }
 0x810   : > { %21469 = vst [vmem:[#allocation62_spill] sm:$0xff] %v17618_v48  ;;  %v5476_v23 = vadd.f32 %v14462_v17, %v5460_v45  ;;  %v21472_v48 = vld [vmem:[#allocation76_spill] sm:$0xff]  ;;  %vm5493_vm15 = vcmp.gt.f32.partialorder %v21474_v11, 1.0  ;;  %v5461_v17 = vmul.f32 0.9, %v21474_v11 }
 0x811   : > { %21471 = vst [vmem:[#allocation63_spill] sm:$0xff] %v17623_v14  ;;  %v5475_v2 = vadd.f32 %v14463_v49, %v5459_v57  ;;  %v13617_v20 = vpop.f32.mrb[38].mxu0  ;;  %v5462_v19 = vmul.f32 0.9, %v21472_v48  ;;  %vm5494_vm14 = vcmp.gt.f32.partialorder %v21472_v48, 1.0 }
 0x812   : > { %v17630_v1 = vsub.f32 %v5476_v23, %v5508_v61  ;;  %v14464_v27 = vadd.f32 %v17595_v60, %v13617_v20  ;;  %v5390_v16 = vpop.f32.mrb[39].mxu0  ;;  %v5510_v49 = vsel %vm5494_vm14, 1.0, %v21146_v44  ;;  %v5509_v23 = vsel %vm5493_vm15, 1.0, %v21146_v44 }
 0x813   : > { %v17635_v35 = vsub.f32 %v5475_v2, %v5507_v12  ;;  %v14465_v45 = vadd.f32 %v17595_v60, %v5390_v16  ;;  %v5464_v20 = vmul.f32 0.9, %v16928_v39  ;;  %v21477_v12 = vld [vmem:[#allocation78_spill] sm:$0xff] }
 0x814   : > { %21473 = vst [vmem:[#allocation60_spill] sm:$0xff] %v17630_v1  ;;  %v5478_v31 = vadd.f32 %v14464_v27, %v5462_v19  ;;  %vm5495_vm3 = vcmp.gt.f32.partialorder %v21477_v12, 1.0  ;;  %v5463_v27 = vmul.f32 0.9, %v21477_v12 }
 0x815   : > { %21475 = vst [vmem:[#allocation61_spill] sm:$0xff] %v17635_v35  ;;  %v5477_v57 = vadd.f32 %v14465_v45, %v5461_v17  ;;  %v13620_v61 = vpop.f32.mrb[40].mxu0  ;;  %v5512_v45 = vsel %vm5496_vm1, 1.0, %v21146_v44 }
 0x816   : > { %v17642_v1 = vsub.f32 %v5478_v31, %v5510_v49  ;;  %v14466_v48 = vadd.f32 %v17595_v60, %v13620_v61  ;;  %v5400_v2 = vpop.f32.mrb[41].mxu0  ;;  %v5511_v31 = vsel %vm5495_vm3, 1.0, %v21146_v44 }
 0x817   : > { %v17647_v16 = vsub.f32 %v5477_v57, %v5509_v23  ;;  %v14467_v19 = vadd.f32 %v17595_v60, %v5400_v2 }
 0x818   : > { %21476 = vst [vmem:[#allocation66_spill] sm:$0xff] %v17642_v1  ;;  %v5480_v11 = vadd.f32 %v14466_v48, %v5464_v20  ;;  %v21479_v1 = vld [vmem:[#allocation79_spill] sm:$0xff]  ;;  %v5465_v48 = vmul.f32 0.9, %v16943_v42 }
 0x819   : > { %21478 = vst [vmem:[#allocation69_spill] sm:$0xff] %v17647_v16  ;;  %v5479_v17 = vadd.f32 %v14467_v19, %v5463_v27  ;;  %v13623_v49 = vpop.f32.mrb[42].mxu0  ;;  %v5466_v61 = vmul.f32 0.9, %v21479_v1  ;;  %vm5498_vm4 = vcmp.gt.f32.partialorder %v21479_v1, 1.0  ;;  %v5513_v27 = vsel %vm5497_vm5, 1.0, %v21146_v44 }
 0x81a   : > { %v17654_v35 = vsub.f32 %v5480_v11, %v5512_v45  ;;  %v14468_v39 = vadd.f32 %v17595_v60, %v13623_v49  ;;  %v5410_v57 = vpop.f32.mrb[43].mxu0  ;;  %v5514_v12 = vsel %vm5498_vm4, 1.0, %v21146_v44  ;;  %v5468_v45 = vmul.f32 0.9, %v16948_v33 }
 0x81b   : > { %v17659_v23 = vsub.f32 %v5479_v17, %v5511_v31  ;;  %v14469_v20 = vadd.f32 %v17595_v60, %v5410_v57  ;;  %v5516_v57 = vsel %vm5500_vm6, 1.0, %v21146_v44 }
 0x81c   : > { %21480 = vst [vmem:[#allocation64_spill] sm:$0xff] %v17654_v35  ;;  %v5482_v2 = vadd.f32 %v14468_v39, %v5466_v61  ;;  %v5467_v61 = vmul.f32 0.9, %v16951_v63 }
 0x81d   : > { %21481 = vst [vmem:[#allocation65_spill] sm:$0xff] %v17659_v23  ;;  %v5481_v19 = vadd.f32 %v14469_v20, %v5465_v48  ;;  %v13626_v11 = vpop.f32.mrb[44].mxu0  ;;  %v5515_v48 = vsel %vm5499_vm8, 1.0, %v21146_v44 }
 0x81e   : > { %v17666_v49 = vsub.f32 %v5482_v2, %v5514_v12  ;;  %v14470_v1 = vadd.f32 %v17595_v60, %v13626_v11  ;;  %v5420_v17 = vpop.f32.mrb[45].mxu0  ;;  %v5470_v11 = vmul.f32 0.9, %v16956_v25  ;;  %v17694_v25 = vld [vmem:[%s20679_s1 + $0x89] ss:$0 sm:$0xff] }
 0x81f   : > { %v17671_v31 = vsub.f32 %v5481_v19, %v5513_v27  ;;  %v14471_v42 = vadd.f32 %v17595_v60, %v5420_v17  ;;  %v5518_v17 = vsel %vm5502_vm9, 1.0, %v21146_v44 }
 0x820   : > { %21482 = vst [vmem:[#allocation67_spill] sm:$0xff] %v17666_v49  ;;  %v5484_v39 = vadd.f32 %v14470_v1, %v5468_v45  ;;  %v5469_v45 = vmul.f32 0.9, %v16960_v21 }
 0x821   : > { %21483 = vst [vmem:[#allocation91_spill] sm:$0xff] %v17671_v31  ;;  %v5483_v20 = vadd.f32 %v14471_v42, %v5467_v61  ;;  %v13629_v2 = vpop.f32.mrb[46].mxu0 }
 0x822   : > { %v17677_v12 = vsub.f32 %v5484_v39, %v5516_v57  ;;  %v14472_v33 = vadd.f32 %v17595_v60, %v13629_v2  ;;  %v5430_v19 = vpop.f32.mrb[47].mxu0  ;;  %v5517_v57 = vsel %vm5501_vm10, 1.0, %v21146_v44 }
 0x823   : > { %v17682_v27 = vsub.f32 %v5483_v20, %v5515_v48  ;;  %v14473_v63 = vadd.f32 %v17595_v60, %v5430_v19  ;;  %v6019_v20 = vmul.f32 0.9, %v16965_v13 }
 0x824   : > { %21484 = vst [vmem:[#allocation68_spill] sm:$0xff] %v17677_v12  ;;  %v5486_v1 = vadd.f32 %v14472_v33, %v5470_v11  ;;  %v6018_v33 = vmul.f32 0.9, %v16970_v22 }
 0x825   : > { %21485 = vst [vmem:[#allocation70_spill] sm:$0xff] %v17682_v27  ;;  %v5485_v42 = vadd.f32 %v14473_v63, %v5469_v45  ;;  %v13668_v61 = vpop.f32.mrb[168].mxu1 }
 0x826   : > { %v17688_v39 = vsub.f32 %v5486_v1, %v5518_v17  ;;  %v5945_v60 = vadd.f32 %v17694_v25, %v13668_v61  ;;  %v5939_v48 = vpop.f32.mrb[169].mxu1  ;;  %v6021_v17 = vmul.f32 0.9, %v16977_v40 }
 0x827   : > { %v17698_v21 = vsub.f32 %v5485_v42, %v5517_v57  ;;  %v5940_v2 = vadd.f32 %v17694_v25, %v5939_v48  ;;  %v21488_v57 = vld [vmem:[#allocation80_spill] sm:$0xff] }
 0x828   : > { %21486 = vst [vmem:[#allocation71_spill] sm:$0xff] %v17688_v39  ;;  %v6035_v11 = vadd.f32 %v6019_v20, %v5945_v60  ;;  %v6020_v48 = vmul.f32 0.9, %v21488_v57 }
 0x829   : > { %21487 = vst [vmem:[#allocation72_spill] sm:$0xff] %v17698_v21  ;;  %v6034_v19 = vadd.f32 %v6018_v33, %v5940_v2  ;;  %v13671_v63 = vpop.f32.mrb[170].mxu1  ;;  %v21490_v33 = vld [vmem:[#allocation81_spill] sm:$0xff]  ;;  %v21496_v21 = vld [vmem:[#allocation86_spill] sm:$0xff] }
 0x82a   : > { %v17703_v45 = vsub.f32 %v6035_v11, %v16985_v18  ;;  %v5955_v1 = vadd.f32 %v17694_v25, %v13671_v63  ;;  %v5949_v61 = vpop.f32.mrb[171].mxu1  ;;  %v21489_v18 = vld [vmem:[#allocation84_spill] sm:$0xff]  ;;  %v6023_v11 = vmul.f32 0.9, %v21490_v33 }
 0x82b   : > { %v17708_v13 = vsub.f32 %v6034_v19, %v16982_v52  ;;  %v5950_v42 = vadd.f32 %v17694_v25, %v5949_v61  ;;  %v21491_v61 = vld [vmem:[#allocation82_spill] sm:$0xff] }
 0x82c   : > { %vm6067_vm11 = vcmp.gt.f32.partialorder %v17703_v45, 1.0  ;;  %v6037_v22 = vadd.f32 %v6021_v17, %v5955_v1 }
 0x82d   : > { %v6036_v60 = vadd.f32 %v6020_v48, %v5950_v42  ;;  %v13674_v20 = vpop.f32.mrb[172].mxu1  ;;  %vm6066_vm12 = vcmp.gt.f32.partialorder %v17708_v13, 1.0  ;;  %v17723_v63 = vsel %vm6067_vm11, 1.0, %v21146_v44  ;;  %v21492_v42 = vld [vmem:[#allocation83_spill] sm:$0xff] }
 0x82e   : > { %v17715_v2 = vsub.f32 %v6037_v22, %v21489_v18  ;;  %v5965_v40 = vadd.f32 %v17694_v25, %v13674_v20  ;;  %v5959_v52 = vpop.f32.mrb[173].mxu1  ;;  %v17720_v19 = vsel %vm6066_vm12, 1.0, %v21146_v44  ;;  %v6022_v57 = vmul.f32 0.9, %v21492_v42 }
 0x82f   : > { %v17726_v1 = vsub.f32 %v6036_v60, %v21491_v61  ;;  %v5960_v17 = vadd.f32 %v17694_v25, %v5959_v52  ;;  %13698 = vmatprep.mubr.msk.f32.mxu0 %vm2480_vm2, %v17720_v19  ;;  %v21493_v60 = vld [vmem:[#allocation16_spill] sm:$0xff]  ;;  %v21494_v52 = vld [vmem:[#allocation85_spill] sm:$0xff] }
 0x830   : > { %v6039_v48 = vadd.f32 %v6023_v11, %v5965_v40  ;;  %13699 = vmatmul.mubr.msk.f32.vlgmr.msra.gmra.mrb[120].mxu0 %vm2480_vm2, %v17723_v63  ;;  %vm6069_vm13 = vcmp.gt.f32.partialorder %v17715_v2, 1.0  ;;  %v6025_v61 = vmul.f32 0.9, %v21494_v52  ;;  %v21495_v11 = vld [vmem:[#allocation87_spill] sm:$0xff] }
 0x831   : > { %v6038_v22 = vadd.f32 %v6022_v57, %v5960_v17  ;;  %v13677_v20 = vpop.f32.mrb[174].mxu1  ;;  %vm6068_vm14 = vcmp.gt.f32.partialorder %v17726_v1, 1.0  ;;  %13723 = vmatpush3.msra.mxu0 %v17260_v59  ;;  %v6024_v59 = vmul.f32 0.9, %v21496_v21 }
 0x832   : > { %v17738_v18 = vsub.f32 %v6039_v48, %v21493_v60  ;;  %v5975_v33 = vadd.f32 %v17694_v25, %v13677_v20  ;;  %v5969_v42 = vpop.f32.mrb[175].mxu1  ;;  %v17743_v40 = vsel %vm6068_vm14, 1.0, %v21146_v44  ;;  %14349 = vmatprep.subr.bf16.mxu0 %v15231_v0  ;;  %v17754_v48 = vsel %vm6069_vm13, 1.0, %v21146_v44 }
 0x833   : > { %v17747_v17 = vsub.f32 %v6038_v22, %v21495_v11  ;;  %v5970_v57 = vadd.f32 %v17694_v25, %v5969_v42  ;;  %13701 = vmatprep.mubr.msk.f32.mxu0 %vm2480_vm2, %v17743_v40  ;;  %v21497_v22 = vld [vmem:[#allocation19_spill] sm:$0xff]  ;;  %v21498_v11 = vld [vmem:[#allocation20_spill] sm:$0xff] }
 0x834   : > { %v6041_v20 = vadd.f32 %v6025_v61, %v5975_v33  ;;  %13702 = vmatmul.mubr.msk.f32.gmra.mrb[122].mxu0 %vm2480_vm2, %v17754_v48  ;;  %vm6071_vm15 = vcmp.gt.f32.partialorder %v17738_v18, 1.0  ;;  %v6027_v39 = vmul.f32 0.9, %v21498_v11  ;;  %v21499_v33 = vld [vmem:[#allocation17_spill] sm:$0xff] }
 0x835   : > { %v6040_v60 = vadd.f32 %v6024_v59, %v5970_v57  ;;  %v13680_v52 = vpop.f32.mrb[176].mxu1  ;;  %vm6070_vm1 = vcmp.gt.f32.partialorder %v17747_v17, 1.0  ;;  %v21501_v57 = vld [vmem:[#allocation15_spill] sm:$0xff] }
 0x836   : > { %v17761_v42 = vsub.f32 %v6041_v20, %v21497_v22  ;;  %v5985_v21 = vadd.f32 %v17694_v25, %v13680_v52  ;;  %v5979_v27 = vpop.f32.mrb[177].mxu1  ;;  %v17766_v12 = vsel %vm6070_vm1, 1.0, %v21146_v44  ;;  %v6026_v59 = vmul.f32 0.9, %v21501_v57  ;;  %v21504_v57 = vld [vmem:[#allocation22_spill] sm:$0xff] }
 0x837   : > { %v17769_v61 = vsub.f32 %v6040_v60, %v21499_v33  ;;  %v5980_v31 = vadd.f32 %v17694_v25, %v5979_v27  ;;  %13704 = vmatprep.mubr.msk.f32.mxu0 %vm2480_vm2, %v17766_v12  ;;  %v17776_v20 = vsel %vm6071_vm15, 1.0, %v21146_v44  ;;  %v21502_v60 = vld [vmem:[#allocation21_spill] sm:$0xff]  ;;  %v6029_v49 = vmul.f32 0.9, %v21504_v57 }
 0x838   : > { %v6043_v52 = vadd.f32 %v6027_v39, %v5985_v21  ;;  %13705 = vmatmul.mubr.msk.f32.gmra.mrb[124].mxu0 %vm2480_vm2, %v17776_v20  ;;  %vm6073_vm3 = vcmp.gt.f32.partialorder %v17761_v42, 1.0  ;;  %v21506_v39 = vld [vmem:[#allocation18_spill] sm:$0xff] }
 0x839   : > { %21500 = vst [vmem:[#allocation73_spill] sm:$0xff] %v17769_v61  ;;  %v6042_v22 = vadd.f32 %v6026_v59, %v5980_v31  ;;  %v13683_v11 = vpop.f32.mrb[178].mxu1  ;;  %vm6072_vm4 = vcmp.gt.f32.partialorder %v17769_v61, 1.0  ;;  %v21508_v31 = vld [vmem:[#allocation24_spill] sm:$0xff] }
 0x83a   : > { %v17783_v27 = vsub.f32 %v6043_v52, %v21502_v60  ;;  %v5995_v33 = vadd.f32 %v17694_v25, %v13683_v11  ;;  %v5989_v23 = vpop.f32.mrb[179].mxu1  ;;  %v17788_v35 = vsel %vm6072_vm4, 1.0, %v21146_v44  ;;  %v6028_v59 = vmul.f32 0.9, %v21508_v31  ;;  %v21512_v31 = vld [vmem:[#allocation26_spill] sm:$0xff] }
 0x83b   : > { %21505 = vst [vmem:[#allocation75_spill] sm:$0xff] %v17788_v35  ;;  %v17791_v21 = vsub.f32 %v6042_v22, %v21506_v39  ;;  %v5990_v16 = vadd.f32 %v17694_v25, %v5989_v23  ;;  %13707 = vmatprep.mubr.msk.f32.mxu0 %vm2480_vm2, %v17788_v35  ;;  %v17798_v52 = vsel %vm6073_vm3, 1.0, %v21146_v44  ;;  %v21510_v22 = vld [vmem:[#allocation25_spill] sm:$0xff]  ;;  %v6031_v14 = vmul.f32 0.9, %v21512_v31 }
 0x83c   : > { %21503 = vst [vmem:[#allocation74_spill] sm:$0xff] %v17783_v27  ;;  %21509 = vst [vmem:[#allocation77_spill] sm:$0xff] %v17798_v52  ;;  %v6045_v11 = vadd.f32 %v6029_v49, %v5995_v33  ;;  %13708 = vmatmul.mubr.msk.f32.gmra.mrb[126].mxu0 %vm2480_vm2, %v17798_v52  ;;  %vm6075_vm5 = vcmp.gt.f32.partialorder %v17783_v27, 1.0  ;;  %v21514_v49 = vld [vmem:[#allocation23_spill] sm:$0xff] }
 0x83d   : > { %21507 = vst [vmem:[#allocation76_spill] sm:$0xff] %v17791_v21  ;;  %v6044_v60 = vadd.f32 %v6028_v59, %v5990_v16  ;;  %v13686_v57 = vpop.f32.mrb[180].mxu1  ;;  %vm6074_vm6 = vcmp.gt.f32.partialorder %v17791_v21, 1.0  ;;  %v21516_v16 = vld [vmem:[#allocation28_spill] sm:$0xff] }
 0x83e   : > { %v17805_v23 = vsub.f32 %v6045_v11, %v21510_v22  ;;  %v6005_v39 = vadd.f32 %v17694_v25, %v13686_v57  ;;  %v5999_v35 = vpop.f32.mrb[181].mxu1  ;;  %v17810_v61 = vsel %vm6074_vm6, 1.0, %v21146_v44  ;;  %v6030_v59 = vmul.f32 0.9, %v21516_v16  ;;  %v21519_v16 = vld [vmem:[#allocation30_spill] sm:$0xff] }
 0x83f   : > { %21513 = vst [vmem:[#allocation79_spill] sm:$0xff] %v17810_v61  ;;  %v17813_v33 = vsub.f32 %v6044_v60, %v21514_v49  ;;  %v6000_v27 = vadd.f32 %v17694_v25, %v5999_v35  ;;  %13710 = vmatprep.mubr.msk.f32.mxu0 %vm2480_vm2, %v17810_v61  ;;  %v17820_v11 = vsel %vm6075_vm5, 1.0, %v21146_v44  ;;  %v21517_v60 = vld [vmem:[#allocation29_spill] sm:$0xff]  ;;  %v6033_v61 = vmul.f32 0.9, %v21519_v16 }
 0x840   : > { %21511 = vst [vmem:[#allocation78_spill] sm:$0xff] %v17805_v23  ;;  %v6047_v57 = vadd.f32 %v6031_v14, %v6005_v39  ;;  %13711 = vmatmul.mubr.msk.f32.gmra.mrb[128].mxu0 %vm2480_vm2, %v17820_v11  ;;  %vm6077_vm8 = vcmp.gt.f32.partialorder %v17805_v23, 1.0  ;;  %v21521_v14 = vld [vmem:[#allocation27_spill] sm:$0xff] }
 0x841   : > { %21515 = vst [vmem:[#allocation80_spill] sm:$0xff] %v17813_v33  ;;  %v6046_v22 = vadd.f32 %v6030_v59, %v6000_v27  ;;  %v13689_v31 = vpop.f32.mrb[182].mxu1  ;;  %vm6076_vm9 = vcmp.gt.f32.partialorder %v17813_v33, 1.0  ;;  %v21522_v27 = vld [vmem:[#allocation32_spill] sm:$0xff] }
 0x842   : > { %v17827_v35 = vsub.f32 %v6047_v57, %v21517_v60  ;;  %v6015_v49 = vadd.f32 %v17694_v25, %v13689_v31  ;;  %v6009_v21 = vpop.f32.mrb[183].mxu1  ;;  %v17832_v52 = vsel %vm6076_vm9, 1.0, %v21146_v44  ;;  %v6032_v59 = vmul.f32 0.9, %v21522_v27 }
 0x843   : > { %21520 = vst [vmem:[#allocation81_spill] sm:$0xff] %v17832_v52  ;;  %v17835_v39 = vsub.f32 %v6046_v22, %v21521_v14  ;;  %v6010_v23 = vadd.f32 %v17694_v25, %v6009_v21  ;;  %13713 = vmatprep.mubr.msk.f32.mxu0 %vm2480_vm2, %v17832_v52  ;;  %v17842_v57 = vsel %vm6077_vm8, 1.0, %v21146_v44  ;;  %v21523_v22 = vld [vmem:[#allocation31_spill] sm:$0xff]  ;;  %v6887_v27 = vmul.f32 0.9, %v17368_v10 }
 0x844   : > { %21518 = vst [vmem:[#allocation84_spill] sm:$0xff] %v17827_v35  ;;  %v6049_v31 = vadd.f32 %v6033_v61, %v6015_v49  ;;  %13714 = vmatmul.mubr.msk.f32.gmra.mrb[130].mxu0 %vm2480_vm2, %v17842_v57  ;;  %vm6079_vm10 = vcmp.gt.f32.partialorder %v17827_v35, 1.0  ;;  %v21524_v61 = vld [vmem:[#allocation88_spill] sm:$0xff] }
 0x845   : > { %v6048_v60 = vadd.f32 %v6032_v59, %v6010_v23  ;;  %v13754_v16 = vpop.f32.mrb[184].mxu1  ;;  %vm6078_vm11 = vcmp.gt.f32.partialorder %v17835_v39, 1.0  ;;  %v6886_v23 = vmul.f32 0.9, %v17376_v34  ;;  %v17864_v59 = vsel %vm6079_vm10, 1.0, %v21146_v44 }
 0x846   : > { %v17849_v21 = vsub.f32 %v6049_v31, %v21523_v22  ;;  %v6813_v14 = vadd.f32 %v17406_v26, %v13754_v16  ;;  %v6807_v52 = vpop.f32.mrb[185].mxu1  ;;  %v17854_v33 = vsel %vm6078_vm11, 1.0, %v21146_v44 }
 0x847   : > { %v17857_v49 = vsub.f32 %v6048_v60, %v21524_v61  ;;  %v6808_v35 = vadd.f32 %v17406_v26, %v6807_v52  ;;  %13716 = vmatprep.mubr.msk.f32.mxu0 %vm2480_vm2, %v17854_v33  ;;  %v6889_v60 = vmul.f32 0.9, %v17390_v28 }
 0x848   : > { %v6903_v31 = vadd.f32 %v6887_v27, %v6813_v14  ;;  %13717 = vmatmul.mubr.msk.f32.gmra.mrb[132].mxu0 %vm2480_vm2, %v17864_v59  ;;  %vm6081_vm12 = vcmp.gt.f32.partialorder %v17849_v21, 1.0 }
 0x849   : > { %v6902_v10 = vadd.f32 %v6886_v23, %v6808_v35  ;;  %v13757_v16 = vpop.f32.mrb[186].mxu1  ;;  %vm6080_vm13 = vcmp.gt.f32.partialorder %v17857_v49, 1.0  ;;  %v6888_v35 = vmul.f32 0.9, %v17401_v36 }
 0x84a   : > { %v17871_v52 = vsub.f32 %v6903_v31, %v17398_v41  ;;  %v6823_v34 = vadd.f32 %v17406_v26, %v13757_v16  ;;  %v6817_v22 = vpop.f32.mrb[187].mxu1  ;;  %v17876_v61 = vsel %vm6080_vm13, 1.0, %v21146_v44  ;;  %v17886_v41 = vsel %vm6081_vm12, 1.0, %v21146_v44 }
 0x84b   : > { %v17879_v14 = vsub.f32 %v6902_v10, %v17395_v4  ;;  %v6818_v27 = vadd.f32 %v17406_v26, %v6817_v22  ;;  %13719 = vmatprep.mubr.msk.f32.mxu0 %vm2480_vm2, %v17876_v61  ;;  %v6891_v10 = vmul.f32 0.9, %v17418_v56 }
 0x84c   : > { %vm6935_vm14 = vcmp.gt.f32.partialorder %v17871_v52, 1.0  ;;  %v6905_v28 = vadd.f32 %v6889_v60, %v6823_v34  ;;  %13720 = vmatmul.mubr.msk.f32.gmra.mrb[134].mxu0 %vm2480_vm2, %v17886_v41 }
 0x84d   : > { %v6904_v23 = vadd.f32 %v6888_v35, %v6818_v27  ;;  %v13760_v31 = vpop.f32.mrb[188].mxu1  ;;  %vm6934_vm15 = vcmp.gt.f32.partialorder %v17879_v14, 1.0  ;;  %v17901_v34 = vsel %vm6935_vm14, 1.0, %v21146_v44  ;;  %v6890_v35 = vmul.f32 0.9, %v17427_v43 }
 0x84e   : > { %v17893_v4 = vsub.f32 %v6905_v28, %v17434_v3  ;;  %v6833_v36 = vadd.f32 %v17406_v26, %v13760_v31  ;;  %v6827_v16 = vpop.f32.mrb[189].mxu1  ;;  %v17898_v22 = vsel %vm6934_vm15, 1.0, %v21146_v44 }
 0x84f   : > { %v17904_v60 = vsub.f32 %v6904_v23, %v17423_v55  ;;  %v6828_v27 = vadd.f32 %v17406_v26, %v6827_v16  ;;  %13784 = vmatprep.mubr.msk.f32.mxu1 %vm2480_vm2, %v17898_v22  ;;  %v6893_v23 = vmul.f32 0.9, %v17441_v8 }
 0x850   : > { %v6907_v3 = vadd.f32 %v6891_v10, %v6833_v36  ;;  %13785 = vmatmul.mubr.msk.f32.vlgmr.msra.gmra.mrb[200].mxu1 %vm2480_vm2, %v17901_v34  ;;  %vm6937_vm1 = vcmp.gt.f32.partialorder %v17893_v4, 1.0 }
 0x851   : > { %v6906_v56 = vadd.f32 %v6890_v35, %v6828_v27  ;;  %14359 = vmatpush3.bf16.msra.mxu1 %v15102_v5  ;;  %v13763_v28 = vpop.f32.mrb[190].mxu1  ;;  %vm6936_vm3 = vcmp.gt.f32.partialorder %v17904_v60, 1.0  ;;  %v6892_v27 = vmul.f32 0.9, %v17449_v38 }
 0x852   : > { %v17916_v55 = vsub.f32 %v6907_v3, %v17456_v29  ;;  %v6843_v43 = vadd.f32 %v17406_v26, %v13763_v28  ;;  %v6837_v31 = vpop.f32.mrb[191].mxu1  ;;  %v17921_v36 = vsel %vm6936_vm3, 1.0, %v21146_v44  ;;  %14361 = vmatprep.subr.bf16.mxu1 %v21344_v62  ;;  %v17932_v29 = vsel %vm6937_vm1, 1.0, %v21146_v44 }
 0x853   : > { %v17925_v10 = vsub.f32 %v6906_v56, %v17446_v50  ;;  %v6838_v16 = vadd.f32 %v17406_v26, %v6837_v31  ;;  %13787 = vmatprep.mubr.msk.f32.mxu1 %vm2480_vm2, %v17921_v36  ;;  %v6895_v56 = vmul.f32 0.9, %v17463_v6 }
 0x854   : > { %v6909_v8 = vadd.f32 %v6893_v23, %v6843_v43  ;;  %13788 = vmatmul.mubr.msk.f32.gmra.mrb[202].mxu1 %vm2480_vm2, %v17932_v29  ;;  %vm6939_vm4 = vcmp.gt.f32.partialorder %v17916_v55, 1.0 }
 0x855   : > { %v6908_v35 = vadd.f32 %v6892_v27, %v6838_v16  ;;  %v13766_v3 = vpop.f32.mrb[192].mxu1  ;;  %vm6938_vm5 = vcmp.gt.f32.partialorder %v17925_v10, 1.0  ;;  %v6894_v16 = vmul.f32 0.9, %v17471_v7 }
 0x856   : > { %v17939_v50 = vsub.f32 %v6909_v8, %v17478_v15  ;;  %v6853_v38 = vadd.f32 %v17406_v26, %v13766_v3  ;;  %v6847_v28 = vpop.f32.mrb[193].mxu1  ;;  %v17944_v31 = vsel %vm6938_vm5, 1.0, %v21146_v44  ;;  %v17954_v15 = vsel %vm6939_vm4, 1.0, %v21146_v44 }
 0x857   : > { %v17947_v43 = vsub.f32 %v6908_v35, %v17468_v24  ;;  %v6848_v23 = vadd.f32 %v17406_v26, %v6847_v28  ;;  %13790 = vmatprep.mubr.msk.f32.mxu1 %vm2480_vm2, %v17944_v31  ;;  %v6897_v35 = vmul.f32 0.9, %v17485_v30 }
 0x858   : > { %v6911_v27 = vadd.f32 %v6895_v56, %v6853_v38  ;;  %13791 = vmatmul.mubr.msk.f32.gmra.mrb[204].mxu1 %vm2480_vm2, %v17954_v15  ;;  %vm6941_vm6 = vcmp.gt.f32.partialorder %v17939_v50, 1.0 }
 0x859   : > { %v6910_v6 = vadd.f32 %v6894_v16, %v6848_v23  ;;  %v13769_v8 = vpop.f32.mrb[194].mxu1  ;;  %vm6940_vm8 = vcmp.gt.f32.partialorder %v17947_v43, 1.0  ;;  %v6896_v23 = vmul.f32 0.9, %v17493_v58 }
 0x85a   : > { %v17961_v24 = vsub.f32 %v6911_v27, %v17500_v9  ;;  %v6863_v7 = vadd.f32 %v17406_v26, %v13769_v8  ;;  %v6857_v3 = vpop.f32.mrb[195].mxu1  ;;  %v17966_v28 = vsel %vm6940_vm8, 1.0, %v21146_v44  ;;  %v17976_v9 = vsel %vm6941_vm6, 1.0, %v21146_v44 }
 0x85b   : > { %v17969_v38 = vsub.f32 %v6910_v6, %v17490_v54  ;;  %v6858_v56 = vadd.f32 %v17406_v26, %v6857_v3  ;;  %13793 = vmatprep.mubr.msk.f32.mxu1 %vm2480_vm2, %v17966_v28  ;;  %v6899_v6 = vmul.f32 0.9, %v17507_v37 }
 0x85c   : > { %v6913_v16 = vadd.f32 %v6897_v35, %v6863_v7  ;;  %13794 = vmatmul.mubr.msk.f32.gmra.mrb[206].mxu1 %vm2480_vm2, %v17976_v9  ;;  %vm6943_vm9 = vcmp.gt.f32.partialorder %v17961_v24, 1.0 }
 0x85d   : > { %21525 = vst [vmem:[#allocation82_spill] sm:$0xff] %v17969_v38  ;;  %v6912_v30 = vadd.f32 %v6896_v23, %v6858_v56  ;;  %v13772_v27 = vpop.f32.mrb[196].mxu1  ;;  %vm6942_vm10 = vcmp.gt.f32.partialorder %v17969_v38, 1.0  ;;  %v6898_v56 = vmul.f32 0.9, %v17515_v32  ;;  %v21551_v38 = vld [vmem:[#allocation36_spill] sm:$0xff] }
 0x85e   : > { %v17983_v54 = vsub.f32 %v6913_v16, %v17522_v47  ;;  %v6873_v58 = vadd.f32 %v17406_v26, %v13772_v27  ;;  %v6867_v8 = vpop.f32.mrb[197].mxu1  ;;  %v17988_v3 = vsel %vm6942_vm10, 1.0, %v21146_v44  ;;  %v17998_v47 = vsel %vm6943_vm9, 1.0, %v21146_v44 }
 0x85f   : > { %21527 = vst [vmem:[#allocation16_spill] sm:$0xff] %v17988_v3  ;;  %v17991_v7 = vsub.f32 %v6912_v30, %v17512_v51  ;;  %v6868_v35 = vadd.f32 %v17406_v26, %v6867_v8  ;;  %13796 = vmatprep.mubr.msk.f32.mxu1 %vm2480_vm2, %v17988_v3  ;;  %21529 = vst [vmem:[#allocation87_spill] sm:$0xff] %v17998_v47  ;;  %v6901_v30 = vmul.f32 0.9, %v17529_v46 }
 0x860   : > { %21526 = vst [vmem:[#allocation83_spill] sm:$0xff] %v17983_v54  ;;  %v6915_v23 = vadd.f32 %v6899_v6, %v6873_v58  ;;  %13797 = vmatmul.mubr.msk.f32.gmra.mrb[208].mxu1 %vm2480_vm2, %v17998_v47  ;;  %vm6945_vm11 = vcmp.gt.f32.partialorder %v17983_v54, 1.0  ;;  %v21532_v58 = vld [vmem:[#allocation53_spill] sm:$0xff] }
 0x861   : > { %21528 = vst [vmem:[#allocation85_spill] sm:$0xff] %v17991_v7  ;;  %v6914_v37 = vadd.f32 %v6898_v56, %v6868_v35  ;;  %v13775_v16 = vpop.f32.mrb[198].mxu1  ;;  %vm6944_vm12 = vcmp.gt.f32.partialorder %v17991_v7, 1.0  ;;  %v21534_v35 = vld [vmem:[#allocation58_spill] sm:$0xff]  ;;  %v21549_v47 = vld [vmem:[#allocation89_spill] sm:$0xff] }
 0x862   : > { %v18005_v51 = vsub.f32 %v6915_v23, %v17540_v53  ;;  %v6883_v32 = vadd.f32 %v17406_v26, %v13775_v16  ;;  %v6877_v27 = vpop.f32.mrb[199].mxu1  ;;  %v18010_v8 = vsel %vm6944_vm12, 1.0, %v21146_v44  ;;  %v6900_v56 = vmul.f32 0.9, %v21534_v35 }
 0x863   : > { %21531 = vst [vmem:[#allocation19_spill] sm:$0xff] %v18010_v8  ;;  %v18013_v6 = vsub.f32 %v6914_v37, %v21532_v58  ;;  %v6878_v3 = vadd.f32 %v17406_v26, %v6877_v27  ;;  %13799 = vmatprep.mubr.msk.f32.mxu1 %vm2480_vm2, %v18010_v8  ;;  %v18020_v53 = vsel %vm6945_vm11, 1.0, %v21146_v44  ;;  %v21536_v26 = vld [vmem:[#allocation59_spill] sm:$0xff]  ;;  %v21547_v8 = vld [vmem:[#allocation38_spill] sm:$0xff] }
 0x864   : > { %21530 = vst [vmem:[#allocation86_spill] sm:$0xff] %v18005_v51  ;;  %21535 = vst [vmem:[#allocation17_spill] sm:$0xff] %v18020_v53  ;;  %v6917_v23 = vadd.f32 %v6901_v30, %v6883_v32  ;;  %13800 = vmatmul.mubr.msk.f32.gmra.mrb[210].mxu1 %vm2480_vm2, %v18020_v53  ;;  %vm6947_vm13 = vcmp.gt.f32.partialorder %v18005_v51, 1.0  ;;  %v21539_v27 = vld [vmem:[#allocation55_spill] sm:$0xff]  ;;  %v21548_v53 = vld [vmem:[#allocation90_spill] sm:$0xff] }
 0x865   : > { %21533 = vst [vmem:[#allocation20_spill] sm:$0xff] %v18013_v6  ;;  %v6916_v46 = vadd.f32 %v6900_v56, %v6878_v3  ;;  %vm6946_vm14 = vcmp.gt.f32.partialorder %v18013_v6, 1.0  ;;  %v18038_v32 = vsel %vm6947_vm13, 1.0, %v21146_v44  ;;  %v12071_v30 = vld [vmem:[%s15104_s6 + $0x280] sm:$0xff]  ;;  %v12072_v56 = vld [vmem:[%s15104_s6 + $0x288] sm:$0xff] }
 0x866   : > { %v18027_v37 = vsub.f32 %v6917_v23, %v21536_v26  ;;  %v18030_v16 = vsel %vm6946_vm14, 1.0, %v21146_v44  ;;  %21541 = vst [vmem:[#allocation18_spill] sm:$0xff] %v18038_v32  ;;  %v12073_v23 = vld [vmem:[%s15104_s6 + $0x290] sm:$0xff]  ;;  %v12075_v26 = vld [vmem:[%s15104_s6 + $0x2a0] sm:$0xff]  ;;  %v6294_v7 = vmul.f32 0.9, %v21548_v53 }
 0x867   : > { %21538 = vst [vmem:[#allocation21_spill] sm:$0xff] %v18030_v16  ;;  %v18033_v58 = vsub.f32 %v6916_v46, %v21539_v27  ;;  %13802 = vmatprep.mubr.msk.f32.mxu1 %vm2480_vm2, %v18030_v16  ;;  %v12074_v46 = vld [vmem:[%s15104_s6 + $0x298] sm:$0xff]  ;;  %v21544_v27 = vld [vmem:[#allocation5_spill] sm:$0xff] }
 0x868   : > { %21537 = vst [vmem:[#allocation15_spill] sm:$0xff] %v18027_v37  ;;  %13803 = vmatmul.mubr.msk.f32.gmra.mrb[212].mxu1 %vm2480_vm2, %v18038_v32  ;;  %vm6949_vm15 = vcmp.gt.f32.partialorder %v18027_v37, 1.0  ;;  %v21546_v37 = vld [vmem:[#allocation33_spill] sm:$0xff] }
 0x869   : > { %21540 = vst [vmem:[#allocation22_spill] sm:$0xff] %v18033_v58  ;;  %vm6948_vm1 = vcmp.gt.f32.partialorder %v18033_v58, 1.0  ;;  %v18051_v35 = vsel %vm6949_vm15, 1.0, %v21146_v44  ;;  %v21554_v53 = vld [vmem:[#allocation37_spill] sm:$0xff] }
 0x86a   : > { %v18045_v3 = vsel %vm6948_vm1, 1.0, %v21146_v44  ;;  %21543 = vst [vmem:[#allocation25_spill] sm:$0xff] %v18051_v35 }
 0x86b   : > { %21542 = vst [vmem:[#allocation24_spill] sm:$0xff] %v18045_v3  ;;  %13805 = vmatprep.mubr.msk.f32.mxu1 %vm2480_vm2, %v18045_v3  ;;  %v12079_v3 = vld [vmem:[%s15104_s6 + $0x2c0] sm:$0xff] }
 0x86c   : > { %13806 = vmatmul.mubr.msk.f32.gmra.mrb[214].mxu1 %vm2480_vm2, %v18051_v35  ;;  %v12083_v35 = vld [vmem:[%s15104_s6 + $0x2e0] sm:$0xff] }
 0x86d   : > { %13870 = vmatprep.mubr.msk.f32.mxu1 %vm1243_vm0, %v12071_v30  ;;  %v12076_v30 = vld [vmem:[%s15104_s6 + $0x2a8] sm:$0xff] }
 0x870   : > { %13871 = vmatmul.mubr.msk.f32.vlgmr.msra.gmra.mrb[216].mxu1 %vm1243_vm0, %v12072_v56  ;;  %v12077_v56 = vld [vmem:[%s15104_s6 + $0x2b0] sm:$0xff] }
 0x871   : > { %13873 = vmatprep.mubr.msk.f32.mxu1 %vm1243_vm0, %v12073_v23  ;;  %14363 = vmatpush3.bf16.msra.mxu1 %v21344_v62  ;;  %v12078_v23 = vld [vmem:[%s15104_s6 + $0x2b8] sm:$0xff] }
 0x872   : > { %14365 = vmatprep.subr.bf16.mxu1 %v21544_v27 }
 0x874   : > { %13874 = vmatmul.mubr.msk.f32.gmra.mrb[218].mxu1 %vm1243_vm0, %v12074_v46  ;;  %v12080_v46 = vld [vmem:[%s15104_s6 + $0x2c8] sm:$0xff] }
 0x875   : > { %13876 = vmatprep.mubr.msk.f32.mxu1 %vm1243_vm0, %v12075_v26  ;;  %14367 = vmatpush3.bf16.msra.mxu1 %v21544_v27  ;;  %v12081_v26 = vld [vmem:[%s15104_s6 + $0x2d0] sm:$0xff]  ;;  %v12082_v27 = vld [vmem:[%s15104_s6 + $0x2d8] sm:$0xff] }
 0x876   : > { %14377 = vmatprep.subr.bf16.mxu1 %v15102_v5 }
 0x878   : > { %13877 = vmatmul.mubr.msk.f32.gmra.mrb[220].mxu1 %vm1243_vm0, %v12076_v30  ;;  %v12084_v30 = vld [vmem:[%s15104_s6 + $0x2e8] sm:$0xff] }
 0x879   : > { %13879 = vmatprep.mubr.msk.f32.mxu1 %vm1243_vm0, %v12077_v56  ;;  %v12085_v56 = vld [vmem:[%s15104_s6 + $0x2f0] sm:$0xff] }
 0x87c   : > { %13880 = vmatmul.mubr.msk.f32.gmra.mrb[222].mxu1 %vm1243_vm0, %v12078_v23  ;;  %v12086_v23 = vld [vmem:[%s15104_s6 + $0x2f8] sm:$0xff] }
 0x87d   : > { %13882 = vmatprep.mubr.msk.f32.mxu1 %vm1243_vm0, %v12079_v3 }
 0x880   : > { %13883 = vmatmul.mubr.msk.f32.gmra.mrb[224].mxu1 %vm1243_vm0, %v12080_v46  ;;  %v18093_v46 = vld [vmem:[%s20679_s1 + $0x8b] ss:$0 sm:$0xff] }
 0x881   : > { %13885 = vmatprep.mubr.msk.f32.mxu1 %vm1243_vm0, %v12081_v26 }
 0x884   : > { %13886 = vmatmul.mubr.msk.f32.gmra.mrb[226].mxu1 %vm1243_vm0, %v12082_v27  ;;  %v21545_v27 = vld [vmem:[#allocation34_spill] sm:$0xff] }
 0x885   : > { %13888 = vmatprep.mubr.msk.f32.mxu1 %vm1243_vm0, %v12083_v35  ;;  %v6292_v58 = vmul.f32 0.9, %v21545_v27 }
 0x888   : > { %13889 = vmatmul.mubr.msk.f32.gmra.mrb[228].mxu1 %vm1243_vm0, %v12084_v30  ;;  %v6291_v30 = vmul.f32 0.9, %v21546_v37 }
 0x889   : > { %13891 = vmatprep.mubr.msk.f32.mxu1 %vm1243_vm0, %v12085_v56 }
 0x88c   : > { %13892 = vmatmul.mubr.msk.f32.gmra.mrb[230].mxu1 %vm1243_vm0, %v12086_v23 }
 0x903   : > { %v13700_v3 = vpop.f32.mrb[120].mxu0 }
 0x904   : > { %v6218_v26 = vadd.f32 %v18093_v46, %v13700_v3  ;;  %v6212_v35 = vpop.f32.mrb[121].mxu0 }
 0x905   : > { %v6213_v16 = vadd.f32 %v18093_v46, %v6212_v35  ;;  %v6293_v35 = vmul.f32 0.9, %v21551_v38 }
 0x906   : > { %v6308_v32 = vadd.f32 %v6292_v58, %v6218_v26  ;;  %v6296_v26 = vmul.f32 0.9, %v21554_v53 }
 0x907   : > { %v6307_v56 = vadd.f32 %v6291_v30, %v6213_v16  ;;  %v13703_v6 = vpop.f32.mrb[122].mxu0 }
 0x908   : > { %v18100_v23 = vsub.f32 %v6308_v32, %v21547_v8  ;;  %v6228_v51 = vadd.f32 %v18093_v46, %v13703_v6  ;;  %v6222_v54 = vpop.f32.mrb[123].mxu0  ;;  %v21552_v8 = vld [vmem:[#allocation39_spill] sm:$0xff] }
 0x909   : > { %v18105_v3 = vsub.f32 %v6307_v56, %v21549_v47  ;;  %v6223_v27 = vadd.f32 %v18093_v46, %v6222_v54  ;;  %v21557_v54 = vld [vmem:[#allocation41_spill] sm:$0xff]  ;;  %v21559_v56 = vld [vmem:[#allocation46_spill] sm:$0xff] }
 0x90a   : > { %vm6340_vm3 = vcmp.gt.f32.partialorder %v18100_v23, 1.0  ;;  %v6310_v37 = vadd.f32 %v6294_v7, %v6228_v51 }
 0x90b   : > { %21550 = vst [vmem:[#allocation26_spill] sm:$0xff] %v18105_v3  ;;  %v6309_v16 = vadd.f32 %v6293_v35, %v6223_v27  ;;  %v13706_v58 = vpop.f32.mrb[124].mxu0  ;;  %vm6339_vm4 = vcmp.gt.f32.partialorder %v18105_v3, 1.0  ;;  %v18120_v38 = vsel %vm6340_vm3, 1.0, %v21146_v44  ;;  %v6295_v27 = vmul.f32 0.9, %v21559_v56 }
 0x90c   : > { %v18112_v32 = vsub.f32 %v6310_v37, %v21552_v8  ;;  %v6238_v6 = vadd.f32 %v18093_v46, %v13706_v58  ;;  %v6232_v47 = vpop.f32.mrb[125].mxu0  ;;  %v18117_v30 = vsel %vm6339_vm4, 1.0, %v21146_v44  ;;  %21556 = vst [vmem:[#allocation29_spill] sm:$0xff] %v18120_v38 }
 0x90d   : > { %21555 = vst [vmem:[#allocation28_spill] sm:$0xff] %v18117_v30  ;;  %v18123_v7 = vsub.f32 %v6309_v16, %v21557_v54  ;;  %v6233_v51 = vadd.f32 %v18093_v46, %v6232_v47  ;;  %13724 = vmatprep.mubr.msk.f32.mxu0 %vm3011_vm7, %v18117_v30  ;;  %v21560_v16 = vld [vmem:[#allocation43_spill] sm:$0xff]  ;;  %v21562_v47 = vld [vmem:[#allocation40_spill] sm:$0xff]  ;;  %v21565_v30 = vld [vmem:[#allocation42_spill] sm:$0xff] }
 0x90e   : > { %21553 = vst [vmem:[#allocation23_spill] sm:$0xff] %v18112_v32  ;;  %v6312_v35 = vadd.f32 %v6296_v26, %v6238_v6  ;;  %13725 = vmatmul.mubr.msk.f32.vlgmr.msra.gmra.mrb[48].mxu0 %vm3011_vm7, %v18120_v38  ;;  %vm6342_vm5 = vcmp.gt.f32.partialorder %v18112_v32, 1.0  ;;  %v6298_v54 = vmul.f32 0.9, %v21562_v47  ;;  %v21564_v26 = vld [vmem:[#allocation14_spill] sm:$0xff]  ;;  %v21567_v32 = vld [vmem:[#allocation35_spill] sm:$0xff] }
 0x90f   : > { %21558 = vst [vmem:[#allocation30_spill] sm:$0xff] %v18123_v7  ;;  %v6311_v37 = vadd.f32 %v6295_v27, %v6233_v51  ;;  %14351 = vmatpush3.bf16.msra.mxu0 %v15231_v0  ;;  %v13709_v58 = vpop.f32.mrb[126].mxu0  ;;  %vm6341_vm6 = vcmp.gt.f32.partialorder %v18123_v7, 1.0  ;;  %v6297_v7 = vmul.f32 0.9, %v21567_v32 }
 0x910   : > { %v18135_v8 = vsub.f32 %v6312_v35, %v21560_v16  ;;  %v6248_v53 = vadd.f32 %v18093_v46, %v13709_v58  ;;  %v6242_v56 = vpop.f32.mrb[127].mxu0  ;;  %v18140_v6 = vsel %vm6341_vm6, 1.0, %v21146_v44  ;;  %14353 = vmatprep.subr.bf16.mxu0 %v21564_v26  ;;  %v18151_v35 = vsel %vm6342_vm5, 1.0, %v21146_v44 }
 0x911   : > { %21563 = vst [vmem:[#allocation32_spill] sm:$0xff] %v18140_v6  ;;  %v18144_v51 = vsub.f32 %v6311_v37, %v21565_v30  ;;  %v6243_v27 = vadd.f32 %v18093_v46, %v6242_v56  ;;  %13727 = vmatprep.mubr.msk.f32.mxu0 %vm3011_vm7, %v18140_v6  ;;  %21568 = vst [vmem:[#allocation88_spill] sm:$0xff] %v18151_v35  ;;  %v21569_v30 = vld [vmem:[#allocation50_spill] sm:$0xff]  ;;  %v21571_v56 = vld [vmem:[#allocation44_spill] sm:$0xff] }
 0x912   : > { %21561 = vst [vmem:[#allocation27_spill] sm:$0xff] %v18135_v8  ;;  %v6314_v58 = vadd.f32 %v6298_v54, %v6248_v53  ;;  %13728 = vmatmul.mubr.msk.f32.gmra.mrb[50].mxu0 %vm3011_vm7, %v18151_v35  ;;  %vm6344_vm8 = vcmp.gt.f32.partialorder %v18135_v8, 1.0  ;;  %v6300_v6 = vmul.f32 0.9, %v21571_v56  ;;  %v21573_v54 = vld [vmem:[#allocation45_spill] sm:$0xff] }
 0x913   : > { %21566 = vst [vmem:[#allocation31_spill] sm:$0xff] %v18144_v51  ;;  %v6313_v16 = vadd.f32 %v6297_v7, %v6243_v27  ;;  %v13712_v47 = vpop.f32.mrb[128].mxu0  ;;  %vm6343_vm9 = vcmp.gt.f32.partialorder %v18144_v51, 1.0  ;;  %14355 = vmatpush3.bf16.msra.mxu0 %v21564_v26  ;;  %v18169_v7 = vld [vmem:[%s20679_s1 + $0x40] sm:$0xff]  ;;  %v18182_v56 = vsel %vm6344_vm8, 1.0, %v21146_v44 }
 0x914   : > { %v18159_v32 = vsub.f32 %v6314_v58, %v21569_v30  ;;  %v6258_v37 = vadd.f32 %v18093_v46, %v13712_v47  ;;  %v6252_v38 = vpop.f32.mrb[129].mxu0  ;;  %v18164_v53 = vsel %vm6343_vm9, 1.0, %v21146_v44  ;;  %13840 = vmatprep.subr.mxu0 %v18169_v7  ;;  %v21575_v30 = vld [vmem:[#allocation49_spill] sm:$0xff]  ;;  %21576 = vst [vmem:[#allocation55_spill] sm:$0xff] %v18182_v56  ;;  %v21579_v51 = vld [vmem:[#allocation47_spill] sm:$0xff] }
 0x915   : > { %21572 = vst [vmem:[#allocation58_spill] sm:$0xff] %v18164_v53  ;;  %v18173_v27 = vsub.f32 %v6313_v16, %v21573_v54  ;;  %v6253_v58 = vadd.f32 %v18093_v46, %v6252_v38  ;;  %v6299_v47 = vmul.f32 0.9, %v21575_v30  ;;  %13730 = vmatprep.mubr.msk.f32.mxu0 %vm3011_vm7, %v18164_v53  ;;  %v21577_v38 = vld [vmem:[#allocation51_spill] sm:$0xff]  ;;  %v6302_v35 = vmul.f32 0.9, %v21579_v51 }
 0x916   : > { %21570 = vst [vmem:[#allocation53_spill] sm:$0xff] %v18159_v32  ;;  %v6316_v26 = vadd.f32 %v6300_v6, %v6258_v37  ;;  %13731 = vmatmul.mubr.msk.f32.gmra.mrb[52].mxu0 %vm3011_vm7, %v18182_v56  ;;  %vm6346_vm10 = vcmp.gt.f32.partialorder %v18159_v32, 1.0  ;;  %v21581_v6 = vld [vmem:[#allocation48_spill] sm:$0xff] }
 0x917   : > { %21574 = vst [vmem:[#allocation59_spill] sm:$0xff] %v18173_v27  ;;  %v6315_v16 = vadd.f32 %v6299_v47, %v6253_v58  ;;  %v13715_v54 = vpop.f32.mrb[130].mxu0  ;;  %vm6345_vm11 = vcmp.gt.f32.partialorder %v18173_v27, 1.0  ;;  %v21583_v58 = vld [vmem:[#allocation54_spill] sm:$0xff] }
 0x918   : > { %v18189_v30 = vsub.f32 %v6316_v26, %v21577_v38  ;;  %v6268_v53 = vadd.f32 %v18093_v46, %v13715_v54  ;;  %v6262_v8 = vpop.f32.mrb[131].mxu0  ;;  %v18194_v3 = vsel %vm6345_vm11, 1.0, %v21146_v44  ;;  %v6301_v47 = vmul.f32 0.9, %v21583_v58  ;;  %v21587_v58 = vld [vmem:[#allocation52_spill] sm:$0xff] }
 0x919   : > { %21580 = vst [vmem:[#allocation33_spill] sm:$0xff] %v18194_v3  ;;  %v18197_v37 = vsub.f32 %v6315_v16, %v21581_v6  ;;  %v6263_v32 = vadd.f32 %v18093_v46, %v6262_v8  ;;  %13733 = vmatprep.mubr.msk.f32.mxu0 %vm3011_vm7, %v18194_v3  ;;  %v18204_v26 = vsel %vm6346_vm10, 1.0, %v21146_v44  ;;  %v21585_v16 = vld [vmem:[#allocation94_spill] sm:$0xff]  ;;  %v6304_v3 = vmul.f32 0.9, %v21587_v58 }
 0x91a   : > { %21578 = vst [vmem:[#allocation34_spill] sm:$0xff] %v18189_v30  ;;  %21584 = vst [vmem:[#allocation90_spill] sm:$0xff] %v18204_v26  ;;  %v6318_v54 = vadd.f32 %v6302_v35, %v6268_v53  ;;  %13734 = vmatmul.mubr.msk.f32.gmra.mrb[54].mxu0 %vm3011_vm7, %v18204_v26  ;;  %vm6348_vm12 = vcmp.gt.f32.partialorder %v18189_v30, 1.0  ;;  %v21589_v35 = vld [vmem:[#allocation92_spill] sm:$0xff] }
 0x91b   : > { %21582 = vst [vmem:[#allocation38_spill] sm:$0xff] %v18197_v37  ;;  %v6317_v51 = vadd.f32 %v6301_v47, %v6263_v32  ;;  %v13718_v38 = vpop.f32.mrb[132].mxu0  ;;  %vm6347_vm13 = vcmp.gt.f32.partialorder %v18197_v37, 1.0  ;;  %v21590_v32 = vld [vmem:[#allocation93_spill] sm:$0xff] }
 0x91c   : > { %v18211_v8 = vsub.f32 %v6318_v54, %v21585_v16  ;;  %v6278_v6 = vadd.f32 %v18093_v46, %v13718_v38  ;;  %v6272_v27 = vpop.f32.mrb[133].mxu0  ;;  %v18216_v56 = vsel %vm6347_vm13, 1.0, %v21146_v44  ;;  %v6303_v47 = vmul.f32 0.9, %v21590_v32  ;;  %v21593_v32 = vld [vmem:[#allocation95_spill] sm:$0xff] }
 0x91d   : > { %21588 = vst [vmem:[#allocation36_spill] sm:$0xff] %v18216_v56  ;;  %v18219_v53 = vsub.f32 %v6317_v51, %v21589_v35  ;;  %v6273_v30 = vadd.f32 %v18093_v46, %v6272_v27  ;;  %13736 = vmatprep.mubr.msk.f32.mxu0 %vm3011_vm7, %v18216_v56  ;;  %v18226_v54 = vsel %vm6348_vm12, 1.0, %v21146_v44  ;;  %v21591_v51 = vld [vmem:[#allocation98_spill] sm:$0xff]  ;;  %v6306_v56 = vmul.f32 0.9, %v21593_v32 }
 0x91e   : > { %21586 = vst [vmem:[#allocation89_spill] sm:$0xff] %v18211_v8  ;;  %v6320_v38 = vadd.f32 %v6304_v3, %v6278_v6  ;;  %13737 = vmatmul.mubr.msk.f32.gmra.mrb[56].mxu0 %vm3011_vm7, %v18226_v54  ;;  %vm6350_vm14 = vcmp.gt.f32.partialorder %v18211_v8, 1.0  ;;  %v21595_v3 = vld [vmem:[#allocation96_spill] sm:$0xff] }
 0x91f   : > { %v6319_v16 = vadd.f32 %v6303_v47, %v6273_v30  ;;  %v13721_v58 = vpop.f32.mrb[134].mxu0  ;;  %vm6349_vm15 = vcmp.gt.f32.partialorder %v18219_v53, 1.0  ;;  %v21596_v30 = vld [vmem:[#allocation97_spill] sm:$0xff] }
 0x920   : > { %v18233_v27 = vsub.f32 %v6320_v38, %v21591_v51  ;;  %v6288_v35 = vadd.f32 %v18093_v46, %v13721_v58  ;;  %v6282_v37 = vpop.f32.mrb[135].mxu0  ;;  %v18238_v26 = vsel %vm6349_vm15, 1.0, %v21146_v44  ;;  %v6305_v47 = vmul.f32 0.9, %v21596_v30 }
 0x921   : > { %21594 = vst [vmem:[#allocation37_spill] sm:$0xff] %v18238_v26  ;;  %v18241_v6 = vsub.f32 %v6319_v16, %v21595_v3  ;;  %v6283_v8 = vadd.f32 %v18093_v46, %v6282_v37  ;;  %13739 = vmatprep.mubr.msk.f32.mxu0 %vm3011_vm7, %v18238_v26  ;;  %v18248_v38 = vsel %vm6350_vm14, 1.0, %v21146_v44  ;;  %v21597_v16 = vld [vmem:[#allocation100_spill] sm:$0xff]  ;;  %v7160_v3 = vmul.f32 0.9, %v17703_v45 }
 0x922   : > { %21592 = vst [vmem:[#allocation39_spill] sm:$0xff] %v18233_v27  ;;  %v6322_v58 = vadd.f32 %v6306_v56, %v6288_v35  ;;  %13740 = vmatmul.mubr.msk.f32.gmra.mrb[58].mxu0 %vm3011_vm7, %v18248_v38  ;;  %vm6352_vm1 = vcmp.gt.f32.partialorder %v18233_v27, 1.0  ;;  %v21598_v56 = vld [vmem:[#allocation99_spill] sm:$0xff] }
 0x923   : > { %v6321_v51 = vadd.f32 %v6305_v47, %v6283_v8  ;;  %v13786_v32 = vpop.f32.mrb[200].mxu1  ;;  %vm6351_vm3 = vcmp.gt.f32.partialorder %v18241_v6, 1.0  ;;  %v7159_v8 = vmul.f32 0.9, %v17708_v13  ;;  %v18270_v47 = vsel %vm6352_vm1, 1.0, %v21146_v44 }
 0x924   : > { %v18255_v46 = vsub.f32 %v6322_v58, %v21597_v16  ;;  %v7086_v37 = vadd.f32 %v17694_v25, %v13786_v32  ;;  %v7080_v30 = vpop.f32.mrb[201].mxu1  ;;  %v18260_v26 = vsel %vm6351_vm3, 1.0, %v21146_v44  ;;  %v7162_v16 = vmul.f32 0.9, %v17715_v2 }
 0x925   : > { %v18263_v35 = vsub.f32 %v6321_v51, %v21598_v56  ;;  %v7081_v27 = vadd.f32 %v17694_v25, %v7080_v30  ;;  %13742 = vmatprep.mubr.msk.f32.mxu0 %vm3011_vm7, %v18260_v26 }
 0x926   : > { %v7176_v58 = vadd.f32 %v7160_v3, %v7086_v37  ;;  %13743 = vmatmul.mubr.msk.f32.gmra.mrb[60].mxu0 %vm3011_vm7, %v18270_v47  ;;  %vm6354_vm4 = vcmp.gt.f32.partialorder %v18255_v46, 1.0 }
 0x927   : > { %v7175_v45 = vadd.f32 %v7159_v8, %v7081_v27  ;;  %v13789_v32 = vpop.f32.mrb[202].mxu1  ;;  %vm6353_vm5 = vcmp.gt.f32.partialorder %v18263_v35, 1.0  ;;  %v7161_v27 = vmul.f32 0.9, %v17726_v1 }
 0x928   : > { %v18277_v51 = vsub.f32 %v7176_v58, %v17723_v63  ;;  %v7096_v13 = vadd.f32 %v17694_v25, %v13789_v32  ;;  %v7090_v30 = vpop.f32.mrb[203].mxu1  ;;  %v18282_v56 = vsel %vm6353_vm5, 1.0, %v21146_v44  ;;  %v18292_v63 = vsel %vm6354_vm4, 1.0, %v21146_v44 }
 0x929   : > { %v18285_v37 = vsub.f32 %v7175_v45, %v17720_v19  ;;  %v7091_v3 = vadd.f32 %v17694_v25, %v7090_v30  ;;  %13745 = vmatprep.mubr.msk.f32.mxu0 %vm3011_vm7, %v18282_v56  ;;  %v7164_v45 = vmul.f32 0.9, %v17738_v18 }
 0x92a   : > { %vm7208_vm6 = vcmp.gt.f32.partialorder %v18277_v51, 1.0  ;;  %v7178_v2 = vadd.f32 %v7162_v16, %v7096_v13  ;;  %13746 = vmatmul.mubr.msk.f32.gmra.mrb[62].mxu0 %vm3011_vm7, %v18292_v63 }
 0x92b   : > { %v7177_v8 = vadd.f32 %v7161_v27, %v7091_v3  ;;  %v13792_v58 = vpop.f32.mrb[204].mxu1  ;;  %vm7207_vm8 = vcmp.gt.f32.partialorder %v18285_v37, 1.0  ;;  %v18307_v13 = vsel %vm7208_vm6, 1.0, %v21146_v44  ;;  %v7163_v27 = vmul.f32 0.9, %v17747_v17 }
 0x92c   : > { %v18299_v19 = vsub.f32 %v7178_v2, %v17754_v48  ;;  %v7106_v1 = vadd.f32 %v17694_v25, %v13792_v58  ;;  %v7100_v32 = vpop.f32.mrb[205].mxu1  ;;  %v18304_v30 = vsel %vm7207_vm8, 1.0, %v21146_v44 }
 0x92d   : > { %v18310_v16 = vsub.f32 %v7177_v8, %v17743_v40  ;;  %v7101_v3 = vadd.f32 %v17694_v25, %v7100_v32  ;;  %13816 = vmatprep.mubr.msk.f32.mxu0 %vm2480_vm2, %v18304_v30  ;;  %v7166_v8 = vmul.f32 0.9, %v17761_v42 }
 0x92e   : > { %v7180_v48 = vadd.f32 %v7164_v45, %v7106_v1  ;;  %13817 = vmatmul.mubr.msk.f32.vlgmr.msra.gmra.mrb[136].mxu0 %vm2480_vm2, %v18307_v13  ;;  %vm7210_vm9 = vcmp.gt.f32.partialorder %v18299_v19, 1.0 }
 0x92f   : > { %21599 = vst [vmem:[#allocation41_spill] sm:$0xff] %v18310_v16  ;;  %v7179_v18 = vadd.f32 %v7163_v27, %v7101_v3  ;;  %v13795_v2 = vpop.f32.mrb[206].mxu1  ;;  %vm7209_vm10 = vcmp.gt.f32.partialorder %v18310_v16, 1.0  ;;  %13841 = vmatpush3.msra.mxu0 %v18169_v7  ;;  %v21603_v3 = vld [vmem:[#allocation73_spill] sm:$0xff] }
 0x930   : > { %v18322_v40 = vsub.f32 %v7180_v48, %v17776_v20  ;;  %v7116_v17 = vadd.f32 %v17694_v25, %v13795_v2  ;;  %v7110_v58 = vpop.f32.mrb[207].mxu1  ;;  %v18327_v1 = vsel %vm7209_vm10, 1.0, %v21146_v44  ;;  %14369 = vmatprep.subr.bf16.mxu0 %v15231_v0  ;;  %v7165_v7 = vmul.f32 0.9, %v21603_v3 }
 0x931   : > { %21601 = vst [vmem:[#allocation43_spill] sm:$0xff] %v18327_v1  ;;  %v18331_v45 = vsub.f32 %v7179_v18, %v17766_v12  ;;  %v7111_v32 = vadd.f32 %v17694_v25, %v7110_v58  ;;  %13819 = vmatprep.mubr.msk.f32.mxu0 %vm2480_vm2, %v18327_v1  ;;  %v18338_v20 = vsel %vm7210_vm9, 1.0, %v21146_v44  ;;  %v21604_v12 = vld [vmem:[#allocation77_spill] sm:$0xff]  ;;  %v21606_v58 = vld [vmem:[#allocation74_spill] sm:$0xff] }
 0x932   : > { %21600 = vst [vmem:[#allocation46_spill] sm:$0xff] %v18322_v40  ;;  %v7182_v42 = vadd.f32 %v7166_v8, %v7116_v17  ;;  %13820 = vmatmul.mubr.msk.f32.gmra.mrb[138].mxu0 %vm2480_vm2, %v18338_v20  ;;  %vm7212_vm11 = vcmp.gt.f32.partialorder %v18322_v40, 1.0  ;;  %v7168_v3 = vmul.f32 0.9, %v21606_v58  ;;  %v21608_v17 = vld [vmem:[#allocation75_spill] sm:$0xff] }
 0x933   : > { %21602 = vst [vmem:[#allocation40_spill] sm:$0xff] %v18331_v45  ;;  %v7181_v27 = vadd.f32 %v7165_v7, %v7111_v32  ;;  %v13798_v48 = vpop.f32.mrb[208].mxu1  ;;  %vm7211_vm12 = vcmp.gt.f32.partialorder %v18331_v45, 1.0  ;;  %v21609_v32 = vld [vmem:[#allocation76_spill] sm:$0xff] }
 0x934   : > { %v18345_v18 = vsub.f32 %v7182_v42, %v21604_v12  ;;  %v7126_v2 = vadd.f32 %v17694_v25, %v13798_v48  ;;  %v7120_v1 = vpop.f32.mrb[209].mxu1  ;;  %v18350_v16 = vsel %vm7211_vm12, 1.0, %v21146_v44  ;;  %v7167_v7 = vmul.f32 0.9, %v21609_v32 }
 0x935   : > { %21607 = vst [vmem:[#allocation35_spill] sm:$0xff] %v18350_v16  ;;  %v18353_v8 = vsub.f32 %v7181_v27, %v21608_v17  ;;  %v7121_v40 = vadd.f32 %v17694_v25, %v7120_v1  ;;  %13822 = vmatprep.mubr.msk.f32.mxu0 %vm2480_vm2, %v18350_v16  ;;  %v18360_v42 = vsel %vm7212_vm11, 1.0, %v21146_v44  ;;  %v21610_v17 = vld [vmem:[#allocation78_spill] sm:$0xff] }
 0x936   : > { %21605 = vst [vmem:[#allocation42_spill] sm:$0xff] %v18345_v18  ;;  %v7184_v48 = vadd.f32 %v7168_v3, %v7126_v2  ;;  %13823 = vmatmul.mubr.msk.f32.gmra.mrb[140].mxu0 %vm2480_vm2, %v18360_v42  ;;  %vm7214_vm13 = vcmp.gt.f32.partialorder %v18345_v18, 1.0  ;;  %v7170_v32 = vmul.f32 0.9, %v21610_v17  ;;  %v21612_v2 = vld [vmem:[#allocation79_spill] sm:$0xff] }
 0x937   : > { %v7183_v12 = vadd.f32 %v7167_v7, %v7121_v40  ;;  %v13801_v58 = vpop.f32.mrb[210].mxu1  ;;  %vm7213_vm14 = vcmp.gt.f32.partialorder %v18353_v8, 1.0  ;;  %v21614_v40 = vld [vmem:[#allocation80_spill] sm:$0xff] }
 0x938   : > { %v18367_v1 = vsub.f32 %v7184_v48, %v17820_v11  ;;  %v7136_v27 = vadd.f32 %v17694_v25, %v13801_v58  ;;  %v7130_v16 = vpop.f32.mrb[211].mxu1  ;;  %v18372_v45 = vsel %vm7213_vm14, 1.0, %v21146_v44  ;;  %v7169_v7 = vmul.f32 0.9, %v21614_v40 }
 0x939   : > { %21611 = vst [vmem:[#allocation50_spill] sm:$0xff] %v18372_v45  ;;  %v18375_v3 = vsub.f32 %v7183_v12, %v21612_v2  ;;  %v7131_v18 = vadd.f32 %v17694_v25, %v7130_v16  ;;  %13825 = vmatprep.mubr.msk.f32.mxu0 %vm2480_vm2, %v18372_v45  ;;  %v18382_v11 = vsel %vm7214_vm13, 1.0, %v21146_v44  ;;  %v18394_v16 = vld [vmem:[%s20679_s1 + $0x89] ss:$0 sm:$0xff] }
 0x93a   : > { %v7186_v48 = vadd.f32 %v7170_v32, %v7136_v27  ;;  %13826 = vmatmul.mubr.msk.f32.gmra.mrb[142].mxu0 %vm2480_vm2, %v18382_v11  ;;  %vm7216_vm15 = vcmp.gt.f32.partialorder %v18367_v1, 1.0  ;;  %v21615_v27 = vld [vmem:[#allocation84_spill] sm:$0xff] }
 0x93b   : > { %21613 = vst [vmem:[#allocation44_spill] sm:$0xff] %v18375_v3  ;;  %v7185_v58 = vadd.f32 %v7169_v7, %v7131_v18  ;;  %v13804_v17 = vpop.f32.mrb[212].mxu1  ;;  %vm7215_vm1 = vcmp.gt.f32.partialorder %v18375_v3, 1.0  ;;  %v7172_v32 = vmul.f32 0.9, %v21615_v27  ;;  %v21617_v18 = vld [vmem:[#allocation81_spill] sm:$0xff] }
 0x93c   : > { %v18389_v25 = vsub.f32 %v7186_v48, %v17842_v57  ;;  %v7146_v12 = vadd.f32 %v18394_v16, %v13804_v17  ;;  %v7140_v2 = vpop.f32.mrb[213].mxu1  ;;  %v18399_v40 = vsel %vm7215_vm1, 1.0, %v21146_v44  ;;  %v7171_v57 = vmul.f32 0.9, %v17835_v39 }
 0x93d   : > { %21616 = vst [vmem:[#allocation45_spill] sm:$0xff] %v18399_v40  ;;  %v18402_v7 = vsub.f32 %v7185_v58, %v21617_v18  ;;  %v7141_v3 = vadd.f32 %v18394_v16, %v7140_v2  ;;  %13828 = vmatprep.mubr.msk.f32.mxu0 %vm2480_vm2, %v18399_v40  ;;  %v18409_v48 = vsel %vm7216_vm15, 1.0, %v21146_v44  ;;  %v7174_v2 = vmul.f32 0.9, %v17849_v21 }
 0x93e   : > { %v7188_v17 = vadd.f32 %v7172_v32, %v7146_v12  ;;  %13829 = vmatmul.mubr.msk.f32.gmra.mrb[144].mxu0 %vm2480_vm2, %v18409_v48  ;;  %vm7218_vm3 = vcmp.gt.f32.partialorder %v18389_v25, 1.0 }
 0x93f   : > { %v7187_v27 = vadd.f32 %v7171_v57, %v7141_v3  ;;  %v13807_v45 = vpop.f32.mrb[214].mxu1  ;;  %vm7217_vm4 = vcmp.gt.f32.partialorder %v18402_v7, 1.0  ;;  %v7173_v3 = vmul.f32 0.9, %v17857_v49  ;;  %v18443_v49 = vld [vmem:[%s20679_s1 + $0x88] ss:$0 sm:$0xff] }
 0x940   : > { %v18416_v58 = vsub.f32 %v7188_v17, %v17864_v59  ;;  %v7156_v39 = vadd.f32 %v18394_v16, %v13807_v45  ;;  %v7150_v18 = vpop.f32.mrb[215].mxu1  ;;  %v18421_v40 = vsel %vm7217_vm4, 1.0, %v21146_v44  ;;  %v18431_v59 = vsel %vm7218_vm3, 1.0, %v21146_v44 }
 0x941   : > { %v18424_v12 = vsub.f32 %v7187_v27, %v17854_v33  ;;  %v7151_v32 = vadd.f32 %v18394_v16, %v7150_v18  ;;  %13831 = vmatprep.mubr.msk.f32.mxu0 %vm2480_vm2, %v18421_v40  ;;  %v8028_v27 = vmul.f32 0.9, %v17871_v52 }
 0x942   : > { %v7190_v45 = vadd.f32 %v7174_v2, %v7156_v39  ;;  %13832 = vmatmul.mubr.msk.f32.gmra.mrb[146].mxu0 %vm2480_vm2, %v18431_v59  ;;  %vm7220_vm5 = vcmp.gt.f32.partialorder %v18416_v58, 1.0 }
 0x943   : > { %v7189_v21 = vadd.f32 %v7173_v3, %v7151_v32  ;;  %v13872_v57 = vpop.f32.mrb[216].mxu1  ;;  %vm7219_vm6 = vcmp.gt.f32.partialorder %v18424_v12, 1.0  ;;  %v18458_v3 = vsel %vm7220_vm5, 1.0, %v21146_v44 }
 0x944   : > { %v18438_v33 = vsub.f32 %v7190_v45, %v17886_v41  ;;  %v7954_v17 = vadd.f32 %v18443_v49, %v13872_v57  ;;  %v7948_v39 = vpop.f32.mrb[217].mxu1  ;;  %v18448_v2 = vsel %vm7219_vm6, 1.0, %v21146_v44  ;;  %v8027_v41 = vmul.f32 0.9, %v17879_v14 }
 0x945   : > { %21618 = vst [vmem:[#allocation49_spill] sm:$0xff] %v18448_v2  ;;  %v18451_v18 = vsub.f32 %v7189_v21, %v17876_v61  ;;  %v7949_v32 = vadd.f32 %v18443_v49, %v7948_v39  ;;  %13834 = vmatprep.mubr.msk.f32.mxu0 %vm2480_vm2, %v18448_v2  ;;  %v8030_v21 = vmul.f32 0.9, %v17893_v4 }
 0x946   : > { %v8044_v45 = vadd.f32 %v8028_v27, %v7954_v17  ;;  %13835 = vmatmul.mubr.msk.f32.gmra.mrb[148].mxu0 %vm2480_vm2, %v18458_v3  ;;  %vm7222_vm8 = vcmp.gt.f32.partialorder %v18438_v33, 1.0 }
 0x947   : > { %v8043_v52 = vadd.f32 %v8027_v41, %v7949_v32  ;;  %v13875_v57 = vpop.f32.mrb[218].mxu1  ;;  %vm7221_vm9 = vcmp.gt.f32.partialorder %v18451_v18, 1.0  ;;  %v8029_v32 = vmul.f32 0.9, %v17904_v60 }
 0x948   : > { %v18465_v61 = vsub.f32 %v8044_v45, %v17901_v34  ;;  %v7964_v14 = vadd.f32 %v18443_v49, %v13875_v57  ;;  %v7958_v39 = vpop.f32.mrb[219].mxu1  ;;  %v18470_v2 = vsel %vm7221_vm9, 1.0, %v21146_v44  ;;  %v18480_v34 = vsel %vm7222_vm8, 1.0, %v21146_v44 }
 0x949   : > { %v18473_v17 = vsub.f32 %v8043_v52, %v17898_v22  ;;  %v7959_v27 = vadd.f32 %v18443_v49, %v7958_v39  ;;  %13837 = vmatprep.mubr.msk.f32.mxu0 %vm2480_vm2, %v18470_v2  ;;  %v8032_v52 = vmul.f32 0.9, %v17916_v55 }
 0x94a   : > { %vm8076_vm10 = vcmp.gt.f32.partialorder %v18465_v61, 1.0  ;;  %v8046_v4 = vadd.f32 %v8030_v21, %v7964_v14  ;;  %13838 = vmatmul.mubr.msk.f32.gmra.mrb[150].mxu0 %vm2480_vm2, %v18480_v34 }
 0x94b   : > { %v8045_v41 = vadd.f32 %v8029_v32, %v7959_v27  ;;  %v13878_v45 = vpop.f32.mrb[220].mxu1  ;;  %vm8075_vm11 = vcmp.gt.f32.partialorder %v18473_v17, 1.0  ;;  %v18495_v14 = vsel %vm8076_vm10, 1.0, %v21146_v44  ;;  %v8031_v32 = vmul.f32 0.9, %v17925_v10 }
 0x94c   : > { %v18487_v22 = vsub.f32 %v8046_v4, %v17932_v29  ;;  %v7974_v60 = vadd.f32 %v18443_v49, %v13878_v45  ;;  %v7968_v57 = vpop.f32.mrb[221].mxu1  ;;  %v18492_v39 = vsel %vm8075_vm11, 1.0, %v21146_v44 }
 0x94d   : > { %v18498_v21 = vsub.f32 %v8045_v41, %v17921_v36  ;;  %v7969_v27 = vadd.f32 %v18443_v49, %v7968_v57  ;;  %13902 = vmatprep.mubr.msk.f32.mxu1 %vm2480_vm2, %v18492_v39  ;;  %v8034_v41 = vmul.f32 0.9, %v17939_v50 }
 0x94e   : > { %v8048_v29 = vadd.f32 %v8032_v52, %v7974_v60  ;;  %13903 = vmatmul.mubr.msk.f32.vlgmr.msra.gmra.mrb[232].mxu1 %vm2480_vm2, %v18495_v14  ;;  %vm8078_vm12 = vcmp.gt.f32.partialorder %v18487_v22, 1.0 }
 0x94f   : > { %v8047_v55 = vadd.f32 %v8031_v32, %v7969_v27  ;;  %14379 = vmatpush3.bf16.msra.mxu1 %v15102_v5  ;;  %v13881_v4 = vpop.f32.mrb[222].mxu1  ;;  %vm8077_vm13 = vcmp.gt.f32.partialorder %v18498_v21, 1.0  ;;  %v8033_v27 = vmul.f32 0.9, %v17947_v43 }
 0x950   : > { %v18510_v36 = vsub.f32 %v8048_v29, %v17954_v15  ;;  %v7984_v10 = vadd.f32 %v18443_v49, %v13881_v4  ;;  %v7978_v45 = vpop.f32.mrb[223].mxu1  ;;  %v18515_v60 = vsel %vm8077_vm13, 1.0, %v21146_v44  ;;  %14381 = vmatprep.subr.bf16.mxu1 %v21344_v62  ;;  %v18526_v15 = vsel %vm8078_vm12, 1.0, %v21146_v44 }
 0x951   : > { %21619 = vst [vmem:[#allocation51_spill] sm:$0xff] %v18515_v60  ;;  %v18519_v52 = vsub.f32 %v8047_v55, %v17944_v31  ;;  %v7979_v57 = vadd.f32 %v18443_v49, %v7978_v45  ;;  %13905 = vmatprep.mubr.msk.f32.mxu1 %vm2480_vm2, %v18515_v60  ;;  %v8036_v55 = vmul.f32 0.9, %v17961_v24 }
 0x952   : > { %v8050_v50 = vadd.f32 %v8034_v41, %v7984_v10  ;;  %13906 = vmatmul.mubr.msk.f32.gmra.mrb[234].mxu1 %vm2480_vm2, %v18526_v15  ;;  %vm8080_vm14 = vcmp.gt.f32.partialorder %v18510_v36, 1.0 }
 0x953   : > { %21620 = vst [vmem:[#allocation47_spill] sm:$0xff] %v18519_v52  ;;  %v8049_v32 = vadd.f32 %v8033_v27, %v7979_v57  ;;  %v13884_v29 = vpop.f32.mrb[224].mxu1  ;;  %vm8079_vm15 = vcmp.gt.f32.partialorder %v18519_v52, 1.0  ;;  %v21624_v57 = vld [vmem:[#allocation82_spill] sm:$0xff] }
 0x954   : > { %v18533_v31 = vsub.f32 %v8050_v50, %v17976_v9  ;;  %v7994_v43 = vadd.f32 %v18443_v49, %v13884_v29  ;;  %v7988_v4 = vpop.f32.mrb[225].mxu1  ;;  %v18538_v45 = vsel %vm8079_vm15, 1.0, %v21146_v44  ;;  %v8035_v27 = vmul.f32 0.9, %v21624_v57  ;;  %v21628_v57 = vld [vmem:[#allocation83_spill] sm:$0xff] }
 0x955   : > { %21622 = vst [vmem:[#allocation54_spill] sm:$0xff] %v18538_v45  ;;  %v18541_v10 = vsub.f32 %v8049_v32, %v17966_v28  ;;  %v7989_v41 = vadd.f32 %v18443_v49, %v7988_v4  ;;  %13908 = vmatprep.mubr.msk.f32.mxu1 %vm2480_vm2, %v18538_v45  ;;  %v18548_v9 = vsel %vm8080_vm14, 1.0, %v21146_v44  ;;  %v21626_v28 = vld [vmem:[#allocation87_spill] sm:$0xff]  ;;  %v8038_v45 = vmul.f32 0.9, %v21628_v57 }
 0x956   : > { %21621 = vst [vmem:[#allocation48_spill] sm:$0xff] %v18533_v31  ;;  %21625 = vst [vmem:[#allocation52_spill] sm:$0xff] %v18548_v9  ;;  %v8052_v50 = vadd.f32 %v8036_v55, %v7994_v43  ;;  %13909 = vmatmul.mubr.msk.f32.gmra.mrb[236].mxu1 %vm2480_vm2, %v18548_v9  ;;  %vm8082_vm1 = vcmp.gt.f32.partialorder %v18533_v31, 1.0  ;;  %v21630_v43 = vld [vmem:[#allocation16_spill] sm:$0xff] }
 0x957   : > { %21623 = vst [vmem:[#allocation94_spill] sm:$0xff] %v18541_v10  ;;  %v8051_v24 = vadd.f32 %v8035_v27, %v7989_v41  ;;  %v13887_v29 = vpop.f32.mrb[226].mxu1  ;;  %vm8081_vm3 = vcmp.gt.f32.partialorder %v18541_v10, 1.0  ;;  %v21632_v41 = vld [vmem:[#allocation85_spill] sm:$0xff] }
 0x958   : > { %v18555_v32 = vsub.f32 %v8052_v50, %v21626_v28  ;;  %v8004_v4 = vadd.f32 %v18443_v49, %v13887_v29  ;;  %v7998_v52 = vpop.f32.mrb[227].mxu1  ;;  %v18560_v60 = vsel %vm8081_vm3, 1.0, %v21146_v44  ;;  %v8037_v27 = vmul.f32 0.9, %v21632_v41  ;;  %v21636_v41 = vld [vmem:[#allocation86_spill] sm:$0xff] }
 0x959   : > { %21629 = vst [vmem:[#allocation93_spill] sm:$0xff] %v18560_v60  ;;  %v18563_v55 = vsub.f32 %v8051_v24, %v21630_v43  ;;  %v7999_v31 = vadd.f32 %v18443_v49, %v7998_v52  ;;  %13911 = vmatprep.mubr.msk.f32.mxu1 %vm2480_vm2, %v18560_v60  ;;  %v18570_v50 = vsel %vm8082_vm1, 1.0, %v21146_v44  ;;  %v21634_v24 = vld [vmem:[#allocation17_spill] sm:$0xff]  ;;  %v8040_v60 = vmul.f32 0.9, %v21636_v41 }
 0x95a   : > { %21627 = vst [vmem:[#allocation92_spill] sm:$0xff] %v18555_v32  ;;  %21633 = vst [vmem:[#allocation95_spill] sm:$0xff] %v18570_v50  ;;  %v8054_v29 = vadd.f32 %v8038_v45, %v8004_v4  ;;  %13912 = vmatmul.mubr.msk.f32.gmra.mrb[238].mxu1 %vm2480_vm2, %v18570_v50  ;;  %vm8084_vm4 = vcmp.gt.f32.partialorder %v18555_v32, 1.0  ;;  %v21638_v45 = vld [vmem:[#allocation19_spill] sm:$0xff] }
 0x95b   : > { %21631 = vst [vmem:[#allocation98_spill] sm:$0xff] %v18563_v55  ;;  %v8053_v28 = vadd.f32 %v8037_v27, %v7999_v31  ;;  %v13890_v57 = vpop.f32.mrb[228].mxu1  ;;  %vm8083_vm5 = vcmp.gt.f32.partialorder %v18563_v55, 1.0  ;;  %v21640_v31 = vld [vmem:[#allocation20_spill] sm:$0xff] }
 0x95c   : > { %v18577_v52 = vsub.f32 %v8054_v29, %v21634_v24  ;;  %v8014_v43 = vadd.f32 %v18443_v49, %v13890_v57  ;;  %v8008_v10 = vpop.f32.mrb[229].mxu1  ;;  %v18582_v9 = vsel %vm8083_vm5, 1.0, %v21146_v44  ;;  %v8039_v27 = vmul.f32 0.9, %v21640_v31  ;;  %v21644_v31 = vld [vmem:[#allocation15_spill] sm:$0xff] }
 0x95d   : > { %21637 = vst [vmem:[#allocation97_spill] sm:$0xff] %v18582_v9  ;;  %v18585_v4 = vsub.f32 %v8053_v28, %v21638_v45  ;;  %v8009_v32 = vadd.f32 %v18443_v49, %v8008_v10  ;;  %13914 = vmatprep.mubr.msk.f32.mxu1 %vm2480_vm2, %v18582_v9  ;;  %v18592_v29 = vsel %vm8084_vm4, 1.0, %v21146_v44  ;;  %v21642_v28 = vld [vmem:[#allocation18_spill] sm:$0xff]  ;;  %v8042_v9 = vmul.f32 0.9, %v21644_v31  ;;  %v21653_v31 = vld [vmem:[#allocation24_spill] sm:$0xff] }
 0x95e   : > { %21635 = vst [vmem:[#allocation96_spill] sm:$0xff] %v18577_v52  ;;  %21641 = vst [vmem:[#allocation99_spill] sm:$0xff] %v18592_v29  ;;  %v8056_v57 = vadd.f32 %v8040_v60, %v8014_v43  ;;  %13915 = vmatmul.mubr.msk.f32.gmra.mrb[240].mxu1 %vm2480_vm2, %v18592_v29  ;;  %vm8086_vm6 = vcmp.gt.f32.partialorder %v18577_v52, 1.0  ;;  %v21646_v60 = vld [vmem:[#allocation21_spill] sm:$0xff]  ;;  %v21663_v29 = vld [vmem:[#allocation63_spill] sm:$0xff] }
 0x95f   : > { %21639 = vst [vmem:[#allocation100_spill] sm:$0xff] %v18585_v4  ;;  %v8055_v24 = vadd.f32 %v8039_v27, %v8009_v32  ;;  %v13893_v41 = vpop.f32.mrb[230].mxu1  ;;  %vm8085_vm8 = vcmp.gt.f32.partialorder %v18585_v4, 1.0  ;;  %v21648_v32 = vld [vmem:[#allocation22_spill] sm:$0xff]  ;;  %vm6630_vm1 = vcmp.gt.f32.partialorder %v21663_v29, 1.0 }
 0x960   : > { %v18599_v10 = vsub.f32 %v8056_v57, %v21642_v28  ;;  %v8024_v45 = vadd.f32 %v18443_v49, %v13893_v41  ;;  %v8018_v55 = vpop.f32.mrb[231].mxu1  ;;  %v18604_v50 = vsel %vm8085_vm8, 1.0, %v21146_v44  ;;  %v8041_v27 = vmul.f32 0.9, %v21648_v32 }
 0x961   : > { %21645 = vst [vmem:[#allocation77_spill] sm:$0xff] %v18604_v50  ;;  %v18607_v43 = vsub.f32 %v8055_v24, %v21646_v60  ;;  %v8019_v52 = vadd.f32 %v18443_v49, %v8018_v55  ;;  %13917 = vmatprep.mubr.msk.f32.mxu1 %vm2480_vm2, %v18604_v50  ;;  %v18614_v57 = vsel %vm8086_vm6, 1.0, %v21146_v44  ;;  %v21650_v49 = vld [vmem:[#allocation25_spill] sm:$0xff] }
 0x962   : > { %21643 = vst [vmem:[#allocation73_spill] sm:$0xff] %v18599_v10  ;;  %21649 = vst [vmem:[#allocation75_spill] sm:$0xff] %v18614_v57  ;;  %v8058_v41 = vadd.f32 %v8042_v9, %v8024_v45  ;;  %13918 = vmatmul.mubr.msk.f32.gmra.mrb[242].mxu1 %vm2480_vm2, %v18614_v57  ;;  %vm8088_vm9 = vcmp.gt.f32.partialorder %v18599_v10, 1.0  ;;  %v12151_v45 = vld [vmem:[%s15104_s6 + $0x300] sm:$0xff]  ;;  %v21661_v10 = vld [vmem:[#allocation62_spill] sm:$0xff] }
 0x963   : > { %21647 = vst [vmem:[#allocation74_spill] sm:$0xff] %v18607_v43  ;;  %v8057_v28 = vadd.f32 %v8041_v27, %v8019_v52  ;;  %vm8087_vm10 = vcmp.gt.f32.partialorder %v18607_v43, 1.0  ;;  %v18632_v9 = vsel %vm8088_vm9, 1.0, %v21146_v44  ;;  %v12152_v27 = vld [vmem:[%s15104_s6 + $0x308] sm:$0xff]  ;;  %vm6631_vm15 = vcmp.gt.f32.partialorder %v21661_v10, 1.0 }
 0x964   : > { %v18621_v55 = vsub.f32 %v8058_v41, %v21650_v49  ;;  %v18624_v24 = vsel %vm8087_vm10, 1.0, %v21146_v44  ;;  %21655 = vst [vmem:[#allocation80_spill] sm:$0xff] %v18632_v9  ;;  %v12153_v41 = vld [vmem:[%s15104_s6 + $0x310] sm:$0xff]  ;;  %v12155_v49 = vld [vmem:[%s15104_s6 + $0x320] sm:$0xff] }
 0x965   : > { %21652 = vst [vmem:[#allocation78_spill] sm:$0xff] %v18624_v24  ;;  %v18627_v60 = vsub.f32 %v8057_v28, %v21653_v31  ;;  %13920 = vmatprep.mubr.msk.f32.mxu1 %vm2480_vm2, %v18624_v24  ;;  %v12154_v28 = vld [vmem:[%s15104_s6 + $0x318] sm:$0xff]  ;;  %v21658_v31 = vld [vmem:[#allocation5_spill] sm:$0xff] }
 0x966   : > { %21651 = vst [vmem:[#allocation76_spill] sm:$0xff] %v18621_v55  ;;  %13921 = vmatmul.mubr.msk.f32.gmra.mrb[244].mxu1 %vm2480_vm2, %v18632_v9  ;;  %vm8090_vm11 = vcmp.gt.f32.partialorder %v18621_v55, 1.0  ;;  %v21660_v24 = vld [vmem:[#allocation57_spill] sm:$0xff] }
 0x967   : > { %21654 = vst [vmem:[#allocation79_spill] sm:$0xff] %v18627_v60  ;;  %vm8089_vm12 = vcmp.gt.f32.partialorder %v18627_v60, 1.0  ;;  %v18645_v32 = vsel %vm8090_vm11, 1.0, %v21146_v44  ;;  %vm6628_vm14 = vcmp.gt.f32.partialorder %v21660_v24, 1.0 }
 0x968   : > { %v18639_v52 = vsel %vm8089_vm12, 1.0, %v21146_v44  ;;  %21657 = vst [vmem:[#allocation81_spill] sm:$0xff] %v18645_v32  ;;  %v6644_v43 = vsel %vm6628_vm14, 1.0, %v21146_v44 }
 0x969   : > { %21656 = vst [vmem:[#allocation84_spill] sm:$0xff] %v18639_v52  ;;  %13923 = vmatprep.mubr.msk.f32.mxu1 %vm2480_vm2, %v18639_v52  ;;  %v12159_v52 = vld [vmem:[%s15104_s6 + $0x340] sm:$0xff] }
 0x96a   : > { %13924 = vmatmul.mubr.msk.f32.gmra.mrb[246].mxu1 %vm2480_vm2, %v18645_v32  ;;  %v12163_v32 = vld [vmem:[%s15104_s6 + $0x360] sm:$0xff] }
 0x96b   : > { %13988 = vmatprep.mubr.msk.f32.mxu1 %vm1243_vm0, %v12151_v45  ;;  %v12156_v45 = vld [vmem:[%s15104_s6 + $0x328] sm:$0xff] }
 0x96e   : > { %13989 = vmatmul.mubr.msk.f32.vlgmr.msra.gmra.mrb[248].mxu1 %vm1243_vm0, %v12152_v27  ;;  %v12157_v27 = vld [vmem:[%s15104_s6 + $0x330] sm:$0xff] }
 0x96f   : > { %13991 = vmatprep.mubr.msk.f32.mxu1 %vm1243_vm0, %v12153_v41  ;;  %14383 = vmatpush3.bf16.msra.mxu1 %v21344_v62  ;;  %v12158_v41 = vld [vmem:[%s15104_s6 + $0x338] sm:$0xff] }
 0x970   : > { %14385 = vmatprep.subr.bf16.mxu1 %v21658_v31 }
 0x972   : > { %13992 = vmatmul.mubr.msk.f32.gmra.mrb[250].mxu1 %vm1243_vm0, %v12154_v28  ;;  %v12160_v28 = vld [vmem:[%s15104_s6 + $0x348] sm:$0xff] }
 0x973   : > { %13994 = vmatprep.mubr.msk.f32.mxu1 %vm1243_vm0, %v12155_v49  ;;  %14387 = vmatpush3.bf16.msra.mxu1 %v21658_v31  ;;  %v12161_v49 = vld [vmem:[%s15104_s6 + $0x350] sm:$0xff]  ;;  %v12162_v31 = vld [vmem:[%s15104_s6 + $0x358] sm:$0xff] }
 0x974   : > { %14397 = vmatprep.subr.bf16.mxu1 %v15102_v5  ;;  %v21693_v5 = vld [vmem:[#allocation28_spill] sm:$0xff] }
 0x976   : > { %13995 = vmatmul.mubr.msk.f32.gmra.mrb[252].mxu1 %vm1243_vm0, %v12156_v45  ;;  %v12164_v45 = vld [vmem:[%s15104_s6 + $0x368] sm:$0xff] }
 0x977   : > { %13997 = vmatprep.mubr.msk.f32.mxu1 %vm1243_vm0, %v12157_v27  ;;  %v12165_v27 = vld [vmem:[%s15104_s6 + $0x370] sm:$0xff] }
 0x97a   : > { %13998 = vmatmul.mubr.msk.f32.gmra.mrb[254].mxu1 %vm1243_vm0, %v12158_v41  ;;  %v12166_v41 = vld [vmem:[%s15104_s6 + $0x378] sm:$0xff] }
 0x97b   : > { %14000 = vmatprep.mubr.msk.f32.mxu1 %vm1243_vm0, %v12159_v52 }
 0x97e   : > { %14001 = vmatmul.mubr.msk.f32.gmra.mrb[8].mxu1 %vm1243_vm0, %v12160_v28  ;;  %v18687_v28 = vld [vmem:[%s20679_s1 + $0x8a] ss:$0 sm:$0xff] }
 0x97f   : > { %14003 = vmatprep.mubr.msk.f32.mxu1 %vm1243_vm0, %v12161_v49 }
 0x982   : > { %14004 = vmatmul.mubr.msk.f32.gmra.mrb[10].mxu1 %vm1243_vm0, %v12162_v31  ;;  %v21659_v31 = vld [vmem:[#allocation56_spill] sm:$0xff] }
 0x983   : > { %14006 = vmatprep.mubr.msk.f32.mxu1 %vm1243_vm0, %v12163_v32  ;;  %v6597_v60 = vmul.f32 0.9, %v21659_v31  ;;  %vm6629_vm13 = vcmp.gt.f32.partialorder %v21659_v31, 1.0 }
 0x984   : > { %v6645_v55 = vsel %vm6629_vm13, 1.0, %v21146_v44 }
 0x986   : > { %14007 = vmatmul.mubr.msk.f32.gmra.mrb[12].mxu1 %vm1243_vm0, %v12164_v45 }
 0x987   : > { %14009 = vmatprep.mubr.msk.f32.mxu1 %vm1243_vm0, %v12165_v27  ;;  %v6596_v27 = vmul.f32 0.9, %v21660_v24 }
 0x98a   : > { %14010 = vmatmul.mubr.msk.f32.gmra.mrb[14].mxu1 %vm1243_vm0, %v12166_v41 }
 0x9e1   : > { %v13726_v52 = vpop.f32.mrb[48].mxu0 }
 0x9e2   : > { %v14474_v49 = vadd.f32 %v18687_v28, %v13726_v52  ;;  %v6501_v32 = vpop.f32.mrb[49].mxu0  ;;  %v6599_v52 = vmul.f32 0.9, %v21661_v10 }
 0x9e3   : > { %v14475_v45 = vadd.f32 %v18687_v28, %v6501_v32 }
 0x9e4   : > { %v6613_v41 = vadd.f32 %v14474_v49, %v6597_v60  ;;  %v6598_v60 = vmul.f32 0.9, %v21663_v29 }
 0x9e5   : > { %v6612_v9 = vadd.f32 %v14475_v45, %v6596_v27  ;;  %v13729_v50 = vpop.f32.mrb[50].mxu0  ;;  %v6647_v45 = vsel %vm6631_vm15, 1.0, %v21146_v44 }
 0x9e6   : > { %v18698_v57 = vsub.f32 %v6613_v41, %v6645_v55  ;;  %v14476_v31 = vadd.f32 %v18687_v28, %v13729_v50  ;;  %v6511_v4 = vpop.f32.mrb[51].mxu0  ;;  %v6646_v55 = vsel %vm6630_vm1, 1.0, %v21146_v44 }
 0x9e7   : > { %v18703_v32 = vsub.f32 %v6612_v9, %v6644_v43  ;;  %v14477_v24 = vadd.f32 %v18687_v28, %v6511_v4  ;;  %v21667_v9 = vld [vmem:[#allocation61_spill] sm:$0xff] }
 0x9e8   : > { %21662 = vst [vmem:[#allocation82_spill] sm:$0xff] %v18698_v57  ;;  %v6615_v49 = vadd.f32 %v14476_v31, %v6599_v52  ;;  %v21665_v57 = vld [vmem:[#allocation60_spill] sm:$0xff]  ;;  %vm6632_vm4 = vcmp.gt.f32.partialorder %v21667_v9, 1.0  ;;  %v6600_v52 = vmul.f32 0.9, %v21667_v9 }
 0x9e9   : > { %21664 = vst [vmem:[#allocation87_spill] sm:$0xff] %v18703_v32  ;;  %v6614_v27 = vadd.f32 %v14477_v24, %v6598_v60  ;;  %v13732_v41 = vpop.f32.mrb[52].mxu0  ;;  %v6601_v50 = vmul.f32 0.9, %v21665_v57  ;;  %vm6633_vm3 = vcmp.gt.f32.partialorder %v21665_v57, 1.0 }
 0x9ea   : > { %v18710_v62 = vsub.f32 %v6615_v49, %v6647_v45  ;;  %v14478_v10 = vadd.f32 %v18687_v28, %v13732_v41  ;;  %v6521_v43 = vpop.f32.mrb[53].mxu0  ;;  %v6649_v24 = vsel %vm6633_vm3, 1.0, %v21146_v44  ;;  %v6648_v49 = vsel %vm6632_vm4, 1.0, %v21146_v44 }
 0x9eb   : > { %v18715_v4 = vsub.f32 %v6614_v27, %v6646_v55  ;;  %v14479_v29 = vadd.f32 %v18687_v28, %v6521_v43  ;;  %v21671_v55 = vld [vmem:[#allocation69_spill] sm:$0xff] }
 0x9ec   : > { %21666 = vst [vmem:[#allocation83_spill] sm:$0xff] %v18710_v62  ;;  %v6617_v31 = vadd.f32 %v14478_v10, %v6601_v50  ;;  %v21669_v62 = vld [vmem:[#allocation66_spill] sm:$0xff]  ;;  %vm6634_vm6 = vcmp.gt.f32.partialorder %v21671_v55, 1.0  ;;  %v6602_v10 = vmul.f32 0.9, %v21671_v55 }
 0x9ed   : > { %21668 = vst [vmem:[#allocation16_spill] sm:$0xff] %v18715_v4  ;;  %v6616_v60 = vadd.f32 %v14479_v29, %v6600_v52  ;;  %v13735_v45 = vpop.f32.mrb[54].mxu0  ;;  %v6603_v41 = vmul.f32 0.9, %v21669_v62  ;;  %vm6635_vm5 = vcmp.gt.f32.partialorder %v21669_v62, 1.0 }
 0x9ee   : > { %v18722_v32 = vsub.f32 %v6617_v31, %v6649_v24  ;;  %v14480_v57 = vadd.f32 %v18687_v28, %v13735_v45  ;;  %v6531_v27 = vpop.f32.mrb[55].mxu0  ;;  %v6651_v29 = vsel %vm6635_vm5, 1.0, %v21146_v44  ;;  %v6650_v31 = vsel %vm6634_vm6, 1.0, %v21146_v44 }
 0x9ef   : > { %v18727_v43 = vsub.f32 %v6616_v60, %v6648_v49  ;;  %v14481_v50 = vadd.f32 %v18687_v28, %v6531_v27  ;;  %v21675_v49 = vld [vmem:[#allocation65_spill] sm:$0xff] }
 0x9f0   : > { %21670 = vst [vmem:[#allocation85_spill] sm:$0xff] %v18722_v32  ;;  %v6619_v9 = vadd.f32 %v14480_v57, %v6603_v41  ;;  %v21673_v32 = vld [vmem:[#allocation64_spill] sm:$0xff]  ;;  %vm6636_vm9 = vcmp.gt.f32.partialorder %v21675_v49, 1.0  ;;  %v6604_v57 = vmul.f32 0.9, %v21675_v49 }
 0x9f1   : > { %21672 = vst [vmem:[#allocation17_spill] sm:$0xff] %v18727_v43  ;;  %v6618_v52 = vadd.f32 %v14481_v50, %v6602_v10  ;;  %v13738_v24 = vpop.f32.mrb[56].mxu0  ;;  %v6605_v45 = vmul.f32 0.9, %v21673_v32  ;;  %vm6637_vm8 = vcmp.gt.f32.partialorder %v21673_v32, 1.0 }
 0x9f2   : > { %v18734_v4 = vsub.f32 %v6619_v9, %v6651_v29  ;;  %v14482_v62 = vadd.f32 %v18687_v28, %v13738_v24  ;;  %v6541_v60 = vpop.f32.mrb[57].mxu0  ;;  %v6653_v50 = vsel %vm6637_vm8, 1.0, %v21146_v44  ;;  %v6652_v9 = vsel %vm6636_vm9, 1.0, %v21146_v44 }
 0x9f3   : > { %v18739_v27 = vsub.f32 %v6618_v52, %v6650_v31  ;;  %v14483_v41 = vadd.f32 %v18687_v28, %v6541_v60  ;;  %v21679_v31 = vld [vmem:[#allocation91_spill] sm:$0xff] }
 0x9f4   : > { %21674 = vst [vmem:[#allocation86_spill] sm:$0xff] %v18734_v4  ;;  %v6621_v55 = vadd.f32 %v14482_v62, %v6605_v45  ;;  %v21677_v4 = vld [vmem:[#allocation67_spill] sm:$0xff]  ;;  %vm6638_vm11 = vcmp.gt.f32.partialorder %v21679_v31, 1.0  ;;  %v6606_v62 = vmul.f32 0.9, %v21679_v31 }
 0x9f5   : > { %21676 = vst [vmem:[#allocation19_spill] sm:$0xff] %v18739_v27  ;;  %v6620_v10 = vadd.f32 %v14483_v41, %v6604_v57  ;;  %v13741_v29 = vpop.f32.mrb[58].mxu0  ;;  %v6607_v24 = vmul.f32 0.9, %v21677_v4  ;;  %vm6639_vm10 = vcmp.gt.f32.partialorder %v21677_v4, 1.0 }
 0x9f6   : > { %v18746_v43 = vsub.f32 %v6621_v55, %v6653_v50  ;;  %v14484_v32 = vadd.f32 %v18687_v28, %v13741_v29  ;;  %v6551_v52 = vpop.f32.mrb[59].mxu0  ;;  %v6655_v41 = vsel %vm6639_vm10, 1.0, %v21146_v44  ;;  %v6654_v55 = vsel %vm6638_vm11, 1.0, %v21146_v44 }
 0x9f7   : > { %v18751_v60 = vsub.f32 %v6620_v10, %v6652_v9  ;;  %v14485_v45 = vadd.f32 %v18687_v28, %v6551_v52  ;;  %v21683_v9 = vld [vmem:[#allocation70_spill] sm:$0xff] }
 0x9f8   : > { %21678 = vst [vmem:[#allocation20_spill] sm:$0xff] %v18746_v43  ;;  %v6623_v49 = vadd.f32 %v14484_v32, %v6607_v24  ;;  %v21681_v43 = vld [vmem:[#allocation68_spill] sm:$0xff]  ;;  %vm6640_vm13 = vcmp.gt.f32.partialorder %v21683_v9, 1.0  ;;  %v6608_v32 = vmul.f32 0.9, %v21683_v9 }
 0x9f9   : > { %21680 = vst [vmem:[#allocation18_spill] sm:$0xff] %v18751_v60  ;;  %v6622_v57 = vadd.f32 %v14485_v45, %v6606_v62  ;;  %v13744_v50 = vpop.f32.mrb[60].mxu0  ;;  %v6609_v29 = vmul.f32 0.9, %v21681_v43  ;;  %vm6641_vm12 = vcmp.gt.f32.partialorder %v21681_v43, 1.0 }
 0x9fa   : > { %v18758_v27 = vsub.f32 %v6623_v49, %v6655_v41  ;;  %v14486_v4 = vadd.f32 %v18687_v28, %v13744_v50  ;;  %v6561_v10 = vpop.f32.mrb[61].mxu0  ;;  %v6657_v45 = vsel %vm6641_vm12, 1.0, %v21146_v44  ;;  %v6656_v49 = vsel %vm6640_vm13, 1.0, %v21146_v44  ;;  %v21686_v50 = vld [vmem:[#allocation71_spill] sm:$0xff] }
 0x9fb   : > { %v18763_v52 = vsub.f32 %v6622_v57, %v6654_v55  ;;  %v14487_v24 = vadd.f32 %v18687_v28, %v6561_v10  ;;  %v6611_v60 = vmul.f32 0.9, %v21686_v50  ;;  %vm6643_vm14 = vcmp.gt.f32.partialorder %v21686_v50, 1.0 }
 0x9fc   : > { %21682 = vst [vmem:[#allocation15_spill] sm:$0xff] %v18758_v27  ;;  %v6625_v31 = vadd.f32 %v14486_v4, %v6609_v29  ;;  %v21688_v29 = vld [vmem:[#allocation72_spill] sm:$0xff] }
 0x9fd   : > { %21684 = vst [vmem:[#allocation21_spill] sm:$0xff] %v18763_v52  ;;  %v6624_v62 = vadd.f32 %v14487_v24, %v6608_v32  ;;  %v13747_v41 = vpop.f32.mrb[62].mxu0  ;;  %v6610_v4 = vmul.f32 0.9, %v21688_v29  ;;  %vm6642_vm15 = vcmp.gt.f32.partialorder %v21688_v29, 1.0  ;;  %v6659_v24 = vsel %vm6643_vm14, 1.0, %v21146_v44 }
 0x9fe   : > { %v18769_v27 = vsub.f32 %v6625_v31, %v6657_v45  ;;  %v14488_v43 = vadd.f32 %v18687_v28, %v13747_v41  ;;  %v6571_v57 = vpop.f32.mrb[63].mxu0  ;;  %v6658_v41 = vsel %vm6642_vm15, 1.0, %v21146_v44 }
 0x9ff   : > { %v18774_v55 = vsub.f32 %v6624_v62, %v6656_v49  ;;  %v14489_v10 = vadd.f32 %v18687_v28, %v6571_v57  ;;  %v18786_v62 = vld [vmem:[%s20679_s1 + $0x8b] ss:$0 sm:$0xff]  ;;  %v7433_v49 = vmul.f32 0.9, %v18100_v23 }
 0xa00   : > { %21685 = vst [vmem:[#allocation22_spill] sm:$0xff] %v18769_v27  ;;  %v6627_v9 = vadd.f32 %v14488_v43, %v6611_v60  ;;  %v21690_v43 = vld [vmem:[#allocation26_spill] sm:$0xff]  ;;  %v21692_v27 = vld [vmem:[#allocation23_spill] sm:$0xff] }
 0xa01   : > { %21687 = vst [vmem:[#allocation25_spill] sm:$0xff] %v18774_v55  ;;  %v6626_v32 = vadd.f32 %v14489_v10, %v6610_v4  ;;  %v13818_v31 = vpop.f32.mrb[136].mxu0  ;;  %v7432_v10 = vmul.f32 0.9, %v21690_v43  ;;  %v7435_v52 = vmul.f32 0.9, %v21692_v27 }
 0xa02   : > { %v18780_v45 = vsub.f32 %v6627_v9, %v6659_v24  ;;  %v7359_v28 = vadd.f32 %v18786_v62, %v13818_v31  ;;  %v7353_v50 = vpop.f32.mrb[137].mxu0  ;;  %v21691_v24 = vld [vmem:[#allocation29_spill] sm:$0xff]  ;;  %v21695_v43 = vld [vmem:[#allocation88_spill] sm:$0xff] }
 0xa03   : > { %v18790_v57 = vsub.f32 %v6626_v32, %v6658_v41  ;;  %v7354_v60 = vadd.f32 %v18786_v62, %v7353_v50  ;;  %v21694_v41 = vld [vmem:[#allocation30_spill] sm:$0xff] }
 0xa04   : > { %21689 = vst [vmem:[#allocation24_spill] sm:$0xff] %v18780_v45  ;;  %v7449_v29 = vadd.f32 %v7433_v49, %v7359_v28  ;;  %v7434_v50 = vmul.f32 0.9, %v21694_v41 }
 0xa05   : > { %v7448_v4 = vadd.f32 %v7432_v10, %v7354_v60  ;;  %v13821_v9 = vpop.f32.mrb[138].mxu0 }
 0xa06   : > { %v18795_v45 = vsub.f32 %v7449_v29, %v21691_v24  ;;  %v7369_v55 = vadd.f32 %v18786_v62, %v13821_v9  ;;  %v7363_v31 = vpop.f32.mrb[139].mxu0  ;;  %v21697_v29 = vld [vmem:[#allocation27_spill] sm:$0xff] }
 0xa07   : > { %v18800_v23 = vsub.f32 %v7448_v4, %v21693_v5  ;;  %v7364_v32 = vadd.f32 %v18786_v62, %v7363_v31  ;;  %v7437_v9 = vmul.f32 0.9, %v21697_v29  ;;  %v21700_v31 = vld [vmem:[#allocation32_spill] sm:$0xff] }
 0xa08   : > { %vm7481_vm1 = vcmp.gt.f32.partialorder %v18795_v45, 1.0  ;;  %v7451_v28 = vadd.f32 %v7435_v52, %v7369_v55 }
 0xa09   : > { %v7450_v49 = vadd.f32 %v7434_v50, %v7364_v32  ;;  %v13824_v60 = vpop.f32.mrb[140].mxu0  ;;  %vm7480_vm3 = vcmp.gt.f32.partialorder %v18800_v23, 1.0  ;;  %v18815_v24 = vsel %vm7481_vm1, 1.0, %v21146_v44  ;;  %v21702_v32 = vld [vmem:[#allocation31_spill] sm:$0xff] }
 0xa0a   : > { %v18807_v10 = vsub.f32 %v7451_v28, %v21695_v43  ;;  %v7379_v27 = vadd.f32 %v18786_v62, %v13824_v60  ;;  %v7373_v5 = vpop.f32.mrb[141].mxu0  ;;  %v18812_v4 = vsel %vm7480_vm3, 1.0, %v21146_v44  ;;  %21699 = vst [vmem:[#allocation62_spill] sm:$0xff] %v18815_v24  ;;  %v7436_v41 = vmul.f32 0.9, %v21702_v32 }
 0xa0b   : > { %21698 = vst [vmem:[#allocation57_spill] sm:$0xff] %v18812_v4  ;;  %v18818_v52 = vsub.f32 %v7450_v49, %v21700_v31  ;;  %v7374_v55 = vadd.f32 %v18786_v62, %v7373_v5  ;;  %13842 = vmatprep.mubr.msk.f32.mxu0 %vm3011_vm7, %v18812_v4  ;;  %v21703_v49 = vld [vmem:[#allocation55_spill] sm:$0xff]  ;;  %v21705_v5 = vld [vmem:[#allocation53_spill] sm:$0xff]  ;;  %v21708_v4 = vld [vmem:[#allocation58_spill] sm:$0xff] }
 0xa0c   : > { %21696 = vst [vmem:[#allocation56_spill] sm:$0xff] %v18807_v10  ;;  %v7453_v50 = vadd.f32 %v7437_v9, %v7379_v27  ;;  %13843 = vmatmul.mubr.msk.f32.vlgmr.msra.gmra.mrb[64].mxu0 %vm3011_vm7, %v18815_v24  ;;  %vm7483_vm4 = vcmp.gt.f32.partialorder %v18807_v10, 1.0  ;;  %v7439_v31 = vmul.f32 0.9, %v21705_v5  ;;  %v21707_v9 = vld [vmem:[#allocation14_spill] sm:$0xff]  ;;  %v21710_v10 = vld [vmem:[#allocation59_spill] sm:$0xff] }
 0xa0d   : > { %21701 = vst [vmem:[#allocation63_spill] sm:$0xff] %v18818_v52  ;;  %v7452_v28 = vadd.f32 %v7436_v41, %v7374_v55  ;;  %14371 = vmatpush3.bf16.msra.mxu0 %v15231_v0  ;;  %v13827_v60 = vpop.f32.mrb[142].mxu0  ;;  %vm7482_vm5 = vcmp.gt.f32.partialorder %v18818_v52, 1.0  ;;  %v7438_v52 = vmul.f32 0.9, %v21710_v10 }
 0xa0e   : > { %v18830_v43 = vsub.f32 %v7453_v50, %v21703_v49  ;;  %v7389_v29 = vadd.f32 %v18786_v62, %v13827_v60  ;;  %v7383_v32 = vpop.f32.mrb[143].mxu0  ;;  %v18835_v27 = vsel %vm7482_vm5, 1.0, %v21146_v44  ;;  %14373 = vmatprep.subr.bf16.mxu0 %v21707_v9  ;;  %v18846_v50 = vsel %vm7483_vm4, 1.0, %v21146_v44 }
 0xa0f   : > { %21706 = vst [vmem:[#allocation61_spill] sm:$0xff] %v18835_v27  ;;  %v18839_v55 = vsub.f32 %v7452_v28, %v21708_v4  ;;  %v7384_v41 = vadd.f32 %v18786_v62, %v7383_v32  ;;  %13845 = vmatprep.mubr.msk.f32.mxu0 %vm3011_vm7, %v18835_v27  ;;  %21711 = vst [vmem:[#allocation69_spill] sm:$0xff] %v18846_v50  ;;  %v21712_v4 = vld [vmem:[#allocation90_spill] sm:$0xff] }
 0xa10   : > { %21704 = vst [vmem:[#allocation60_spill] sm:$0xff] %v18830_v43  ;;  %v7455_v60 = vadd.f32 %v7439_v31, %v7389_v29  ;;  %13846 = vmatmul.mubr.msk.f32.gmra.mrb[66].mxu0 %vm3011_vm7, %v18846_v50  ;;  %vm7485_vm6 = vcmp.gt.f32.partialorder %v18830_v43, 1.0  ;;  %v21714_v32 = vld [vmem:[#allocation34_spill] sm:$0xff]  ;;  %v21716_v31 = vld [vmem:[#allocation33_spill] sm:$0xff] }
 0xa11   : > { %21709 = vst [vmem:[#allocation66_spill] sm:$0xff] %v18839_v55  ;;  %v7454_v49 = vadd.f32 %v7438_v52, %v7384_v41  ;;  %v13830_v5 = vpop.f32.mrb[144].mxu0  ;;  %vm7484_vm8 = vcmp.gt.f32.partialorder %v18839_v55, 1.0  ;;  %14375 = vmatpush3.bf16.msra.mxu0 %v21707_v9  ;;  %v7441_v27 = vmul.f32 0.9, %v21714_v32  ;;  %v18864_v52 = vld [vmem:[%s20679_s1 + $0x40] sm:$0xff] }
 0xa12   : > { %v18854_v10 = vsub.f32 %v7455_v60, %v21712_v4  ;;  %v7399_v28 = vadd.f32 %v18786_v62, %v13830_v5  ;;  %v7393_v24 = vpop.f32.mrb[145].mxu0  ;;  %v18859_v29 = vsel %vm7484_vm8, 1.0, %v21146_v44  ;;  %13958 = vmatprep.subr.mxu0 %v18864_v52  ;;  %v21717_v4 = vld [vmem:[#allocation38_spill] sm:$0xff]  ;;  %v18877_v32 = vsel %vm7485_vm6, 1.0, %v21146_v44 }
 0xa13   : > { %21715 = vst [vmem:[#allocation65_spill] sm:$0xff] %v18859_v29  ;;  %v18868_v41 = vsub.f32 %v7454_v49, %v21716_v31  ;;  %v7394_v60 = vadd.f32 %v18786_v62, %v7393_v24  ;;  %v7440_v5 = vmul.f32 0.9, %v21717_v4  ;;  %13848 = vmatprep.mubr.msk.f32.mxu0 %vm3011_vm7, %v18859_v29  ;;  %v21719_v29 = vld [vmem:[#allocation89_spill] sm:$0xff] }
 0xa14   : > { %21713 = vst [vmem:[#allocation64_spill] sm:$0xff] %v18854_v10  ;;  %v7457_v9 = vadd.f32 %v7441_v27, %v7399_v28  ;;  %13849 = vmatmul.mubr.msk.f32.gmra.mrb[68].mxu0 %vm3011_vm7, %v18877_v32  ;;  %vm7487_vm9 = vcmp.gt.f32.partialorder %v18854_v10, 1.0  ;;  %v7443_v55 = vmul.f32 0.9, %v21719_v29  ;;  %v21721_v27 = vld [vmem:[#allocation36_spill] sm:$0xff] }
 0xa15   : > { %v7456_v49 = vadd.f32 %v7440_v5, %v7394_v60  ;;  %v13833_v31 = vpop.f32.mrb[146].mxu0  ;;  %vm7486_vm10 = vcmp.gt.f32.partialorder %v18868_v41, 1.0  ;;  %v7442_v60 = vmul.f32 0.9, %v18219_v53 }
 0xa16   : > { %v18884_v24 = vsub.f32 %v7457_v9, %v18226_v54  ;;  %v7409_v4 = vadd.f32 %v18786_v62, %v13833_v31  ;;  %v7403_v43 = vpop.f32.mrb[147].mxu0  ;;  %v18889_v50 = vsel %vm7486_vm10, 1.0, %v21146_v44  ;;  %v18899_v54 = vsel %vm7487_vm9, 1.0, %v21146_v44 }
 0xa17   : > { %21720 = vst [vmem:[#allocation91_spill] sm:$0xff] %v18889_v50  ;;  %v18892_v28 = vsub.f32 %v7456_v49, %v21721_v27  ;;  %v7404_v10 = vadd.f32 %v18786_v62, %v7403_v43  ;;  %13851 = vmatprep.mubr.msk.f32.mxu0 %vm3011_vm7, %v18889_v50  ;;  %v21722_v49 = vld [vmem:[#allocation39_spill] sm:$0xff] }
 0xa18   : > { %21718 = vst [vmem:[#allocation67_spill] sm:$0xff] %v18884_v24  ;;  %v7459_v9 = vadd.f32 %v7443_v55, %v7409_v4  ;;  %13852 = vmatmul.mubr.msk.f32.gmra.mrb[70].mxu0 %vm3011_vm7, %v18899_v54  ;;  %vm7489_vm11 = vcmp.gt.f32.partialorder %v18884_v24, 1.0  ;;  %v7445_v31 = vmul.f32 0.9, %v21722_v49  ;;  %v21723_v55 = vld [vmem:[#allocation37_spill] sm:$0xff] }
 0xa19   : > { %v7458_v29 = vadd.f32 %v7442_v60, %v7404_v10  ;;  %v13836_v5 = vpop.f32.mrb[148].mxu0  ;;  %vm7488_vm12 = vcmp.gt.f32.partialorder %v18892_v28, 1.0  ;;  %v7444_v10 = vmul.f32 0.9, %v18241_v6  ;;  %v7447_v49 = vmul.f32 0.9, %v18255_v46 }
 0xa1a   : > { %v18906_v43 = vsub.f32 %v7459_v9, %v18248_v38  ;;  %v7419_v53 = vadd.f32 %v18786_v62, %v13836_v5  ;;  %v7413_v27 = vpop.f32.mrb[149].mxu0  ;;  %v18911_v50 = vsel %vm7488_vm12, 1.0, %v21146_v44  ;;  %v18921_v38 = vsel %vm7489_vm11, 1.0, %v21146_v44 }
 0xa1b   : > { %v18914_v4 = vsub.f32 %v7458_v29, %v21723_v55  ;;  %v7414_v24 = vadd.f32 %v18786_v62, %v7413_v27  ;;  %13854 = vmatprep.mubr.msk.f32.mxu0 %vm3011_vm7, %v18911_v50 }
 0xa1c   : > { %v7461_v60 = vadd.f32 %v7445_v31, %v7419_v53  ;;  %13855 = vmatmul.mubr.msk.f32.gmra.mrb[72].mxu0 %vm3011_vm7, %v18921_v38  ;;  %vm7491_vm13 = vcmp.gt.f32.partialorder %v18906_v43, 1.0 }
 0xa1d   : > { %v7460_v9 = vadd.f32 %v7444_v10, %v7414_v24  ;;  %v13839_v5 = vpop.f32.mrb[150].mxu0  ;;  %vm7490_vm14 = vcmp.gt.f32.partialorder %v18914_v4, 1.0  ;;  %v7446_v24 = vmul.f32 0.9, %v18263_v35 }
 0xa1e   : > { %v18928_v29 = vsub.f32 %v7461_v60, %v18270_v47  ;;  %v7429_v6 = vadd.f32 %v18786_v62, %v13839_v5  ;;  %v7423_v27 = vpop.f32.mrb[151].mxu0  ;;  %v18933_v55 = vsel %vm7490_vm14, 1.0, %v21146_v44  ;;  %v18943_v47 = vsel %vm7491_vm13, 1.0, %v21146_v44 }
 0xa1f   : > { %v18936_v53 = vsub.f32 %v7460_v9, %v18260_v26  ;;  %v7424_v31 = vadd.f32 %v18786_v62, %v7423_v27  ;;  %13857 = vmatprep.mubr.msk.f32.mxu0 %vm3011_vm7, %v18933_v55  ;;  %v8301_v62 = vmul.f32 0.9, %v18277_v51  ;;  %v8300_v27 = vmul.f32 0.9, %v18285_v37 }
 0xa20   : > { %v7463_v10 = vadd.f32 %v7447_v49, %v7429_v6  ;;  %13858 = vmatmul.mubr.msk.f32.gmra.mrb[74].mxu0 %vm3011_vm7, %v18943_v47  ;;  %vm7493_vm15 = vcmp.gt.f32.partialorder %v18928_v29, 1.0 }
 0xa21   : > { %v7462_v46 = vadd.f32 %v7446_v24, %v7424_v31  ;;  %v13904_v60 = vpop.f32.mrb[232].mxu1  ;;  %vm7492_vm1 = vcmp.gt.f32.partialorder %v18936_v53, 1.0 }
 0xa22   : > { %v18950_v26 = vsub.f32 %v7463_v10, %v18292_v63  ;;  %v8227_v35 = vadd.f32 %v18394_v16, %v13904_v60  ;;  %v8221_v9 = vpop.f32.mrb[233].mxu1  ;;  %v18955_v5 = vsel %vm7492_vm1, 1.0, %v21146_v44  ;;  %v18965_v63 = vsel %vm7493_vm15, 1.0, %v21146_v44 }
 0xa23   : > { %v18958_v6 = vsub.f32 %v7462_v46, %v18282_v56  ;;  %v8222_v49 = vadd.f32 %v18394_v16, %v8221_v9  ;;  %13860 = vmatprep.mubr.msk.f32.mxu0 %vm3011_vm7, %v18955_v5  ;;  %v8303_v10 = vmul.f32 0.9, %v18299_v19  ;;  %v21727_v9 = vld [vmem:[#allocation41_spill] sm:$0xff] }
 0xa24   : > { %v8317_v31 = vadd.f32 %v8301_v62, %v8227_v35  ;;  %13861 = vmatmul.mubr.msk.f32.gmra.mrb[76].mxu0 %vm3011_vm7, %v18965_v63  ;;  %vm7495_vm3 = vcmp.gt.f32.partialorder %v18950_v26, 1.0 }
 0xa25   : > { %v8316_v51 = vadd.f32 %v8300_v27, %v8222_v49  ;;  %v13907_v24 = vpop.f32.mrb[234].mxu1  ;;  %vm7494_vm4 = vcmp.gt.f32.partialorder %v18958_v6, 1.0  ;;  %v8302_v49 = vmul.f32 0.9, %v21727_v9 }
 0xa26   : > { %v18972_v56 = vsub.f32 %v8317_v31, %v18307_v13  ;;  %v8237_v37 = vadd.f32 %v18394_v16, %v13907_v24  ;;  %v8231_v46 = vpop.f32.mrb[235].mxu1  ;;  %v18977_v60 = vsel %vm7494_vm4, 1.0, %v21146_v44  ;;  %v18987_v13 = vsel %vm7495_vm3, 1.0, %v21146_v44  ;;  %v21728_v24 = vld [vmem:[#allocation46_spill] sm:$0xff] }
 0xa27   : > { %21725 = vst [vmem:[#allocation70_spill] sm:$0xff] %v18977_v60  ;;  %v18980_v35 = vsub.f32 %v8316_v51, %v18304_v30  ;;  %v8232_v62 = vadd.f32 %v18394_v16, %v8231_v46  ;;  %13863 = vmatprep.mubr.msk.f32.mxu0 %vm3011_vm7, %v18977_v60  ;;  %v8305_v46 = vmul.f32 0.9, %v21728_v24 }
 0xa28   : > { %21724 = vst [vmem:[#allocation68_spill] sm:$0xff] %v18972_v56  ;;  %vm8349_vm5 = vcmp.gt.f32.partialorder %v18972_v56, 1.0  ;;  %v8319_v19 = vadd.f32 %v8303_v10, %v8237_v37  ;;  %13864 = vmatmul.mubr.msk.f32.gmra.mrb[78].mxu0 %vm3011_vm7, %v18987_v13  ;;  %v21729_v10 = vld [vmem:[#allocation43_spill] sm:$0xff] }
 0xa29   : > { %21726 = vst [vmem:[#allocation71_spill] sm:$0xff] %v18980_v35  ;;  %v8318_v27 = vadd.f32 %v8302_v49, %v8232_v62  ;;  %v13910_v31 = vpop.f32.mrb[236].mxu1  ;;  %vm8348_vm6 = vcmp.gt.f32.partialorder %v18980_v35, 1.0  ;;  %v19002_v37 = vsel %vm8349_vm5, 1.0, %v21146_v44  ;;  %v21730_v49 = vld [vmem:[#allocation40_spill] sm:$0xff] }
 0xa2a   : > { %v18994_v30 = vsub.f32 %v8319_v19, %v18338_v20  ;;  %v8247_v51 = vadd.f32 %v18394_v16, %v13910_v31  ;;  %v8241_v9 = vpop.f32.mrb[237].mxu1  ;;  %v18999_v60 = vsel %vm8348_vm6, 1.0, %v21146_v44  ;;  %v8304_v35 = vmul.f32 0.9, %v21730_v49 }
 0xa2b   : > { %v19005_v56 = vsub.f32 %v8318_v27, %v21729_v10  ;;  %v8242_v62 = vadd.f32 %v18394_v16, %v8241_v9  ;;  %13934 = vmatprep.mubr.msk.f32.mxu0 %vm2480_vm2, %v18999_v60  ;;  %v21731_v9 = vld [vmem:[#allocation42_spill] sm:$0xff] }
 0xa2c   : > { %v8321_v20 = vadd.f32 %v8305_v46, %v8247_v51  ;;  %13935 = vmatmul.mubr.msk.f32.vlgmr.msra.gmra.mrb[152].mxu0 %vm2480_vm2, %v19002_v37  ;;  %vm8351_vm8 = vcmp.gt.f32.partialorder %v18994_v30, 1.0  ;;  %v8307_v10 = vmul.f32 0.9, %v21731_v9  ;;  %v21733_v46 = vld [vmem:[#allocation35_spill] sm:$0xff] }
 0xa2d   : > { %v8320_v19 = vadd.f32 %v8304_v35, %v8242_v62  ;;  %v13913_v31 = vpop.f32.mrb[238].mxu1  ;;  %vm8350_vm9 = vcmp.gt.f32.partialorder %v19005_v56, 1.0  ;;  %13959 = vmatpush3.msra.mxu0 %v18864_v52  ;;  %v8306_v52 = vmul.f32 0.9, %v18353_v8 }
 0xa2e   : > { %v19017_v27 = vsub.f32 %v8321_v20, %v18360_v42  ;;  %v8257_v24 = vadd.f32 %v18394_v16, %v13913_v31  ;;  %v8251_v49 = vpop.f32.mrb[239].mxu1  ;;  %v19022_v51 = vsel %vm8350_vm9, 1.0, %v21146_v44  ;;  %14389 = vmatprep.subr.bf16.mxu0 %v15231_v0  ;;  %v19033_v42 = vsel %vm8351_vm8, 1.0, %v21146_v44 }
 0xa2f   : > { %21732 = vst [vmem:[#allocation72_spill] sm:$0xff] %v19022_v51  ;;  %v19026_v35 = vsub.f32 %v8320_v19, %v21733_v46  ;;  %v8252_v62 = vadd.f32 %v18394_v16, %v8251_v49  ;;  %13937 = vmatprep.mubr.msk.f32.mxu0 %vm2480_vm2, %v19022_v51  ;;  %v8309_v49 = vmul.f32 0.9, %v18367_v1 }
 0xa30   : > { %v8323_v20 = vadd.f32 %v8307_v10, %v8257_v24  ;;  %13938 = vmatmul.mubr.msk.f32.gmra.mrb[154].mxu0 %vm2480_vm2, %v19033_v42  ;;  %vm8353_vm10 = vcmp.gt.f32.partialorder %v19017_v27, 1.0  ;;  %v21737_v24 = vld [vmem:[#allocation50_spill] sm:$0xff] }
 0xa31   : > { %21734 = vst [vmem:[#allocation26_spill] sm:$0xff] %v19026_v35  ;;  %v8322_v31 = vadd.f32 %v8306_v52, %v8252_v62  ;;  %v13916_v9 = vpop.f32.mrb[240].mxu1  ;;  %vm8352_vm11 = vcmp.gt.f32.partialorder %v19026_v35, 1.0  ;;  %v19053_v62 = vld [vmem:[%s20679_s1 + $0x89] ss:$0 sm:$0xff]  ;;  %v19060_v1 = vsel %vm8353_vm10, 1.0, %v21146_v44 }
 0xa32   : > { %v19040_v19 = vsub.f32 %v8323_v20, %v18382_v11  ;;  %v8267_v8 = vadd.f32 %v18394_v16, %v13916_v9  ;;  %v8261_v46 = vpop.f32.mrb[241].mxu1  ;;  %v19045_v51 = vsel %vm8352_vm11, 1.0, %v21146_v44  ;;  %v21738_v11 = vld [vmem:[#allocation44_spill] sm:$0xff] }
 0xa33   : > { %21736 = vst [vmem:[#allocation23_spill] sm:$0xff] %v19045_v51  ;;  %v19048_v10 = vsub.f32 %v8322_v31, %v21737_v24  ;;  %v8262_v52 = vadd.f32 %v19053_v62, %v8261_v46  ;;  %v8308_v20 = vmul.f32 0.9, %v21738_v11  ;;  %13940 = vmatprep.mubr.msk.f32.mxu0 %vm2480_vm2, %v19045_v51  ;;  %v8311_v11 = vmul.f32 0.9, %v18389_v25 }
 0xa34   : > { %21735 = vst [vmem:[#allocation29_spill] sm:$0xff] %v19040_v19  ;;  %v8325_v16 = vadd.f32 %v8309_v49, %v8267_v8  ;;  %13941 = vmatmul.mubr.msk.f32.gmra.mrb[156].mxu0 %vm2480_vm2, %v19060_v1  ;;  %vm8355_vm12 = vcmp.gt.f32.partialorder %v19040_v19, 1.0  ;;  %v21739_v8 = vld [vmem:[#allocation45_spill] sm:$0xff] }
 0xa35   : > { %v8324_v31 = vadd.f32 %v8308_v20, %v8262_v52  ;;  %v13919_v9 = vpop.f32.mrb[242].mxu1  ;;  %vm8354_vm13 = vcmp.gt.f32.partialorder %v19048_v10, 1.0  ;;  %v8310_v52 = vmul.f32 0.9, %v18402_v7 }
 0xa36   : > { %v19067_v46 = vsub.f32 %v8325_v16, %v18409_v48  ;;  %v8277_v24 = vadd.f32 %v19053_v62, %v13919_v9  ;;  %v8271_v51 = vpop.f32.mrb[243].mxu1  ;;  %v19072_v35 = vsel %vm8354_vm13, 1.0, %v21146_v44  ;;  %v19082_v48 = vsel %vm8355_vm12, 1.0, %v21146_v44 }
 0xa37   : > { %v19075_v49 = vsub.f32 %v8324_v31, %v21739_v8  ;;  %v8272_v19 = vadd.f32 %v19053_v62, %v8271_v51  ;;  %13943 = vmatprep.mubr.msk.f32.mxu0 %vm2480_vm2, %v19072_v35  ;;  %v8313_v31 = vmul.f32 0.9, %v18416_v58 }
 0xa38   : > { %v8327_v20 = vadd.f32 %v8311_v11, %v8277_v24  ;;  %13944 = vmatmul.mubr.msk.f32.gmra.mrb[158].mxu0 %vm2480_vm2, %v19082_v48  ;;  %vm8357_vm14 = vcmp.gt.f32.partialorder %v19067_v46, 1.0 }
 0xa39   : > { %v8326_v25 = vadd.f32 %v8310_v52, %v8272_v19  ;;  %v13922_v16 = vpop.f32.mrb[244].mxu1  ;;  %vm8356_vm15 = vcmp.gt.f32.partialorder %v19075_v49, 1.0  ;;  %v8312_v19 = vmul.f32 0.9, %v18424_v12 }
 0xa3a   : > { %v19089_v51 = vsub.f32 %v8327_v20, %v18431_v59  ;;  %v8287_v7 = vadd.f32 %v19053_v62, %v13922_v16  ;;  %v8281_v9 = vpop.f32.mrb[245].mxu1  ;;  %v19094_v8 = vsel %vm8356_vm15, 1.0, %v21146_v44  ;;  %v19104_v59 = vsel %vm8357_vm14, 1.0, %v21146_v44 }
 0xa3b   : > { %21740 = vst [vmem:[#allocation28_spill] sm:$0xff] %v19094_v8  ;;  %v19097_v24 = vsub.f32 %v8326_v25, %v18421_v40  ;;  %v8282_v11 = vadd.f32 %v19053_v62, %v8281_v9  ;;  %13946 = vmatprep.mubr.msk.f32.mxu0 %vm2480_vm2, %v19094_v8  ;;  %v8315_v25 = vmul.f32 0.9, %v18438_v33 }
 0xa3c   : > { %v8329_v52 = vadd.f32 %v8313_v31, %v8287_v7  ;;  %13947 = vmatmul.mubr.msk.f32.gmra.mrb[160].mxu0 %vm2480_vm2, %v19104_v59  ;;  %vm8359_vm1 = vcmp.gt.f32.partialorder %v19089_v51, 1.0  ;;  %v21741_v7 = vld [vmem:[#allocation49_spill] sm:$0xff] }
 0xa3d   : > { %v8328_v58 = vadd.f32 %v8312_v19, %v8282_v11  ;;  %v13925_v20 = vpop.f32.mrb[246].mxu1  ;;  %vm8358_vm3 = vcmp.gt.f32.partialorder %v19097_v24, 1.0  ;;  %v8314_v11 = vmul.f32 0.9, %v18451_v18  ;;  %v19138_v18 = vld [vmem:[%s20679_s1 + $0x88] ss:$0 sm:$0xff] }
 0xa3e   : > { %v19111_v40 = vsub.f32 %v8329_v52, %v18458_v3  ;;  %v8297_v12 = vadd.f32 %v19053_v62, %v13925_v20  ;;  %v8291_v16 = vpop.f32.mrb[247].mxu1  ;;  %v19116_v9 = vsel %vm8358_vm3, 1.0, %v21146_v44  ;;  %v19126_v3 = vsel %vm8359_vm1, 1.0, %v21146_v44 }
 0xa3f   : > { %v19119_v31 = vsub.f32 %v8328_v58, %v21741_v7  ;;  %v8292_v8 = vadd.f32 %v19053_v62, %v8291_v16  ;;  %13949 = vmatprep.mubr.msk.f32.mxu0 %vm2480_vm2, %v19116_v9 }
 0xa40   : > { %v8331_v19 = vadd.f32 %v8315_v25, %v8297_v12  ;;  %13950 = vmatmul.mubr.msk.f32.gmra.mrb[162].mxu0 %vm2480_vm2, %v19126_v3  ;;  %vm8361_vm4 = vcmp.gt.f32.partialorder %v19111_v40, 1.0  ;;  %v9169_v12 = vmul.f32 0.9, %v18465_v61 }
 0xa41   : > { %v8330_v33 = vadd.f32 %v8314_v11, %v8292_v8  ;;  %v13990_v52 = vpop.f32.mrb[248].mxu1  ;;  %vm8360_vm5 = vcmp.gt.f32.partialorder %v19119_v31, 1.0  ;;  %v19153_v11 = vsel %vm8361_vm4, 1.0, %v21146_v44 }
 0xa42   : > { %v19133_v58 = vsub.f32 %v8331_v19, %v18480_v34  ;;  %v9095_v20 = vadd.f32 %v19138_v18, %v13990_v52  ;;  %v9089_v25 = vpop.f32.mrb[249].mxu1  ;;  %v19143_v16 = vsel %vm8360_vm5, 1.0, %v21146_v44  ;;  %v9168_v34 = vmul.f32 0.9, %v18473_v17 }
 0xa43   : > { %21742 = vst [vmem:[#allocation30_spill] sm:$0xff] %v19143_v16  ;;  %v19146_v8 = vsub.f32 %v8330_v33, %v18470_v2  ;;  %v9090_v7 = vadd.f32 %v19138_v18, %v9089_v25  ;;  %13952 = vmatprep.mubr.msk.f32.mxu0 %vm2480_vm2, %v19143_v16  ;;  %v9171_v33 = vmul.f32 0.9, %v18487_v22 }
 0xa44   : > { %v9185_v19 = vadd.f32 %v9169_v12, %v9095_v20  ;;  %13953 = vmatmul.mubr.msk.f32.gmra.mrb[164].mxu0 %vm2480_vm2, %v19153_v11  ;;  %vm8363_vm6 = vcmp.gt.f32.partialorder %v19133_v58, 1.0 }
 0xa45   : > { %v9184_v61 = vadd.f32 %v9168_v34, %v9090_v7  ;;  %v13993_v52 = vpop.f32.mrb[250].mxu1  ;;  %vm8362_vm8 = vcmp.gt.f32.partialorder %v19146_v8, 1.0  ;;  %v9170_v7 = vmul.f32 0.9, %v18498_v21 }
 0xa46   : > { %v19160_v2 = vsub.f32 %v9185_v19, %v18495_v14  ;;  %v9105_v17 = vadd.f32 %v19138_v18, %v13993_v52  ;;  %v9099_v25 = vpop.f32.mrb[251].mxu1  ;;  %v19165_v16 = vsel %vm8362_vm8, 1.0, %v21146_v44  ;;  %v19175_v14 = vsel %vm8363_vm6, 1.0, %v21146_v44 }
 0xa47   : > { %21744 = vst [vmem:[#allocation27_spill] sm:$0xff] %v19165_v16  ;;  %v19168_v20 = vsub.f32 %v9184_v61, %v18492_v39  ;;  %v9100_v12 = vadd.f32 %v19138_v18, %v9099_v25  ;;  %13955 = vmatprep.mubr.msk.f32.mxu0 %vm2480_vm2, %v19165_v16  ;;  %21746 = vst [vmem:[#allocation31_spill] sm:$0xff] %v19175_v14  ;;  %v9173_v61 = vmul.f32 0.9, %v18510_v36 }
 0xa48   : > { %21743 = vst [vmem:[#allocation88_spill] sm:$0xff] %v19160_v2  ;;  %vm9217_vm9 = vcmp.gt.f32.partialorder %v19160_v2, 1.0  ;;  %v9187_v22 = vadd.f32 %v9171_v33, %v9105_v17  ;;  %13956 = vmatmul.mubr.msk.f32.gmra.mrb[166].mxu0 %vm2480_vm2, %v19175_v14  ;;  %v21750_v33 = vld [vmem:[#allocation51_spill] sm:$0xff] }
 0xa49   : > { %21745 = vst [vmem:[#allocation32_spill] sm:$0xff] %v19168_v20  ;;  %v9186_v34 = vadd.f32 %v9170_v7, %v9100_v12  ;;  %v13996_v19 = vpop.f32.mrb[252].mxu1  ;;  %vm9216_vm10 = vcmp.gt.f32.partialorder %v19168_v20, 1.0  ;;  %v19190_v17 = vsel %vm9217_vm9, 1.0, %v21146_v44  ;;  %v21752_v7 = vld [vmem:[#allocation47_spill] sm:$0xff] }
 0xa4a   : > { %v19182_v39 = vsub.f32 %v9187_v22, %v18526_v15  ;;  %v9115_v21 = vadd.f32 %v19138_v18, %v13996_v19  ;;  %v9109_v52 = vpop.f32.mrb[253].mxu1  ;;  %v19187_v25 = vsel %vm9216_vm10, 1.0, %v21146_v44  ;;  %21749 = vst [vmem:[#allocation58_spill] sm:$0xff] %v19190_v17  ;;  %v9172_v20 = vmul.f32 0.9, %v21752_v7  ;;  %v21753_v22 = vld [vmem:[#allocation3_spill] sm:$0xff] }
 0xa4b   : > { %21748 = vst [vmem:[#allocation53_spill] sm:$0xff] %v19187_v25  ;;  %v19193_v16 = vsub.f32 %v9186_v34, %v21750_v33  ;;  %v9110_v12 = vadd.f32 %v19138_v18, %v9109_v52  ;;  %14020 = vmatprep.mubr.msk.f32.mxu1 %vm2480_vm2, %v19187_v25  ;;  %v21754_v34 = vld [vmem:[#allocation52_spill] sm:$0xff] }
 0xa4c   : > { %21747 = vst [vmem:[#allocation55_spill] sm:$0xff] %v19182_v39  ;;  %vm9219_vm11 = vcmp.gt.f32.partialorder %v19182_v39, 1.0  ;;  %v9189_v36 = vadd.f32 %v9173_v61, %v9115_v21  ;;  %14021 = vmatmul.mubr.msk.f32.vlgmr.msra.gmra.mrb[16].mxu1 %vm2480_vm2, %v19190_v17  ;;  %v21756_v7 = vld [vmem:[#allocation48_spill] sm:$0xff]  ;;  %v21760_v61 = vld [vmem:[#allocation54_spill] sm:$0xff]  ;;  %v21763_v17 = vld [vmem:[#allocation95_spill] sm:$0xff] }
 0xa4d   : > { %21751 = vst [vmem:[#allocation59_spill] sm:$0xff] %v19193_v16  ;;  %v9188_v15 = vadd.f32 %v9172_v20, %v9110_v12  ;;  %14399 = vmatpush3.bf16.msra.mxu1 %v21753_v22  ;;  %v13999_v19 = vpop.f32.mrb[254].mxu1  ;;  %vm9218_vm12 = vcmp.gt.f32.partialorder %v19193_v16, 1.0  ;;  %v9175_v2 = vmul.f32 0.9, %v21756_v7  ;;  %v21758_v21 = vld [vmem:[#allocation4_spill] sm:$0xff] }
 0xa4e   : > { %v19205_v33 = vsub.f32 %v9189_v36, %v21754_v34  ;;  %v9125_v52 = vadd.f32 %v19138_v18, %v13999_v19  ;;  %v9119_v25 = vpop.f32.mrb[255].mxu1  ;;  %v19210_v39 = vsel %vm9218_vm12, 1.0, %v21146_v44  ;;  %14401 = vmatprep.subr.bf16.mxu1 %v21758_v21  ;;  %v19214_v20 = vsel %vm9219_vm11, 1.0, %v21146_v44  ;;  %v21762_v36 = vld [vmem:[#allocation94_spill] sm:$0xff] }
 0xa4f   : > { %21757 = vst [vmem:[#allocation34_spill] sm:$0xff] %v19210_v39  ;;  %21759 = vst [vmem:[#allocation33_spill] sm:$0xff] %v19214_v20  ;;  %v19217_v12 = vsub.f32 %v9188_v15, %v21760_v61  ;;  %v9120_v22 = vadd.f32 %v19138_v18, %v9119_v25  ;;  %v9174_v34 = vmul.f32 0.9, %v21762_v36  ;;  %14023 = vmatprep.mubr.msk.f32.mxu1 %vm2480_vm2, %v19210_v39  ;;  %v21765_v61 = vld [vmem:[#allocation92_spill] sm:$0xff] }
 0xa50   : > { %21755 = vst [vmem:[#allocation90_spill] sm:$0xff] %v19205_v33  ;;  %vm9221_vm13 = vcmp.gt.f32.partialorder %v19205_v33, 1.0  ;;  %v9191_v19 = vadd.f32 %v9175_v2, %v9125_v52  ;;  %14024 = vmatmul.mubr.msk.f32.gmra.mrb[18].mxu1 %vm2480_vm2, %v19214_v20  ;;  %v9177_v36 = vmul.f32 0.9, %v21765_v61  ;;  %v21768_v52 = vld [vmem:[#allocation93_spill] sm:$0xff]  ;;  %v21771_v61 = vld [vmem:[#allocation99_spill] sm:$0xff] }
 0xa51   : > { %21761 = vst [vmem:[#allocation38_spill] sm:$0xff] %v19217_v12  ;;  %v9190_v7 = vadd.f32 %v9174_v34, %v9120_v22  ;;  %v14002_v16 = vpop.f32.mrb[8].mxu1  ;;  %vm9220_vm14 = vcmp.gt.f32.partialorder %v19217_v12, 1.0  ;;  %v19236_v2 = vsel %vm9221_vm13, 1.0, %v21146_v44  ;;  %v21770_v34 = vld [vmem:[#allocation98_spill] sm:$0xff] }
 0xa52   : > { %v19228_v15 = vsub.f32 %v9191_v19, %v21763_v17  ;;  %v9135_v25 = vadd.f32 %v19138_v18, %v14002_v16  ;;  %v9129_v14 = vpop.f32.mrb[9].mxu1  ;;  %v19233_v39 = vsel %vm9220_vm14, 1.0, %v21146_v44  ;;  %21767 = vst [vmem:[#allocation39_spill] sm:$0xff] %v19236_v2  ;;  %v9176_v12 = vmul.f32 0.9, %v21770_v34 }
 0xa53   : > { %21766 = vst [vmem:[#allocation36_spill] sm:$0xff] %v19233_v39  ;;  %v19239_v33 = vsub.f32 %v9190_v7, %v21768_v52  ;;  %v9130_v22 = vadd.f32 %v19138_v18, %v9129_v14  ;;  %14026 = vmatprep.mubr.msk.f32.mxu1 %vm2480_vm2, %v19233_v39  ;;  %v21773_v52 = vld [vmem:[#allocation96_spill] sm:$0xff] }
 0xa54   : > { %21764 = vst [vmem:[#allocation89_spill] sm:$0xff] %v19228_v15  ;;  %vm9223_vm15 = vcmp.gt.f32.partialorder %v19228_v15, 1.0  ;;  %v9193_v16 = vadd.f32 %v9177_v36, %v9135_v25  ;;  %14027 = vmatmul.mubr.msk.f32.gmra.mrb[20].mxu1 %vm2480_vm2, %v19236_v2  ;;  %v9179_v34 = vmul.f32 0.9, %v21773_v52  ;;  %v21776_v36 = vld [vmem:[#allocation97_spill] sm:$0xff]  ;;  %v21779_v52 = vld [vmem:[#allocation75_spill] sm:$0xff] }
 0xa55   : > { %21769 = vst [vmem:[#allocation37_spill] sm:$0xff] %v19239_v33  ;;  %v9192_v17 = vadd.f32 %v9176_v12, %v9130_v22  ;;  %v14005_v19 = vpop.f32.mrb[10].mxu1  ;;  %vm9222_vm1 = vcmp.gt.f32.partialorder %v19239_v33, 1.0  ;;  %v19258_v25 = vsel %vm9223_vm15, 1.0, %v21146_v44  ;;  %v21778_v22 = vld [vmem:[#allocation100_spill] sm:$0xff] }
 0xa56   : > { %v19250_v7 = vsub.f32 %v9193_v16, %v21771_v61  ;;  %v9145_v14 = vadd.f32 %v19138_v18, %v14005_v19  ;;  %v9139_v20 = vpop.f32.mrb[11].mxu1  ;;  %v19255_v39 = vsel %vm9222_vm1, 1.0, %v21146_v44  ;;  %21775 = vst [vmem:[#allocation43_spill] sm:$0xff] %v19258_v25  ;;  %v9178_v33 = vmul.f32 0.9, %v21778_v22 }
 0xa57   : > { %21774 = vst [vmem:[#allocation46_spill] sm:$0xff] %v19255_v39  ;;  %v19261_v15 = vsub.f32 %v9192_v17, %v21776_v36  ;;  %v9140_v12 = vadd.f32 %v19138_v18, %v9139_v20  ;;  %14029 = vmatprep.mubr.msk.f32.mxu1 %vm2480_vm2, %v19255_v39  ;;  %v21781_v36 = vld [vmem:[#allocation73_spill] sm:$0xff] }
 0xa58   : > { %21772 = vst [vmem:[#allocation41_spill] sm:$0xff] %v19250_v7  ;;  %vm9225_vm3 = vcmp.gt.f32.partialorder %v19250_v7, 1.0  ;;  %v9195_v16 = vadd.f32 %v9179_v34, %v9145_v14  ;;  %14030 = vmatmul.mubr.msk.f32.gmra.mrb[22].mxu1 %vm2480_vm2, %v19258_v25  ;;  %v9181_v22 = vmul.f32 0.9, %v21781_v36  ;;  %v21784_v34 = vld [vmem:[#allocation77_spill] sm:$0xff]  ;;  %v21787_v36 = vld [vmem:[#allocation80_spill] sm:$0xff] }
 0xa59   : > { %21777 = vst [vmem:[#allocation40_spill] sm:$0xff] %v19261_v15  ;;  %v9194_v19 = vadd.f32 %v9178_v33, %v9140_v12  ;;  %v14008_v61 = vpop.f32.mrb[12].mxu1  ;;  %vm9224_vm4 = vcmp.gt.f32.partialorder %v19261_v15, 1.0  ;;  %v19280_v14 = vsel %vm9225_vm3, 1.0, %v21146_v44  ;;  %v21786_v12 = vld [vmem:[#allocation74_spill] sm:$0xff] }
 0xa5a   : > { %v19272_v17 = vsub.f32 %v9195_v16, %v21779_v52  ;;  %v9155_v20 = vadd.f32 %v19138_v18, %v14008_v61  ;;  %v9149_v2 = vpop.f32.mrb[13].mxu1  ;;  %v19277_v39 = vsel %vm9224_vm4, 1.0, %v21146_v44  ;;  %21783 = vst [vmem:[#allocation50_spill] sm:$0xff] %v19280_v14  ;;  %v9180_v15 = vmul.f32 0.9, %v21786_v12 }
 0xa5b   : > { %21782 = vst [vmem:[#allocation35_spill] sm:$0xff] %v19277_v39  ;;  %v19283_v7 = vsub.f32 %v9194_v19, %v21784_v34  ;;  %v9150_v33 = vadd.f32 %v19138_v18, %v9149_v2  ;;  %14032 = vmatprep.mubr.msk.f32.mxu1 %vm2480_vm2, %v19277_v39  ;;  %v21789_v34 = vld [vmem:[#allocation76_spill] sm:$0xff] }
 0xa5c   : > { %21780 = vst [vmem:[#allocation42_spill] sm:$0xff] %v19272_v17  ;;  %vm9227_vm5 = vcmp.gt.f32.partialorder %v19272_v17, 1.0  ;;  %v9197_v16 = vadd.f32 %v9181_v22, %v9155_v20  ;;  %14033 = vmatmul.mubr.msk.f32.gmra.mrb[24].mxu1 %vm2480_vm2, %v19280_v14  ;;  %v9183_v12 = vmul.f32 0.9, %v21789_v34  ;;  %v21792_v22 = vld [vmem:[#allocation78_spill] sm:$0xff]  ;;  %v21799_v34 = vld [vmem:[#allocation84_spill] sm:$0xff] }
 0xa5d   : > { %21785 = vst [vmem:[#allocation44_spill] sm:$0xff] %v19283_v7  ;;  %v9196_v61 = vadd.f32 %v9180_v15, %v9150_v33  ;;  %v14011_v52 = vpop.f32.mrb[14].mxu1  ;;  %vm9226_vm6 = vcmp.gt.f32.partialorder %v19283_v7, 1.0  ;;  %v19302_v20 = vsel %vm9227_vm5, 1.0, %v21146_v44  ;;  %v21794_v33 = vld [vmem:[#allocation79_spill] sm:$0xff] }
 0xa5e   : > { %v19294_v19 = vsub.f32 %v9197_v16, %v21787_v36  ;;  %v9165_v2 = vadd.f32 %v19138_v18, %v14011_v52  ;;  %v9159_v25 = vpop.f32.mrb[15].mxu1  ;;  %v19299_v39 = vsel %vm9226_vm6, 1.0, %v21146_v44  ;;  %21791 = vst [vmem:[#allocation51_spill] sm:$0xff] %v19302_v20  ;;  %v9182_v7 = vmul.f32 0.9, %v21794_v33  ;;  %v12233_v33 = vld [vmem:[%s15104_s6 + $0x390] sm:$0xff] }
 0xa5f   : > { %21790 = vst [vmem:[#allocation49_spill] sm:$0xff] %v19299_v39  ;;  %v19305_v17 = vsub.f32 %v9196_v61, %v21792_v22  ;;  %v9160_v15 = vadd.f32 %v19138_v18, %v9159_v25  ;;  %14035 = vmatprep.mubr.msk.f32.mxu1 %vm2480_vm2, %v19299_v39  ;;  %v21795_v61 = vld [vmem:[#allocation81_spill] sm:$0xff] }
 0xa60   : > { %21788 = vst [vmem:[#allocation45_spill] sm:$0xff] %v19294_v19  ;;  %vm9229_vm8 = vcmp.gt.f32.partialorder %v19294_v19, 1.0  ;;  %v9199_v16 = vadd.f32 %v9183_v12, %v9165_v2  ;;  %14036 = vmatmul.mubr.msk.f32.gmra.mrb[26].mxu1 %vm2480_vm2, %v19302_v20  ;;  %v12231_v12 = vld [vmem:[%s15104_s6 + $0x380] sm:$0xff]  ;;  %v21808_v20 = vld [vmem:[#allocation16_spill] sm:$0xff] }
 0xa61   : > { %21793 = vst [vmem:[#allocation47_spill] sm:$0xff] %v19305_v17  ;;  %v9198_v52 = vadd.f32 %v9182_v7, %v9160_v15  ;;  %vm9228_vm9 = vcmp.gt.f32.partialorder %v19305_v17, 1.0  ;;  %v19322_v25 = vsel %vm9229_vm8, 1.0, %v21146_v44  ;;  %v12232_v15 = vld [vmem:[%s15104_s6 + $0x388] sm:$0xff]  ;;  %v21806_v17 = vld [vmem:[#allocation83_spill] sm:$0xff]  ;;  %vm7771_vm14 = vcmp.gt.f32.partialorder %v21808_v20, 1.0 }
 0xa62   : > { %v19316_v36 = vsub.f32 %v9199_v16, %v21795_v61  ;;  %v19319_v18 = vsel %vm9228_vm9, 1.0, %v21146_v44  ;;  %21798 = vst [vmem:[#allocation48_spill] sm:$0xff] %v19322_v25  ;;  %v12234_v16 = vld [vmem:[%s15104_s6 + $0x398] sm:$0xff]  ;;  %v21803_v61 = vld [vmem:[#allocation5_spill] sm:$0xff] }
 0xa63   : > { %21797 = vst [vmem:[#allocation52_spill] sm:$0xff] %v19319_v18  ;;  %v19325_v2 = vsub.f32 %v9198_v52, %v21799_v34  ;;  %14038 = vmatprep.mubr.msk.f32.mxu1 %vm2480_vm2, %v19319_v18  ;;  %v12235_v52 = vld [vmem:[%s15104_s6 + $0x3a0] sm:$0xff]  ;;  %v12236_v34 = vld [vmem:[%s15104_s6 + $0x3a8] sm:$0xff] }
 0xa64   : > { %21796 = vst [vmem:[#allocation3_spill] sm:$0xff] %v19316_v36  ;;  %vm9231_vm10 = vcmp.gt.f32.partialorder %v19316_v36, 1.0  ;;  %14039 = vmatmul.mubr.msk.f32.gmra.mrb[28].mxu1 %vm2480_vm2, %v19322_v25 }
 0xa65   : > { %21800 = vst [vmem:[#allocation4_spill] sm:$0xff] %v19325_v2  ;;  %vm9230_vm11 = vcmp.gt.f32.partialorder %v19325_v2, 1.0  ;;  %v19338_v22 = vsel %vm9231_vm10, 1.0, %v21146_v44 }
 0xa66   : > { %v19334_v7 = vsel %vm9230_vm11, 1.0, %v21146_v44  ;;  %21802 = vst [vmem:[#allocation94_spill] sm:$0xff] %v19338_v22 }
 0xa67   : > { %21801 = vst [vmem:[#allocation54_spill] sm:$0xff] %v19334_v7  ;;  %14041 = vmatprep.mubr.msk.f32.mxu1 %vm2480_vm2, %v19334_v7 }
 0xa68   : > { %14042 = vmatmul.mubr.msk.f32.gmra.mrb[30].mxu1 %vm2480_vm2, %v19338_v22  ;;  %v21805_v22 = vld [vmem:[#allocation87_spill] sm:$0xff] }
 0xa69   : > { %14106 = vmatprep.mubr.msk.f32.mxu1 %vm1243_vm0, %v12231_v12  ;;  %v12237_v12 = vld [vmem:[%s15104_s6 + $0x3b0] sm:$0xff]  ;;  %vm7769_vm13 = vcmp.gt.f32.partialorder %v21805_v22, 1.0 }
 0xa6a   : > { %v7785_v36 = vsel %vm7769_vm13, 1.0, %v21146_v44  ;;  %vm7783_vm13 = vcmp.gt.f32.partialorder %v18790_v57, 1.0 }
 0xa6c   : > { %14107 = vmatmul.mubr.msk.f32.vlgmr.msra.gmra.mrb[32].mxu1 %vm1243_vm0, %v12232_v15  ;;  %v12239_v15 = vld [vmem:[%s15104_s6 + $0x3c0] sm:$0xff] }
 0xa6d   : > { %14109 = vmatprep.mubr.msk.f32.mxu1 %vm1243_vm0, %v12233_v33  ;;  %14403 = vmatpush3.bf16.msra.mxu1 %v21758_v21  ;;  %v12238_v21 = vld [vmem:[%s15104_s6 + $0x3b8] sm:$0xff]  ;;  %v12240_v33 = vld [vmem:[%s15104_s6 + $0x3c8] sm:$0xff] }
 0xa6e   : > { %14405 = vmatprep.subr.bf16.mxu1 %v21803_v61 }
 0xa70   : > { %14110 = vmatmul.mubr.msk.f32.gmra.mrb[34].mxu1 %vm1243_vm0, %v12234_v16  ;;  %v12241_v16 = vld [vmem:[%s15104_s6 + $0x3d0] sm:$0xff] }
 0xa71   : > { %14112 = vmatprep.mubr.msk.f32.mxu1 %vm1243_vm0, %v12235_v52  ;;  %14407 = vmatpush3.bf16.msra.mxu1 %v21803_v61  ;;  %v12242_v52 = vld [vmem:[%s15104_s6 + $0x3d8] sm:$0xff]  ;;  %v12243_v61 = vld [vmem:[%s15104_s6 + $0x3e0] sm:$0xff] }
 0xa74   : > { %14113 = vmatmul.mubr.msk.f32.gmra.mrb[36].mxu1 %vm1243_vm0, %v12236_v34  ;;  %v12244_v34 = vld [vmem:[%s15104_s6 + $0x3e8] sm:$0xff] }
 0xa75   : > { %14115 = vmatprep.mubr.msk.f32.mxu1 %vm1243_vm0, %v12237_v12  ;;  %v12245_v12 = vld [vmem:[%s15104_s6 + $0x3f0] sm:$0xff] }
 0xa78   : > { %14116 = vmatmul.mubr.msk.f32.gmra.mrb[38].mxu1 %vm1243_vm0, %v12238_v21  ;;  %v12246_v21 = vld [vmem:[%s15104_s6 + $0x3f8] sm:$0xff] }
 0xa79   : > { %14118 = vmatprep.mubr.msk.f32.mxu1 %vm1243_vm0, %v12239_v15 }
 0xa7c   : > { %14119 = vmatmul.mubr.msk.f32.gmra.mrb[40].mxu1 %vm1243_vm0, %v12240_v33  ;;  %v19381_v33 = vld [vmem:[%s20679_s1 + $0x8a] ss:$0 sm:$0xff] }
 0xa7d   : > { %14121 = vmatprep.mubr.msk.f32.mxu1 %vm1243_vm0, %v12241_v16 }
 0xa80   : > { %14122 = vmatmul.mubr.msk.f32.gmra.mrb[42].mxu1 %vm1243_vm0, %v12242_v52  ;;  %v21804_v52 = vld [vmem:[#allocation82_spill] sm:$0xff] }
 0xa81   : > { %14124 = vmatprep.mubr.msk.f32.mxu1 %vm1243_vm0, %v12243_v61  ;;  %v7738_v7 = vmul.f32 0.9, %v21804_v52  ;;  %vm7770_vm12 = vcmp.gt.f32.partialorder %v21804_v52, 1.0 }
 0xa82   : > { %v7786_v2 = vsel %vm7770_vm12, 1.0, %v21146_v44 }
 0xa84   : > { %14125 = vmatmul.mubr.msk.f32.gmra.mrb[44].mxu1 %vm1243_vm0, %v12244_v34 }
 0xa85   : > { %14127 = vmatprep.mubr.msk.f32.mxu1 %vm1243_vm0, %v12245_v12  ;;  %v7737_v12 = vmul.f32 0.9, %v21805_v22  ;;  %v7739_v22 = vmul.f32 0.9, %v21808_v20 }
 0xa88   : > { %14128 = vmatmul.mubr.msk.f32.gmra.mrb[46].mxu1 %vm1243_vm0, %v12246_v21  ;;  %vm7772_vm0 = vcmp.gt.f32.partialorder %v21806_v17, 1.0 }
 0xadf   : > { %v13844_v15 = vpop.f32.mrb[64].mxu0 }
 0xae0   : > { %v14490_v16 = vadd.f32 %v19381_v33, %v13844_v15  ;;  %v7642_v61 = vpop.f32.mrb[65].mxu0  ;;  %v7740_v15 = vmul.f32 0.9, %v21806_v17 }
 0xae1   : > { %v14491_v34 = vadd.f32 %v19381_v33, %v7642_v61 }
 0xae2   : > { %v7754_v21 = vadd.f32 %v14490_v16, %v7738_v7 }
 0xae3   : > { %v7753_v18 = vadd.f32 %v14491_v34, %v7737_v12  ;;  %v13847_v25 = vpop.f32.mrb[66].mxu0  ;;  %v7788_v34 = vsel %vm7772_vm0, 1.0, %v21146_v44 }
 0xae4   : > { %v19392_v39 = vsub.f32 %v7754_v21, %v7786_v2  ;;  %v14492_v52 = vadd.f32 %v19381_v33, %v13847_v25  ;;  %v7652_v19 = vpop.f32.mrb[67].mxu0  ;;  %v7787_v2 = vsel %vm7771_vm14, 1.0, %v21146_v44 }
 0xae5   : > { %v19397_v61 = vsub.f32 %v7753_v18, %v7785_v36  ;;  %v14493_v7 = vadd.f32 %v19381_v33, %v7652_v19  ;;  %v21812_v18 = vld [vmem:[#allocation17_spill] sm:$0xff] }
 0xae6   : > { %21807 = vst [vmem:[#allocation95_spill] sm:$0xff] %v19392_v39  ;;  %v7756_v16 = vadd.f32 %v14492_v52, %v7740_v15  ;;  %v21810_v39 = vld [vmem:[#allocation85_spill] sm:$0xff]  ;;  %vm7773_vm1 = vcmp.gt.f32.partialorder %v21812_v18, 1.0  ;;  %v7741_v15 = vmul.f32 0.9, %v21812_v18 }
 0xae7   : > { %21809 = vst [vmem:[#allocation92_spill] sm:$0xff] %v19397_v61  ;;  %v7755_v12 = vadd.f32 %v14493_v7, %v7739_v22  ;;  %v13850_v21 = vpop.f32.mrb[68].mxu0  ;;  %v7742_v25 = vmul.f32 0.9, %v21810_v39  ;;  %vm7774_vm15 = vcmp.gt.f32.partialorder %v21810_v39, 1.0 }
 0xae8   : > { %v19404_v14 = vsub.f32 %v7756_v16, %v7788_v34  ;;  %v14494_v17 = vadd.f32 %v19381_v33, %v13850_v21  ;;  %v7662_v36 = vpop.f32.mrb[69].mxu0  ;;  %v7790_v7 = vsel %vm7774_vm15, 1.0, %v21146_v44  ;;  %v7789_v16 = vsel %vm7773_vm1, 1.0, %v21146_v44 }
 0xae9   : > { %v19409_v19 = vsub.f32 %v7755_v12, %v7787_v2  ;;  %v14495_v20 = vadd.f32 %v19381_v33, %v7662_v36  ;;  %v21816_v2 = vld [vmem:[#allocation19_spill] sm:$0xff] }
 0xaea   : > { %21811 = vst [vmem:[#allocation93_spill] sm:$0xff] %v19404_v14  ;;  %v7758_v52 = vadd.f32 %v14494_v17, %v7742_v25  ;;  %v21814_v14 = vld [vmem:[#allocation86_spill] sm:$0xff]  ;;  %vm7775_vm4 = vcmp.gt.f32.partialorder %v21816_v2, 1.0  ;;  %v7743_v17 = vmul.f32 0.9, %v21816_v2 }
 0xaeb   : > { %21813 = vst [vmem:[#allocation98_spill] sm:$0xff] %v19409_v19  ;;  %v7757_v22 = vadd.f32 %v14495_v20, %v7741_v15  ;;  %v13853_v34 = vpop.f32.mrb[70].mxu0  ;;  %v7744_v21 = vmul.f32 0.9, %v21814_v14  ;;  %vm7776_vm3 = vcmp.gt.f32.partialorder %v21814_v14, 1.0 }
 0xaec   : > { %v19416_v61 = vsub.f32 %v7758_v52, %v7790_v7  ;;  %v14496_v39 = vadd.f32 %v19381_v33, %v13853_v34  ;;  %v7672_v12 = vpop.f32.mrb[71].mxu0  ;;  %v7792_v20 = vsel %vm7776_vm3, 1.0, %v21146_v44  ;;  %v7791_v52 = vsel %vm7775_vm4, 1.0, %v21146_v44 }
 0xaed   : > { %v19421_v36 = vsub.f32 %v7757_v22, %v7789_v16  ;;  %v14497_v25 = vadd.f32 %v19381_v33, %v7672_v12  ;;  %v21820_v16 = vld [vmem:[#allocation18_spill] sm:$0xff] }
 0xaee   : > { %21815 = vst [vmem:[#allocation99_spill] sm:$0xff] %v19416_v61  ;;  %v7760_v18 = vadd.f32 %v14496_v39, %v7744_v21  ;;  %v21818_v61 = vld [vmem:[#allocation20_spill] sm:$0xff]  ;;  %vm7777_vm6 = vcmp.gt.f32.partialorder %v21820_v16, 1.0  ;;  %v7745_v39 = vmul.f32 0.9, %v21820_v16 }
 0xaef   : > { %21817 = vst [vmem:[#allocation96_spill] sm:$0xff] %v19421_v36  ;;  %v7759_v15 = vadd.f32 %v14497_v25, %v7743_v17  ;;  %v13856_v7 = vpop.f32.mrb[72].mxu0  ;;  %v7746_v34 = vmul.f32 0.9, %v21818_v61  ;;  %vm7778_vm5 = vcmp.gt.f32.partialorder %v21818_v61, 1.0 }
 0xaf0   : > { %v19428_v19 = vsub.f32 %v7760_v18, %v7792_v20  ;;  %v14498_v14 = vadd.f32 %v19381_v33, %v13856_v7  ;;  %v7682_v22 = vpop.f32.mrb[73].mxu0  ;;  %v7794_v25 = vsel %vm7778_vm5, 1.0, %v21146_v44  ;;  %v7793_v18 = vsel %vm7777_vm6, 1.0, %v21146_v44 }
 0xaf1   : > { %v19433_v12 = vsub.f32 %v7759_v15, %v7791_v52  ;;  %v14499_v21 = vadd.f32 %v19381_v33, %v7682_v22  ;;  %v21824_v52 = vld [vmem:[#allocation21_spill] sm:$0xff] }
 0xaf2   : > { %21819 = vst [vmem:[#allocation97_spill] sm:$0xff] %v19428_v19  ;;  %v7762_v2 = vadd.f32 %v14498_v14, %v7746_v34  ;;  %v21822_v19 = vld [vmem:[#allocation15_spill] sm:$0xff]  ;;  %vm7779_vm9 = vcmp.gt.f32.partialorder %v21824_v52, 1.0  ;;  %v7747_v14 = vmul.f32 0.9, %v21824_v52 }
 0xaf3   : > { %21821 = vst [vmem:[#allocation100_spill] sm:$0xff] %v19433_v12  ;;  %v7761_v17 = vadd.f32 %v14499_v21, %v7745_v39  ;;  %v13859_v20 = vpop.f32.mrb[74].mxu0  ;;  %v7748_v7 = vmul.f32 0.9, %v21822_v19  ;;  %vm7780_vm8 = vcmp.gt.f32.partialorder %v21822_v19, 1.0 }
 0xaf4   : > { %v19440_v36 = vsub.f32 %v7762_v2, %v7794_v25  ;;  %v14500_v61 = vadd.f32 %v19381_v33, %v13859_v20  ;;  %v7692_v15 = vpop.f32.mrb[75].mxu0  ;;  %v7796_v21 = vsel %vm7780_vm8, 1.0, %v21146_v44  ;;  %v7795_v2 = vsel %vm7779_vm9, 1.0, %v21146_v44 }
 0xaf5   : > { %v19445_v22 = vsub.f32 %v7761_v17, %v7793_v18  ;;  %v14501_v34 = vadd.f32 %v19381_v33, %v7692_v15  ;;  %v21828_v18 = vld [vmem:[#allocation25_spill] sm:$0xff] }
 0xaf6   : > { %21823 = vst [vmem:[#allocation75_spill] sm:$0xff] %v19440_v36  ;;  %v7764_v16 = vadd.f32 %v14500_v61, %v7748_v7  ;;  %v21826_v36 = vld [vmem:[#allocation22_spill] sm:$0xff]  ;;  %vm7781_vm11 = vcmp.gt.f32.partialorder %v21828_v18, 1.0  ;;  %v7749_v61 = vmul.f32 0.9, %v21828_v18 }
 0xaf7   : > { %21825 = vst [vmem:[#allocation73_spill] sm:$0xff] %v19445_v22  ;;  %v7763_v39 = vadd.f32 %v14501_v34, %v7747_v14  ;;  %v13862_v25 = vpop.f32.mrb[76].mxu0  ;;  %v7750_v20 = vmul.f32 0.9, %v21826_v36  ;;  %vm7782_vm10 = vcmp.gt.f32.partialorder %v21826_v36, 1.0 }
 0xaf8   : > { %v19452_v12 = vsub.f32 %v7764_v16, %v7796_v21  ;;  %v14502_v19 = vadd.f32 %v19381_v33, %v13862_v25  ;;  %v7702_v17 = vpop.f32.mrb[77].mxu0  ;;  %v7798_v34 = vsel %vm7782_vm10, 1.0, %v21146_v44  ;;  %v7797_v16 = vsel %vm7781_vm11, 1.0, %v21146_v44  ;;  %v21831_v25 = vld [vmem:[#allocation24_spill] sm:$0xff] }
 0xaf9   : > { %v19457_v15 = vsub.f32 %v7763_v39, %v7795_v2  ;;  %v14503_v7 = vadd.f32 %v19381_v33, %v7702_v17  ;;  %v7752_v22 = vmul.f32 0.9, %v21831_v25  ;;  %vm7784_vm12 = vcmp.gt.f32.partialorder %v21831_v25, 1.0 }
 0xafa   : > { %21827 = vst [vmem:[#allocation77_spill] sm:$0xff] %v19452_v12  ;;  %v7766_v52 = vadd.f32 %v14502_v19, %v7750_v20  ;;  %v7751_v20 = vmul.f32 0.9, %v18790_v57  ;;  %v7800_v18 = vsel %vm7784_vm12, 1.0, %v21146_v44 }
 0xafb   : > { %21829 = vst [vmem:[#allocation74_spill] sm:$0xff] %v19457_v15  ;;  %v7765_v14 = vadd.f32 %v14503_v7, %v7749_v61  ;;  %v13865_v21 = vpop.f32.mrb[78].mxu0  ;;  %v21836_v15 = vld [vmem:[#allocation57_spill] sm:$0xff] }
 0xafc   : > { %v19463_v12 = vsub.f32 %v7766_v52, %v7798_v34  ;;  %v14504_v36 = vadd.f32 %v19381_v33, %v13865_v21  ;;  %v7712_v39 = vpop.f32.mrb[79].mxu0  ;;  %v7799_v34 = vsel %vm7783_vm13, 1.0, %v21146_v44  ;;  %v8574_v21 = vmul.f32 0.9, %v18795_v45 }
 0xafd   : > { %v19468_v2 = vsub.f32 %v7765_v14, %v7797_v16  ;;  %v14505_v17 = vadd.f32 %v19381_v33, %v7712_v39  ;;  %v19480_v14 = vld [vmem:[%s20679_s1 + $0x8b] ss:$0 sm:$0xff] }
 0xafe   : > { %21830 = vst [vmem:[#allocation80_spill] sm:$0xff] %v19463_v12  ;;  %v7768_v19 = vadd.f32 %v14504_v36, %v7752_v22  ;;  %v8573_v36 = vmul.f32 0.9, %v18800_v23 }
 0xaff   : > { %21832 = vst [vmem:[#allocation76_spill] sm:$0xff] %v19468_v2  ;;  %v7767_v7 = vadd.f32 %v14505_v17, %v7751_v20  ;;  %v13936_v61 = vpop.f32.mrb[152].mxu0  ;;  %v21835_v2 = vld [vmem:[#allocation56_spill] sm:$0xff] }
 0xb00   : > { %v19474_v52 = vsub.f32 %v7768_v19, %v7800_v18  ;;  %v8500_v16 = vadd.f32 %v19480_v14, %v13936_v61  ;;  %v8494_v25 = vpop.f32.mrb[153].mxu0  ;;  %v21834_v19 = vld [vmem:[#allocation62_spill] sm:$0xff]  ;;  %v8576_v12 = vmul.f32 0.9, %v21835_v2 }
 0xb01   : > { %v19484_v57 = vsub.f32 %v7767_v7, %v7799_v34  ;;  %v8495_v22 = vadd.f32 %v19480_v14, %v8494_v25  ;;  %v21837_v34 = vld [vmem:[#allocation63_spill] sm:$0xff] }
 0xb02   : > { %21833 = vst [vmem:[#allocation78_spill] sm:$0xff] %v19474_v52  ;;  %v8590_v39 = vadd.f32 %v8574_v21, %v8500_v16  ;;  %v8575_v25 = vmul.f32 0.9, %v21837_v34 }
 0xb03   : > { %v8589_v17 = vadd.f32 %v8573_v36, %v8495_v22  ;;  %v13939_v20 = vpop.f32.mrb[154].mxu0  ;;  %v21838_v22 = vld [vmem:[#allocation69_spill] sm:$0xff] }
 0xb04   : > { %v19489_v18 = vsub.f32 %v8590_v39, %v21834_v19  ;;  %v8510_v52 = vadd.f32 %v19480_v14, %v13939_v20  ;;  %v8504_v61 = vpop.f32.mrb[155].mxu0  ;;  %v21839_v39 = vld [vmem:[#allocation60_spill] sm:$0xff] }
 0xb05   : > { %v19494_v45 = vsub.f32 %v8589_v17, %v21836_v15  ;;  %v8505_v7 = vadd.f32 %v19480_v14, %v8504_v61  ;;  %v8578_v20 = vmul.f32 0.9, %v21839_v39  ;;  %v21840_v61 = vld [vmem:[#allocation61_spill] sm:$0xff]  ;;  %v21843_v39 = vld [vmem:[#allocation64_spill] sm:$0xff] }
 0xb06   : > { %vm8622_vm0 = vcmp.gt.f32.partialorder %v19489_v18, 1.0  ;;  %v8592_v23 = vadd.f32 %v8576_v12, %v8510_v52 }
 0xb07   : > { %v8591_v16 = vadd.f32 %v8575_v25, %v8505_v7  ;;  %v13942_v21 = vpop.f32.mrb[156].mxu0  ;;  %vm8621_vm14 = vcmp.gt.f32.partialorder %v19494_v45, 1.0  ;;  %v19509_v19 = vsel %vm8622_vm0, 1.0, %v21146_v44  ;;  %v21842_v7 = vld [vmem:[#allocation66_spill] sm:$0xff] }
 0xb08   : > { %v19501_v36 = vsub.f32 %v8592_v23, %v21838_v22  ;;  %v8520_v2 = vadd.f32 %v19480_v14, %v13942_v21  ;;  %v8514_v15 = vpop.f32.mrb[157].mxu0  ;;  %v19506_v17 = vsel %vm8621_vm14, 1.0, %v21146_v44  ;;  %v8577_v34 = vmul.f32 0.9, %v21842_v7  ;;  %v21846_v7 = vld [vmem:[#allocation65_spill] sm:$0xff] }
 0xb09   : > { %v19512_v12 = vsub.f32 %v8591_v16, %v21840_v61  ;;  %v8515_v52 = vadd.f32 %v19480_v14, %v8514_v15  ;;  %13960 = vmatprep.mubr.msk.f32.mxu0 %vm3011_vm7, %v19506_v17  ;;  %v8580_v15 = vmul.f32 0.9, %v21843_v39 }
 0xb0a   : > { %v8594_v25 = vadd.f32 %v8578_v20, %v8520_v2  ;;  %13961 = vmatmul.mubr.msk.f32.vlgmr.msra.gmra.mrb[80].mxu0 %vm3011_vm7, %v19509_v19  ;;  %vm8624_vm15 = vcmp.gt.f32.partialorder %v19501_v36, 1.0  ;;  %v21845_v20 = vld [vmem:[#allocation14_spill] sm:$0xff] }
 0xb0b   : > { %21841 = vst [vmem:[#allocation79_spill] sm:$0xff] %v19512_v12  ;;  %v8593_v23 = vadd.f32 %v8577_v34, %v8515_v52  ;;  %14391 = vmatpush3.bf16.msra.mxu0 %v15231_v0  ;;  %v13945_v21 = vpop.f32.mrb[158].mxu0  ;;  %vm8623_vm1 = vcmp.gt.f32.partialorder %v19512_v12, 1.0  ;;  %v8579_v12 = vmul.f32 0.9, %v18868_v41 }
 0xb0c   : > { %v19524_v16 = vsub.f32 %v8594_v25, %v18877_v32  ;;  %v8530_v22 = vadd.f32 %v19480_v14, %v13945_v21  ;;  %v8524_v61 = vpop.f32.mrb[159].mxu0  ;;  %v19529_v2 = vsel %vm8623_vm1, 1.0, %v21146_v44  ;;  %14393 = vmatprep.subr.bf16.mxu0 %v21845_v20  ;;  %v19540_v32 = vsel %vm8624_vm15, 1.0, %v21146_v44 }
 0xb0d   : > { %21844 = vst [vmem:[#allocation81_spill] sm:$0xff] %v19529_v2  ;;  %v19533_v52 = vsub.f32 %v8593_v23, %v21846_v7  ;;  %v8525_v34 = vadd.f32 %v19480_v14, %v8524_v61  ;;  %13963 = vmatprep.mubr.msk.f32.mxu0 %vm3011_vm7, %v19529_v2  ;;  %v21848_v61 = vld [vmem:[#allocation67_spill] sm:$0xff] }
 0xb0e   : > { %v8596_v25 = vadd.f32 %v8580_v15, %v8530_v22  ;;  %13964 = vmatmul.mubr.msk.f32.gmra.mrb[82].mxu0 %vm3011_vm7, %v19540_v32  ;;  %vm8626_vm3 = vcmp.gt.f32.partialorder %v19524_v16, 1.0  ;;  %v8582_v7 = vmul.f32 0.9, %v21848_v61  ;;  %v21850_v15 = vld [vmem:[#allocation91_spill] sm:$0xff] }
 0xb0f   : > { %21847 = vst [vmem:[#allocation84_spill] sm:$0xff] %v19533_v52  ;;  %v8595_v21 = vadd.f32 %v8579_v12, %v8525_v34  ;;  %v13948_v39 = vpop.f32.mrb[160].mxu0  ;;  %vm8625_vm4 = vcmp.gt.f32.partialorder %v19533_v52, 1.0  ;;  %14395 = vmatpush3.bf16.msra.mxu0 %v21845_v20  ;;  %v19558_v12 = vld [vmem:[%s20679_s1 + $0x40] sm:$0xff] }
 0xb10   : > { %v19548_v41 = vsub.f32 %v8596_v25, %v18899_v54  ;;  %v8540_v23 = vadd.f32 %v19480_v14, %v13948_v39  ;;  %v8534_v2 = vpop.f32.mrb[161].mxu0  ;;  %v19553_v22 = vsel %vm8625_vm4, 1.0, %v21146_v44  ;;  %14076 = vmatprep.subr.mxu0 %v19558_v12  ;;  %v8581_v25 = vmul.f32 0.9, %v18892_v28 }
 0xb11   : > { %21849 = vst [vmem:[#allocation5_spill] sm:$0xff] %v19553_v22  ;;  %v19562_v34 = vsub.f32 %v8595_v21, %v21850_v15  ;;  %v8535_v54 = vadd.f32 %v19480_v14, %v8534_v2  ;;  %13966 = vmatprep.mubr.msk.f32.mxu0 %vm3011_vm7, %v19553_v22  ;;  %v19571_v39 = vsel %vm8626_vm3, 1.0, %v21146_v44  ;;  %v8584_v22 = vmul.f32 0.9, %v18906_v43 }
 0xb12   : > { %v8598_v61 = vadd.f32 %v8582_v7, %v8540_v23  ;;  %13967 = vmatmul.mubr.msk.f32.gmra.mrb[84].mxu0 %vm3011_vm7, %v19571_v39  ;;  %vm8628_vm5 = vcmp.gt.f32.partialorder %v19548_v41, 1.0 }
 0xb13   : > { %v8597_v21 = vadd.f32 %v8581_v25, %v8535_v54  ;;  %v13951_v15 = vpop.f32.mrb[162].mxu0  ;;  %vm8627_vm6 = vcmp.gt.f32.partialorder %v19562_v34, 1.0  ;;  %v8583_v54 = vmul.f32 0.9, %v18914_v4 }
 0xb14   : > { %v19578_v28 = vsub.f32 %v8598_v61, %v18921_v38  ;;  %v8550_v2 = vadd.f32 %v19480_v14, %v13951_v15  ;;  %v8544_v20 = vpop.f32.mrb[163].mxu0  ;;  %v19583_v52 = vsel %vm8627_vm6, 1.0, %v21146_v44  ;;  %v19593_v38 = vsel %vm8628_vm5, 1.0, %v21146_v44 }
 0xb15   : > { %v19586_v23 = vsub.f32 %v8597_v21, %v18911_v50  ;;  %v8545_v7 = vadd.f32 %v19480_v14, %v8544_v20  ;;  %13969 = vmatprep.mubr.msk.f32.mxu0 %vm3011_vm7, %v19583_v52  ;;  %v8586_v20 = vmul.f32 0.9, %v18928_v29 }
 0xb16   : > { %v8600_v25 = vadd.f32 %v8584_v22, %v8550_v2  ;;  %13970 = vmatmul.mubr.msk.f32.gmra.mrb[86].mxu0 %vm3011_vm7, %v19593_v38  ;;  %vm8630_vm8 = vcmp.gt.f32.partialorder %v19578_v28, 1.0 }
 0xb17   : > { %v8599_v43 = vadd.f32 %v8583_v54, %v8545_v7  ;;  %v13954_v61 = vpop.f32.mrb[164].mxu0  ;;  %vm8629_vm9 = vcmp.gt.f32.partialorder %v19586_v23, 1.0  ;;  %v8585_v7 = vmul.f32 0.9, %v18936_v53 }
 0xb18   : > { %v19600_v50 = vsub.f32 %v8600_v25, %v18943_v47  ;;  %v8560_v4 = vadd.f32 %v19480_v14, %v13954_v61  ;;  %v8554_v21 = vpop.f32.mrb[165].mxu0  ;;  %v19605_v15 = vsel %vm8629_vm9, 1.0, %v21146_v44  ;;  %v19615_v47 = vsel %vm8630_vm8, 1.0, %v21146_v44 }
 0xb19   : > { %v19608_v22 = vsub.f32 %v8599_v43, %v18933_v55  ;;  %v8555_v2 = vadd.f32 %v19480_v14, %v8554_v21  ;;  %13972 = vmatprep.mubr.msk.f32.mxu0 %vm3011_vm7, %v19605_v15  ;;  %v8588_v43 = vmul.f32 0.9, %v18950_v26 }
 0xb1a   : > { %v8602_v54 = vadd.f32 %v8586_v20, %v8560_v4  ;;  %13973 = vmatmul.mubr.msk.f32.gmra.mrb[88].mxu0 %vm3011_vm7, %v19615_v47  ;;  %vm8632_vm10 = vcmp.gt.f32.partialorder %v19600_v50, 1.0 }
 0xb1b   : > { %v8601_v29 = vadd.f32 %v8585_v7, %v8555_v2  ;;  %v13957_v25 = vpop.f32.mrb[166].mxu0  ;;  %vm8631_vm11 = vcmp.gt.f32.partialorder %v19608_v22, 1.0  ;;  %v8587_v2 = vmul.f32 0.9, %v18958_v6 }
 0xb1c   : > { %v19622_v55 = vsub.f32 %v8602_v54, %v18965_v63  ;;  %v8570_v53 = vadd.f32 %v19480_v14, %v13957_v25  ;;  %v8564_v61 = vpop.f32.mrb[167].mxu0  ;;  %v19627_v21 = vsel %vm8631_vm11, 1.0, %v21146_v44  ;;  %v19637_v63 = vsel %vm8632_vm10, 1.0, %v21146_v44 }
 0xb1d   : > { %21852 = vst [vmem:[#allocation87_spill] sm:$0xff] %v19627_v21  ;;  %v19630_v4 = vsub.f32 %v8601_v29, %v18955_v5  ;;  %v8565_v20 = vadd.f32 %v19480_v14, %v8564_v61  ;;  %13975 = vmatprep.mubr.msk.f32.mxu0 %vm3011_vm7, %v19627_v21  ;;  %v21853_v29 = vld [vmem:[#allocation68_spill] sm:$0xff] }
 0xb1e   : > { %21851 = vst [vmem:[#allocation82_spill] sm:$0xff] %v19622_v55  ;;  %v8604_v7 = vadd.f32 %v8588_v43, %v8570_v53  ;;  %13976 = vmatmul.mubr.msk.f32.gmra.mrb[90].mxu0 %vm3011_vm7, %v19637_v63  ;;  %vm8634_vm12 = vcmp.gt.f32.partialorder %v19622_v55, 1.0  ;;  %v9442_v25 = vmul.f32 0.9, %v21853_v29  ;;  %v21855_v53 = vld [vmem:[#allocation70_spill] sm:$0xff] }
 0xb1f   : > { %v8603_v26 = vadd.f32 %v8587_v2, %v8565_v20  ;;  %v14022_v54 = vpop.f32.mrb[16].mxu1  ;;  %vm8633_vm13 = vcmp.gt.f32.partialorder %v19630_v4, 1.0  ;;  %v21856_v20 = vld [vmem:[#allocation71_spill] sm:$0xff] }
 0xb20   : > { %v19644_v5 = vsub.f32 %v8604_v7, %v18987_v13  ;;  %v9368_v6 = vadd.f32 %v19053_v62, %v14022_v54  ;;  %v9362_v61 = vpop.f32.mrb[17].mxu1  ;;  %v19649_v21 = vsel %vm8633_vm13, 1.0, %v21146_v44  ;;  %v9441_v2 = vmul.f32 0.9, %v21856_v20 }
 0xb21   : > { %21854 = vst [vmem:[#allocation83_spill] sm:$0xff] %v19649_v21  ;;  %v19652_v43 = vsub.f32 %v8603_v26, %v21855_v53  ;;  %v9363_v55 = vadd.f32 %v19053_v62, %v9362_v61  ;;  %13978 = vmatprep.mubr.msk.f32.mxu0 %vm3011_vm7, %v19649_v21  ;;  %v19659_v13 = vsel %vm8634_vm12, 1.0, %v21146_v44  ;;  %v9444_v53 = vmul.f32 0.9, %v18994_v30 }
 0xb22   : > { %v9458_v7 = vadd.f32 %v9442_v25, %v9368_v6  ;;  %13979 = vmatmul.mubr.msk.f32.gmra.mrb[92].mxu0 %vm3011_vm7, %v19659_v13  ;;  %vm8636_vm0 = vcmp.gt.f32.partialorder %v19644_v5, 1.0 }
 0xb23   : > { %v9457_v54 = vadd.f32 %v9441_v2, %v9363_v55  ;;  %v14025_v29 = vpop.f32.mrb[18].mxu1  ;;  %vm8635_vm14 = vcmp.gt.f32.partialorder %v19652_v43, 1.0  ;;  %v9443_v55 = vmul.f32 0.9, %v19005_v56 }
 0xb24   : > { %v19666_v26 = vsub.f32 %v9458_v7, %v19002_v37  ;;  %v9378_v61 = vadd.f32 %v19053_v62, %v14025_v29  ;;  %v9372_v20 = vpop.f32.mrb[19].mxu1  ;;  %v19671_v21 = vsel %vm8635_vm14, 1.0, %v21146_v44  ;;  %v19681_v37 = vsel %vm8636_vm0, 1.0, %v21146_v44 }
 0xb25   : > { %21857 = vst [vmem:[#allocation16_spill] sm:$0xff] %v19671_v21  ;;  %v19674_v6 = vsub.f32 %v9457_v54, %v18999_v60  ;;  %v9373_v25 = vadd.f32 %v19053_v62, %v9372_v20  ;;  %13981 = vmatprep.mubr.msk.f32.mxu0 %vm3011_vm7, %v19671_v21  ;;  %v9446_v54 = vmul.f32 0.9, %v19017_v27 }
 0xb26   : > { %vm9490_vm15 = vcmp.gt.f32.partialorder %v19666_v26, 1.0  ;;  %v9460_v30 = vadd.f32 %v9444_v53, %v9378_v61  ;;  %13982 = vmatmul.mubr.msk.f32.gmra.mrb[94].mxu0 %vm3011_vm7, %v19681_v37  ;;  %v21859_v53 = vld [vmem:[#allocation72_spill] sm:$0xff] }
 0xb27   : > { %21858 = vst [vmem:[#allocation85_spill] sm:$0xff] %v19674_v6  ;;  %v9459_v2 = vadd.f32 %v9443_v55, %v9373_v25  ;;  %v14028_v7 = vpop.f32.mrb[20].mxu1  ;;  %vm9489_vm1 = vcmp.gt.f32.partialorder %v19674_v6, 1.0  ;;  %v19696_v61 = vsel %vm9490_vm15, 1.0, %v21146_v44  ;;  %v21861_v55 = vld [vmem:[#allocation26_spill] sm:$0xff] }
 0xb28   : > { %v19688_v60 = vsub.f32 %v9460_v30, %v19033_v42  ;;  %v9388_v56 = vadd.f32 %v19053_v62, %v14028_v7  ;;  %v9382_v29 = vpop.f32.mrb[21].mxu1  ;;  %v19693_v20 = vsel %vm9489_vm1, 1.0, %v21146_v44  ;;  %v9445_v6 = vmul.f32 0.9, %v21861_v55 }
 0xb29   : > { %v19699_v21 = vsub.f32 %v9459_v2, %v21859_v53  ;;  %v9383_v25 = vadd.f32 %v19053_v62, %v9382_v29  ;;  %14052 = vmatprep.mubr.msk.f32.mxu0 %vm2480_vm2, %v19693_v20  ;;  %v19716_v62 = vld [vmem:[%s20679_s1 + $0x89] ss:$0 sm:$0xff]  ;;  %v21864_v53 = vld [vmem:[#allocation23_spill] sm:$0xff]  ;;  %v9447_v55 = vmul.f32 0.9, %v19048_v10 }
 0xb2a   : > { %v9462_v42 = vadd.f32 %v9446_v54, %v9388_v56  ;;  %14053 = vmatmul.mubr.msk.f32.vlgmr.msra.gmra.mrb[168].mxu0 %vm2480_vm2, %v19696_v61  ;;  %vm9492_vm3 = vcmp.gt.f32.partialorder %v19688_v60, 1.0  ;;  %v21862_v56 = vld [vmem:[#allocation29_spill] sm:$0xff] }
 0xb2b   : > { %21860 = vst [vmem:[#allocation17_spill] sm:$0xff] %v19699_v21  ;;  %v9461_v27 = vadd.f32 %v9445_v6, %v9383_v25  ;;  %v14031_v30 = vpop.f32.mrb[22].mxu1  ;;  %vm9491_vm4 = vcmp.gt.f32.partialorder %v19699_v21, 1.0  ;;  %14077 = vmatpush3.msra.mxu0 %v19558_v12  ;;  %v9448_v54 = vmul.f32 0.9, %v21862_v56 }
 0xb2c   : > { %v19711_v2 = vsub.f32 %v9462_v42, %v19060_v1  ;;  %v9398_v7 = vadd.f32 %v19716_v62, %v14031_v30  ;;  %v9392_v29 = vpop.f32.mrb[23].mxu1  ;;  %v19721_v6 = vsel %vm9491_vm4, 1.0, %v21146_v44  ;;  %14409 = vmatprep.subr.bf16.mxu0 %v15231_v0  ;;  %v19734_v42 = vsel %vm9492_vm3, 1.0, %v21146_v44 }
 0xb2d   : > { %21863 = vst [vmem:[#allocation86_spill] sm:$0xff] %v19721_v6  ;;  %v19725_v25 = vsub.f32 %v9461_v27, %v21864_v53  ;;  %v9393_v1 = vadd.f32 %v19716_v62, %v9392_v29  ;;  %14055 = vmatprep.mubr.msk.f32.mxu0 %vm2480_vm2, %v19721_v6  ;;  %v9450_v53 = vmul.f32 0.9, %v19067_v46 }
 0xb2e   : > { %v9464_v30 = vadd.f32 %v9448_v54, %v9398_v7  ;;  %14056 = vmatmul.mubr.msk.f32.gmra.mrb[170].mxu0 %vm2480_vm2, %v19734_v42  ;;  %vm9494_vm5 = vcmp.gt.f32.partialorder %v19711_v2, 1.0 }
 0xb2f   : > { %v9463_v27 = vadd.f32 %v9447_v55, %v9393_v1  ;;  %v14034_v56 = vpop.f32.mrb[24].mxu1  ;;  %vm9493_vm6 = vcmp.gt.f32.partialorder %v19725_v25, 1.0  ;;  %v9449_v1 = vmul.f32 0.9, %v19075_v49 }
 0xb30   : > { %v19741_v10 = vsub.f32 %v9464_v30, %v19082_v48  ;;  %v9408_v29 = vadd.f32 %v19716_v62, %v14034_v56  ;;  %v9402_v6 = vpop.f32.mrb[25].mxu1  ;;  %v19746_v21 = vsel %vm9493_vm6, 1.0, %v21146_v44  ;;  %v19756_v48 = vsel %vm9494_vm5, 1.0, %v21146_v44 }
 0xb31   : > { %21865 = vst [vmem:[#allocation19_spill] sm:$0xff] %v19746_v21  ;;  %v19749_v7 = vsub.f32 %v9463_v27, %v19072_v35  ;;  %v9403_v54 = vadd.f32 %v19716_v62, %v9402_v6  ;;  %14058 = vmatprep.mubr.msk.f32.mxu0 %vm2480_vm2, %v19746_v21  ;;  %v9452_v6 = vmul.f32 0.9, %v19089_v51 }
 0xb32   : > { %v9466_v55 = vadd.f32 %v9450_v53, %v9408_v29  ;;  %14059 = vmatmul.mubr.msk.f32.gmra.mrb[172].mxu0 %vm2480_vm2, %v19756_v48  ;;  %vm9496_vm8 = vcmp.gt.f32.partialorder %v19741_v10, 1.0  ;;  %v21867_v29 = vld [vmem:[#allocation28_spill] sm:$0xff] }
 0xb33   : > { %v9465_v46 = vadd.f32 %v9449_v1, %v9403_v54  ;;  %v14037_v30 = vpop.f32.mrb[26].mxu1  ;;  %vm9495_vm9 = vcmp.gt.f32.partialorder %v19749_v7, 1.0  ;;  %v9451_v54 = vmul.f32 0.9, %v19097_v24 }
 0xb34   : > { %v19763_v35 = vsub.f32 %v9466_v55, %v19104_v59  ;;  %v9418_v49 = vadd.f32 %v19716_v62, %v14037_v30  ;;  %v9412_v27 = vpop.f32.mrb[27].mxu1  ;;  %v19768_v56 = vsel %vm9495_vm9, 1.0, %v21146_v44  ;;  %v19778_v59 = vsel %vm9496_vm8, 1.0, %v21146_v44 }
 0xb35   : > { %21866 = vst [vmem:[#allocation20_spill] sm:$0xff] %v19768_v56  ;;  %v19771_v53 = vsub.f32 %v9465_v46, %v21867_v29  ;;  %v9413_v21 = vadd.f32 %v19716_v62, %v9412_v27  ;;  %14061 = vmatprep.mubr.msk.f32.mxu0 %vm2480_vm2, %v19768_v56  ;;  %v9454_v30 = vmul.f32 0.9, %v19111_v40 }
 0xb36   : > { %v9468_v1 = vadd.f32 %v9452_v6, %v9418_v49  ;;  %14062 = vmatmul.mubr.msk.f32.gmra.mrb[174].mxu0 %vm2480_vm2, %v19778_v59  ;;  %vm9498_vm10 = vcmp.gt.f32.partialorder %v19763_v35, 1.0 }
 0xb37   : > { %21868 = vst [vmem:[#allocation18_spill] sm:$0xff] %v19771_v53  ;;  %v9467_v51 = vadd.f32 %v9451_v54, %v9413_v21  ;;  %v14040_v55 = vpop.f32.mrb[28].mxu1  ;;  %vm9497_vm11 = vcmp.gt.f32.partialorder %v19771_v53, 1.0  ;;  %v9453_v21 = vmul.f32 0.9, %v19119_v31  ;;  %v21894_v53 = vld [vmem:[#allocation34_spill] sm:$0xff] }
 0xb38   : > { %v19785_v46 = vsub.f32 %v9468_v1, %v19126_v3  ;;  %v9428_v24 = vadd.f32 %v19716_v62, %v14040_v55  ;;  %v9422_v27 = vpop.f32.mrb[29].mxu1  ;;  %v19790_v29 = vsel %vm9497_vm11, 1.0, %v21146_v44  ;;  %v19800_v3 = vsel %vm9498_vm10, 1.0, %v21146_v44 }
 0xb39   : > { %21870 = vst [vmem:[#allocation21_spill] sm:$0xff] %v19790_v29  ;;  %v19793_v49 = vsub.f32 %v9467_v51, %v19116_v9  ;;  %v9423_v6 = vadd.f32 %v19716_v62, %v9422_v27  ;;  %14064 = vmatprep.mubr.msk.f32.mxu0 %vm2480_vm2, %v19790_v29  ;;  %21872 = vst [vmem:[#allocation25_spill] sm:$0xff] %v19800_v3  ;;  %v9456_v51 = vmul.f32 0.9, %v19133_v58 }
 0xb3a   : > { %21869 = vst [vmem:[#allocation15_spill] sm:$0xff] %v19785_v46  ;;  %v9470_v54 = vadd.f32 %v9454_v30, %v9428_v24  ;;  %14065 = vmatmul.mubr.msk.f32.gmra.mrb[176].mxu0 %vm2480_vm2, %v19800_v3  ;;  %vm9500_vm12 = vcmp.gt.f32.partialorder %v19785_v46, 1.0  ;;  %v21875_v24 = vld [vmem:[#allocation30_spill] sm:$0xff]  ;;  %v21890_v3 = vld [vmem:[#allocation59_spill] sm:$0xff] }
 0xb3b   : > { %21871 = vst [vmem:[#allocation22_spill] sm:$0xff] %v19793_v49  ;;  %v9469_v40 = vadd.f32 %v9453_v21, %v9423_v6  ;;  %v14043_v1 = vpop.f32.mrb[30].mxu1  ;;  %vm9499_vm13 = vcmp.gt.f32.partialorder %v19793_v49, 1.0  ;;  %v9455_v6 = vmul.f32 0.9, %v19146_v8 }
 0xb3c   : > { %v19807_v9 = vsub.f32 %v9470_v54, %v19153_v11  ;;  %v9438_v31 = vadd.f32 %v19716_v62, %v14043_v1  ;;  %v9432_v55 = vpop.f32.mrb[31].mxu1  ;;  %v19812_v27 = vsel %vm9499_vm13, 1.0, %v21146_v44  ;;  %v19822_v11 = vsel %vm9500_vm12, 1.0, %v21146_v44  ;;  %v19834_v8 = vld [vmem:[%s20679_s1 + $0x88] ss:$0 sm:$0xff] }
 0xb3d   : > { %21874 = vst [vmem:[#allocation62_spill] sm:$0xff] %v19812_v27  ;;  %v19815_v30 = vsub.f32 %v9469_v40, %v21875_v24  ;;  %v9433_v29 = vadd.f32 %v19716_v62, %v9432_v55  ;;  %14067 = vmatprep.mubr.msk.f32.mxu0 %vm2480_vm2, %v19812_v27  ;;  %21877 = vst [vmem:[#allocation57_spill] sm:$0xff] %v19822_v11  ;;  %v21878_v40 = vld [vmem:[#allocation31_spill] sm:$0xff] }
 0xb3e   : > { %21873 = vst [vmem:[#allocation24_spill] sm:$0xff] %v19807_v9  ;;  %v9472_v21 = vadd.f32 %v9456_v51, %v9438_v31  ;;  %14068 = vmatmul.mubr.msk.f32.gmra.mrb[178].mxu0 %vm2480_vm2, %v19822_v11  ;;  %vm9502_vm0 = vcmp.gt.f32.partialorder %v19807_v9, 1.0  ;;  %v21880_v31 = vld [vmem:[#allocation88_spill] sm:$0xff] }
 0xb3f   : > { %21876 = vst [vmem:[#allocation56_spill] sm:$0xff] %v19815_v30  ;;  %v9471_v58 = vadd.f32 %v9455_v6, %v9433_v29  ;;  %v14108_v54 = vpop.f32.mrb[32].mxu1  ;;  %vm9501_vm14 = vcmp.gt.f32.partialorder %v19815_v30, 1.0  ;;  %v10310_v51 = vmul.f32 0.9, %v21880_v31  ;;  %v21882_v29 = vld [vmem:[#allocation27_spill] sm:$0xff] }
 0xb40   : > { %v19829_v1 = vsub.f32 %v9472_v21, %v21878_v40  ;;  %v10236_v55 = vadd.f32 %v19834_v8, %v14108_v54  ;;  %v10230_v24 = vpop.f32.mrb[33].mxu1  ;;  %v19839_v27 = vsel %vm9501_vm14, 1.0, %v21146_v44  ;;  %v21884_v21 = vld [vmem:[#allocation32_spill] sm:$0xff]  ;;  %v19849_v9 = vsel %vm9502_vm0, 1.0, %v21146_v44 }
 0xb41   : > { %21881 = vst [vmem:[#allocation69_spill] sm:$0xff] %v19839_v27  ;;  %v19842_v6 = vsub.f32 %v9471_v58, %v21882_v29  ;;  %v10231_v30 = vadd.f32 %v19834_v8, %v10230_v24  ;;  %v10309_v40 = vmul.f32 0.9, %v21884_v21  ;;  %14070 = vmatprep.mubr.msk.f32.mxu0 %vm2480_vm2, %v19839_v27  ;;  %21885 = vst [vmem:[#allocation61_spill] sm:$0xff] %v19849_v9  ;;  %v21886_v58 = vld [vmem:[#allocation58_spill] sm:$0xff]  ;;  %v21887_v21 = vld [vmem:[#allocation55_spill] sm:$0xff] }
 0xb42   : > { %21879 = vst [vmem:[#allocation63_spill] sm:$0xff] %v19829_v1  ;;  %v10326_v54 = vadd.f32 %v10310_v51, %v10236_v55  ;;  %14071 = vmatmul.mubr.msk.f32.gmra.mrb[180].mxu0 %vm2480_vm2, %v19849_v9  ;;  %vm9504_vm15 = vcmp.gt.f32.partialorder %v19829_v1, 1.0  ;;  %v10312_v49 = vmul.f32 0.9, %v21887_v21  ;;  %v21889_v55 = vld [vmem:[#allocation53_spill] sm:$0xff]  ;;  %v21893_v21 = vld [vmem:[#allocation90_spill] sm:$0xff] }
 0xb43   : > { %21883 = vst [vmem:[#allocation60_spill] sm:$0xff] %v19842_v6  ;;  %v10325_v31 = vadd.f32 %v10309_v40, %v10231_v30  ;;  %v14111_v11 = vpop.f32.mrb[34].mxu1  ;;  %vm9503_vm1 = vcmp.gt.f32.partialorder %v19842_v6, 1.0  ;;  %v10311_v1 = vmul.f32 0.9, %v21890_v3  ;;  %v19867_v30 = vsel %vm9504_vm15, 1.0, %v21146_v44 }
 0xb44   : > { %v10342_v24 = vsub.f32 %v10326_v54, %v21886_v58  ;;  %v10246_v29 = vadd.f32 %v19834_v8, %v14111_v11  ;;  %v10240_v27 = vpop.f32.mrb[35].mxu1  ;;  %v19859_v46 = vsel %vm9503_vm1, 1.0, %v21146_v44  ;;  %21891 = vst [vmem:[#allocation64_spill] sm:$0xff] %v19867_v30  ;;  %v21892_v58 = vld [vmem:[#allocation33_spill] sm:$0xff]  ;;  %v10314_v3 = vmul.f32 0.9, %v21893_v21 }
 0xb45   : > { %21888 = vst [vmem:[#allocation66_spill] sm:$0xff] %v19859_v46  ;;  %v10341_v51 = vsub.f32 %v10325_v31, %v21889_v55  ;;  %v10241_v9 = vadd.f32 %v19834_v8, %v10240_v27  ;;  %14073 = vmatprep.mubr.msk.f32.mxu0 %vm2480_vm2, %v19859_v46  ;;  %v21897_v21 = vld [vmem:[#allocation89_spill] sm:$0xff] }
 0xb46   : > { %vm10358_vm3 = vcmp.gt.f32.partialorder %v10342_v24, 1.0  ;;  %v10328_v11 = vadd.f32 %v10312_v49, %v10246_v29  ;;  %14074 = vmatmul.mubr.msk.f32.gmra.mrb[182].mxu0 %vm2480_vm2, %v19867_v30  ;;  %v21895_v29 = vld [vmem:[#allocation38_spill] sm:$0xff]  ;;  %v10316_v56 = vmul.f32 0.9, %v21897_v21 }
 0xb47   : > { %v10327_v40 = vadd.f32 %v10311_v1, %v10241_v9  ;;  %v14114_v54 = vpop.f32.mrb[36].mxu1  ;;  %vm10357_vm4 = vcmp.gt.f32.partialorder %v10341_v51, 1.0  ;;  %v10374_v6 = vsel %vm10358_vm3, 1.0, %v21146_v44  ;;  %v10313_v30 = vmul.f32 0.9, %v21895_v29  ;;  %v21898_v29 = vld [vmem:[#allocation36_spill] sm:$0xff] }
 0xb48   : > { %v10344_v31 = vsub.f32 %v10328_v11, %v21892_v58  ;;  %v10256_v27 = vadd.f32 %v19834_v8, %v14114_v54  ;;  %v10250_v55 = vpop.f32.mrb[37].mxu1  ;;  %v10373_v46 = vsel %vm10357_vm4, 1.0, %v21146_v44  ;;  %v21896_v11 = vld [vmem:[#allocation39_spill] sm:$0xff] }
 0xb49   : > { %v10343_v24 = vsub.f32 %v10327_v40, %v21894_v53  ;;  %v10251_v49 = vadd.f32 %v19834_v8, %v10250_v55  ;;  %14138 = vmatprep.mubr.msk.f32.mxu1 %vm2480_vm2, %v10373_v46 }
 0xb4a   : > { %vm10360_vm5 = vcmp.gt.f32.partialorder %v10344_v31, 1.0  ;;  %v10330_v9 = vadd.f32 %v10314_v3, %v10256_v27  ;;  %14139 = vmatmul.mubr.msk.f32.vlgmr.msra.gmra.mrb[48].mxu1 %vm2480_vm2, %v10374_v6  ;;  %v21899_v27 = vld [vmem:[#allocation37_spill] sm:$0xff] }
 0xb4b   : > { %v10329_v1 = vadd.f32 %v10313_v30, %v10251_v49  ;;  %v14117_v51 = vpop.f32.mrb[38].mxu1  ;;  %vm10359_vm6 = vcmp.gt.f32.partialorder %v10343_v24, 1.0  ;;  %v10376_v55 = vsel %vm10360_vm5, 1.0, %v21146_v44  ;;  %v10315_v6 = vmul.f32 0.9, %v21899_v27  ;;  %v21900_v49 = vld [vmem:[#allocation43_spill] sm:$0xff] }
 0xb4c   : > { %v10346_v54 = vsub.f32 %v10330_v9, %v21896_v11  ;;  %v10266_v58 = vadd.f32 %v19834_v8, %v14117_v51  ;;  %v10260_v53 = vpop.f32.mrb[39].mxu1  ;;  %v10375_v40 = vsel %vm10359_vm6, 1.0, %v21146_v44  ;;  %v21901_v11 = vld [vmem:[#allocation41_spill] sm:$0xff]  ;;  %v21902_v27 = vld [vmem:[#allocation46_spill] sm:$0xff] }
 0xb4d   : > { %v10345_v46 = vsub.f32 %v10329_v1, %v21898_v29  ;;  %v10261_v31 = vadd.f32 %v19834_v8, %v10260_v53  ;;  %14141 = vmatprep.mubr.msk.f32.mxu1 %vm2480_vm2, %v10375_v40  ;;  %v10318_v21 = vmul.f32 0.9, %v21901_v11 }
 0xb4e   : > { %vm10362_vm8 = vcmp.gt.f32.partialorder %v10346_v54, 1.0  ;;  %v10332_v30 = vadd.f32 %v10316_v56, %v10266_v58  ;;  %14142 = vmatmul.mubr.msk.f32.gmra.mrb[50].mxu1 %vm2480_vm2, %v10376_v55  ;;  %v21903_v54 = vld [vmem:[#allocation40_spill] sm:$0xff] }
 0xb4f   : > { %v10331_v3 = vadd.f32 %v10315_v6, %v10261_v31  ;;  %v14120_v24 = vpop.f32.mrb[40].mxu1  ;;  %vm10361_vm9 = vcmp.gt.f32.partialorder %v10345_v46, 1.0  ;;  %v10378_v29 = vsel %vm10362_vm8, 1.0, %v21146_v44  ;;  %v10317_v58 = vmul.f32 0.9, %v21903_v54  ;;  %v21904_v6 = vld [vmem:[#allocation50_spill] sm:$0xff] }
 0xb50   : > { %v10348_v9 = vsub.f32 %v10332_v30, %v21900_v49  ;;  %v10276_v51 = vadd.f32 %v19834_v8, %v14120_v24  ;;  %v10270_v1 = vpop.f32.mrb[41].mxu1  ;;  %v10377_v53 = vsel %vm10361_vm9, 1.0, %v21146_v44  ;;  %v21905_v49 = vld [vmem:[#allocation42_spill] sm:$0xff]  ;;  %v21906_v54 = vld [vmem:[#allocation35_spill] sm:$0xff] }
 0xb51   : > { %v10347_v40 = vsub.f32 %v10331_v3, %v21902_v27  ;;  %v10271_v56 = vadd.f32 %v19834_v8, %v10270_v1  ;;  %14144 = vmatprep.mubr.msk.f32.mxu1 %vm2480_vm2, %v10377_v53  ;;  %v10320_v11 = vmul.f32 0.9, %v21905_v49 }
 0xb52   : > { %vm10364_vm10 = vcmp.gt.f32.partialorder %v10348_v9, 1.0  ;;  %v10334_v55 = vadd.f32 %v10318_v21, %v10276_v51  ;;  %14145 = vmatmul.mubr.msk.f32.gmra.mrb[52].mxu1 %vm2480_vm2, %v10378_v29  ;;  %v21907_v51 = vld [vmem:[#allocation44_spill] sm:$0xff] }
 0xb53   : > { %v10333_v46 = vadd.f32 %v10317_v58, %v10271_v56  ;;  %v14123_v31 = vpop.f32.mrb[42].mxu1  ;;  %vm10363_vm11 = vcmp.gt.f32.partialorder %v10347_v40, 1.0  ;;  %v10380_v27 = vsel %vm10364_vm10, 1.0, %v21146_v44  ;;  %v10319_v21 = vmul.f32 0.9, %v21907_v51  ;;  %v21908_v58 = vld [vmem:[#allocation51_spill] sm:$0xff] }
 0xb54   : > { %v10350_v30 = vsub.f32 %v10334_v55, %v21904_v6  ;;  %v10286_v24 = vadd.f32 %v19834_v8, %v14123_v31  ;;  %v10280_v3 = vpop.f32.mrb[43].mxu1  ;;  %v10379_v1 = vsel %vm10363_vm11, 1.0, %v21146_v44  ;;  %v21909_v6 = vld [vmem:[#allocation45_spill] sm:$0xff] }
 0xb55   : > { %v10349_v53 = vsub.f32 %v10333_v46, %v21906_v54  ;;  %v10281_v9 = vadd.f32 %v19834_v8, %v10280_v3  ;;  %14147 = vmatprep.mubr.msk.f32.mxu1 %vm2480_vm2, %v10379_v1  ;;  %v10322_v49 = vmul.f32 0.9, %v21909_v6  ;;  %v21910_v51 = vld [vmem:[#allocation49_spill] sm:$0xff] }
 0xb56   : > { %vm10366_vm12 = vcmp.gt.f32.partialorder %v10350_v30, 1.0  ;;  %v10336_v29 = vadd.f32 %v10320_v11, %v10286_v24  ;;  %14148 = vmatmul.mubr.msk.f32.gmra.mrb[54].mxu1 %vm2480_vm2, %v10380_v27  ;;  %v21911_v24 = vld [vmem:[#allocation47_spill] sm:$0xff] }
 0xb57   : > { %v10335_v40 = vadd.f32 %v10319_v21, %v10281_v9  ;;  %v14126_v56 = vpop.f32.mrb[44].mxu1  ;;  %vm10365_vm13 = vcmp.gt.f32.partialorder %v10349_v53, 1.0  ;;  %v10382_v54 = vsel %vm10366_vm12, 1.0, %v21146_v44  ;;  %v10321_v11 = vmul.f32 0.9, %v21911_v24  ;;  %v21912_v21 = vld [vmem:[#allocation48_spill] sm:$0xff] }
 0xb58   : > { %v10352_v55 = vsub.f32 %v10336_v29, %v21908_v58  ;;  %v10296_v31 = vadd.f32 %v19834_v8, %v14126_v56  ;;  %v10290_v46 = vpop.f32.mrb[45].mxu1  ;;  %v10381_v3 = vsel %vm10365_vm13, 1.0, %v21146_v44  ;;  %v21913_v58 = vld [vmem:[#allocation3_spill] sm:$0xff]  ;;  %v21914_v24 = vld [vmem:[#allocation52_spill] sm:$0xff] }
 0xb59   : > { %v10351_v1 = vsub.f32 %v10335_v40, %v21910_v51  ;;  %v10291_v30 = vadd.f32 %v19834_v8, %v10290_v46  ;;  %14150 = vmatprep.mubr.msk.f32.mxu1 %vm2480_vm2, %v10381_v3  ;;  %v10324_v6 = vmul.f32 0.9, %v21913_v58 }
 0xb5a   : > { %vm10368_vm0 = vcmp.gt.f32.partialorder %v10352_v55, 1.0  ;;  %v10338_v27 = vadd.f32 %v10322_v49, %v10296_v31  ;;  %14151 = vmatmul.mubr.msk.f32.gmra.mrb[56].mxu1 %vm2480_vm2, %v10382_v54  ;;  %v21915_v31 = vld [vmem:[#allocation4_spill] sm:$0xff] }
 0xb5b   : > { %v10337_v53 = vadd.f32 %v10321_v11, %v10291_v30  ;;  %v14129_v9 = vpop.f32.mrb[46].mxu1  ;;  %vm10367_vm14 = vcmp.gt.f32.partialorder %v10351_v1, 1.0  ;;  %v10384_v51 = vsel %vm10368_vm0, 1.0, %v21146_v44  ;;  %v10323_v49 = vmul.f32 0.9, %v21915_v31  ;;  %v21916_v30 = vld [vmem:[#allocation94_spill] sm:$0xff] }
 0xb5c   : > { %v10354_v29 = vsub.f32 %v10338_v27, %v21912_v21  ;;  %v10306_v56 = vadd.f32 %v19834_v8, %v14129_v9  ;;  %v10300_v40 = vpop.f32.mrb[47].mxu1  ;;  %v10383_v46 = vsel %vm10367_vm14, 1.0, %v21146_v44  ;;  %v21917_v21 = vld [vmem:[#allocation54_spill] sm:$0xff] }
 0xb5d   : > { %v10353_v3 = vsub.f32 %v10337_v53, %v21914_v24  ;;  %v10301_v55 = vadd.f32 %v19834_v8, %v10300_v40  ;;  %14153 = vmatprep.mubr.msk.f32.mxu1 %vm2480_vm2, %v10383_v46 }
 0xb5e   : > { %vm10370_vm15 = vcmp.gt.f32.partialorder %v10354_v29, 1.0  ;;  %v10340_v54 = vadd.f32 %v10324_v6, %v10306_v56  ;;  %14154 = vmatmul.mubr.msk.f32.gmra.mrb[58].mxu1 %vm2480_vm2, %v10384_v51  ;;  %v21918_v6 = vld [vmem:[#allocation95_spill] sm:$0xff]  ;;  %v21919_v51 = vld [vmem:[#allocation92_spill] sm:$0xff] }
 0xb5f   : > { %v10339_v1 = vadd.f32 %v10323_v49, %v10301_v55  ;;  %vm10369_vm1 = vcmp.gt.f32.partialorder %v10353_v3, 1.0  ;;  %v10386_v9 = vsel %vm10370_vm15, 1.0, %v21146_v44  ;;  %v8879_v40 = vmul.f32 0.9, %v21918_v6 }
 0xb60   : > { %v10356_v11 = vsub.f32 %v10340_v54, %v21916_v30  ;;  %v10385_v27 = vsel %vm10369_vm1, 1.0, %v21146_v44  ;;  %vm8911_vm5 = vcmp.gt.f32.partialorder %v21918_v6, 1.0  ;;  %vm8910_vm6 = vcmp.gt.f32.partialorder %v21919_v51, 1.0  ;;  %v21920_v30 = vld [vmem:[#allocation93_spill] sm:$0xff] }
 0xb61   : > { %v10355_v53 = vsub.f32 %v10339_v1, %v21917_v21  ;;  %14156 = vmatprep.mubr.msk.f32.mxu1 %vm2480_vm2, %v10385_v27  ;;  %v8878_v3 = vmul.f32 0.9, %v21919_v51  ;;  %v8927_v31 = vsel %vm8911_vm5, 1.0, %v21146_v44  ;;  %v8926_v54 = vsel %vm8910_vm6, 1.0, %v21146_v44 }
 0xb62   : > { %vm10372_vm3 = vcmp.gt.f32.partialorder %v10356_v11, 1.0  ;;  %14157 = vmatmul.mubr.msk.f32.gmra.mrb[60].mxu1 %vm2480_vm2, %v10386_v9  ;;  %v8881_v11 = vmul.f32 0.9, %v21920_v30  ;;  %v19955_v9 = vld [vmem:[%s20679_s1 + $0x8a] ss:$0 sm:$0xff]  ;;  %vm8913_vm8 = vcmp.gt.f32.partialorder %v21920_v30, 1.0 }
 0xb63   : > { %vm10371_vm4 = vcmp.gt.f32.partialorder %v10355_v53, 1.0  ;;  %v10388_v29 = vsel %vm10372_vm3, 1.0, %v21146_v44  ;;  %v21921_v53 = vld [vmem:[#allocation98_spill] sm:$0xff]  ;;  %v8929_v6 = vsel %vm8913_vm8, 1.0, %v21146_v44  ;;  %vm8924_vm6 = vcmp.gt.f32.partialorder %v19484_v57, 1.0 }
 0xb64   : > { %v10387_v8 = vsel %vm10371_vm4, 1.0, %v21146_v44  ;;  %vm8912_vm9 = vcmp.gt.f32.partialorder %v21921_v53, 1.0 }
 0xb65   : > { %14159 = vmatprep.mubr.msk.f32.mxu1 %vm2480_vm2, %v10387_v8 }
 0xb66   : > { %14160 = vmatmul.mubr.msk.f32.gmra.mrb[62].mxu1 %vm2480_vm2, %v10388_v29 }
 0xbdd   : > { %v13962_v56 = vpop.f32.mrb[80].mxu0 }
 0xbde   : > { %v14506_v58 = vadd.f32 %v19381_v33, %v13962_v56  ;;  %v8783_v46 = vpop.f32.mrb[81].mxu0  ;;  %v8880_v56 = vmul.f32 0.9, %v21921_v53 }
 0xbdf   : > { %v14507_v24 = vadd.f32 %v19381_v33, %v8783_v46  ;;  %v8928_v46 = vsel %vm8912_vm9, 1.0, %v21146_v44 }
 0xbe0   : > { %v8895_v55 = vadd.f32 %v14506_v58, %v8879_v40 }
 0xbe1   : > { %v8894_v49 = vadd.f32 %v14507_v24, %v8878_v3  ;;  %v13965_v1 = vpop.f32.mrb[82].mxu0  ;;  %v21922_v24 = vld [vmem:[#allocation99_spill] sm:$0xff] }
 0xbe2   : > { %v19950_v27 = vsub.f32 %v8895_v55, %v8927_v31  ;;  %v14508_v33 = vadd.f32 %v19955_v9, %v13965_v1  ;;  %v8793_v21 = vpop.f32.mrb[83].mxu0  ;;  %v8883_v3 = vmul.f32 0.9, %v21922_v24  ;;  %vm8915_vm10 = vcmp.gt.f32.partialorder %v21922_v24, 1.0 }
 0xbe3   : > { %v19960_v8 = vsub.f32 %v8894_v49, %v8926_v54  ;;  %v14509_v29 = vadd.f32 %v19955_v9, %v8793_v21  ;;  %v21923_v54 = vld [vmem:[#allocation96_spill] sm:$0xff]  ;;  %v8931_v21 = vsel %vm8915_vm10, 1.0, %v21146_v44 }
 0xbe4   : > { %v8897_v58 = vadd.f32 %v14508_v33, %v8881_v11  ;;  %vm8914_vm11 = vcmp.gt.f32.partialorder %v21923_v54, 1.0  ;;  %v8882_v11 = vmul.f32 0.9, %v21923_v54 }
 0xbe5   : > { %v8896_v40 = vadd.f32 %v14509_v29, %v8880_v56  ;;  %v13968_v51 = vpop.f32.mrb[84].mxu0  ;;  %v8930_v29 = vsel %vm8914_vm11, 1.0, %v21146_v44 }
 0xbe6   : > { %v19967_v55 = vsub.f32 %v8897_v58, %v8929_v6  ;;  %v14510_v31 = vadd.f32 %v19955_v9, %v13968_v51  ;;  %v8803_v49 = vpop.f32.mrb[85].mxu0  ;;  %v21925_v58 = vld [vmem:[#allocation97_spill] sm:$0xff] }
 0xbe7   : > { %v19972_v1 = vsub.f32 %v8896_v40, %v8928_v46  ;;  %v14511_v30 = vadd.f32 %v19955_v9, %v8803_v49  ;;  %v8885_v6 = vmul.f32 0.9, %v21925_v58  ;;  %vm8917_vm12 = vcmp.gt.f32.partialorder %v21925_v58, 1.0  ;;  %v21927_v46 = vld [vmem:[#allocation100_spill] sm:$0xff] }
 0xbe8   : > { %v8899_v33 = vadd.f32 %v14510_v31, %v8883_v3  ;;  %vm8916_vm13 = vcmp.gt.f32.partialorder %v21927_v46, 1.0  ;;  %v8884_v31 = vmul.f32 0.9, %v21927_v46 }
 0xbe9   : > { %21924 = vst [vmem:[#allocation65_spill] sm:$0xff] %v19972_v1  ;;  %v8898_v53 = vadd.f32 %v14511_v30, %v8882_v11  ;;  %v13971_v56 = vpop.f32.mrb[86].mxu0  ;;  %v8933_v30 = vsel %vm8917_vm12, 1.0, %v21146_v44 }
 0xbea   : > { %v19979_v51 = vsub.f32 %v8899_v33, %v8931_v21  ;;  %v14512_v24 = vadd.f32 %v19955_v9, %v13971_v56  ;;  %v8813_v40 = vpop.f32.mrb[87].mxu0  ;;  %v8932_v33 = vsel %vm8916_vm13, 1.0, %v21146_v44 }
 0xbeb   : > { %v19984_v49 = vsub.f32 %v8898_v53, %v8930_v29  ;;  %v14513_v3 = vadd.f32 %v19955_v9, %v8813_v40  ;;  %v21931_v29 = vld [vmem:[#allocation73_spill] sm:$0xff] }
 0xbec   : > { %21926 = vst [vmem:[#allocation67_spill] sm:$0xff] %v19979_v51  ;;  %v8901_v54 = vadd.f32 %v14512_v24, %v8885_v6  ;;  %v21929_v51 = vld [vmem:[#allocation75_spill] sm:$0xff]  ;;  %vm8918_vm14 = vcmp.gt.f32.partialorder %v21931_v29, 1.0  ;;  %v8886_v24 = vmul.f32 0.9, %v21931_v29 }
 0xbed   : > { %21928 = vst [vmem:[#allocation91_spill] sm:$0xff] %v19984_v49  ;;  %v8900_v11 = vadd.f32 %v14513_v3, %v8884_v31  ;;  %v13974_v21 = vpop.f32.mrb[88].mxu0  ;;  %v8887_v56 = vmul.f32 0.9, %v21929_v51  ;;  %vm8919_vm0 = vcmp.gt.f32.partialorder %v21929_v51, 1.0 }
 0xbee   : > { %v19991_v1 = vsub.f32 %v8901_v54, %v8933_v30  ;;  %v14514_v58 = vadd.f32 %v19955_v9, %v13974_v21  ;;  %v8823_v53 = vpop.f32.mrb[89].mxu0  ;;  %v8935_v3 = vsel %vm8919_vm0, 1.0, %v21146_v44  ;;  %v8934_v54 = vsel %vm8918_vm14, 1.0, %v21146_v44 }
 0xbef   : > { %v19996_v40 = vsub.f32 %v8900_v11, %v8932_v33  ;;  %v14515_v6 = vadd.f32 %v19955_v9, %v8823_v53  ;;  %v21935_v33 = vld [vmem:[#allocation74_spill] sm:$0xff] }
 0xbf0   : > { %21930 = vst [vmem:[#allocation68_spill] sm:$0xff] %v19991_v1  ;;  %v8903_v46 = vadd.f32 %v14514_v58, %v8887_v56  ;;  %v21933_v1 = vld [vmem:[#allocation77_spill] sm:$0xff]  ;;  %vm8920_vm1 = vcmp.gt.f32.partialorder %v21935_v33, 1.0  ;;  %v8888_v58 = vmul.f32 0.9, %v21935_v33 }
 0xbf1   : > { %21932 = vst [vmem:[#allocation70_spill] sm:$0xff] %v19996_v40  ;;  %v8902_v31 = vadd.f32 %v14515_v6, %v8886_v24  ;;  %v13977_v30 = vpop.f32.mrb[90].mxu0  ;;  %v8889_v21 = vmul.f32 0.9, %v21933_v1  ;;  %vm8921_vm15 = vcmp.gt.f32.partialorder %v21933_v1, 1.0 }
 0xbf2   : > { %v20003_v49 = vsub.f32 %v8903_v46, %v8935_v3  ;;  %v14516_v51 = vadd.f32 %v19955_v9, %v13977_v30  ;;  %v8833_v11 = vpop.f32.mrb[91].mxu0  ;;  %v8937_v6 = vsel %vm8921_vm15, 1.0, %v21146_v44  ;;  %v8936_v46 = vsel %vm8920_vm1, 1.0, %v21146_v44 }
 0xbf3   : > { %v20008_v53 = vsub.f32 %v8902_v31, %v8934_v54  ;;  %v14517_v56 = vadd.f32 %v19955_v9, %v8833_v11  ;;  %v21939_v54 = vld [vmem:[#allocation76_spill] sm:$0xff] }
 0xbf4   : > { %21934 = vst [vmem:[#allocation71_spill] sm:$0xff] %v20003_v49  ;;  %v8905_v29 = vadd.f32 %v14516_v51, %v8889_v21  ;;  %v21937_v49 = vld [vmem:[#allocation80_spill] sm:$0xff]  ;;  %vm8922_vm4 = vcmp.gt.f32.partialorder %v21939_v54, 1.0  ;;  %v8890_v51 = vmul.f32 0.9, %v21939_v54 }
 0xbf5   : > { %21936 = vst [vmem:[#allocation72_spill] sm:$0xff] %v20008_v53  ;;  %v8904_v24 = vadd.f32 %v14517_v56, %v8888_v58  ;;  %v13980_v3 = vpop.f32.mrb[92].mxu0  ;;  %v8891_v30 = vmul.f32 0.9, %v21937_v49  ;;  %vm8923_vm3 = vcmp.gt.f32.partialorder %v21937_v49, 1.0 }
 0xbf6   : > { %v20015_v40 = vsub.f32 %v8905_v29, %v8937_v6  ;;  %v14518_v1 = vadd.f32 %v19955_v9, %v13980_v3  ;;  %v8843_v31 = vpop.f32.mrb[93].mxu0  ;;  %v8939_v56 = vsel %vm8923_vm3, 1.0, %v21146_v44  ;;  %v8938_v29 = vsel %vm8922_vm4, 1.0, %v21146_v44  ;;  %v21940_v3 = vld [vmem:[#allocation78_spill] sm:$0xff] }
 0xbf7   : > { %v20020_v11 = vsub.f32 %v8904_v24, %v8936_v46  ;;  %v14519_v21 = vadd.f32 %v19955_v9, %v8843_v31  ;;  %v8893_v53 = vmul.f32 0.9, %v21940_v3  ;;  %vm8925_vm5 = vcmp.gt.f32.partialorder %v21940_v3, 1.0 }
 0xbf8   : > { %21938 = vst [vmem:[#allocation26_spill] sm:$0xff] %v20015_v40  ;;  %v8907_v33 = vadd.f32 %v14518_v1, %v8891_v30  ;;  %v8892_v30 = vmul.f32 0.9, %v19484_v57  ;;  %v8941_v54 = vsel %vm8925_vm5, 1.0, %v21146_v44  ;;  %v9714_v57 = vmul.f32 0.9, %v19494_v45 }
 0xbf9   : > { %v8906_v58 = vadd.f32 %v14519_v21, %v8890_v51  ;;  %v13983_v6 = vpop.f32.mrb[94].mxu0 }
 0xbfa   : > { %v20026_v40 = vsub.f32 %v8907_v33, %v8939_v56  ;;  %v14520_v49 = vadd.f32 %v19955_v9, %v13983_v6  ;;  %v8853_v24 = vpop.f32.mrb[95].mxu0  ;;  %v8940_v56 = vsel %vm8924_vm6, 1.0, %v21146_v44 }
 0xbfb   : > { %v20031_v46 = vsub.f32 %v8906_v58, %v8938_v29  ;;  %v14521_v31 = vadd.f32 %v19955_v9, %v8853_v24  ;;  %v9715_v58 = vmul.f32 0.9, %v19489_v18 }
 0xbfc   : > { %v8909_v1 = vadd.f32 %v14520_v49, %v8893_v53 }
 0xbfd   : > { %21941 = vst [vmem:[#allocation29_spill] sm:$0xff] %v20031_v46  ;;  %v8908_v21 = vadd.f32 %v14521_v31, %v8892_v30  ;;  %v14054_v51 = vpop.f32.mrb[168].mxu0  ;;  %v20052_v30 = vld [vmem:[%s20679_s1 + $0x8b] ss:$0 sm:$0xff] }
 0xbfe   : > { %v20037_v33 = vsub.f32 %v8909_v1, %v8941_v54  ;;  %v9641_v6 = vadd.f32 %v19480_v14, %v14054_v51  ;;  %v9635_v29 = vpop.f32.mrb[169].mxu0  ;;  %v9717_v1 = vmul.f32 0.9, %v19501_v36 }
 0xbff   : > { %v20042_v3 = vsub.f32 %v8908_v21, %v8940_v56  ;;  %v9636_v24 = vadd.f32 %v19480_v14, %v9635_v29  ;;  %v21942_v21 = vld [vmem:[#allocation79_spill] sm:$0xff] }
 0xc00   : > { %v9731_v53 = vadd.f32 %v9715_v58, %v9641_v6  ;;  %v9716_v51 = vmul.f32 0.9, %v21942_v21 }
 0xc01   : > { %v9730_v49 = vadd.f32 %v9714_v57, %v9636_v24  ;;  %v14057_v46 = vpop.f32.mrb[170].mxu0  ;;  %v21943_v57 = vld [vmem:[#allocation81_spill] sm:$0xff] }
 0xc02   : > { %v20047_v31 = vsub.f32 %v9731_v53, %v19509_v19  ;;  %v9651_v18 = vadd.f32 %v20052_v30, %v14057_v46  ;;  %v9645_v54 = vpop.f32.mrb[171].mxu0  ;;  %v9719_v46 = vmul.f32 0.9, %v19524_v16 }
 0xc03   : > { %v20057_v14 = vsub.f32 %v9730_v49, %v19506_v17  ;;  %v9646_v45 = vadd.f32 %v20052_v30, %v9645_v54 }
 0xc04   : > { %vm9763_vm8 = vcmp.gt.f32.partialorder %v20047_v31, 1.0  ;;  %v9733_v19 = vadd.f32 %v9717_v1, %v9651_v18  ;;  %v21944_v18 = vld [vmem:[#allocation84_spill] sm:$0xff] }
 0xc05   : > { %v9732_v56 = vadd.f32 %v9716_v51, %v9646_v45  ;;  %v14060_v6 = vpop.f32.mrb[172].mxu0  ;;  %vm9762_vm9 = vcmp.gt.f32.partialorder %v20057_v14, 1.0  ;;  %v20072_v24 = vsel %vm9763_vm8, 1.0, %v21146_v44  ;;  %v9718_v1 = vmul.f32 0.9, %v21944_v18 }
 0xc06   : > { %v20064_v58 = vsub.f32 %v9733_v19, %v19540_v32  ;;  %v9661_v36 = vadd.f32 %v20052_v30, %v14060_v6  ;;  %v9655_v17 = vpop.f32.mrb[173].mxu0  ;;  %v20069_v29 = vsel %vm9762_vm9, 1.0, %v21146_v44  ;;  %v9721_v51 = vmul.f32 0.9, %v19548_v41  ;;  %v21945_v6 = vld [vmem:[#allocation14_spill] sm:$0xff] }
 0xc07   : > { %v20075_v53 = vsub.f32 %v9732_v56, %v21943_v57  ;;  %v9656_v49 = vadd.f32 %v20052_v30, %v9655_v17  ;;  %14078 = vmatprep.mubr.msk.f32.mxu0 %vm3011_vm7, %v20069_v29  ;;  %v9720_v17 = vmul.f32 0.9, %v19562_v34 }
 0xc08   : > { %v9735_v32 = vadd.f32 %v9719_v46, %v9661_v36  ;;  %14079 = vmatmul.mubr.msk.f32.vlgmr.msra.gmra.mrb[96].mxu0 %vm3011_vm7, %v20072_v24  ;;  %vm9765_vm10 = vcmp.gt.f32.partialorder %v20064_v58, 1.0  ;;  %v21946_v36 = vld [vmem:[#allocation5_spill] sm:$0xff] }
 0xc09   : > { %v9734_v16 = vadd.f32 %v9718_v1, %v9656_v49  ;;  %14411 = vmatpush3.bf16.msra.mxu0 %v15231_v0  ;;  %v14063_v54 = vpop.f32.mrb[174].mxu0  ;;  %vm9764_vm11 = vcmp.gt.f32.partialorder %v20075_v53, 1.0  ;;  %v9723_v1 = vmul.f32 0.9, %v19578_v28 }
 0xc0a   : > { %v20087_v45 = vsub.f32 %v9735_v32, %v19571_v39  ;;  %v9671_v21 = vadd.f32 %v20052_v30, %v14063_v54  ;;  %v9665_v19 = vpop.f32.mrb[175].mxu0  ;;  %v20092_v56 = vsel %vm9764_vm11, 1.0, %v21146_v44  ;;  %14413 = vmatprep.subr.bf16.mxu0 %v21945_v6  ;;  %v20103_v39 = vsel %vm9765_vm10, 1.0, %v21146_v44 }
 0xc0b   : > { %v20096_v46 = vsub.f32 %v9734_v16, %v21946_v36  ;;  %v9666_v0 = vadd.f32 %v20052_v30, %v9665_v19  ;;  %14081 = vmatprep.mubr.msk.f32.mxu0 %vm3011_vm7, %v20092_v56 }
 0xc0c   : > { %v9737_v41 = vadd.f32 %v9721_v51, %v9671_v21  ;;  %14082 = vmatmul.mubr.msk.f32.gmra.mrb[98].mxu0 %vm3011_vm7, %v20103_v39  ;;  %vm9767_vm12 = vcmp.gt.f32.partialorder %v20087_v45, 1.0  ;;  %v9722_v51 = vmul.f32 0.9, %v19586_v23 }
 0xc0d   : > { %v9736_v57 = vadd.f32 %v9720_v17, %v9666_v0  ;;  %v14066_v49 = vpop.f32.mrb[176].mxu0  ;;  %vm9766_vm13 = vcmp.gt.f32.partialorder %v20096_v46, 1.0  ;;  %14415 = vmatpush3.bf16.msra.mxu0 %v21945_v6  ;;  %v9725_v6 = vmul.f32 0.9, %v19600_v50 }
 0xc0e   : > { %v20111_v34 = vsub.f32 %v9737_v41, %v19593_v38  ;;  %v9681_v18 = vadd.f32 %v20052_v30, %v14066_v49  ;;  %v9675_v32 = vpop.f32.mrb[177].mxu0  ;;  %v20116_v16 = vsel %vm9766_vm13, 1.0, %v21146_v44  ;;  %14194 = vmatprep.subr.mxu0 %v19558_v12  ;;  %v20127_v38 = vsel %vm9767_vm12, 1.0, %v21146_v44 }
 0xc0f   : > { %v20120_v54 = vsub.f32 %v9736_v57, %v19583_v52  ;;  %v9676_v21 = vadd.f32 %v20052_v30, %v9675_v32  ;;  %14084 = vmatprep.mubr.msk.f32.mxu0 %vm3011_vm7, %v20116_v16  ;;  %v9724_v57 = vmul.f32 0.9, %v19608_v22 }
 0xc10   : > { %v9739_v28 = vadd.f32 %v9723_v1, %v9681_v18  ;;  %14085 = vmatmul.mubr.msk.f32.gmra.mrb[100].mxu0 %vm3011_vm7, %v20127_v38  ;;  %vm9769_vm0 = vcmp.gt.f32.partialorder %v20111_v34, 1.0  ;;  %v21947_v1 = vld [vmem:[#allocation82_spill] sm:$0xff] }
 0xc11   : > { %v9738_v12 = vadd.f32 %v9722_v51, %v9676_v21  ;;  %v14069_v19 = vpop.f32.mrb[178].mxu0  ;;  %vm9768_vm14 = vcmp.gt.f32.partialorder %v20120_v54, 1.0  ;;  %v9727_v32 = vmul.f32 0.9, %v21947_v1 }
 0xc12   : > { %v20134_v52 = vsub.f32 %v9739_v28, %v19615_v47  ;;  %v9691_v23 = vadd.f32 %v20052_v30, %v14069_v19  ;;  %v9685_v36 = vpop.f32.mrb[179].mxu0  ;;  %v20139_v0 = vsel %vm9768_vm14, 1.0, %v21146_v44  ;;  %v20149_v47 = vsel %vm9769_vm0, 1.0, %v21146_v44  ;;  %v21948_v28 = vld [vmem:[#allocation87_spill] sm:$0xff] }
 0xc13   : > { %v20142_v17 = vsub.f32 %v9738_v12, %v19605_v15  ;;  %v9686_v41 = vadd.f32 %v20052_v30, %v9685_v36  ;;  %14087 = vmatprep.mubr.msk.f32.mxu0 %vm3011_vm7, %v20139_v0 }
 0xc14   : > { %v9741_v49 = vadd.f32 %v9725_v6, %v9691_v23  ;;  %14088 = vmatmul.mubr.msk.f32.gmra.mrb[102].mxu0 %vm3011_vm7, %v20149_v47  ;;  %vm9771_vm15 = vcmp.gt.f32.partialorder %v20134_v52, 1.0  ;;  %v9726_v23 = vmul.f32 0.9, %v19630_v4 }
 0xc15   : > { %v9740_v50 = vadd.f32 %v9724_v57, %v9686_v41  ;;  %v14072_v18 = vpop.f32.mrb[180].mxu0  ;;  %vm9770_vm1 = vcmp.gt.f32.partialorder %v20142_v17, 1.0 }
 0xc16   : > { %v20156_v15 = vsub.f32 %v9741_v49, %v19637_v63  ;;  %v9701_v22 = vadd.f32 %v20052_v30, %v14072_v18  ;;  %v9695_v21 = vpop.f32.mrb[181].mxu0  ;;  %v20161_v51 = vsel %vm9770_vm1, 1.0, %v21146_v44  ;;  %v20171_v63 = vsel %vm9771_vm15, 1.0, %v21146_v44 }
 0xc17   : > { %v20164_v12 = vsub.f32 %v9740_v50, %v21948_v28  ;;  %v9696_v19 = vadd.f32 %v20052_v30, %v9695_v21  ;;  %14090 = vmatprep.mubr.msk.f32.mxu0 %vm3011_vm7, %v20161_v51  ;;  %v9729_v49 = vmul.f32 0.9, %v19644_v5  ;;  %v9728_v21 = vmul.f32 0.9, %v19652_v43 }
 0xc18   : > { %v9743_v6 = vadd.f32 %v9727_v32, %v9701_v22  ;;  %14091 = vmatmul.mubr.msk.f32.gmra.mrb[104].mxu0 %vm3011_vm7, %v20171_v63  ;;  %vm9773_vm3 = vcmp.gt.f32.partialorder %v20156_v15, 1.0  ;;  %v21949_v22 = vld [vmem:[#allocation83_spill] sm:$0xff] }
 0xc19   : > { %v9742_v36 = vadd.f32 %v9726_v23, %v9696_v19  ;;  %v14075_v41 = vpop.f32.mrb[182].mxu0  ;;  %vm9772_vm4 = vcmp.gt.f32.partialorder %v20164_v12, 1.0 }
 0xc1a   : > { %v20178_v57 = vsub.f32 %v9743_v6, %v19659_v13  ;;  %v9711_v4 = vadd.f32 %v20052_v30, %v14075_v41  ;;  %v9705_v50 = vpop.f32.mrb[183].mxu0  ;;  %v20183_v18 = vsel %vm9772_vm4, 1.0, %v21146_v44  ;;  %v20193_v13 = vsel %vm9773_vm3, 1.0, %v21146_v44 }
 0xc1b   : > { %v20186_v1 = vsub.f32 %v9742_v36, %v21949_v22  ;;  %v9706_v32 = vadd.f32 %v20052_v30, %v9705_v50  ;;  %14093 = vmatprep.mubr.msk.f32.mxu0 %vm3011_vm7, %v20183_v18  ;;  %v10583_v6 = vmul.f32 0.9, %v19666_v26  ;;  %v21953_v22 = vld [vmem:[#allocation85_spill] sm:$0xff] }
 0xc1c   : > { %v9745_v28 = vadd.f32 %v9729_v49, %v9711_v4  ;;  %14094 = vmatmul.mubr.msk.f32.gmra.mrb[106].mxu0 %vm3011_vm7, %v20193_v13  ;;  %vm9775_vm5 = vcmp.gt.f32.partialorder %v20178_v57, 1.0  ;;  %v21952_v4 = vld [vmem:[#allocation16_spill] sm:$0xff] }
 0xc1d   : > { %v9744_v5 = vadd.f32 %v9728_v21, %v9706_v32  ;;  %v14140_v19 = vpop.f32.mrb[48].mxu1  ;;  %vm9774_vm6 = vcmp.gt.f32.partialorder %v20186_v1, 1.0  ;;  %v10582_v32 = vmul.f32 0.9, %v21953_v22 }
 0xc1e   : > { %v20200_v23 = vsub.f32 %v9745_v28, %v19681_v37  ;;  %v10509_v43 = vadd.f32 %v19716_v62, %v14140_v19  ;;  %v10503_v36 = vpop.f32.mrb[49].mxu1  ;;  %v20205_v41 = vsel %vm9774_vm6, 1.0, %v21146_v44  ;;  %v20215_v37 = vsel %vm9775_vm5, 1.0, %v21146_v44 }
 0xc1f   : > { %21951 = vst [vmem:[#allocation28_spill] sm:$0xff] %v20205_v41  ;;  %v20208_v49 = vsub.f32 %v9744_v5, %v21952_v4  ;;  %v10504_v50 = vadd.f32 %v19716_v62, %v10503_v36  ;;  %14096 = vmatprep.mubr.msk.f32.mxu0 %vm3011_vm7, %v20205_v41  ;;  %v10585_v36 = vmul.f32 0.9, %v19688_v60  ;;  %v21955_v41 = vld [vmem:[#allocation17_spill] sm:$0xff] }
 0xc20   : > { %21950 = vst [vmem:[#allocation23_spill] sm:$0xff] %v20200_v23  ;;  %v10599_v21 = vadd.f32 %v10583_v6, %v10509_v43  ;;  %14097 = vmatmul.mubr.msk.f32.gmra.mrb[108].mxu0 %vm3011_vm7, %v20215_v37  ;;  %vm9777_vm8 = vcmp.gt.f32.partialorder %v20200_v23, 1.0  ;;  %v10584_v23 = vmul.f32 0.9, %v21955_v41  ;;  %v10587_v41 = vmul.f32 0.9, %v19711_v2 }
 0xc21   : > { %v10598_v26 = vadd.f32 %v10582_v32, %v10504_v50  ;;  %v14143_v28 = vpop.f32.mrb[50].mxu1  ;;  %vm9776_vm9 = vcmp.gt.f32.partialorder %v20208_v49, 1.0  ;;  %v20233_v50 = vsel %vm9777_vm8, 1.0, %v21146_v44  ;;  %v14749_v2 = vld [vmem:[%s20679_s1 + $0x40] sm:$0xff] }
 0xc22   : > { %v10615_v5 = vsub.f32 %v10599_v21, %v19696_v61  ;;  %v10519_v19 = vadd.f32 %v19716_v62, %v14143_v28  ;;  %v10513_v4 = vpop.f32.mrb[51].mxu1  ;;  %v20225_v22 = vsel %vm9776_vm9, 1.0, %v21146_v44 }
 0xc23   : > { %21954 = vst [vmem:[#allocation30_spill] sm:$0xff] %v20225_v22  ;;  %v10614_v43 = vsub.f32 %v10598_v26, %v19693_v20  ;;  %v10514_v6 = vadd.f32 %v19716_v62, %v10513_v4  ;;  %14099 = vmatprep.mubr.msk.f32.mxu0 %vm3011_vm7, %v20225_v22  ;;  %v21956_v22 = vld [vmem:[#allocation86_spill] sm:$0xff] }
 0xc24   : > { %vm10631_vm10 = vcmp.gt.f32.partialorder %v10615_v5, 1.0  ;;  %v10601_v61 = vadd.f32 %v10585_v36, %v10519_v19  ;;  %14100 = vmatmul.mubr.msk.f32.gmra.mrb[110].mxu0 %vm3011_vm7, %v20233_v50  ;;  %v10586_v36 = vmul.f32 0.9, %v19725_v25  ;;  %v10589_v25 = vmul.f32 0.9, %v19741_v10 }
 0xc25   : > { %v10600_v60 = vadd.f32 %v10584_v23, %v10514_v6  ;;  %v14146_v32 = vpop.f32.mrb[52].mxu1  ;;  %vm10630_vm11 = vcmp.gt.f32.partialorder %v10614_v43, 1.0  ;;  %v10647_v4 = vsel %vm10631_vm10, 1.0, %v21146_v44 }
 0xc26   : > { %v10617_v20 = vsub.f32 %v10601_v61, %v19734_v42  ;;  %v10529_v21 = vadd.f32 %v19716_v62, %v14146_v32  ;;  %v10523_v26 = vpop.f32.mrb[53].mxu1  ;;  %v10646_v28 = vsel %vm10630_vm11, 1.0, %v21146_v44  ;;  %v21957_v32 = vld [vmem:[#allocation19_spill] sm:$0xff] }
 0xc27   : > { %v10616_v5 = vsub.f32 %v10600_v60, %v21956_v22  ;;  %v10524_v19 = vadd.f32 %v19716_v62, %v10523_v26  ;;  %14170 = vmatprep.mubr.msk.f32.mxu0 %vm2480_vm2, %v10646_v28 }
 0xc28   : > { %v10603_v23 = vadd.f32 %v10587_v41, %v10529_v21  ;;  %14171 = vmatmul.mubr.msk.f32.vlgmr.msra.gmra.mrb[184].mxu0 %vm2480_vm2, %v10647_v4  ;;  %vm10633_vm12 = vcmp.gt.f32.partialorder %v10617_v20, 1.0  ;;  %v10588_v41 = vmul.f32 0.9, %v19749_v7  ;;  %v10591_v7 = vmul.f32 0.9, %v19763_v35  ;;  %v21960_v35 = vld [vmem:[#allocation25_spill] sm:$0xff] }
 0xc29   : > { %v10602_v42 = vadd.f32 %v10586_v36, %v10524_v19  ;;  %v14149_v43 = vpop.f32.mrb[54].mxu1  ;;  %vm10632_vm13 = vcmp.gt.f32.partialorder %v10616_v5, 1.0  ;;  %14195 = vmatpush3.msra.mxu0 %v14749_v2  ;;  %v10649_v26 = vsel %vm10633_vm12, 1.0, %v21146_v44  ;;  %v14750_v5 = vld [vmem:[%s20679_s1 + $0x89] ss:$0 sm:$0xff]  ;;  %v21959_v2 = vld [vmem:[#allocation18_spill] sm:$0xff] }
 0xc2a   : > { %v10619_v22 = vsub.f32 %v10603_v23, %v19756_v48  ;;  %v10539_v6 = vadd.f32 %v19716_v62, %v14149_v43  ;;  %v10533_v61 = vpop.f32.mrb[55].mxu1  ;;  %v10648_v60 = vsel %vm10632_vm13, 1.0, %v21146_v44  ;;  %v21958_v23 = vld [vmem:[#allocation20_spill] sm:$0xff]  ;;  %vm10052_vm12 = vcmp.gt.f32.partialorder %v19950_v27, 1.0 }
 0xc2b   : > { %v10618_v21 = vsub.f32 %v10602_v42, %v21957_v32  ;;  %v10534_v20 = vadd.f32 %v19716_v62, %v10533_v61  ;;  %14173 = vmatprep.mubr.msk.f32.mxu0 %vm2480_vm2, %v10648_v60  ;;  %vm10051_vm13 = vcmp.gt.f32.partialorder %v19960_v8, 1.0 }
 0xc2c   : > { %v10605_v28 = vadd.f32 %v10589_v25, %v10539_v6  ;;  %14174 = vmatmul.mubr.msk.f32.gmra.mrb[186].mxu0 %vm2480_vm2, %v10649_v26  ;;  %vm10635_vm0 = vcmp.gt.f32.partialorder %v10619_v22, 1.0  ;;  %v10590_v22 = vmul.f32 0.9, %v21959_v2 }
 0xc2d   : > { %v10604_v48 = vadd.f32 %v10588_v41, %v10534_v20  ;;  %v14152_v4 = vpop.f32.mrb[56].mxu1  ;;  %vm10634_vm14 = vcmp.gt.f32.partialorder %v10618_v21, 1.0  ;;  %v10651_v6 = vsel %vm10635_vm0, 1.0, %v21146_v44  ;;  %v21961_v21 = vld [vmem:[#allocation15_spill] sm:$0xff]  ;;  %vm10054_vm0 = vcmp.gt.f32.partialorder %v19967_v55, 1.0 }
 0xc2e   : > { %v10621_v10 = vsub.f32 %v10605_v28, %v19778_v59  ;;  %v10549_v62 = vadd.f32 %v14750_v5, %v14152_v4  ;;  %v10543_v19 = vpop.f32.mrb[57].mxu1  ;;  %v10650_v36 = vsel %vm10634_vm14, 1.0, %v21146_v44  ;;  %v10593_v20 = vmul.f32 0.9, %v21961_v21  ;;  %v21962_v28 = vld [vmem:[#allocation21_spill] sm:$0xff] }
 0xc2f   : > { %v10620_v42 = vsub.f32 %v10604_v48, %v21958_v23  ;;  %v10544_v43 = vadd.f32 %v14750_v5, %v10543_v19  ;;  %14176 = vmatprep.mubr.msk.f32.mxu0 %vm2480_vm2, %v10650_v36  ;;  %v21963_v19 = vld [vmem:[#allocation22_spill] sm:$0xff] }
 0xc30   : > { %v10607_v59 = vadd.f32 %v10591_v7, %v10549_v62  ;;  %14177 = vmatmul.mubr.msk.f32.gmra.mrb[188].mxu0 %vm2480_vm2, %v10651_v6  ;;  %vm10637_vm15 = vcmp.gt.f32.partialorder %v10621_v10, 1.0  ;;  %v10592_v36 = vmul.f32 0.9, %v21963_v19 }
 0xc31   : > { %v10606_v25 = vadd.f32 %v10590_v22, %v10544_v43  ;;  %v14155_v61 = vpop.f32.mrb[58].mxu1  ;;  %vm10636_vm1 = vcmp.gt.f32.partialorder %v10620_v42, 1.0  ;;  %v10653_v10 = vsel %vm10637_vm15, 1.0, %v21146_v44  ;;  %v21964_v42 = vld [vmem:[#allocation57_spill] sm:$0xff]  ;;  %v21965_v22 = vld [vmem:[#allocation24_spill] sm:$0xff] }
 0xc32   : > { %v10623_v60 = vsub.f32 %v10607_v59, %v21960_v35  ;;  %v10559_v32 = vadd.f32 %v14750_v5, %v14155_v61  ;;  %v10553_v41 = vpop.f32.mrb[59].mxu1  ;;  %v10652_v26 = vsel %vm10636_vm1, 1.0, %v21146_v44  ;;  %v10595_v6 = vmul.f32 0.9, %v21965_v22  ;;  %v21966_v61 = vld [vmem:[#allocation62_spill] sm:$0xff] }
 0xc33   : > { %v10622_v48 = vsub.f32 %v10606_v25, %v21962_v28  ;;  %v10554_v4 = vadd.f32 %v14750_v5, %v10553_v41  ;;  %14179 = vmatprep.mubr.msk.f32.mxu0 %vm2480_vm2, %v10652_v26  ;;  %v21967_v41 = vld [vmem:[#allocation56_spill] sm:$0xff] }
 0xc34   : > { %v10609_v62 = vadd.f32 %v10593_v20, %v10559_v32  ;;  %14180 = vmatmul.mubr.msk.f32.gmra.mrb[190].mxu0 %vm2480_vm2, %v10653_v10  ;;  %vm10639_vm3 = vcmp.gt.f32.partialorder %v10623_v60, 1.0  ;;  %v10594_v26 = vmul.f32 0.9, %v21967_v41  ;;  %v21973_v41 = vld [vmem:[#allocation66_spill] sm:$0xff] }
 0xc35   : > { %v10608_v7 = vadd.f32 %v10592_v36, %v10554_v4  ;;  %v14158_v23 = vpop.f32.mrb[60].mxu1  ;;  %vm10638_vm4 = vcmp.gt.f32.partialorder %v10622_v48, 1.0  ;;  %v10655_v60 = vsel %vm10639_vm3, 1.0, %v21146_v44  ;;  %v21968_v48 = vld [vmem:[#allocation61_spill] sm:$0xff]  ;;  %v21969_v36 = vld [vmem:[#allocation63_spill] sm:$0xff] }
 0xc36   : > { %v10625_v43 = vsub.f32 %v10609_v62, %v21964_v42  ;;  %v10569_v2 = vadd.f32 %v14750_v5, %v14158_v23  ;;  %v10563_v59 = vpop.f32.mrb[61].mxu1  ;;  %v10654_v25 = vsel %vm10638_vm4, 1.0, %v21146_v44  ;;  %v10597_v10 = vmul.f32 0.9, %v21969_v36  ;;  %v21970_v23 = vld [vmem:[#allocation69_spill] sm:$0xff] }
 0xc37   : > { %v10624_v35 = vsub.f32 %v10608_v7, %v21966_v61  ;;  %v10564_v21 = vadd.f32 %v14750_v5, %v10563_v59  ;;  %14182 = vmatprep.mubr.msk.f32.mxu0 %vm2480_vm2, %v10654_v25  ;;  %v21971_v59 = vld [vmem:[#allocation60_spill] sm:$0xff] }
 0xc38   : > { %v10611_v32 = vadd.f32 %v10595_v6, %v10569_v2  ;;  %14183 = vmatmul.mubr.msk.f32.gmra.mrb[192].mxu0 %vm2480_vm2, %v10655_v60  ;;  %vm10641_vm5 = vcmp.gt.f32.partialorder %v10625_v43, 1.0  ;;  %v10596_v25 = vmul.f32 0.9, %v21971_v59  ;;  %v21972_v61 = vld [vmem:[#allocation64_spill] sm:$0xff] }
 0xc39   : > { %v10610_v20 = vadd.f32 %v10594_v26, %v10564_v21  ;;  %v14161_v28 = vpop.f32.mrb[62].mxu1  ;;  %vm10640_vm6 = vcmp.gt.f32.partialorder %v10624_v35, 1.0  ;;  %v10657_v43 = vsel %vm10641_vm5, 1.0, %v21146_v44 }
 0xc3a   : > { %v10627_v4 = vsub.f32 %v10611_v32, %v21968_v48  ;;  %v10579_v19 = vadd.f32 %v14750_v5, %v14161_v28  ;;  %v10573_v62 = vpop.f32.mrb[63].mxu1  ;;  %v10656_v7 = vsel %vm10640_vm6, 1.0, %v21146_v44  ;;  %v703_v28 = vld [vmem:[%s20679_s1 + $0x70] sm:$0xff]  ;;  %v704_v48 = vld [vmem:[%s20679_s1 + $0x78] sm:$0xff] }
 0xc3b   : > { %v10626_v42 = vsub.f32 %v10610_v20, %v21970_v23  ;;  %v10574_v22 = vadd.f32 %v14750_v5, %v10573_v62  ;;  %14185 = vmatprep.mubr.msk.f32.mxu0 %vm2480_vm2, %v10656_v7  ;;  %v702_v20 = vld [vmem:[%s20679_s1 + $0x68] sm:$0xff]  ;;  %v10020_v7 = vmul.f32 0.9, %v19950_v27 }
 0xc3c   : > { %v10613_v2 = vadd.f32 %v10597_v10, %v10579_v19  ;;  %14186 = vmatmul.mubr.msk.f32.gmra.mrb[194].mxu0 %vm2480_vm2, %v10657_v43  ;;  %vm10643_vm8 = vcmp.gt.f32.partialorder %v10627_v4, 1.0  ;;  %v14416_v4 = vpack.c.bf16 %v703_v28, %v702_v20  ;;  %v705_v19 = vld [vmem:[%s20679_s1 + $0x80] sm:$0xff] }
 0xc3d   : > { %v10612_v6 = vadd.f32 %v10596_v25, %v10574_v22  ;;  %vm10642_vm9 = vcmp.gt.f32.partialorder %v10626_v42, 1.0  ;;  %v10659_v5 = vsel %vm10643_vm8, 1.0, %v21146_v44  ;;  %v14420_v36 = vpack.c.bf16 %v705_v19, %v704_v48 }
 0xc3e   : > { %v10629_v35 = vsub.f32 %v10613_v2, %v21972_v61  ;;  %v10658_v21 = vsel %vm10642_vm9, 1.0, %v21146_v44  ;;  %14417 = vmatprep.subr.bf16.mxu1 %v14416_v4  ;;  %v10019_v22 = vmul.f32 0.9, %v19960_v8  ;;  %v10068_v25 = vsel %vm10052_vm12, 1.0, %v21146_v44 }
 0xc3f   : > { %v10628_v26 = vsub.f32 %v10612_v6, %v21973_v41  ;;  %14188 = vmatprep.mubr.msk.f32.mxu0 %vm2480_vm2, %v10658_v21  ;;  %14419 = vmatpush3.bf16.msra.mxu1 %v14416_v4  ;;  %v10067_v2 = vsel %vm10051_vm13, 1.0, %v21146_v44  ;;  %v10022_v61 = vmul.f32 0.9, %v19967_v55  ;;  %v21974_v41 = vld [vmem:[#allocation65_spill] sm:$0xff]  ;;  %v21975_v4 = vld [vmem:[#allocation67_spill] sm:$0xff]  ;;  %vm10061_vm9 = vcmp.gt.f32.partialorder %v20020_v11, 1.0 }
 0xc40   : > { %14189 = vmatmul.mubr.msk.f32.gmra.mrb[196].mxu0 %vm2480_vm2, %v10659_v5  ;;  %vm10645_vm10 = vcmp.gt.f32.partialorder %v10629_v35, 1.0  ;;  %14421 = vmatprep.subr.bf16.mxu1 %v14420_v36  ;;  %vm10053_vm14 = vcmp.gt.f32.partialorder %v21974_v41, 1.0  ;;  %v10021_v5 = vmul.f32 0.9, %v21974_v41  ;;  %v10024_v19 = vmul.f32 0.9, %v21975_v4 }
 0xc41   : > { %vm10644_vm11 = vcmp.gt.f32.partialorder %v10628_v26, 1.0  ;;  %v10661_v32 = vsel %vm10645_vm10, 1.0, %v21146_v44  ;;  %v10069_v28 = vsel %vm10053_vm14, 1.0, %v21146_v44  ;;  %vm10056_vm15 = vcmp.gt.f32.partialorder %v21975_v4, 1.0 }
 0xc42   : > { %v10660_v60 = vsel %vm10644_vm11, 1.0, %v21146_v44  ;;  %vm10064_vm10 = vcmp.gt.f32.partialorder %v20026_v40, 1.0  ;;  %vm10066_vm12 = vcmp.gt.f32.partialorder %v20037_v33, 1.0  ;;  %vm10065_vm13 = vcmp.gt.f32.partialorder %v20042_v3, 1.0 }
 0xc43   : > { %14191 = vmatprep.mubr.msk.f32.mxu0 %vm2480_vm2, %v10660_v60  ;;  %14423 = vmatpush3.bf16.msra.mxu1 %v14420_v36 }
 0xc44   : > { %14192 = vmatmul.mubr.msk.f32.gmra.mrb[198].mxu0 %vm2480_vm2, %v10661_v32  ;;  %v10070_v32 = vsel %vm10054_vm0, 1.0, %v21146_v44 }
 0xcdb   : > { %v14080_v10 = vpop.f32.mrb[96].mxu0 }
 0xcdc   : > { %v14522_v62 = vadd.f32 %v19955_v9, %v14080_v10  ;;  %v9924_v23 = vpop.f32.mrb[97].mxu0 }
 0xcdd   : > { %v14523_v42 = vadd.f32 %v19955_v9, %v9924_v23 }
 0xcde   : > { %v10036_v59 = vadd.f32 %v14522_v62, %v10020_v7  ;;  %v21976_v62 = vld [vmem:[#allocation91_spill] sm:$0xff] }
 0xcdf   : > { %v10035_v43 = vadd.f32 %v14523_v42, %v10019_v22  ;;  %v14083_v6 = vpop.f32.mrb[98].mxu0  ;;  %vm10055_vm1 = vcmp.gt.f32.partialorder %v21976_v62, 1.0  ;;  %v10023_v42 = vmul.f32 0.9, %v21976_v62 }
 0xce0   : > { %v20326_v35 = vsub.f32 %v10036_v59, %v10068_v25  ;;  %v14524_v27 = vadd.f32 %v19955_v9, %v14083_v6  ;;  %v9934_v21 = vpop.f32.mrb[99].mxu0  ;;  %v10072_v59 = vsel %vm10056_vm15, 1.0, %v21146_v44  ;;  %v21977_v6 = vld [vmem:[#allocation68_spill] sm:$0xff] }
 0xce1   : > { %v20331_v26 = vsub.f32 %v10035_v43, %v10067_v2  ;;  %v14525_v8 = vadd.f32 %v19955_v9, %v9934_v21  ;;  %v10071_v43 = vsel %vm10055_vm1, 1.0, %v21146_v44  ;;  %vm10058_vm3 = vcmp.gt.f32.partialorder %v21977_v6, 1.0 }
 0xce2   : > { %v10038_v60 = vadd.f32 %v14524_v27, %v10022_v61  ;;  %v10026_v61 = vmul.f32 0.9, %v21977_v6 }
 0xce3   : > { %v10037_v20 = vadd.f32 %v14525_v8, %v10021_v5  ;;  %v14086_v48 = vpop.f32.mrb[100].mxu0  ;;  %v21978_v8 = vld [vmem:[#allocation70_spill] sm:$0xff] }
 0xce4   : > { %v20338_v36 = vsub.f32 %v10038_v60, %v10070_v32  ;;  %v14526_v55 = vadd.f32 %v19955_v9, %v14086_v48  ;;  %v9944_v10 = vpop.f32.mrb[101].mxu0  ;;  %vm10057_vm4 = vcmp.gt.f32.partialorder %v21978_v8, 1.0  ;;  %v10025_v32 = vmul.f32 0.9, %v21978_v8  ;;  %v21981_v8 = vld [vmem:[#allocation26_spill] sm:$0xff] }
 0xce5   : > { %v20343_v7 = vsub.f32 %v10037_v20, %v10069_v28  ;;  %v14527_v23 = vadd.f32 %v19955_v9, %v9944_v10  ;;  %v10074_v28 = vsel %vm10058_vm3, 1.0, %v21146_v44  ;;  %v10073_v4 = vsel %vm10057_vm4, 1.0, %v21146_v44 }
 0xce6   : > { %v10040_v22 = vadd.f32 %v14526_v55, %v10024_v19  ;;  %v21979_v55 = vld [vmem:[#allocation71_spill] sm:$0xff]  ;;  %vm10062_vm8 = vcmp.gt.f32.partialorder %v21981_v8, 1.0 }
 0xce7   : > { %v10039_v25 = vadd.f32 %v14527_v23, %v10023_v42  ;;  %v14089_v2 = vpop.f32.mrb[102].mxu0  ;;  %v10028_v10 = vmul.f32 0.9, %v21979_v55  ;;  %vm10060_vm5 = vcmp.gt.f32.partialorder %v21979_v55, 1.0 }
 0xce8   : > { %v20350_v27 = vsub.f32 %v10040_v22, %v10072_v59  ;;  %v14528_v21 = vadd.f32 %v19955_v9, %v14089_v2  ;;  %v9954_v41 = vpop.f32.mrb[103].mxu0  ;;  %v21980_v22 = vld [vmem:[#allocation72_spill] sm:$0xff]  ;;  %v10076_v6 = vsel %vm10060_vm5, 1.0, %v21146_v44 }
 0xce9   : > { %v20355_v5 = vsub.f32 %v10039_v25, %v10071_v43  ;;  %v14529_v60 = vadd.f32 %v19955_v9, %v9954_v41  ;;  %vm10059_vm6 = vcmp.gt.f32.partialorder %v21980_v22, 1.0  ;;  %v10027_v43 = vmul.f32 0.9, %v21980_v22 }
 0xcea   : > { %v10042_v20 = vadd.f32 %v14528_v21, %v10026_v61  ;;  %v10075_v21 = vsel %vm10059_vm6, 1.0, %v21146_v44 }
 0xceb   : > { %v10041_v48 = vadd.f32 %v14529_v60, %v10025_v32  ;;  %v14092_v19 = vpop.f32.mrb[104].mxu0  ;;  %v10030_v60 = vmul.f32 0.9, %v21981_v8 }
 0xcec   : > { %v20362_v62 = vsub.f32 %v10042_v20, %v10074_v28  ;;  %v14530_v23 = vadd.f32 %v19955_v9, %v14092_v19  ;;  %v9964_v42 = vpop.f32.mrb[105].mxu0  ;;  %v10029_v19 = vmul.f32 0.9, %v20020_v11 }
 0xced   : > { %v20367_v59 = vsub.f32 %v10041_v48, %v10073_v4  ;;  %v14531_v25 = vadd.f32 %v19955_v9, %v9964_v42  ;;  %v10077_v42 = vsel %vm10061_vm9, 1.0, %v21146_v44 }
 0xcee   : > { %v10044_v2 = vadd.f32 %v14530_v23, %v10028_v10  ;;  %v10078_v10 = vsel %vm10062_vm8, 1.0, %v21146_v44 }
 0xcef   : > { %v10043_v61 = vadd.f32 %v14531_v25, %v10027_v43  ;;  %v14095_v41 = vpop.f32.mrb[106].mxu0  ;;  %v10032_v25 = vmul.f32 0.9, %v20026_v40 }
 0xcf0   : > { %v20374_v32 = vsub.f32 %v10044_v2, %v10076_v6  ;;  %v14532_v20 = vadd.f32 %v19955_v9, %v14095_v41  ;;  %v9974_v28 = vpop.f32.mrb[107].mxu0 }
 0xcf1   : > { %v20379_v48 = vsub.f32 %v10043_v61, %v10075_v21  ;;  %v14533_v4 = vadd.f32 %v19955_v9, %v9974_v28  ;;  %v21982_v61 = vld [vmem:[#allocation29_spill] sm:$0xff] }
 0xcf2   : > { %v10046_v55 = vadd.f32 %v14532_v20, %v10030_v60  ;;  %vm10063_vm11 = vcmp.gt.f32.partialorder %v21982_v61, 1.0  ;;  %v10031_v41 = vmul.f32 0.9, %v21982_v61  ;;  %v10080_v60 = vsel %vm10064_vm10, 1.0, %v21146_v44 }
 0xcf3   : > { %v10045_v23 = vadd.f32 %v14533_v4, %v10029_v19  ;;  %v14098_v22 = vpop.f32.mrb[108].mxu0  ;;  %v10079_v28 = vsel %vm10063_vm11, 1.0, %v21146_v44 }
 0xcf4   : > { %v20386_v43 = vsub.f32 %v10046_v55, %v10078_v10  ;;  %v14534_v2 = vadd.f32 %v19955_v9, %v14098_v22  ;;  %v9984_v6 = vpop.f32.mrb[109].mxu0  ;;  %v10034_v55 = vmul.f32 0.9, %v20037_v33  ;;  %v10033_v22 = vmul.f32 0.9, %v20042_v3 }
 0xcf5   : > { %v20391_v21 = vsub.f32 %v10045_v23, %v10077_v42  ;;  %v14535_v11 = vadd.f32 %v19955_v9, %v9984_v6  ;;  %v10855_v3 = vmul.f32 0.9, %v20057_v14 }
 0xcf6   : > { %v10048_v8 = vadd.f32 %v14534_v2, %v10032_v25  ;;  %v10082_v2 = vsel %vm10066_vm12, 1.0, %v21146_v44 }
 0xcf7   : > { %v10047_v20 = vadd.f32 %v14535_v11, %v10031_v41  ;;  %v14101_v4 = vpop.f32.mrb[110].mxu0  ;;  %v10081_v41 = vsel %vm10065_vm13, 1.0, %v21146_v44 }
 0xcf8   : > { %v20397_v19 = vsub.f32 %v10048_v8, %v10080_v60  ;;  %v14536_v40 = vadd.f32 %v19955_v9, %v14101_v4  ;;  %v9994_v10 = vpop.f32.mrb[111].mxu0  ;;  %v10856_v8 = vmul.f32 0.9, %v20047_v31 }
 0xcf9   : > { %v20402_v23 = vsub.f32 %v10047_v20, %v10079_v28  ;;  %v14537_v42 = vadd.f32 %v19955_v9, %v9994_v10 }
 0xcfa   : > { %v10050_v25 = vadd.f32 %v14536_v40, %v10034_v55 }
 0xcfb   : > { %v10049_v6 = vadd.f32 %v14537_v42, %v10033_v22  ;;  %v14172_v61 = vpop.f32.mrb[184].mxu0  ;;  %v10858_v42 = vmul.f32 0.9, %v20064_v58 }
 0xcfc   : > { %v20408_v11 = vsub.f32 %v10050_v25, %v10082_v2  ;;  %v10782_v33 = vadd.f32 %v20052_v30, %v14172_v61  ;;  %v10776_v60 = vpop.f32.mrb[185].mxu0  ;;  %v10857_v2 = vmul.f32 0.9, %v20075_v53 }
 0xcfd   : > { %v20413_v20 = vsub.f32 %v10049_v6, %v10081_v41  ;;  %v10777_v9 = vadd.f32 %v20052_v30, %v10776_v60 }
 0xcfe   : > { %v10872_v28 = vadd.f32 %v10856_v8, %v10782_v33  ;;  %v10860_v33 = vmul.f32 0.9, %v20087_v45 }
 0xcff   : > { %v10871_v4 = vadd.f32 %v10855_v3, %v10777_v9  ;;  %v14175_v40 = vpop.f32.mrb[186].mxu0  ;;  %v10859_v9 = vmul.f32 0.9, %v20096_v46 }
 0xd00   : > { %v10888_v55 = vsub.f32 %v10872_v28, %v20072_v24  ;;  %v10792_v10 = vadd.f32 %v20052_v30, %v14175_v40  ;;  %v10786_v22 = vpop.f32.mrb[187].mxu0  ;;  %v10862_v40 = vmul.f32 0.9, %v20111_v34 }
 0xd01   : > { %v10887_v25 = vsub.f32 %v10871_v4, %v20069_v29  ;;  %v10787_v31 = vadd.f32 %v20052_v30, %v10786_v22 }
 0xd02   : > { %vm10904_vm0 = vcmp.gt.f32.partialorder %v10888_v55, 1.0  ;;  %v10874_v6 = vadd.f32 %v10858_v42, %v10792_v10  ;;  %v10861_v42 = vmul.f32 0.9, %v20120_v54 }
 0xd03   : > { %v10873_v61 = vadd.f32 %v10857_v2, %v10787_v31  ;;  %v14178_v14 = vpop.f32.mrb[188].mxu0  ;;  %vm10903_vm14 = vcmp.gt.f32.partialorder %v10887_v25, 1.0  ;;  %v10920_v29 = vsel %vm10904_vm0, 1.0, %v21146_v44 }
 0xd04   : > { %v10890_v41 = vsub.f32 %v10874_v6, %v20103_v39  ;;  %v10802_v24 = vadd.f32 %v20052_v30, %v14178_v14  ;;  %v10796_v8 = vpop.f32.mrb[189].mxu0  ;;  %v10919_v58 = vsel %vm10903_vm14, 1.0, %v21146_v44 }
 0xd05   : > { %v10889_v60 = vsub.f32 %v10873_v61, %v20092_v56  ;;  %v10797_v53 = vadd.f32 %v20052_v30, %v10796_v8  ;;  %14196 = vmatprep.mubr.msk.f32.mxu0 %vm3011_vm7, %v10919_v58 }
 0xd06   : > { %v10876_v3 = vadd.f32 %v10860_v33, %v10802_v24  ;;  %14197 = vmatmul.mubr.msk.f32.vlgmr.msra.gmra.mrb[112].mxu0 %vm3011_vm7, %v10920_v29  ;;  %vm10906_vm15 = vcmp.gt.f32.partialorder %v10890_v41, 1.0  ;;  %v10863_v41 = vmul.f32 0.9, %v20142_v17 }
 0xd07   : > { %v10875_v39 = vadd.f32 %v10859_v9, %v10797_v53  ;;  %v14181_v28 = vpop.f32.mrb[190].mxu0  ;;  %vm10905_vm1 = vcmp.gt.f32.partialorder %v10889_v60, 1.0  ;;  %v10922_v22 = vsel %vm10906_vm15, 1.0, %v21146_v44  ;;  %v10865_v9 = vmul.f32 0.9, %v20164_v12 }
 0xd08   : > { %v10892_v45 = vsub.f32 %v10876_v3, %v20127_v38  ;;  %v10812_v4 = vadd.f32 %v20052_v30, %v14181_v28  ;;  %v10806_v56 = vpop.f32.mrb[191].mxu0  ;;  %v10921_v55 = vsel %vm10905_vm1, 1.0, %v21146_v44  ;;  %vm11193_vm15 = vcmp.gt.f32.partialorder %v20326_v35, 1.0 }
 0xd09   : > { %v10891_v46 = vsub.f32 %v10875_v39, %v20116_v16  ;;  %v10807_v10 = vadd.f32 %v20052_v30, %v10806_v56  ;;  %14199 = vmatprep.mubr.msk.f32.mxu0 %vm3011_vm7, %v10921_v55  ;;  %v10864_v16 = vmul.f32 0.9, %v20134_v52  ;;  %v10867_v55 = vmul.f32 0.9, %v20186_v1 }
 0xd0a   : > { %v10878_v25 = vadd.f32 %v10862_v40, %v10812_v4  ;;  %14200 = vmatmul.mubr.msk.f32.gmra.mrb[114].mxu0 %vm3011_vm7, %v10922_v22  ;;  %vm10908_vm3 = vcmp.gt.f32.partialorder %v10892_v45, 1.0  ;;  %vm11192_vm1 = vcmp.gt.f32.partialorder %v20331_v26, 1.0 }
 0xd0b   : > { %v10877_v38 = vadd.f32 %v10861_v42, %v10807_v10  ;;  %v14184_v31 = vpop.f32.mrb[192].mxu0  ;;  %vm10907_vm4 = vcmp.gt.f32.partialorder %v10891_v46, 1.0  ;;  %v10924_v24 = vsel %vm10908_vm3, 1.0, %v21146_v44  ;;  %vm11195_vm3 = vcmp.gt.f32.partialorder %v20338_v36, 1.0 }
 0xd0c   : > { %v10894_v34 = vsub.f32 %v10878_v25, %v20149_v47  ;;  %v10822_v2 = vadd.f32 %v20052_v30, %v14184_v31  ;;  %v10816_v6 = vpop.f32.mrb[193].mxu0  ;;  %v10923_v54 = vsel %vm10907_vm4, 1.0, %v21146_v44  ;;  %v21984_v31 = vld [vmem:[#allocation28_spill] sm:$0xff]  ;;  %vm11194_vm4 = vcmp.gt.f32.partialorder %v20343_v7, 1.0 }
 0xd0d   : > { %v10893_v61 = vsub.f32 %v10877_v38, %v20139_v0  ;;  %v10817_v14 = vadd.f32 %v20052_v30, %v10816_v6  ;;  %14202 = vmatprep.mubr.msk.f32.mxu0 %vm3011_vm7, %v10923_v54  ;;  %v10866_v0 = vmul.f32 0.9, %v20156_v15 }
 0xd0e   : > { %v10880_v33 = vadd.f32 %v10864_v16, %v10822_v2  ;;  %14203 = vmatmul.mubr.msk.f32.gmra.mrb[116].mxu0 %vm3011_vm7, %v10924_v24  ;;  %vm10910_vm5 = vcmp.gt.f32.partialorder %v10894_v34, 1.0  ;;  %v10869_v16 = vmul.f32 0.9, %v20208_v49 }
 0xd0f   : > { %v10879_v47 = vadd.f32 %v10863_v41, %v10817_v14  ;;  %v14187_v8 = vpop.f32.mrb[194].mxu0  ;;  %vm10909_vm6 = vcmp.gt.f32.partialorder %v10893_v61, 1.0  ;;  %v10926_v3 = vsel %vm10910_vm5, 1.0, %v21146_v44  ;;  %v21985_v41 = vld [vmem:[#allocation30_spill] sm:$0xff] }
 0xd10   : > { %v10896_v52 = vsub.f32 %v10880_v33, %v20171_v63  ;;  %v10832_v58 = vadd.f32 %v20052_v30, %v14187_v8  ;;  %v10826_v29 = vpop.f32.mrb[195].mxu0  ;;  %v10925_v17 = vsel %vm10909_vm6, 1.0, %v21146_v44  ;;  %vm11197_vm6 = vcmp.gt.f32.partialorder %v20350_v27, 1.0 }
 0xd11   : > { %v10895_v60 = vsub.f32 %v10879_v47, %v20161_v51  ;;  %v10827_v53 = vadd.f32 %v20052_v30, %v10826_v29  ;;  %14205 = vmatprep.mubr.msk.f32.mxu0 %vm3011_vm7, %v10925_v17  ;;  %v10868_v51 = vmul.f32 0.9, %v20178_v57  ;;  %v21986_v47 = vld [vmem:[#allocation6_spill] sm:$0xff]  ;;  %v21988_v29 = vld [vmem:[#allocation8_spill] sm:$0xff] }
 0xd12   : > { %v10882_v39 = vadd.f32 %v10866_v0, %v10832_v58  ;;  %14206 = vmatmul.mubr.msk.f32.gmra.mrb[118].mxu0 %vm3011_vm7, %v10926_v3  ;;  %vm10912_vm8 = vcmp.gt.f32.partialorder %v10896_v52, 1.0  ;;  %v21987_v52 = vld [vmem:[#allocation7_spill] sm:$0xff]  ;;  %v21989_v3 = vld [vmem:[#allocation9_spill] sm:$0xff] }
 0xd13   : > { %v10881_v63 = vadd.f32 %v10865_v9, %v10827_v53  ;;  %v14190_v28 = vpop.f32.mrb[196].mxu0  ;;  %vm10911_vm9 = vcmp.gt.f32.partialorder %v10895_v60, 1.0  ;;  %v10928_v46 = vsel %vm10912_vm8, 1.0, %v21146_v44  ;;  %v11161_v53 = vmul.f32 0.9, %v20326_v35  ;;  %v21992_v35 = vld [vmem:[#allocation12_spill] sm:$0xff] }
 0xd14   : > { %v10898_v15 = vsub.f32 %v10882_v39, %v20193_v13  ;;  %v10842_v45 = vadd.f32 %v20052_v30, %v14190_v28  ;;  %v10836_v4 = vpop.f32.mrb[197].mxu0  ;;  %v10927_v12 = vsel %vm10911_vm9, 1.0, %v21146_v44  ;;  %v11160_v28 = vmul.f32 0.9, %v20331_v26 }
 0xd15   : > { %v10897_v40 = vsub.f32 %v10881_v63, %v20183_v18  ;;  %v10837_v56 = vadd.f32 %v20052_v30, %v10836_v4  ;;  %14208 = vmatprep.mubr.msk.f32.mxu0 %vm3011_vm7, %v10927_v12  ;;  %v21983_v18 = vld [vmem:[#allocation23_spill] sm:$0xff]  ;;  %vm11196_vm8 = vcmp.gt.f32.partialorder %v20355_v5, 1.0 }
 0xd16   : > { %v10884_v10 = vadd.f32 %v10868_v51, %v10842_v45  ;;  %14209 = vmatmul.mubr.msk.f32.gmra.mrb[200].mxu0 %vm3011_vm7, %v10928_v46  ;;  %vm10914_vm10 = vcmp.gt.f32.partialorder %v10898_v15, 1.0  ;;  %v10870_v25 = vmul.f32 0.9, %v21983_v18  ;;  %v21990_v15 = vld [vmem:[#allocation10_spill] sm:$0xff]  ;;  %v21991_v51 = vld [vmem:[#allocation11_spill] sm:$0xff] }
 0xd17   : > { %v10883_v13 = vadd.f32 %v10867_v55, %v10837_v56  ;;  %v14193_v42 = vpop.f32.mrb[198].mxu0  ;;  %vm10913_vm11 = vcmp.gt.f32.partialorder %v10897_v40, 1.0  ;;  %v10930_v6 = vsel %vm10914_vm10, 1.0, %v21146_v44  ;;  %v11209_v56 = vsel %vm11193_vm15, 1.0, %v21146_v44 }
 0xd18   : > { %v10900_v57 = vsub.f32 %v10884_v10, %v20215_v37  ;;  %v10852_v22 = vadd.f32 %v20052_v30, %v14193_v42  ;;  %v10846_v38 = vpop.f32.mrb[199].mxu0  ;;  %v10929_v1 = vsel %vm10913_vm11, 1.0, %v21146_v44  ;;  %v11208_v10 = vsel %vm11192_vm1, 1.0, %v21146_v44 }
 0xd19   : > { %v10899_v34 = vsub.f32 %v10883_v13, %v21984_v31  ;;  %v10847_v2 = vadd.f32 %v20052_v30, %v10846_v38  ;;  %14211 = vmatprep.mubr.msk.f32.mxu0 %vm3011_vm7, %v10929_v1  ;;  %v11163_v42 = vmul.f32 0.9, %v20338_v36  ;;  %v11162_v1 = vmul.f32 0.9, %v20343_v7 }
 0xd1a   : > { %v10886_v54 = vadd.f32 %v10870_v25, %v10852_v22  ;;  %14212 = vmatmul.mubr.msk.f32.gmra.mrb[202].mxu0 %vm3011_vm7, %v10930_v6  ;;  %vm10916_vm12 = vcmp.gt.f32.partialorder %v10900_v57, 1.0  ;;  %v21993_v22 = vld [vmem:[#allocation13_spill] sm:$0xff]  ;;  %vm11199_vm11 = vcmp.gt.f32.partialorder %v20362_v62, 1.0  ;;  %vm11200_vm15 = vcmp.gt.f32.partialorder %v20379_v48, 1.0 }
 0xd1b   : > { %v10885_v37 = vadd.f32 %v10869_v16, %v10847_v2  ;;  %vm10915_vm13 = vcmp.gt.f32.partialorder %v10899_v34, 1.0  ;;  %v10932_v30 = vsel %vm10916_vm12, 1.0, %v21146_v44  ;;  %v11211_v34 = vsel %vm11195_vm3, 1.0, %v21146_v44 }
 0xd1c   : > { %v10902_v61 = vsub.f32 %v10886_v54, %v20233_v50  ;;  %v10931_v14 = vsel %vm10915_vm13, 1.0, %v21146_v44  ;;  %v20496_v50 = vld [vmem:[%s20679_s1 + $0x8a] ss:$0 sm:$0xff]  ;;  %v11210_v2 = vsel %vm11194_vm4, 1.0, %v21146_v44  ;;  %vm11198_vm12 = vcmp.gt.f32.partialorder %v20367_v59, 1.0 }
 0xd1d   : > { %v10901_v24 = vsub.f32 %v10885_v37, %v21985_v41  ;;  %14214 = vmatprep.mubr.msk.f32.mxu0 %vm3011_vm7, %v10931_v14  ;;  %v20500_v8 = vadd.f32 %v20496_v50, %v21986_v47  ;;  %v20504_v58 = vadd.f32 %v20496_v50, %v21987_v52  ;;  %v20508_v17 = vadd.f32 %v20496_v50, %v21988_v29 }
 0xd1e   : > { %14215 = vmatmul.mubr.msk.f32.gmra.mrb[204].mxu0 %vm3011_vm7, %v10932_v30  ;;  %vm10918_vm0 = vcmp.gt.f32.partialorder %v10902_v61, 1.0  ;;  %v20515_v39 = vadd.f32 %v20496_v50, %v21989_v3  ;;  %v20522_v45 = vadd.f32 %v20496_v50, %v21990_v15  ;;  %v20526_v4 = vadd.f32 %v20496_v50, %v21991_v51 }
 0xd1f   : > { %vm10917_vm14 = vcmp.gt.f32.partialorder %v10901_v24, 1.0  ;;  %v10934_v33 = vsel %vm10918_vm0, 1.0, %v21146_v44  ;;  %v20530_v12 = vadd.f32 %v20496_v50, %v21992_v35  ;;  %v20540_v18 = vadd.f32 %v20496_v50, %v21993_v22 }
 0xd20   : > { %v10933_v49 = vsel %vm10917_vm14, 1.0, %v21146_v44  ;;  %v11165_v37 = vmul.f32 0.9, %v20350_v27  ;;  %v11164_v30 = vmul.f32 0.9, %v20355_v5  ;;  %v11212_v47 = vsel %vm11196_vm8, 1.0, %v21146_v44 }
 0xd21   : > { %14217 = vmatprep.mubr.msk.f32.mxu0 %vm3011_vm7, %v10933_v49  ;;  %v11167_v29 = vmul.f32 0.9, %v20362_v62  ;;  %v11215_v51 = vsel %vm11199_vm11, 1.0, %v21146_v44  ;;  %v11214_v35 = vsel %vm11198_vm12, 1.0, %v21146_v44  ;;  %vm11201_vm14 = vcmp.gt.f32.partialorder %v20374_v32, 1.0 }
 0xd22   : > { %14218 = vmatmul.mubr.msk.f32.gmra.mrb[206].mxu0 %vm3011_vm7, %v10934_v33  ;;  %v11213_v33 = vsel %vm11197_vm6, 1.0, %v21146_v44  ;;  %v11217_v22 = vsel %vm11201_vm14, 1.0, %v21146_v44  ;;  %vm11203_vm4 = vcmp.gt.f32.partialorder %v20386_v43, 1.0  ;;  %vm11206_vm14 = vcmp.gt.f32.partialorder %v20413_v20, 1.0 }
 0xdd9   : > { %v14198_v0 = vpop.f32.mrb[112].mxu0 }
 0xdda   : > { %v14538_v60 = vadd.f32 %v20496_v50, %v14198_v0  ;;  %v11065_v9 = vpop.f32.mrb[113].mxu0 }
 0xddb   : > { %v14539_v63 = vadd.f32 %v20496_v50, %v11065_v9 }
 0xddc   : > { %v11177_v40 = vadd.f32 %v14538_v60, %v11161_v53 }
 0xddd   : > { %v11176_v55 = vadd.f32 %v14539_v63, %v11160_v28  ;;  %v14201_v46 = vpop.f32.mrb[114].mxu0  ;;  %v11166_v28 = vmul.f32 0.9, %v20367_v59 }
 0xdde   : > { %v11225_v26 = vsub.f32 %v11177_v40, %v11209_v56  ;;  %v14540_v13 = vadd.f32 %v20496_v50, %v14201_v46  ;;  %v11075_v57 = vpop.f32.mrb[115].mxu0  ;;  %v11169_v56 = vmul.f32 0.9, %v20374_v32 }
 0xddf   : > { %v11224_v25 = vsub.f32 %v11176_v55, %v11208_v10  ;;  %v14541_v38 = vadd.f32 %v20496_v50, %v11075_v57 }
 0xde0   : > { %vm11241_vm5 = vcmp.gt.f32.partialorder %v11225_v26, 1.0  ;;  %v11179_v31 = vadd.f32 %v14540_v13, %v11163_v42  ;;  %v11168_v42 = vmul.f32 0.9, %v20379_v48 }
 0xde1   : > { %v11178_v16 = vadd.f32 %v14541_v38, %v11162_v1  ;;  %v14204_v6 = vpop.f32.mrb[116].mxu0  ;;  %vm11240_vm9 = vcmp.gt.f32.partialorder %v11224_v25, 1.0  ;;  %v11257_v14 = vsel %vm11241_vm5, 1.0, %v21146_v44  ;;  %vm11202_vm5 = vcmp.gt.f32.partialorder %v20391_v21, 1.0 }
 0xde2   : > { %v11227_v36 = vsub.f32 %v11179_v31, %v11211_v34  ;;  %v14542_v54 = vadd.f32 %v20496_v50, %v14204_v6  ;;  %v11085_v61 = vpop.f32.mrb[117].mxu0  ;;  %v11256_v7 = vsel %vm11240_vm9, 1.0, %v21146_v44  ;;  %v11171_v38 = vmul.f32 0.9, %v20386_v43 }
 0xde3   : > { %v11226_v41 = vsub.f32 %v11178_v16, %v11210_v2  ;;  %v14543_v24 = vadd.f32 %v20496_v50, %v11085_v61  ;;  %14228 = vmatprep.mubr.msk.f32.mxu1 %vm2480_vm2, %v11256_v7  ;;  %v11170_v6 = vmul.f32 0.9, %v20391_v21  ;;  %vm11205_vm9 = vcmp.gt.f32.partialorder %v20397_v19, 1.0 }
 0xde4   : > { %vm11243_vm10 = vcmp.gt.f32.partialorder %v11227_v36, 1.0  ;;  %v11181_v49 = vadd.f32 %v14542_v54, %v11165_v37  ;;  %14229 = vmatmul.mubr.msk.f32.vlgmr.msra.gmra.mrb[64].mxu1 %vm2480_vm2, %v11257_v14  ;;  %v11219_v54 = vsel %vm11203_vm4, 1.0, %v21146_v44  ;;  %v11173_v61 = vmul.f32 0.9, %v20397_v19 }
 0xde5   : > { %v11180_v27 = vadd.f32 %v14543_v24, %v11164_v30  ;;  %v14207_v52 = vpop.f32.mrb[118].mxu0  ;;  %vm11242_vm13 = vcmp.gt.f32.partialorder %v11226_v41, 1.0  ;;  %v11259_v9 = vsel %vm11243_vm10, 1.0, %v21146_v44  ;;  %vm11204_vm10 = vcmp.gt.f32.partialorder %v20402_v23, 1.0 }
 0xde6   : > { %v11229_v0 = vsub.f32 %v11181_v49, %v11213_v33  ;;  %v14544_v5 = vadd.f32 %v20496_v50, %v14207_v52  ;;  %v11095_v60 = vpop.f32.mrb[119].mxu0  ;;  %v11258_v53 = vsel %vm11242_vm13, 1.0, %v21146_v44  ;;  %v11172_v49 = vmul.f32 0.9, %v20402_v23 }
 0xde7   : > { %v11228_v3 = vsub.f32 %v11180_v27, %v11212_v47  ;;  %v14545_v63 = vadd.f32 %v20496_v50, %v11095_v60  ;;  %14231 = vmatprep.mubr.msk.f32.mxu1 %vm2480_vm2, %v11258_v53  ;;  %v11221_v47 = vsel %vm11205_vm9, 1.0, %v21146_v44  ;;  %v11175_v52 = vmul.f32 0.9, %v20408_v11 }
 0xde8   : > { %vm11245_vm0 = vcmp.gt.f32.partialorder %v11229_v0, 1.0  ;;  %v11183_v15 = vadd.f32 %v14544_v5, %v11167_v29  ;;  %14232 = vmatmul.mubr.msk.f32.gmra.mrb[66].mxu1 %vm2480_vm2, %v11259_v9  ;;  %vm11207_vm13 = vcmp.gt.f32.partialorder %v20408_v11, 1.0  ;;  %v11174_v5 = vmul.f32 0.9, %v20413_v20 }
 0xde9   : > { %v11182_v62 = vadd.f32 %v14545_v63, %v11166_v28  ;;  %v14210_v40 = vpop.f32.mrb[200].mxu0  ;;  %vm11244_vm1 = vcmp.gt.f32.partialorder %v11228_v3, 1.0  ;;  %v11261_v26 = vsel %vm11245_vm0, 1.0, %v21146_v44  ;;  %v11222_v28 = vsel %vm11206_vm14, 1.0, %v21146_v44 }
 0xdea   : > { %v11231_v50 = vsub.f32 %v11183_v15, %v11215_v51  ;;  %v11153_v59 = vadd.f32 %v14210_v40, %v20500_v8  ;;  %v11105_v55 = vpop.f32.mrb[201].mxu0  ;;  %v11260_v46 = vsel %vm11244_vm1, 1.0, %v21146_v44  ;;  %v11216_v8 = vsel %vm11200_vm15, 1.0, %v21146_v44 }
 0xdeb   : > { %v11230_v10 = vsub.f32 %v11182_v62, %v11214_v35  ;;  %v11152_v13 = vadd.f32 %v11105_v55, %v20504_v58  ;;  %14234 = vmatprep.mubr.msk.f32.mxu1 %vm2480_vm2, %v11260_v46  ;;  %v11558_v62 = vld [vmem:[%s20679_s1 + $0x8c] ss:$0 sm:$0xff] }
 0xdec   : > { %vm11247_vm3 = vcmp.gt.f32.partialorder %v11231_v50, 1.0  ;;  %v11185_v57 = vadd.f32 %v11169_v56, %v11153_v59  ;;  %14235 = vmatmul.mubr.msk.f32.gmra.mrb[68].mxu1 %vm2480_vm2, %v11261_v26 }
 0xded   : > { %v11184_v32 = vadd.f32 %v11168_v42, %v11152_v13  ;;  %v14213_v25 = vpop.f32.mrb[202].mxu0  ;;  %vm11246_vm6 = vcmp.gt.f32.partialorder %v11230_v10, 1.0  ;;  %v11263_v34 = vsel %vm11247_vm3, 1.0, %v21146_v44 }
 0xdee   : > { %v11233_v58 = vsub.f32 %v11185_v57, %v11217_v22  ;;  %v11155_v48 = vadd.f32 %v14213_v25, %v20508_v17  ;;  %v11115_v1 = vpop.f32.mrb[203].mxu0  ;;  %v11262_v31 = vsel %vm11246_vm6, 1.0, %v21146_v44  ;;  %v11218_v17 = vsel %vm11202_vm5, 1.0, %v21146_v44 }
 0xdef   : > { %v11232_v2 = vsub.f32 %v11184_v32, %v11216_v8  ;;  %v11154_v16 = vadd.f32 %v11115_v1, %v20515_v39  ;;  %14237 = vmatprep.mubr.msk.f32.mxu1 %vm2480_vm2, %v11262_v31 }
 0xdf0   : > { %vm11249_vm8 = vcmp.gt.f32.partialorder %v11233_v58, 1.0  ;;  %v11187_v36 = vadd.f32 %v11171_v38, %v11155_v48  ;;  %14238 = vmatmul.mubr.msk.f32.gmra.mrb[70].mxu1 %vm2480_vm2, %v11263_v34 }
 0xdf1   : > { %v11186_v43 = vadd.f32 %v11170_v6, %v11154_v16  ;;  %v14216_v37 = vpop.f32.mrb[204].mxu0  ;;  %vm11248_vm11 = vcmp.gt.f32.partialorder %v11232_v2, 1.0  ;;  %v11265_v41 = vsel %vm11249_vm8, 1.0, %v21146_v44 }
 0xdf2   : > { %v11235_v39 = vsub.f32 %v11187_v36, %v11219_v54  ;;  %v11157_v21 = vadd.f32 %v14216_v37, %v20522_v45  ;;  %v11125_v7 = vpop.f32.mrb[205].mxu0  ;;  %v11264_v14 = vsel %vm11248_vm11, 1.0, %v21146_v44  ;;  %v11220_v45 = vsel %vm11204_vm10, 1.0, %v21146_v44 }
 0xdf3   : > { %v11234_v24 = vsub.f32 %v11186_v43, %v11218_v17  ;;  %v11156_v30 = vadd.f32 %v11125_v7, %v20526_v4  ;;  %14240 = vmatprep.mubr.msk.f32.mxu1 %vm2480_vm2, %v11264_v14 }
 0xdf4   : > { %vm11251_vm12 = vcmp.gt.f32.partialorder %v11235_v39, 1.0  ;;  %v11189_v33 = vadd.f32 %v11173_v61, %v11157_v21  ;;  %14241 = vmatmul.mubr.msk.f32.gmra.mrb[72].mxu1 %vm2480_vm2, %v11265_v41 }
 0xdf5   : > { %v11188_v19 = vadd.f32 %v11172_v49, %v11156_v30  ;;  %v14219_v27 = vpop.f32.mrb[206].mxu0  ;;  %vm11250_vm0 = vcmp.gt.f32.partialorder %v11234_v24, 1.0  ;;  %v11267_v60 = vsel %vm11251_vm12, 1.0, %v21146_v44 }
 0xdf6   : > { %v11237_v4 = vsub.f32 %v11189_v33, %v11221_v47  ;;  %v11159_v23 = vadd.f32 %v14219_v27, %v20530_v12  ;;  %v11135_v0 = vpop.f32.mrb[207].mxu0  ;;  %v11266_v29 = vsel %vm11250_vm0, 1.0, %v21146_v44  ;;  %v11223_v12 = vsel %vm11207_vm13, 1.0, %v21146_v44 }
 0xdf7   : > { %v11236_v53 = vsub.f32 %v11188_v19, %v11220_v45  ;;  %v11158_v9 = vadd.f32 %v11135_v0, %v20540_v18  ;;  %14243 = vmatprep.mubr.msk.f32.mxu1 %vm2480_vm2, %v11266_v29 }
 0xdf8   : > { %vm11253_vm15 = vcmp.gt.f32.partialorder %v11237_v4, 1.0  ;;  %v11191_v11 = vadd.f32 %v11175_v52, %v11159_v23  ;;  %14244 = vmatmul.mubr.msk.f32.gmra.mrb[74].mxu1 %vm2480_vm2, %v11267_v60 }
 0xdf9   : > { %v11190_v3 = vadd.f32 %v11174_v5, %v11158_v9  ;;  %vm11252_vm1 = vcmp.gt.f32.partialorder %v11236_v53, 1.0  ;;  %v11269_v18 = vsel %vm11253_vm15, 1.0, %v21146_v44 }
 0xdfa   : > { %v11239_v63 = vsub.f32 %v11191_v11, %v11223_v12  ;;  %v11268_v15 = vsel %vm11252_vm1, 1.0, %v21146_v44 }
 0xdfb   : > { %v11238_v51 = vsub.f32 %v11190_v3, %v11222_v28  ;;  %14246 = vmatprep.mubr.msk.f32.mxu1 %vm2480_vm2, %v11268_v15 }
 0xdfc   : > { %vm11255_vm3 = vcmp.gt.f32.partialorder %v11239_v63, 1.0  ;;  %14247 = vmatmul.mubr.msk.f32.gmra.mrb[76].mxu1 %vm2480_vm2, %v11269_v18 }
 0xdfd   : > { %vm11254_vm4 = vcmp.gt.f32.partialorder %v11238_v51, 1.0  ;;  %v11271_v35 = vsel %vm11255_vm3, 1.0, %v21146_v44 }
 0xdfe   : > { %v11270_v20 = vsel %vm11254_vm4, 1.0, %v21146_v44 }
 0xdff   : > { %14249 = vmatprep.mubr.msk.f32.mxu1 %vm2480_vm2, %v11270_v20 }
 0xe00   : > { %14250 = vmatmul.mubr.msk.f32.gmra.mrb[78].mxu1 %vm2480_vm2, %v11271_v35 }
 0xeb7   : > { %v14230_v44 = vpop.f32.mrb[64].mxu1 }
 0xeb8   : > { %v11392_v40 = vadd.f32 %v14230_v44, %v11558_v62  ;;  %v11386_v50 = vpop.f32.mrb[65].mxu1 }
 0xeb9   : > { %v11387_v59 = vadd.f32 %v11558_v62, %v11386_v50 }
 0xeba   : > { %11466 = vst.msk [vmem:[%s20634_s19 + $0x8] sm:$0xff] %vm3011_vm7, %v11392_v40 }
 0xebb   : > { %11465 = vst.msk [vmem:[%s20634_s19] sm:$0xff] %vm3011_vm7, %v11387_v59  ;;  %v14233_v56 = vpop.f32.mrb[66].mxu1 }
 0xebc   : > { %v11402_v55 = vadd.f32 %v14233_v56, %v11558_v62  ;;  %v11396_v46 = vpop.f32.mrb[67].mxu1 }
 0xebd   : > { %v11397_v26 = vadd.f32 %v11558_v62, %v11396_v46 }
 0xebe   : > { %11468 = vst.msk [vmem:[%s20634_s19 + $0x18] sm:$0xff] %vm3011_vm7, %v11402_v55 }
 0xebf   : > { %11467 = vst.msk [vmem:[%s20634_s19 + $0x10] sm:$0xff] %vm3011_vm7, %v11397_v26  ;;  %v14236_v10 = vpop.f32.mrb[68].mxu1 }
 0xec0   : > { %v11412_v13 = vadd.f32 %v14236_v10, %v11558_v62  ;;  %v11406_v42 = vpop.f32.mrb[69].mxu1 }
 0xec1   : > { %v11407_v57 = vadd.f32 %v11558_v62, %v11406_v42 }
 0xec2   : > { %11470 = vst.msk [vmem:[%s20634_s19 + $0x28] sm:$0xff] %vm3011_vm7, %v11412_v13 }
 0xec3   : > { %11469 = vst.msk [vmem:[%s20634_s19 + $0x20] sm:$0xff] %vm3011_vm7, %v11407_v57  ;;  %v14239_v22 = vpop.f32.mrb[70].mxu1 }
 0xec4   : > { %v11422_v8 = vadd.f32 %v14239_v22, %v11558_v62  ;;  %v11416_v32 = vpop.f32.mrb[71].mxu1 }
 0xec5   : > { %v11417_v25 = vadd.f32 %v11558_v62, %v11416_v32 }
 0xec6   : > { %11472 = vst.msk [vmem:[%s20634_s19 + $0x38] sm:$0xff] %vm3011_vm7, %v11422_v8 }
 0xec7   : > { %11471 = vst.msk [vmem:[%s20634_s19 + $0x30] sm:$0xff] %vm3011_vm7, %v11417_v25  ;;  %v14242_v58 = vpop.f32.mrb[72].mxu1 }
 0xec8   : > { %v11432_v48 = vadd.f32 %v14242_v58, %v11558_v62  ;;  %v11426_v38 = vpop.f32.mrb[73].mxu1 }
 0xec9   : > { %v11427_v1 = vadd.f32 %v11558_v62, %v11426_v38 }
 0xeca   : > { %11474 = vst.msk [vmem:[%s20634_s19 + $0x48] sm:$0xff] %vm3011_vm7, %v11432_v48 }
 0xecb   : > { %11473 = vst.msk [vmem:[%s20634_s19 + $0x40] sm:$0xff] %vm3011_vm7, %v11427_v1  ;;  %v14245_v31 = vpop.f32.mrb[74].mxu1 }
 0xecc   : > { %v11442_v34 = vadd.f32 %v14245_v31, %v11558_v62  ;;  %v11436_v2 = vpop.f32.mrb[75].mxu1 }
 0xecd   : > { %v11437_v16 = vadd.f32 %v11558_v62, %v11436_v2 }
 0xece   : > { %11476 = vst.msk [vmem:[%s20634_s19 + $0x58] sm:$0xff] %vm3011_vm7, %v11442_v34 }
 0xecf   : > { %11475 = vst.msk [vmem:[%s20634_s19 + $0x50] sm:$0xff] %vm3011_vm7, %v11437_v16  ;;  %v14248_v6 = vpop.f32.mrb[76].mxu1 }
 0xed0   : > { %v11452_v36 = vadd.f32 %v14248_v6, %v11558_v62  ;;  %v11446_v54 = vpop.f32.mrb[77].mxu1 }
 0xed1   : > { %v11447_v17 = vadd.f32 %v11558_v62, %v11446_v54 }
 0xed2   : > { %11478 = vst.msk [vmem:[%s20634_s19 + $0x68] sm:$0xff] %vm3011_vm7, %v11452_v36 }
 0xed3   : > { %11477 = vst.msk [vmem:[%s20634_s19 + $0x60] sm:$0xff] %vm3011_vm7, %v11447_v17  ;;  %v14251_v43 = vpop.f32.mrb[78].mxu1 }
 0xed4   : > { %v11462_v37 = vadd.f32 %v14251_v43, %v11558_v62  ;;  %v11456_v39 = vpop.f32.mrb[79].mxu1 }
 0xed5   : > { %v11457_v21 = vadd.f32 %v11558_v62, %v11456_v39 }
 0xed6   : > { %11480 = vst.msk [vmem:[%s20634_s19 + $0x78] sm:$0xff] %vm3011_vm7, %v11462_v37 }
 0xed7   : > { %11479 = vst.msk [vmem:[%s20634_s19 + $0x70] sm:$0xff] %vm3011_vm7, %v11457_v21 }
 0xed8 PF: > { %p9_p9 = scmp.ge.s32.totalorder %s14810_s13, 4   ;;  %s21994_s9 = smov %s14770_s10 }
 0xed9   : > { %s21995_s10 = smov %s14819_s16  ;;  %s21996_s11 = smov %s14810_s13 }
 0xeda   :  { %11 = sbr.rel (!%p9_p9) target bundleno = 2 (0x2), region = 108 }

</bundles_post_ra>
